<compile_context>
chip_gen: v7x
topology: tpu7x:2x2x1
jax: 0.10.0
libtpu: 0.0.40
codegen_flags: <defaults>
</compile_context>

<pallas_src>
import jax
import jax.numpy as jnp
import numpy as np
from jax import lax
from jax.experimental import pallas as pl
from jax.experimental.pallas import tpu as pltpu

B = 2      # batch_size
S = 8      # max_num_items (padded sequence length == pointer steps)
H = 32     # hid_dim
NEG = 10000000000.0
BN_EPS = 1e-5


def _sigmoid(x):
    return 1.0 / (1.0 + jnp.exp(-x))


def pointer_forward_kernel(
    # ---- inputs -----------------------------------------------------------
    lens_ref,                          # VMEM (B,1) int32   sequence lengths
    x_ref,                             # VMEM (B,S) f32     item values (batch-major)
    gum_ref,                           # VMEM (S,B,S) f32   pre-drawn Gumbel noise
    embw_ref, gamma_ref, beta_ref,     # (1,H) embedding W^T, BN gamma, BN beta
    ewih_ref, ewhh_ref, eb_ref,        # (H,4H),(H,4H),(1,4H) encoder LSTM
    dwih_ref, dwhh_ref, db_ref,        # (1,4H),(H,4H),(1,4H) decoder LSTM
    w1cat_ref, w2g_ref, vg_ref, bg_ref,  # (H,2H) fused W1_g|W1, (H,H),(1,H),(1,1)
    w2_ref, v_ref, bv_ref,             # (H,H),(1,H),(1,1) pointer attn
    # ---- outputs ----------------------------------------------------------
    logps_ref,                         # (B,S) f32  masked log-probs of actions
    actions_ref):                      # (B,S) int32 selected items (-1 = pad)

    lens = lens_ref[...]                                  # [B,1] int32
    x = x_ref[...]                                        # [B,S]
    gum = gum_ref[...]                                    # [S,B,S]

    # ---------------- embedding + BatchNorm1d (training-mode batch stats) ---
    # (stats over all B*S padded positions, matching the PyTorch reference
    #  which applies BN to the padded tensor before packing)
    emb = x[:, :, None] * embw_ref[...][None, :, :]       # [B,S,H]
    mean = jnp.mean(emb, axis=(0, 1), keepdims=True)
    var = jnp.mean((emb - mean) ** 2, axis=(0, 1), keepdims=True)
    norm = (emb - mean) * lax.rsqrt(var + BN_EPS)
    norm = norm * gamma_ref[...][None, :, :] + beta_ref[...][None, :, :]

    # hoisted input-to-hidden projection for ALL timesteps: one matmul,
    # kept live as a value (no padded per-step scratch reads)
    xg = (jnp.dot(norm.reshape(B * S, H), ewih_ref[...],
                  preferred_element_type=jnp.float32)
          + eb_ref[...]).reshape(B, S, 4 * H)

    # ---------------- encoder LSTM recurrence (pack_padded emulation) -------
    ewhh = ewhh_ref[...]
    h = jnp.zeros((B, H), jnp.float32)
    c = jnp.zeros((B, H), jnp.float32)
    eo_cols = []
    for t in range(S):                                    # fully unrolled, static t
        gates = xg[:, t, :] + jnp.dot(h, ewhh, preferred_element_type=jnp.float32)
        sg_all = _sigmoid(gates)                          # full-width [B,4H]
        th_all = jnp.tanh(gates)                          # full-width [B,4H]
        i_g = sg_all[:, 0:H]
        f_g = sg_all[:, H:2 * H]
        g_g = th_all[:, 2 * H:3 * H]
        o_g = sg_all[:, 3 * H:4 * H]
        c_new = f_g * c + i_g * g_g
        h_new = o_g * jnp.tanh(c_new)
        m = (lens > t).astype(jnp.float32)                # [B,1]; 1 while valid
        h = m * h_new + (1.0 - m) * h                     # freeze past length
        c = m * c_new + (1.0 - m) * c
        eo_cols.append(m * h_new)                         # padded steps -> 0
    enc = jnp.stack(eo_cols, axis=1)                      # [B,S,H] batch-major

    # column iota / length masks built ONCE, reused by every decode step
    col_i = lax.broadcasted_iota(jnp.int32, (B, S), 1)
    len_mask_i = (col_i < lens).astype(jnp.int32)
    len_mask_f = len_mask_i.astype(jnp.float32)

    # ---------------- fused step-invariant attention projections ------------
    proj = jnp.dot(enc.reshape(B * S, H), w1cat_ref[...],
                   preferred_element_type=jnp.float32)    # [B*S, 2H]
    w1_e_g = proj[:, 0:H].reshape(B, S, H)
    w1_e = proj[:, H:2 * H].reshape(B, S, H)

    dwih = dwih_ref[...]
    dwhh = dwhh_ref[...]
    db = db_ref[...]
    w2g = w2g_ref[...]
    vg = vg_ref[...]
    bg = bg_ref[...]
    w2 = w2_ref[...]
    v = v_ref[...]
    bv = bv_ref[...]

    # ---------------- fused decoder + attention + sampling pointer loop -----
    h_d = h
    c_d = c
    pmask = len_mask_f
    dec_in = jnp.full((B, 1), -1.0, jnp.float32)          # dec_input = -1
    act_cols = []
    lp_cols = []
    for i in range(S):                                    # fully unrolled, static i
        # decoder LSTM cell, input size 1 (broadcast instead of K=1 matmul)
        gates = (dec_in * dwih
                 + jnp.dot(h_d, dwhh, preferred_element_type=jnp.float32) + db)
        sg_all = _sigmoid(gates)
        th_all = jnp.tanh(gates)
        i_g = sg_all[:, 0:H]
        f_g = sg_all[:, H:2 * H]
        g_g = th_all[:, 2 * H:3 * H]
        o_g = sg_all[:, 3 * H:4 * H]
        c_d = f_g * c_d + i_g * g_g
        h_d = o_g * jnp.tanh(c_d)

        # --- glimpse pass (masked softmax) ---
        w2_d_g = jnp.dot(h_d, w2g, preferred_element_type=jnp.float32)     # [B,H]
        tanh_g = jnp.tanh(w1_e_g + w2_d_g[:, None, :])                     # [B,S,H]
        scores_g = jnp.sum(tanh_g * vg[None, :, :], axis=-1) + bg          # [B,S]
        sgm = scores_g - NEG * (1.0 - pmask)
        sgm = sgm - jnp.max(sgm, axis=1, keepdims=True)
        eg = jnp.exp(sgm)
        attn_g = eg / jnp.sum(eg, axis=1, keepdims=True)
        glimpse = jnp.sum(attn_g[:, :, None] * enc, axis=1) + h_d          # [B,H]

        # --- pointer pass (masked log-softmax) ---
        w2_d = jnp.dot(glimpse, w2, preferred_element_type=jnp.float32)
        tanh_o = jnp.tanh(w1_e + w2_d[:, None, :])
        scores = jnp.sum(tanh_o * v[None, :, :], axis=-1) + bv             # [B,S]
        so = scores - NEG * (1.0 - pmask)
        so = so - jnp.max(so, axis=1, keepdims=True)
        logp = so - jnp.log(jnp.sum(jnp.exp(so), axis=1, keepdims=True))   # [B,S]

        # --- Gumbel-max sampling == torch.multinomial(probs, 1) -------------
        z = logp + gum[i]                                                  # [B,S]
        is_max = z >= jnp.max(z, axis=1, keepdims=True)
        sel_i = jnp.min(jnp.where(is_max, col_i, S), axis=1, keepdims=True)  # [B,1]
        sel_onehot = col_i == sel_i                                        # [B,S]

        # pointer_mask.scatter_(1, selected, 0)
        pmask = jnp.where(sel_onehot, 0.0, pmask)
        # gather(log_probs, 1, selected)
        lp_sel = jnp.sum(jnp.where(sel_onehot, logp, 0.0), axis=1, keepdims=True)

        act_cols.append(sel_i)
        lp_cols.append(lp_sel)
        dec_in = sel_i.astype(jnp.float32)                # next decoder input

    act = jnp.concatenate(act_cols, axis=1)               # [B,S] int32
    lp = jnp.concatenate(lp_cols, axis=1)                 # [B,S] f32

    # final masking (== logps * len_mask_device ; actions * len_mask - (1-len_mask))
    logps_ref[...] = lp * len_mask_f
    actions_ref[...] = act * len_mask_i + (len_mask_i - 1)


@jax.jit
def actor_pointer_forward(params, states_batch, states_lens, len_mask,
                          len_mask_device, rng_key):
    # len_mask / len_mask_device are re-derived in-kernel from states_lens
    # (identical by construction); kept in the signature for API parity.
    del len_mask, len_mask_device
    x_bs = states_batch[..., 0]                               # [B,S] batch-major
    lens_i = states_lens.reshape(B, 1).astype(jnp.int32)      # [B,1]
    # Pre-draw all Gumbel noise (one per decode step / item) outside the kernel.
    gum = jax.random.gumbel(rng_key, (S, B, S), dtype=jnp.float32)
    # Fused attention projection matrix W1_g | W1 -> [H, 2H]
    w1cat = jnp.concatenate([params['W1g'], params['W1']], axis=1)

    logps, actions = pl.pallas_call(
        pointer_forward_kernel,
        out_shape=(jax.ShapeDtypeStruct((B, S), jnp.float32),
                   jax.ShapeDtypeStruct((B, S), jnp.int32)),
        in_specs=[pl.BlockSpec(memory_space=pltpu.MemorySpace.VMEM)] * 19,
        out_specs=(pl.BlockSpec(memory_space=pltpu.MemorySpace.VMEM),
                   pl.BlockSpec(memory_space=pltpu.MemorySpace.VMEM)),
    )(lens_i, x_bs, gum,
      params['emb_w'], params['bn_gamma'], params['bn_beta'],
      params['enc_wih'], params['enc_whh'], params['enc_b'],
      params['dec_wih'], params['dec_whh'], params['dec_b'],
      w1cat, params['W2g'], params['Vg'], params['bg'],
      params['W2'], params['V'], params['bV'])
    return logps, actions


def init_params(key):
    ks = jax.random.split(key, 16)

    def rn(k, shape, scale=0.1):
        return scale * jax.random.normal(k, shape, dtype=jnp.float32)

    p = {}
    p['emb_w'] = rn(ks[0], (1, H))              # Linear(1,H,bias=False) weight^T
    p['bn_gamma'] = jnp.ones((1, H), jnp.float32)
    p['bn_beta'] = jnp.zeros((1, H), jnp.float32)
    p['enc_wih'] = rn(ks[1], (H, 4 * H))        # LSTM weight_ih^T
    p['enc_whh'] = rn(ks[2], (H, 4 * H))        # LSTM weight_hh^T
    p['enc_b'] = rn(ks[3], (1, 4 * H))          # bias_ih + bias_hh
    p['dec_wih'] = rn(ks[4], (1, 4 * H))
    p['dec_whh'] = rn(ks[5], (H, 4 * H))
    p['dec_b'] = rn(ks[6], (1, 4 * H))
    p['W1g'] = rn(ks[7], (H, H))
    p['W2g'] = rn(ks[8], (H, H))
    p['Vg'] = rn(ks[9], (1, H))                 # V_g weight (row vector)
    p['bg'] = rn(ks[10], (1, 1))
    p['W1'] = rn(ks[11], (H, H))
    p['W2'] = rn(ks[12], (H, H))
    p['V'] = rn(ks[13], (1, H))
    p['bV'] = rn(ks[14], (1, 1))
    return p


if __name__ == "__main__":
    root = jax.random.PRNGKey(0)
    kp, kx, kn = jax.random.split(root, 3)
    params = init_params(kp)

    states_batch = jax.random.uniform(kx, (B, S, 1), dtype=jnp.float32)
    states_lens = jnp.array([8, 5], dtype=jnp.int32)
    idx = jnp.arange(S)[None, :]
    len_mask = (idx < states_lens[:, None]).astype(jnp.int32)       # [B, S]
    len_mask_device = len_mask.astype(jnp.float32)                  # [B, S]

    actions_log_probs, actions_seq = actor_pointer_forward(
        params, states_batch, states_lens, len_mask, len_mask_device, kn)
    jax.block_until_ready((actions_log_probs, actions_seq))

    a = np.asarray(actions_seq)
    lp = np.asarray(actions_log_probs)
    assert a.shape == (B, S) and lp.shape == (B, S)
    assert np.all(np.isfinite(lp)) and np.all(lp <= 1e-5)
    # padded steps masked out: action -1, log-prob 0
    assert np.all(a[1, 5:] == -1) and np.all(lp[1, 5:] == 0.0)
    # pointer property: valid selections are distinct valid indices
    assert sorted(a[0].tolist()) == list(range(S))
    assert sorted(a[1, :5].tolist()) == list(range(5))
    print("KERNEL_OK")
</pallas_src>

<mosaic_0001>
module attributes {stable_mosaic.version = 11 : i64} {
  func.func @pointer_forward_kernel(%arg0: memref<2x1xi32, #tpu.memory_space<vmem>>, %arg1: memref<2x8xf32, #tpu.memory_space<vmem>>, %arg2: memref<8x2x8xf32, #tpu.memory_space<vmem>>, %arg3: memref<1x32xf32, #tpu.memory_space<vmem>>, %arg4: memref<1x32xf32, #tpu.memory_space<vmem>>, %arg5: memref<1x32xf32, #tpu.memory_space<vmem>>, %arg6: memref<32x128xf32, #tpu.memory_space<vmem>>, %arg7: memref<32x128xf32, #tpu.memory_space<vmem>>, %arg8: memref<1x128xf32, #tpu.memory_space<vmem>>, %arg9: memref<1x128xf32, #tpu.memory_space<vmem>>, %arg10: memref<32x128xf32, #tpu.memory_space<vmem>>, %arg11: memref<1x128xf32, #tpu.memory_space<vmem>>, %arg12: memref<32x64xf32, #tpu.memory_space<vmem>>, %arg13: memref<32x32xf32, #tpu.memory_space<vmem>>, %arg14: memref<1x32xf32, #tpu.memory_space<vmem>>, %arg15: memref<1x1xf32, #tpu.memory_space<vmem>>, %arg16: memref<32x32xf32, #tpu.memory_space<vmem>>, %arg17: memref<1x32xf32, #tpu.memory_space<vmem>>, %arg18: memref<1x1xf32, #tpu.memory_space<vmem>>, %arg19: memref<2x8xf32, #tpu.memory_space<vmem>>, %arg20: memref<2x8xi32, #tpu.memory_space<vmem>>) attributes {dimension_semantics = [], scalar_prefetch = 0 : i64, scratch_operands = 0 : i64, tpu.core_type = #tpu.core_type<tc>} {
    %c0 = arith.constant 0 : index
    %c0_0 = arith.constant 0 : index
    %0 = vector.load %arg0[%c0, %c0_0] : memref<2x1xi32, #tpu.memory_space<vmem>>, vector<2x1xi32>
    %c0_1 = arith.constant 0 : index
    %c0_2 = arith.constant 0 : index
    %1 = vector.load %arg1[%c0_1, %c0_2] : memref<2x8xf32, #tpu.memory_space<vmem>>, vector<2x8xf32>
    %c0_3 = arith.constant 0 : index
    %c0_4 = arith.constant 0 : index
    %c0_5 = arith.constant 0 : index
    %2 = vector.load %arg2[%c0_3, %c0_4, %c0_5] : memref<8x2x8xf32, #tpu.memory_space<vmem>>, vector<8x2x8xf32>
    %3 = vector.shape_cast %1 : vector<2x8xf32> to vector<2x8x1xf32>
    %c0_6 = arith.constant 0 : index
    %c0_7 = arith.constant 0 : index
    %4 = vector.load %arg3[%c0_6, %c0_7] : memref<1x32xf32, #tpu.memory_space<vmem>>, vector<1x32xf32>
    %5 = vector.shape_cast %4 : vector<1x32xf32> to vector<1x1x32xf32>
    %6 = vector.broadcast %3 : vector<2x8x1xf32> to vector<2x8x32xf32>
    %7 = vector.broadcast %5 : vector<1x1x32xf32> to vector<2x8x32xf32>
    %8 = arith.mulf %6, %7 : vector<2x8x32xf32>
    %cst = arith.constant dense<0.000000e+00> : vector<32xf32>
    %9 = vector.multi_reduction <add>, %8, %cst [0, 1] : vector<2x8x32xf32> to vector<32xf32>
    %10 = vector.shape_cast %9 : vector<32xf32> to vector<1x1x32xf32>
    %cst_8 = arith.constant 1.600000e+01 : f32
    %11 = vector.broadcast %cst_8 : f32 to vector<1x1x32xf32>
    %12 = arith.divf %10, %11 : vector<1x1x32xf32>
    %13 = vector.broadcast %12 : vector<1x1x32xf32> to vector<2x8x32xf32>
    %14 = arith.subf %8, %13 : vector<2x8x32xf32>
    %15 = arith.mulf %14, %14 : vector<2x8x32xf32>
    %cst_9 = arith.constant dense<0.000000e+00> : vector<32xf32>
    %16 = vector.multi_reduction <add>, %15, %cst_9 [0, 1] : vector<2x8x32xf32> to vector<32xf32>
    %17 = vector.shape_cast %16 : vector<32xf32> to vector<1x1x32xf32>
    %cst_10 = arith.constant 1.600000e+01 : f32
    %18 = vector.broadcast %cst_10 : f32 to vector<1x1x32xf32>
    %19 = arith.divf %17, %18 : vector<1x1x32xf32>
    %20 = vector.broadcast %12 : vector<1x1x32xf32> to vector<2x8x32xf32>
    %21 = arith.subf %8, %20 : vector<2x8x32xf32>
    %cst_11 = arith.constant 9.99999974E-6 : f32
    %22 = vector.broadcast %cst_11 : f32 to vector<1x1x32xf32>
    %23 = arith.addf %19, %22 : vector<1x1x32xf32>
    %24 = math.rsqrt %23 : vector<1x1x32xf32>
    %25 = vector.broadcast %24 : vector<1x1x32xf32> to vector<2x8x32xf32>
    %26 = arith.mulf %21, %25 : vector<2x8x32xf32>
    %c0_12 = arith.constant 0 : index
    %c0_13 = arith.constant 0 : index
    %27 = vector.load %arg4[%c0_12, %c0_13] : memref<1x32xf32, #tpu.memory_space<vmem>>, vector<1x32xf32>
    %28 = vector.shape_cast %27 : vector<1x32xf32> to vector<1x1x32xf32>
    %29 = vector.broadcast %28 : vector<1x1x32xf32> to vector<2x8x32xf32>
    %30 = arith.mulf %26, %29 : vector<2x8x32xf32>
    %c0_14 = arith.constant 0 : index
    %c0_15 = arith.constant 0 : index
    %31 = vector.load %arg5[%c0_14, %c0_15] : memref<1x32xf32, #tpu.memory_space<vmem>>, vector<1x32xf32>
    %32 = vector.shape_cast %31 : vector<1x32xf32> to vector<1x1x32xf32>
    %33 = vector.broadcast %32 : vector<1x1x32xf32> to vector<2x8x32xf32>
    %34 = arith.addf %30, %33 : vector<2x8x32xf32>
    %35 = vector.shape_cast %34 : vector<2x8x32xf32> to vector<16x32xf32>
    %c0_16 = arith.constant 0 : index
    %c0_17 = arith.constant 0 : index
    %36 = vector.load %arg6[%c0_16, %c0_17] : memref<32x128xf32, #tpu.memory_space<vmem>>, vector<32x128xf32>
    %cst_18 = arith.constant dense<0.000000e+00> : vector<16x128xf32>
    %37 = tpu.matmul %35, %36, %cst_18 {dimension_numbers = #tpu.dot_dimension_numbers<[1], [0], [0], [1], [0, 0, 1, 1], [], []>} : vector<16x32xf32>, vector<32x128xf32>, vector<16x128xf32> -> vector<16x128xf32>
    %c0_19 = arith.constant 0 : index
    %c0_20 = arith.constant 0 : index
    %38 = vector.load %arg8[%c0_19, %c0_20] : memref<1x128xf32, #tpu.memory_space<vmem>>, vector<1x128xf32>
    %39 = vector.broadcast %38 : vector<1x128xf32> to vector<16x128xf32>
    %40 = arith.addf %37, %39 : vector<16x128xf32>
    %41 = vector.shape_cast %40 : vector<16x128xf32> to vector<2x8x128xf32>
    %c0_21 = arith.constant 0 : index
    %c0_22 = arith.constant 0 : index
    %42 = vector.load %arg7[%c0_21, %c0_22] : memref<32x128xf32, #tpu.memory_space<vmem>>, vector<32x128xf32>
    %cst_23 = arith.constant 0.000000e+00 : f32
    %43 = vector.broadcast %cst_23 : f32 to vector<2x32xf32>
    %cst_24 = arith.constant 0.000000e+00 : f32
    %44 = vector.broadcast %cst_24 : f32 to vector<2x32xf32>
    %45 = vector.extract_strided_slice %41 {offsets = [0, 0, 0], sizes = [2, 1, 128], strides = [1, 1, 1]} : vector<2x8x128xf32> to vector<2x1x128xf32>
    %46 = vector.shape_cast %45 : vector<2x1x128xf32> to vector<2x128xf32>
    %cst_25 = arith.constant dense<0.000000e+00> : vector<2x128xf32>
    %47 = tpu.matmul %43, %42, %cst_25 {dimension_numbers = #tpu.dot_dimension_numbers<[1], [0], [0], [1], [0, 0, 1, 1], [], []>} : vector<2x32xf32>, vector<32x128xf32>, vector<2x128xf32> -> vector<2x128xf32>
    %48 = arith.addf %46, %47 : vector<2x128xf32>
    %cst_26 = arith.constant 0.000000e+00 : f32
    %49 = vector.broadcast %cst_26 : f32 to vector<2x128xf32>
    %50 = arith.subf %49, %48 : vector<2x128xf32>
    %51 = math.exp %50 : vector<2x128xf32>
    %cst_27 = arith.constant 1.000000e+00 : f32
    %52 = vector.broadcast %cst_27 : f32 to vector<2x128xf32>
    %53 = arith.addf %52, %51 : vector<2x128xf32>
    %cst_28 = arith.constant 1.000000e+00 : f32
    %54 = vector.broadcast %cst_28 : f32 to vector<2x128xf32>
    %55 = arith.divf %54, %53 : vector<2x128xf32>
    %56 = math.tanh %48 : vector<2x128xf32>
    %57 = vector.extract_strided_slice %55 {offsets = [0, 0], sizes = [2, 32], strides = [1, 1]} : vector<2x128xf32> to vector<2x32xf32>
    %58 = vector.extract_strided_slice %55 {offsets = [0, 32], sizes = [2, 32], strides = [1, 1]} : vector<2x128xf32> to vector<2x32xf32>
    %59 = vector.extract_strided_slice %56 {offsets = [0, 64], sizes = [2, 32], strides = [1, 1]} : vector<2x128xf32> to vector<2x32xf32>
    %60 = vector.extract_strided_slice %55 {offsets = [0, 96], sizes = [2, 32], strides = [1, 1]} : vector<2x128xf32> to vector<2x32xf32>
    %61 = arith.mulf %58, %44 : vector<2x32xf32>
    %62 = arith.mulf %57, %59 : vector<2x32xf32>
    %63 = arith.addf %61, %62 : vector<2x32xf32>
    %64 = math.tanh %63 : vector<2x32xf32>
    %65 = arith.mulf %60, %64 : vector<2x32xf32>
    %c0_i32 = arith.constant 0 : i32
    %66 = vector.broadcast %c0_i32 : i32 to vector<2x1xi32>
    %67 = arith.cmpi sgt, %0, %66 : vector<2x1xi32>
    %68 = arith.extui %67 : vector<2x1xi1> to vector<2x1xi32>
    %69 = arith.sitofp %68 : vector<2x1xi32> to vector<2x1xf32>
    %70 = vector.broadcast %69 : vector<2x1xf32> to vector<2x32xf32>
    %71 = arith.mulf %70, %65 : vector<2x32xf32>
    %cst_29 = arith.constant 1.000000e+00 : f32
    %72 = vector.broadcast %cst_29 : f32 to vector<2x1xf32>
    %73 = arith.subf %72, %69 : vector<2x1xf32>
    %74 = vector.broadcast %73 : vector<2x1xf32> to vector<2x32xf32>
    %75 = arith.mulf %74, %43 : vector<2x32xf32>
    %76 = arith.addf %71, %75 : vector<2x32xf32>
    %77 = vector.broadcast %69 : vector<2x1xf32> to vector<2x32xf32>
    %78 = arith.mulf %77, %63 : vector<2x32xf32>
    %cst_30 = arith.constant 1.000000e+00 : f32
    %79 = vector.broadcast %cst_30 : f32 to vector<2x1xf32>
    %80 = arith.subf %79, %69 : vector<2x1xf32>
    %81 = vector.broadcast %80 : vector<2x1xf32> to vector<2x32xf32>
    %82 = arith.mulf %81, %44 : vector<2x32xf32>
    %83 = arith.addf %78, %82 : vector<2x32xf32>
    %84 = vector.broadcast %69 : vector<2x1xf32> to vector<2x32xf32>
    %85 = arith.mulf %84, %65 : vector<2x32xf32>
    %86 = vector.extract_strided_slice %41 {offsets = [0, 1, 0], sizes = [2, 1, 128], strides = [1, 1, 1]} : vector<2x8x128xf32> to vector<2x1x128xf32>
    %87 = vector.shape_cast %86 : vector<2x1x128xf32> to vector<2x128xf32>
    %cst_31 = arith.constant dense<0.000000e+00> : vector<2x128xf32>
    %88 = tpu.matmul %76, %42, %cst_31 {dimension_numbers = #tpu.dot_dimension_numbers<[1], [0], [0], [1], [0, 0, 1, 1], [], []>} : vector<2x32xf32>, vector<32x128xf32>, vector<2x128xf32> -> vector<2x128xf32>
    %89 = arith.addf %87, %88 : vector<2x128xf32>
    %cst_32 = arith.constant 0.000000e+00 : f32
    %90 = vector.broadcast %cst_32 : f32 to vector<2x128xf32>
    %91 = arith.subf %90, %89 : vector<2x128xf32>
    %92 = math.exp %91 : vector<2x128xf32>
    %cst_33 = arith.constant 1.000000e+00 : f32
    %93 = vector.broadcast %cst_33 : f32 to vector<2x128xf32>
    %94 = arith.addf %93, %92 : vector<2x128xf32>
    %cst_34 = arith.constant 1.000000e+00 : f32
    %95 = vector.broadcast %cst_34 : f32 to vector<2x128xf32>
    %96 = arith.divf %95, %94 : vector<2x128xf32>
    %97 = math.tanh %89 : vector<2x128xf32>
    %98 = vector.extract_strided_slice %96 {offsets = [0, 0], sizes = [2, 32], strides = [1, 1]} : vector<2x128xf32> to vector<2x32xf32>
    %99 = vector.extract_strided_slice %96 {offsets = [0, 32], sizes = [2, 32], strides = [1, 1]} : vector<2x128xf32> to vector<2x32xf32>
    %100 = vector.extract_strided_slice %97 {offsets = [0, 64], sizes = [2, 32], strides = [1, 1]} : vector<2x128xf32> to vector<2x32xf32>
    %101 = vector.extract_strided_slice %96 {offsets = [0, 96], sizes = [2, 32], strides = [1, 1]} : vector<2x128xf32> to vector<2x32xf32>
    %102 = arith.mulf %99, %83 : vector<2x32xf32>
    %103 = arith.mulf %98, %100 : vector<2x32xf32>
    %104 = arith.addf %102, %103 : vector<2x32xf32>
    %105 = math.tanh %104 : vector<2x32xf32>
    %106 = arith.mulf %101, %105 : vector<2x32xf32>
    %c1_i32 = arith.constant 1 : i32
    %107 = vector.broadcast %c1_i32 : i32 to vector<2x1xi32>
    %108 = arith.cmpi sgt, %0, %107 : vector<2x1xi32>
    %109 = arith.extui %108 : vector<2x1xi1> to vector<2x1xi32>
    %110 = arith.sitofp %109 : vector<2x1xi32> to vector<2x1xf32>
    %111 = vector.broadcast %110 : vector<2x1xf32> to vector<2x32xf32>
    %112 = arith.mulf %111, %106 : vector<2x32xf32>
    %cst_35 = arith.constant 1.000000e+00 : f32
    %113 = vector.broadcast %cst_35 : f32 to vector<2x1xf32>
    %114 = arith.subf %113, %110 : vector<2x1xf32>
    %115 = vector.broadcast %114 : vector<2x1xf32> to vector<2x32xf32>
    %116 = arith.mulf %115, %76 : vector<2x32xf32>
    %117 = arith.addf %112, %116 : vector<2x32xf32>
    %118 = vector.broadcast %110 : vector<2x1xf32> to vector<2x32xf32>
    %119 = arith.mulf %118, %104 : vector<2x32xf32>
    %cst_36 = arith.constant 1.000000e+00 : f32
    %120 = vector.broadcast %cst_36 : f32 to vector<2x1xf32>
    %121 = arith.subf %120, %110 : vector<2x1xf32>
    %122 = vector.broadcast %121 : vector<2x1xf32> to vector<2x32xf32>
    %123 = arith.mulf %122, %83 : vector<2x32xf32>
    %124 = arith.addf %119, %123 : vector<2x32xf32>
    %125 = vector.broadcast %110 : vector<2x1xf32> to vector<2x32xf32>
    %126 = arith.mulf %125, %106 : vector<2x32xf32>
    %127 = vector.extract_strided_slice %41 {offsets = [0, 2, 0], sizes = [2, 1, 128], strides = [1, 1, 1]} : vector<2x8x128xf32> to vector<2x1x128xf32>
    %128 = vector.shape_cast %127 : vector<2x1x128xf32> to vector<2x128xf32>
    %cst_37 = arith.constant dense<0.000000e+00> : vector<2x128xf32>
    %129 = tpu.matmul %117, %42, %cst_37 {dimension_numbers = #tpu.dot_dimension_numbers<[1], [0], [0], [1], [0, 0, 1, 1], [], []>} : vector<2x32xf32>, vector<32x128xf32>, vector<2x128xf32> -> vector<2x128xf32>
    %130 = arith.addf %128, %129 : vector<2x128xf32>
    %cst_38 = arith.constant 0.000000e+00 : f32
    %131 = vector.broadcast %cst_38 : f32 to vector<2x128xf32>
    %132 = arith.subf %131, %130 : vector<2x128xf32>
    %133 = math.exp %132 : vector<2x128xf32>
    %cst_39 = arith.constant 1.000000e+00 : f32
    %134 = vector.broadcast %cst_39 : f32 to vector<2x128xf32>
    %135 = arith.addf %134, %133 : vector<2x128xf32>
    %cst_40 = arith.constant 1.000000e+00 : f32
    %136 = vector.broadcast %cst_40 : f32 to vector<2x128xf32>
    %137 = arith.divf %136, %135 : vector<2x128xf32>
    %138 = math.tanh %130 : vector<2x128xf32>
    %139 = vector.extract_strided_slice %137 {offsets = [0, 0], sizes = [2, 32], strides = [1, 1]} : vector<2x128xf32> to vector<2x32xf32>
    %140 = vector.extract_strided_slice %137 {offsets = [0, 32], sizes = [2, 32], strides = [1, 1]} : vector<2x128xf32> to vector<2x32xf32>
    %141 = vector.extract_strided_slice %138 {offsets = [0, 64], sizes = [2, 32], strides = [1, 1]} : vector<2x128xf32> to vector<2x32xf32>
    %142 = vector.extract_strided_slice %137 {offsets = [0, 96], sizes = [2, 32], strides = [1, 1]} : vector<2x128xf32> to vector<2x32xf32>
    %143 = arith.mulf %140, %124 : vector<2x32xf32>
    %144 = arith.mulf %139, %141 : vector<2x32xf32>
    %145 = arith.addf %143, %144 : vector<2x32xf32>
    %146 = math.tanh %145 : vector<2x32xf32>
    %147 = arith.mulf %142, %146 : vector<2x32xf32>
    %c2_i32 = arith.constant 2 : i32
    %148 = vector.broadcast %c2_i32 : i32 to vector<2x1xi32>
    %149 = arith.cmpi sgt, %0, %148 : vector<2x1xi32>
    %150 = arith.extui %149 : vector<2x1xi1> to vector<2x1xi32>
    %151 = arith.sitofp %150 : vector<2x1xi32> to vector<2x1xf32>
    %152 = vector.broadcast %151 : vector<2x1xf32> to vector<2x32xf32>
    %153 = arith.mulf %152, %147 : vector<2x32xf32>
    %cst_41 = arith.constant 1.000000e+00 : f32
    %154 = vector.broadcast %cst_41 : f32 to vector<2x1xf32>
    %155 = arith.subf %154, %151 : vector<2x1xf32>
    %156 = vector.broadcast %155 : vector<2x1xf32> to vector<2x32xf32>
    %157 = arith.mulf %156, %117 : vector<2x32xf32>
    %158 = arith.addf %153, %157 : vector<2x32xf32>
    %159 = vector.broadcast %151 : vector<2x1xf32> to vector<2x32xf32>
    %160 = arith.mulf %159, %145 : vector<2x32xf32>
    %cst_42 = arith.constant 1.000000e+00 : f32
    %161 = vector.broadcast %cst_42 : f32 to vector<2x1xf32>
    %162 = arith.subf %161, %151 : vector<2x1xf32>
    %163 = vector.broadcast %162 : vector<2x1xf32> to vector<2x32xf32>
    %164 = arith.mulf %163, %124 : vector<2x32xf32>
    %165 = arith.addf %160, %164 : vector<2x32xf32>
    %166 = vector.broadcast %151 : vector<2x1xf32> to vector<2x32xf32>
    %167 = arith.mulf %166, %147 : vector<2x32xf32>
    %168 = vector.extract_strided_slice %41 {offsets = [0, 3, 0], sizes = [2, 1, 128], strides = [1, 1, 1]} : vector<2x8x128xf32> to vector<2x1x128xf32>
    %169 = vector.shape_cast %168 : vector<2x1x128xf32> to vector<2x128xf32>
    %cst_43 = arith.constant dense<0.000000e+00> : vector<2x128xf32>
    %170 = tpu.matmul %158, %42, %cst_43 {dimension_numbers = #tpu.dot_dimension_numbers<[1], [0], [0], [1], [0, 0, 1, 1], [], []>} : vector<2x32xf32>, vector<32x128xf32>, vector<2x128xf32> -> vector<2x128xf32>
    %171 = arith.addf %169, %170 : vector<2x128xf32>
    %cst_44 = arith.constant 0.000000e+00 : f32
    %172 = vector.broadcast %cst_44 : f32 to vector<2x128xf32>
    %173 = arith.subf %172, %171 : vector<2x128xf32>
    %174 = math.exp %173 : vector<2x128xf32>
    %cst_45 = arith.constant 1.000000e+00 : f32
    %175 = vector.broadcast %cst_45 : f32 to vector<2x128xf32>
    %176 = arith.addf %175, %174 : vector<2x128xf32>
    %cst_46 = arith.constant 1.000000e+00 : f32
    %177 = vector.broadcast %cst_46 : f32 to vector<2x128xf32>
    %178 = arith.divf %177, %176 : vector<2x128xf32>
    %179 = math.tanh %171 : vector<2x128xf32>
    %180 = vector.extract_strided_slice %178 {offsets = [0, 0], sizes = [2, 32], strides = [1, 1]} : vector<2x128xf32> to vector<2x32xf32>
    %181 = vector.extract_strided_slice %178 {offsets = [0, 32], sizes = [2, 32], strides = [1, 1]} : vector<2x128xf32> to vector<2x32xf32>
    %182 = vector.extract_strided_slice %179 {offsets = [0, 64], sizes = [2, 32], strides = [1, 1]} : vector<2x128xf32> to vector<2x32xf32>
    %183 = vector.extract_strided_slice %178 {offsets = [0, 96], sizes = [2, 32], strides = [1, 1]} : vector<2x128xf32> to vector<2x32xf32>
    %184 = arith.mulf %181, %165 : vector<2x32xf32>
    %185 = arith.mulf %180, %182 : vector<2x32xf32>
    %186 = arith.addf %184, %185 : vector<2x32xf32>
    %187 = math.tanh %186 : vector<2x32xf32>
    %188 = arith.mulf %183, %187 : vector<2x32xf32>
    %c3_i32 = arith.constant 3 : i32
    %189 = vector.broadcast %c3_i32 : i32 to vector<2x1xi32>
    %190 = arith.cmpi sgt, %0, %189 : vector<2x1xi32>
    %191 = arith.extui %190 : vector<2x1xi1> to vector<2x1xi32>
    %192 = arith.sitofp %191 : vector<2x1xi32> to vector<2x1xf32>
    %193 = vector.broadcast %192 : vector<2x1xf32> to vector<2x32xf32>
    %194 = arith.mulf %193, %188 : vector<2x32xf32>
    %cst_47 = arith.constant 1.000000e+00 : f32
    %195 = vector.broadcast %cst_47 : f32 to vector<2x1xf32>
    %196 = arith.subf %195, %192 : vector<2x1xf32>
    %197 = vector.broadcast %196 : vector<2x1xf32> to vector<2x32xf32>
    %198 = arith.mulf %197, %158 : vector<2x32xf32>
    %199 = arith.addf %194, %198 : vector<2x32xf32>
    %200 = vector.broadcast %192 : vector<2x1xf32> to vector<2x32xf32>
    %201 = arith.mulf %200, %186 : vector<2x32xf32>
    %cst_48 = arith.constant 1.000000e+00 : f32
    %202 = vector.broadcast %cst_48 : f32 to vector<2x1xf32>
    %203 = arith.subf %202, %192 : vector<2x1xf32>
    %204 = vector.broadcast %203 : vector<2x1xf32> to vector<2x32xf32>
    %205 = arith.mulf %204, %165 : vector<2x32xf32>
    %206 = arith.addf %201, %205 : vector<2x32xf32>
    %207 = vector.broadcast %192 : vector<2x1xf32> to vector<2x32xf32>
    %208 = arith.mulf %207, %188 : vector<2x32xf32>
    %209 = vector.extract_strided_slice %41 {offsets = [0, 4, 0], sizes = [2, 1, 128], strides = [1, 1, 1]} : vector<2x8x128xf32> to vector<2x1x128xf32>
    %210 = vector.shape_cast %209 : vector<2x1x128xf32> to vector<2x128xf32>
    %cst_49 = arith.constant dense<0.000000e+00> : vector<2x128xf32>
    %211 = tpu.matmul %199, %42, %cst_49 {dimension_numbers = #tpu.dot_dimension_numbers<[1], [0], [0], [1], [0, 0, 1, 1], [], []>} : vector<2x32xf32>, vector<32x128xf32>, vector<2x128xf32> -> vector<2x128xf32>
    %212 = arith.addf %210, %211 : vector<2x128xf32>
    %cst_50 = arith.constant 0.000000e+00 : f32
    %213 = vector.broadcast %cst_50 : f32 to vector<2x128xf32>
    %214 = arith.subf %213, %212 : vector<2x128xf32>
    %215 = math.exp %214 : vector<2x128xf32>
    %cst_51 = arith.constant 1.000000e+00 : f32
    %216 = vector.broadcast %cst_51 : f32 to vector<2x128xf32>
    %217 = arith.addf %216, %215 : vector<2x128xf32>
    %cst_52 = arith.constant 1.000000e+00 : f32
    %218 = vector.broadcast %cst_52 : f32 to vector<2x128xf32>
    %219 = arith.divf %218, %217 : vector<2x128xf32>
    %220 = math.tanh %212 : vector<2x128xf32>
    %221 = vector.extract_strided_slice %219 {offsets = [0, 0], sizes = [2, 32], strides = [1, 1]} : vector<2x128xf32> to vector<2x32xf32>
    %222 = vector.extract_strided_slice %219 {offsets = [0, 32], sizes = [2, 32], strides = [1, 1]} : vector<2x128xf32> to vector<2x32xf32>
    %223 = vector.extract_strided_slice %220 {offsets = [0, 64], sizes = [2, 32], strides = [1, 1]} : vector<2x128xf32> to vector<2x32xf32>
    %224 = vector.extract_strided_slice %219 {offsets = [0, 96], sizes = [2, 32], strides = [1, 1]} : vector<2x128xf32> to vector<2x32xf32>
    %225 = arith.mulf %222, %206 : vector<2x32xf32>
    %226 = arith.mulf %221, %223 : vector<2x32xf32>
    %227 = arith.addf %225, %226 : vector<2x32xf32>
    %228 = math.tanh %227 : vector<2x32xf32>
    %229 = arith.mulf %224, %228 : vector<2x32xf32>
    %c4_i32 = arith.constant 4 : i32
    %230 = vector.broadcast %c4_i32 : i32 to vector<2x1xi32>
    %231 = arith.cmpi sgt, %0, %230 : vector<2x1xi32>
    %232 = arith.extui %231 : vector<2x1xi1> to vector<2x1xi32>
    %233 = arith.sitofp %232 : vector<2x1xi32> to vector<2x1xf32>
    %234 = vector.broadcast %233 : vector<2x1xf32> to vector<2x32xf32>
    %235 = arith.mulf %234, %229 : vector<2x32xf32>
    %cst_53 = arith.constant 1.000000e+00 : f32
    %236 = vector.broadcast %cst_53 : f32 to vector<2x1xf32>
    %237 = arith.subf %236, %233 : vector<2x1xf32>
    %238 = vector.broadcast %237 : vector<2x1xf32> to vector<2x32xf32>
    %239 = arith.mulf %238, %199 : vector<2x32xf32>
    %240 = arith.addf %235, %239 : vector<2x32xf32>
    %241 = vector.broadcast %233 : vector<2x1xf32> to vector<2x32xf32>
    %242 = arith.mulf %241, %227 : vector<2x32xf32>
    %cst_54 = arith.constant 1.000000e+00 : f32
    %243 = vector.broadcast %cst_54 : f32 to vector<2x1xf32>
    %244 = arith.subf %243, %233 : vector<2x1xf32>
    %245 = vector.broadcast %244 : vector<2x1xf32> to vector<2x32xf32>
    %246 = arith.mulf %245, %206 : vector<2x32xf32>
    %247 = arith.addf %242, %246 : vector<2x32xf32>
    %248 = vector.broadcast %233 : vector<2x1xf32> to vector<2x32xf32>
    %249 = arith.mulf %248, %229 : vector<2x32xf32>
    %250 = vector.extract_strided_slice %41 {offsets = [0, 5, 0], sizes = [2, 1, 128], strides = [1, 1, 1]} : vector<2x8x128xf32> to vector<2x1x128xf32>
    %251 = vector.shape_cast %250 : vector<2x1x128xf32> to vector<2x128xf32>
    %cst_55 = arith.constant dense<0.000000e+00> : vector<2x128xf32>
    %252 = tpu.matmul %240, %42, %cst_55 {dimension_numbers = #tpu.dot_dimension_numbers<[1], [0], [0], [1], [0, 0, 1, 1], [], []>} : vector<2x32xf32>, vector<32x128xf32>, vector<2x128xf32> -> vector<2x128xf32>
    %253 = arith.addf %251, %252 : vector<2x128xf32>
    %cst_56 = arith.constant 0.000000e+00 : f32
    %254 = vector.broadcast %cst_56 : f32 to vector<2x128xf32>
    %255 = arith.subf %254, %253 : vector<2x128xf32>
    %256 = math.exp %255 : vector<2x128xf32>
    %cst_57 = arith.constant 1.000000e+00 : f32
    %257 = vector.broadcast %cst_57 : f32 to vector<2x128xf32>
    %258 = arith.addf %257, %256 : vector<2x128xf32>
    %cst_58 = arith.constant 1.000000e+00 : f32
    %259 = vector.broadcast %cst_58 : f32 to vector<2x128xf32>
    %260 = arith.divf %259, %258 : vector<2x128xf32>
    %261 = math.tanh %253 : vector<2x128xf32>
    %262 = vector.extract_strided_slice %260 {offsets = [0, 0], sizes = [2, 32], strides = [1, 1]} : vector<2x128xf32> to vector<2x32xf32>
    %263 = vector.extract_strided_slice %260 {offsets = [0, 32], sizes = [2, 32], strides = [1, 1]} : vector<2x128xf32> to vector<2x32xf32>
    %264 = vector.extract_strided_slice %261 {offsets = [0, 64], sizes = [2, 32], strides = [1, 1]} : vector<2x128xf32> to vector<2x32xf32>
    %265 = vector.extract_strided_slice %260 {offsets = [0, 96], sizes = [2, 32], strides = [1, 1]} : vector<2x128xf32> to vector<2x32xf32>
    %266 = arith.mulf %263, %247 : vector<2x32xf32>
    %267 = arith.mulf %262, %264 : vector<2x32xf32>
    %268 = arith.addf %266, %267 : vector<2x32xf32>
    %269 = math.tanh %268 : vector<2x32xf32>
    %270 = arith.mulf %265, %269 : vector<2x32xf32>
    %c5_i32 = arith.constant 5 : i32
    %271 = vector.broadcast %c5_i32 : i32 to vector<2x1xi32>
    %272 = arith.cmpi sgt, %0, %271 : vector<2x1xi32>
    %273 = arith.extui %272 : vector<2x1xi1> to vector<2x1xi32>
    %274 = arith.sitofp %273 : vector<2x1xi32> to vector<2x1xf32>
    %275 = vector.broadcast %274 : vector<2x1xf32> to vector<2x32xf32>
    %276 = arith.mulf %275, %270 : vector<2x32xf32>
    %cst_59 = arith.constant 1.000000e+00 : f32
    %277 = vector.broadcast %cst_59 : f32 to vector<2x1xf32>
    %278 = arith.subf %277, %274 : vector<2x1xf32>
    %279 = vector.broadcast %278 : vector<2x1xf32> to vector<2x32xf32>
    %280 = arith.mulf %279, %240 : vector<2x32xf32>
    %281 = arith.addf %276, %280 : vector<2x32xf32>
    %282 = vector.broadcast %274 : vector<2x1xf32> to vector<2x32xf32>
    %283 = arith.mulf %282, %268 : vector<2x32xf32>
    %cst_60 = arith.constant 1.000000e+00 : f32
    %284 = vector.broadcast %cst_60 : f32 to vector<2x1xf32>
    %285 = arith.subf %284, %274 : vector<2x1xf32>
    %286 = vector.broadcast %285 : vector<2x1xf32> to vector<2x32xf32>
    %287 = arith.mulf %286, %247 : vector<2x32xf32>
    %288 = arith.addf %283, %287 : vector<2x32xf32>
    %289 = vector.broadcast %274 : vector<2x1xf32> to vector<2x32xf32>
    %290 = arith.mulf %289, %270 : vector<2x32xf32>
    %291 = vector.extract_strided_slice %41 {offsets = [0, 6, 0], sizes = [2, 1, 128], strides = [1, 1, 1]} : vector<2x8x128xf32> to vector<2x1x128xf32>
    %292 = vector.shape_cast %291 : vector<2x1x128xf32> to vector<2x128xf32>
    %cst_61 = arith.constant dense<0.000000e+00> : vector<2x128xf32>
    %293 = tpu.matmul %281, %42, %cst_61 {dimension_numbers = #tpu.dot_dimension_numbers<[1], [0], [0], [1], [0, 0, 1, 1], [], []>} : vector<2x32xf32>, vector<32x128xf32>, vector<2x128xf32> -> vector<2x128xf32>
    %294 = arith.addf %292, %293 : vector<2x128xf32>
    %cst_62 = arith.constant 0.000000e+00 : f32
    %295 = vector.broadcast %cst_62 : f32 to vector<2x128xf32>
    %296 = arith.subf %295, %294 : vector<2x128xf32>
    %297 = math.exp %296 : vector<2x128xf32>
    %cst_63 = arith.constant 1.000000e+00 : f32
    %298 = vector.broadcast %cst_63 : f32 to vector<2x128xf32>
    %299 = arith.addf %298, %297 : vector<2x128xf32>
    %cst_64 = arith.constant 1.000000e+00 : f32
    %300 = vector.broadcast %cst_64 : f32 to vector<2x128xf32>
    %301 = arith.divf %300, %299 : vector<2x128xf32>
    %302 = math.tanh %294 : vector<2x128xf32>
    %303 = vector.extract_strided_slice %301 {offsets = [0, 0], sizes = [2, 32], strides = [1, 1]} : vector<2x128xf32> to vector<2x32xf32>
    %304 = vector.extract_strided_slice %301 {offsets = [0, 32], sizes = [2, 32], strides = [1, 1]} : vector<2x128xf32> to vector<2x32xf32>
    %305 = vector.extract_strided_slice %302 {offsets = [0, 64], sizes = [2, 32], strides = [1, 1]} : vector<2x128xf32> to vector<2x32xf32>
    %306 = vector.extract_strided_slice %301 {offsets = [0, 96], sizes = [2, 32], strides = [1, 1]} : vector<2x128xf32> to vector<2x32xf32>
    %307 = arith.mulf %304, %288 : vector<2x32xf32>
    %308 = arith.mulf %303, %305 : vector<2x32xf32>
    %309 = arith.addf %307, %308 : vector<2x32xf32>
    %310 = math.tanh %309 : vector<2x32xf32>
    %311 = arith.mulf %306, %310 : vector<2x32xf32>
    %c6_i32 = arith.constant 6 : i32
    %312 = vector.broadcast %c6_i32 : i32 to vector<2x1xi32>
    %313 = arith.cmpi sgt, %0, %312 : vector<2x1xi32>
    %314 = arith.extui %313 : vector<2x1xi1> to vector<2x1xi32>
    %315 = arith.sitofp %314 : vector<2x1xi32> to vector<2x1xf32>
    %316 = vector.broadcast %315 : vector<2x1xf32> to vector<2x32xf32>
    %317 = arith.mulf %316, %311 : vector<2x32xf32>
    %cst_65 = arith.constant 1.000000e+00 : f32
    %318 = vector.broadcast %cst_65 : f32 to vector<2x1xf32>
    %319 = arith.subf %318, %315 : vector<2x1xf32>
    %320 = vector.broadcast %319 : vector<2x1xf32> to vector<2x32xf32>
    %321 = arith.mulf %320, %281 : vector<2x32xf32>
    %322 = arith.addf %317, %321 : vector<2x32xf32>
    %323 = vector.broadcast %315 : vector<2x1xf32> to vector<2x32xf32>
    %324 = arith.mulf %323, %309 : vector<2x32xf32>
    %cst_66 = arith.constant 1.000000e+00 : f32
    %325 = vector.broadcast %cst_66 : f32 to vector<2x1xf32>
    %326 = arith.subf %325, %315 : vector<2x1xf32>
    %327 = vector.broadcast %326 : vector<2x1xf32> to vector<2x32xf32>
    %328 = arith.mulf %327, %288 : vector<2x32xf32>
    %329 = arith.addf %324, %328 : vector<2x32xf32>
    %330 = vector.broadcast %315 : vector<2x1xf32> to vector<2x32xf32>
    %331 = arith.mulf %330, %311 : vector<2x32xf32>
    %332 = vector.extract_strided_slice %41 {offsets = [0, 7, 0], sizes = [2, 1, 128], strides = [1, 1, 1]} : vector<2x8x128xf32> to vector<2x1x128xf32>
    %333 = vector.shape_cast %332 : vector<2x1x128xf32> to vector<2x128xf32>
    %cst_67 = arith.constant dense<0.000000e+00> : vector<2x128xf32>
    %334 = tpu.matmul %322, %42, %cst_67 {dimension_numbers = #tpu.dot_dimension_numbers<[1], [0], [0], [1], [0, 0, 1, 1], [], []>} : vector<2x32xf32>, vector<32x128xf32>, vector<2x128xf32> -> vector<2x128xf32>
    %335 = arith.addf %333, %334 : vector<2x128xf32>
    %cst_68 = arith.constant 0.000000e+00 : f32
    %336 = vector.broadcast %cst_68 : f32 to vector<2x128xf32>
    %337 = arith.subf %336, %335 : vector<2x128xf32>
    %338 = math.exp %337 : vector<2x128xf32>
    %cst_69 = arith.constant 1.000000e+00 : f32
    %339 = vector.broadcast %cst_69 : f32 to vector<2x128xf32>
    %340 = arith.addf %339, %338 : vector<2x128xf32>
    %cst_70 = arith.constant 1.000000e+00 : f32
    %341 = vector.broadcast %cst_70 : f32 to vector<2x128xf32>
    %342 = arith.divf %341, %340 : vector<2x128xf32>
    %343 = math.tanh %335 : vector<2x128xf32>
    %344 = vector.extract_strided_slice %342 {offsets = [0, 0], sizes = [2, 32], strides = [1, 1]} : vector<2x128xf32> to vector<2x32xf32>
    %345 = vector.extract_strided_slice %342 {offsets = [0, 32], sizes = [2, 32], strides = [1, 1]} : vector<2x128xf32> to vector<2x32xf32>
    %346 = vector.extract_strided_slice %343 {offsets = [0, 64], sizes = [2, 32], strides = [1, 1]} : vector<2x128xf32> to vector<2x32xf32>
    %347 = vector.extract_strided_slice %342 {offsets = [0, 96], sizes = [2, 32], strides = [1, 1]} : vector<2x128xf32> to vector<2x32xf32>
    %348 = arith.mulf %345, %329 : vector<2x32xf32>
    %349 = arith.mulf %344, %346 : vector<2x32xf32>
    %350 = arith.addf %348, %349 : vector<2x32xf32>
    %351 = math.tanh %350 : vector<2x32xf32>
    %352 = arith.mulf %347, %351 : vector<2x32xf32>
    %c7_i32 = arith.constant 7 : i32
    %353 = vector.broadcast %c7_i32 : i32 to vector<2x1xi32>
    %354 = arith.cmpi sgt, %0, %353 : vector<2x1xi32>
    %355 = arith.extui %354 : vector<2x1xi1> to vector<2x1xi32>
    %356 = arith.sitofp %355 : vector<2x1xi32> to vector<2x1xf32>
    %357 = vector.broadcast %356 : vector<2x1xf32> to vector<2x32xf32>
    %358 = arith.mulf %357, %352 : vector<2x32xf32>
    %cst_71 = arith.constant 1.000000e+00 : f32
    %359 = vector.broadcast %cst_71 : f32 to vector<2x1xf32>
    %360 = arith.subf %359, %356 : vector<2x1xf32>
    %361 = vector.broadcast %360 : vector<2x1xf32> to vector<2x32xf32>
    %362 = arith.mulf %361, %322 : vector<2x32xf32>
    %363 = arith.addf %358, %362 : vector<2x32xf32>
    %364 = vector.broadcast %356 : vector<2x1xf32> to vector<2x32xf32>
    %365 = arith.mulf %364, %350 : vector<2x32xf32>
    %cst_72 = arith.constant 1.000000e+00 : f32
    %366 = vector.broadcast %cst_72 : f32 to vector<2x1xf32>
    %367 = arith.subf %366, %356 : vector<2x1xf32>
    %368 = vector.broadcast %367 : vector<2x1xf32> to vector<2x32xf32>
    %369 = arith.mulf %368, %329 : vector<2x32xf32>
    %370 = arith.addf %365, %369 : vector<2x32xf32>
    %371 = vector.broadcast %356 : vector<2x1xf32> to vector<2x32xf32>
    %372 = arith.mulf %371, %352 : vector<2x32xf32>
    %373 = vector.shape_cast %85 : vector<2x32xf32> to vector<2x1x32xf32>
    %374 = vector.shape_cast %126 : vector<2x32xf32> to vector<2x1x32xf32>
    %375 = vector.shape_cast %167 : vector<2x32xf32> to vector<2x1x32xf32>
    %376 = vector.shape_cast %208 : vector<2x32xf32> to vector<2x1x32xf32>
    %377 = vector.shape_cast %249 : vector<2x32xf32> to vector<2x1x32xf32>
    %378 = vector.shape_cast %290 : vector<2x32xf32> to vector<2x1x32xf32>
    %379 = vector.shape_cast %331 : vector<2x32xf32> to vector<2x1x32xf32>
    %380 = vector.shape_cast %372 : vector<2x32xf32> to vector<2x1x32xf32>
    %381 = tpu.concatenate %373, %374, %375, %376, %377, %378, %379, %380 in 1 : vector<2x1x32xf32>, vector<2x1x32xf32>, vector<2x1x32xf32>, vector<2x1x32xf32>, vector<2x1x32xf32>, vector<2x1x32xf32>, vector<2x1x32xf32>, vector<2x1x32xf32> -> vector<2x8x32xf32>
    %382 = tpu.iota {dimensions = array<i32: 1>} : vector<2x8xi32>
    %383 = vector.broadcast %0 : vector<2x1xi32> to vector<2x8xi32>
    %384 = arith.cmpi slt, %382, %383 : vector<2x8xi32>
    %385 = arith.extui %384 : vector<2x8xi1> to vector<2x8xi32>
    %386 = arith.sitofp %385 : vector<2x8xi32> to vector<2x8xf32>
    %387 = vector.shape_cast %381 : vector<2x8x32xf32> to vector<16x32xf32>
    %c0_73 = arith.constant 0 : index
    %c0_74 = arith.constant 0 : index
    %388 = vector.load %arg12[%c0_73, %c0_74] : memref<32x64xf32, #tpu.memory_space<vmem>>, vector<32x64xf32>
    %cst_75 = arith.constant dense<0.000000e+00> : vector<16x64xf32>
    %389 = tpu.matmul %387, %388, %cst_75 {dimension_numbers = #tpu.dot_dimension_numbers<[1], [0], [0], [1], [0, 0, 1, 1], [], []>} : vector<16x32xf32>, vector<32x64xf32>, vector<16x64xf32> -> vector<16x64xf32>
    %390 = vector.extract_strided_slice %389 {offsets = [0, 0], sizes = [16, 32], strides = [1, 1]} : vector<16x64xf32> to vector<16x32xf32>
    %391 = vector.shape_cast %390 : vector<16x32xf32> to vector<2x8x32xf32>
    %392 = vector.extract_strided_slice %389 {offsets = [0, 32], sizes = [16, 32], strides = [1, 1]} : vector<16x64xf32> to vector<16x32xf32>
    %393 = vector.shape_cast %392 : vector<16x32xf32> to vector<2x8x32xf32>
    %c0_76 = arith.constant 0 : index
    %c0_77 = arith.constant 0 : index
    %394 = vector.load %arg9[%c0_76, %c0_77] : memref<1x128xf32, #tpu.memory_space<vmem>>, vector<1x128xf32>
    %c0_78 = arith.constant 0 : index
    %c0_79 = arith.constant 0 : index
    %395 = vector.load %arg10[%c0_78, %c0_79] : memref<32x128xf32, #tpu.memory_space<vmem>>, vector<32x128xf32>
    %c0_80 = arith.constant 0 : index
    %c0_81 = arith.constant 0 : index
    %396 = vector.load %arg11[%c0_80, %c0_81] : memref<1x128xf32, #tpu.memory_space<vmem>>, vector<1x128xf32>
    %c0_82 = arith.constant 0 : index
    %c0_83 = arith.constant 0 : index
    %397 = vector.load %arg13[%c0_82, %c0_83] : memref<32x32xf32, #tpu.memory_space<vmem>>, vector<32x32xf32>
    %c0_84 = arith.constant 0 : index
    %c0_85 = arith.constant 0 : index
    %398 = vector.load %arg14[%c0_84, %c0_85] : memref<1x32xf32, #tpu.memory_space<vmem>>, vector<1x32xf32>
    %c0_86 = arith.constant 0 : index
    %c0_87 = arith.constant 0 : index
    %399 = vector.load %arg15[%c0_86, %c0_87] : memref<1x1xf32, #tpu.memory_space<vmem>>, vector<1x1xf32>
    %c0_88 = arith.constant 0 : index
    %c0_89 = arith.constant 0 : index
    %400 = vector.load %arg16[%c0_88, %c0_89] : memref<32x32xf32, #tpu.memory_space<vmem>>, vector<32x32xf32>
    %c0_90 = arith.constant 0 : index
    %c0_91 = arith.constant 0 : index
    %401 = vector.load %arg17[%c0_90, %c0_91] : memref<1x32xf32, #tpu.memory_space<vmem>>, vector<1x32xf32>
    %c0_92 = arith.constant 0 : index
    %c0_93 = arith.constant 0 : index
    %402 = vector.load %arg18[%c0_92, %c0_93] : memref<1x1xf32, #tpu.memory_space<vmem>>, vector<1x1xf32>
    %cst_94 = arith.constant -1.000000e+00 : f32
    %403 = vector.broadcast %cst_94 : f32 to vector<2x1xf32>
    %404 = vector.broadcast %403 : vector<2x1xf32> to vector<2x128xf32>
    %405 = vector.broadcast %394 : vector<1x128xf32> to vector<2x128xf32>
    %406 = arith.mulf %404, %405 : vector<2x128xf32>
    %cst_95 = arith.constant dense<0.000000e+00> : vector<2x128xf32>
    %407 = tpu.matmul %363, %395, %cst_95 {dimension_numbers = #tpu.dot_dimension_numbers<[1], [0], [0], [1], [0, 0, 1, 1], [], []>} : vector<2x32xf32>, vector<32x128xf32>, vector<2x128xf32> -> vector<2x128xf32>
    %408 = arith.addf %406, %407 : vector<2x128xf32>
    %409 = vector.broadcast %396 : vector<1x128xf32> to vector<2x128xf32>
    %410 = arith.addf %408, %409 : vector<2x128xf32>
    %cst_96 = arith.constant 0.000000e+00 : f32
    %411 = vector.broadcast %cst_96 : f32 to vector<2x128xf32>
    %412 = arith.subf %411, %410 : vector<2x128xf32>
    %413 = math.exp %412 : vector<2x128xf32>
    %cst_97 = arith.constant 1.000000e+00 : f32
    %414 = vector.broadcast %cst_97 : f32 to vector<2x128xf32>
    %415 = arith.addf %414, %413 : vector<2x128xf32>
    %cst_98 = arith.constant 1.000000e+00 : f32
    %416 = vector.broadcast %cst_98 : f32 to vector<2x128xf32>
    %417 = arith.divf %416, %415 : vector<2x128xf32>
    %418 = math.tanh %410 : vector<2x128xf32>
    %419 = vector.extract_strided_slice %417 {offsets = [0, 0], sizes = [2, 32], strides = [1, 1]} : vector<2x128xf32> to vector<2x32xf32>
    %420 = vector.extract_strided_slice %417 {offsets = [0, 32], sizes = [2, 32], strides = [1, 1]} : vector<2x128xf32> to vector<2x32xf32>
    %421 = vector.extract_strided_slice %418 {offsets = [0, 64], sizes = [2, 32], strides = [1, 1]} : vector<2x128xf32> to vector<2x32xf32>
    %422 = vector.extract_strided_slice %417 {offsets = [0, 96], sizes = [2, 32], strides = [1, 1]} : vector<2x128xf32> to vector<2x32xf32>
    %423 = arith.mulf %420, %370 : vector<2x32xf32>
    %424 = arith.mulf %419, %421 : vector<2x32xf32>
    %425 = arith.addf %423, %424 : vector<2x32xf32>
    %426 = math.tanh %425 : vector<2x32xf32>
    %427 = arith.mulf %422, %426 : vector<2x32xf32>
    %cst_99 = arith.constant dense<0.000000e+00> : vector<2x32xf32>
    %428 = tpu.matmul %427, %397, %cst_99 {dimension_numbers = #tpu.dot_dimension_numbers<[1], [0], [0], [1], [0, 0, 1, 1], [], []>} : vector<2x32xf32>, vector<32x32xf32>, vector<2x32xf32> -> vector<2x32xf32>
    %429 = vector.shape_cast %428 : vector<2x32xf32> to vector<2x1x32xf32>
    %430 = vector.broadcast %429 : vector<2x1x32xf32> to vector<2x8x32xf32>
    %431 = arith.addf %391, %430 : vector<2x8x32xf32>
    %432 = math.tanh %431 : vector<2x8x32xf32>
    %433 = vector.shape_cast %398 : vector<1x32xf32> to vector<1x1x32xf32>
    %434 = vector.broadcast %433 : vector<1x1x32xf32> to vector<2x8x32xf32>
    %435 = arith.mulf %432, %434 : vector<2x8x32xf32>
    %cst_100 = arith.constant dense<0.000000e+00> : vector<2x8xf32>
    %436 = vector.multi_reduction <add>, %435, %cst_100 [2] : vector<2x8x32xf32> to vector<2x8xf32>
    %437 = vector.broadcast %399 : vector<1x1xf32> to vector<2x8xf32>
    %438 = arith.addf %436, %437 : vector<2x8xf32>
    %cst_101 = arith.constant 1.000000e+00 : f32
    %439 = vector.broadcast %cst_101 : f32 to vector<2x8xf32>
    %440 = arith.subf %439, %386 : vector<2x8xf32>
    %cst_102 = arith.constant 1.000000e+10 : f32
    %441 = vector.broadcast %cst_102 : f32 to vector<2x8xf32>
    %442 = arith.mulf %441, %440 : vector<2x8xf32>
    %443 = arith.subf %438, %442 : vector<2x8xf32>
    %cst_103 = arith.constant dense<0xFF800000> : vector<2xf32>
    %444 = vector.multi_reduction <maximumf>, %443, %cst_103 [1] : vector<2x8xf32> to vector<2xf32>
    %445 = vector.shape_cast %444 : vector<2xf32> to vector<2x1xf32>
    %446 = vector.broadcast %445 : vector<2x1xf32> to vector<2x8xf32>
    %447 = arith.subf %443, %446 : vector<2x8xf32>
    %448 = math.exp %447 : vector<2x8xf32>
    %cst_104 = arith.constant dense<0.000000e+00> : vector<2xf32>
    %449 = vector.multi_reduction <add>, %448, %cst_104 [1] : vector<2x8xf32> to vector<2xf32>
    %450 = vector.shape_cast %449 : vector<2xf32> to vector<2x1xf32>
    %451 = vector.broadcast %450 : vector<2x1xf32> to vector<2x8xf32>
    %452 = arith.divf %448, %451 : vector<2x8xf32>
    %453 = vector.shape_cast %452 : vector<2x8xf32> to vector<2x8x1xf32>
    %454 = vector.broadcast %453 : vector<2x8x1xf32> to vector<2x8x32xf32>
    %455 = arith.mulf %454, %381 : vector<2x8x32xf32>
    %cst_105 = arith.constant dense<0.000000e+00> : vector<2x32xf32>
    %456 = vector.multi_reduction <add>, %455, %cst_105 [1] : vector<2x8x32xf32> to vector<2x32xf32>
    %457 = arith.addf %456, %427 : vector<2x32xf32>
    %cst_106 = arith.constant dense<0.000000e+00> : vector<2x32xf32>
    %458 = tpu.matmul %457, %400, %cst_106 {dimension_numbers = #tpu.dot_dimension_numbers<[1], [0], [0], [1], [0, 0, 1, 1], [], []>} : vector<2x32xf32>, vector<32x32xf32>, vector<2x32xf32> -> vector<2x32xf32>
    %459 = vector.shape_cast %458 : vector<2x32xf32> to vector<2x1x32xf32>
    %460 = vector.broadcast %459 : vector<2x1x32xf32> to vector<2x8x32xf32>
    %461 = arith.addf %393, %460 : vector<2x8x32xf32>
    %462 = math.tanh %461 : vector<2x8x32xf32>
    %463 = vector.shape_cast %401 : vector<1x32xf32> to vector<1x1x32xf32>
    %464 = vector.broadcast %463 : vector<1x1x32xf32> to vector<2x8x32xf32>
    %465 = arith.mulf %462, %464 : vector<2x8x32xf32>
    %cst_107 = arith.constant dense<0.000000e+00> : vector<2x8xf32>
    %466 = vector.multi_reduction <add>, %465, %cst_107 [2] : vector<2x8x32xf32> to vector<2x8xf32>
    %467 = vector.broadcast %402 : vector<1x1xf32> to vector<2x8xf32>
    %468 = arith.addf %466, %467 : vector<2x8xf32>
    %cst_108 = arith.constant 1.000000e+00 : f32
    %469 = vector.broadcast %cst_108 : f32 to vector<2x8xf32>
    %470 = arith.subf %469, %386 : vector<2x8xf32>
    %cst_109 = arith.constant 1.000000e+10 : f32
    %471 = vector.broadcast %cst_109 : f32 to vector<2x8xf32>
    %472 = arith.mulf %471, %470 : vector<2x8xf32>
    %473 = arith.subf %468, %472 : vector<2x8xf32>
    %cst_110 = arith.constant dense<0xFF800000> : vector<2xf32>
    %474 = vector.multi_reduction <maximumf>, %473, %cst_110 [1] : vector<2x8xf32> to vector<2xf32>
    %475 = vector.shape_cast %474 : vector<2xf32> to vector<2x1xf32>
    %476 = vector.broadcast %475 : vector<2x1xf32> to vector<2x8xf32>
    %477 = arith.subf %473, %476 : vector<2x8xf32>
    %478 = math.exp %477 : vector<2x8xf32>
    %cst_111 = arith.constant dense<0.000000e+00> : vector<2xf32>
    %479 = vector.multi_reduction <add>, %478, %cst_111 [1] : vector<2x8xf32> to vector<2xf32>
    %480 = vector.shape_cast %479 : vector<2xf32> to vector<2x1xf32>
    %481 = math.log %480 : vector<2x1xf32>
    %482 = vector.broadcast %481 : vector<2x1xf32> to vector<2x8xf32>
    %483 = arith.subf %477, %482 : vector<2x8xf32>
    %484 = vector.extract_strided_slice %2 {offsets = [0, 0, 0], sizes = [1, 2, 8], strides = [1, 1, 1]} : vector<8x2x8xf32> to vector<1x2x8xf32>
    %485 = vector.shape_cast %484 : vector<1x2x8xf32> to vector<2x8xf32>
    %486 = arith.addf %483, %485 : vector<2x8xf32>
    %cst_112 = arith.constant dense<0xFF800000> : vector<2xf32>
    %487 = vector.multi_reduction <maximumf>, %486, %cst_112 [1] : vector<2x8xf32> to vector<2xf32>
    %488 = vector.shape_cast %487 : vector<2xf32> to vector<2x1xf32>
    %489 = vector.broadcast %488 : vector<2x1xf32> to vector<2x8xf32>
    %490 = arith.cmpf oge, %486, %489 : vector<2x8xf32>
    %c8_i32 = arith.constant 8 : i32
    %491 = vector.broadcast %c8_i32 : i32 to vector<2x8xi32>
    %492 = arith.select %490, %382, %491 : vector<2x8xi1>, vector<2x8xi32>
    %cst_113 = arith.constant dense<2147483647> : vector<2xi32>
    %493 = vector.multi_reduction <minsi>, %492, %cst_113 [1] : vector<2x8xi32> to vector<2xi32>
    %494 = vector.shape_cast %493 : vector<2xi32> to vector<2x1xi32>
    %495 = vector.broadcast %494 : vector<2x1xi32> to vector<2x8xi32>
    %496 = arith.cmpi eq, %382, %495 : vector<2x8xi32>
    %cst_114 = arith.constant 0.000000e+00 : f32
    %497 = vector.broadcast %cst_114 : f32 to vector<2x8xf32>
    %498 = arith.select %496, %497, %386 : vector<2x8xi1>, vector<2x8xf32>
    %cst_115 = arith.constant 0.000000e+00 : f32
    %499 = vector.broadcast %cst_115 : f32 to vector<2x8xf32>
    %500 = arith.select %496, %483, %499 : vector<2x8xi1>, vector<2x8xf32>
    %cst_116 = arith.constant dense<0.000000e+00> : vector<2xf32>
    %501 = vector.multi_reduction <add>, %500, %cst_116 [1] : vector<2x8xf32> to vector<2xf32>
    %502 = vector.shape_cast %501 : vector<2xf32> to vector<2x1xf32>
    %503 = arith.sitofp %494 : vector<2x1xi32> to vector<2x1xf32>
    %504 = vector.broadcast %503 : vector<2x1xf32> to vector<2x128xf32>
    %505 = vector.broadcast %394 : vector<1x128xf32> to vector<2x128xf32>
    %506 = arith.mulf %504, %505 : vector<2x128xf32>
    %cst_117 = arith.constant dense<0.000000e+00> : vector<2x128xf32>
    %507 = tpu.matmul %427, %395, %cst_117 {dimension_numbers = #tpu.dot_dimension_numbers<[1], [0], [0], [1], [0, 0, 1, 1], [], []>} : vector<2x32xf32>, vector<32x128xf32>, vector<2x128xf32> -> vector<2x128xf32>
    %508 = arith.addf %506, %507 : vector<2x128xf32>
    %509 = vector.broadcast %396 : vector<1x128xf32> to vector<2x128xf32>
    %510 = arith.addf %508, %509 : vector<2x128xf32>
    %cst_118 = arith.constant 0.000000e+00 : f32
    %511 = vector.broadcast %cst_118 : f32 to vector<2x128xf32>
    %512 = arith.subf %511, %510 : vector<2x128xf32>
    %513 = math.exp %512 : vector<2x128xf32>
    %cst_119 = arith.constant 1.000000e+00 : f32
    %514 = vector.broadcast %cst_119 : f32 to vector<2x128xf32>
    %515 = arith.addf %514, %513 : vector<2x128xf32>
    %cst_120 = arith.constant 1.000000e+00 : f32
    %516 = vector.broadcast %cst_120 : f32 to vector<2x128xf32>
    %517 = arith.divf %516, %515 : vector<2x128xf32>
    %518 = math.tanh %510 : vector<2x128xf32>
    %519 = vector.extract_strided_slice %517 {offsets = [0, 0], sizes = [2, 32], strides = [1, 1]} : vector<2x128xf32> to vector<2x32xf32>
    %520 = vector.extract_strided_slice %517 {offsets = [0, 32], sizes = [2, 32], strides = [1, 1]} : vector<2x128xf32> to vector<2x32xf32>
    %521 = vector.extract_strided_slice %518 {offsets = [0, 64], sizes = [2, 32], strides = [1, 1]} : vector<2x128xf32> to vector<2x32xf32>
    %522 = vector.extract_strided_slice %517 {offsets = [0, 96], sizes = [2, 32], strides = [1, 1]} : vector<2x128xf32> to vector<2x32xf32>
    %523 = arith.mulf %520, %425 : vector<2x32xf32>
    %524 = arith.mulf %519, %521 : vector<2x32xf32>
    %525 = arith.addf %523, %524 : vector<2x32xf32>
    %526 = math.tanh %525 : vector<2x32xf32>
    %527 = arith.mulf %522, %526 : vector<2x32xf32>
    %cst_121 = arith.constant dense<0.000000e+00> : vector<2x32xf32>
    %528 = tpu.matmul %527, %397, %cst_121 {dimension_numbers = #tpu.dot_dimension_numbers<[1], [0], [0], [1], [0, 0, 1, 1], [], []>} : vector<2x32xf32>, vector<32x32xf32>, vector<2x32xf32> -> vector<2x32xf32>
    %529 = vector.shape_cast %528 : vector<2x32xf32> to vector<2x1x32xf32>
    %530 = vector.broadcast %529 : vector<2x1x32xf32> to vector<2x8x32xf32>
    %531 = arith.addf %391, %530 : vector<2x8x32xf32>
    %532 = math.tanh %531 : vector<2x8x32xf32>
    %533 = vector.shape_cast %398 : vector<1x32xf32> to vector<1x1x32xf32>
    %534 = vector.broadcast %533 : vector<1x1x32xf32> to vector<2x8x32xf32>
    %535 = arith.mulf %532, %534 : vector<2x8x32xf32>
    %cst_122 = arith.constant dense<0.000000e+00> : vector<2x8xf32>
    %536 = vector.multi_reduction <add>, %535, %cst_122 [2] : vector<2x8x32xf32> to vector<2x8xf32>
    %537 = vector.broadcast %399 : vector<1x1xf32> to vector<2x8xf32>
    %538 = arith.addf %536, %537 : vector<2x8xf32>
    %cst_123 = arith.constant 1.000000e+00 : f32
    %539 = vector.broadcast %cst_123 : f32 to vector<2x8xf32>
    %540 = arith.subf %539, %498 : vector<2x8xf32>
    %cst_124 = arith.constant 1.000000e+10 : f32
    %541 = vector.broadcast %cst_124 : f32 to vector<2x8xf32>
    %542 = arith.mulf %541, %540 : vector<2x8xf32>
    %543 = arith.subf %538, %542 : vector<2x8xf32>
    %cst_125 = arith.constant dense<0xFF800000> : vector<2xf32>
    %544 = vector.multi_reduction <maximumf>, %543, %cst_125 [1] : vector<2x8xf32> to vector<2xf32>
    %545 = vector.shape_cast %544 : vector<2xf32> to vector<2x1xf32>
    %546 = vector.broadcast %545 : vector<2x1xf32> to vector<2x8xf32>
    %547 = arith.subf %543, %546 : vector<2x8xf32>
    %548 = math.exp %547 : vector<2x8xf32>
    %cst_126 = arith.constant dense<0.000000e+00> : vector<2xf32>
    %549 = vector.multi_reduction <add>, %548, %cst_126 [1] : vector<2x8xf32> to vector<2xf32>
    %550 = vector.shape_cast %549 : vector<2xf32> to vector<2x1xf32>
    %551 = vector.broadcast %550 : vector<2x1xf32> to vector<2x8xf32>
    %552 = arith.divf %548, %551 : vector<2x8xf32>
    %553 = vector.shape_cast %552 : vector<2x8xf32> to vector<2x8x1xf32>
    %554 = vector.broadcast %553 : vector<2x8x1xf32> to vector<2x8x32xf32>
    %555 = arith.mulf %554, %381 : vector<2x8x32xf32>
    %cst_127 = arith.constant dense<0.000000e+00> : vector<2x32xf32>
    %556 = vector.multi_reduction <add>, %555, %cst_127 [1] : vector<2x8x32xf32> to vector<2x32xf32>
    %557 = arith.addf %556, %527 : vector<2x32xf32>
    %cst_128 = arith.constant dense<0.000000e+00> : vector<2x32xf32>
    %558 = tpu.matmul %557, %400, %cst_128 {dimension_numbers = #tpu.dot_dimension_numbers<[1], [0], [0], [1], [0, 0, 1, 1], [], []>} : vector<2x32xf32>, vector<32x32xf32>, vector<2x32xf32> -> vector<2x32xf32>
    %559 = vector.shape_cast %558 : vector<2x32xf32> to vector<2x1x32xf32>
    %560 = vector.broadcast %559 : vector<2x1x32xf32> to vector<2x8x32xf32>
    %561 = arith.addf %393, %560 : vector<2x8x32xf32>
    %562 = math.tanh %561 : vector<2x8x32xf32>
    %563 = vector.shape_cast %401 : vector<1x32xf32> to vector<1x1x32xf32>
    %564 = vector.broadcast %563 : vector<1x1x32xf32> to vector<2x8x32xf32>
    %565 = arith.mulf %562, %564 : vector<2x8x32xf32>
    %cst_129 = arith.constant dense<0.000000e+00> : vector<2x8xf32>
    %566 = vector.multi_reduction <add>, %565, %cst_129 [2] : vector<2x8x32xf32> to vector<2x8xf32>
    %567 = vector.broadcast %402 : vector<1x1xf32> to vector<2x8xf32>
    %568 = arith.addf %566, %567 : vector<2x8xf32>
    %cst_130 = arith.constant 1.000000e+00 : f32
    %569 = vector.broadcast %cst_130 : f32 to vector<2x8xf32>
    %570 = arith.subf %569, %498 : vector<2x8xf32>
    %cst_131 = arith.constant 1.000000e+10 : f32
    %571 = vector.broadcast %cst_131 : f32 to vector<2x8xf32>
    %572 = arith.mulf %571, %570 : vector<2x8xf32>
    %573 = arith.subf %568, %572 : vector<2x8xf32>
    %cst_132 = arith.constant dense<0xFF800000> : vector<2xf32>
    %574 = vector.multi_reduction <maximumf>, %573, %cst_132 [1] : vector<2x8xf32> to vector<2xf32>
    %575 = vector.shape_cast %574 : vector<2xf32> to vector<2x1xf32>
    %576 = vector.broadcast %575 : vector<2x1xf32> to vector<2x8xf32>
    %577 = arith.subf %573, %576 : vector<2x8xf32>
    %578 = math.exp %577 : vector<2x8xf32>
    %cst_133 = arith.constant dense<0.000000e+00> : vector<2xf32>
    %579 = vector.multi_reduction <add>, %578, %cst_133 [1] : vector<2x8xf32> to vector<2xf32>
    %580 = vector.shape_cast %579 : vector<2xf32> to vector<2x1xf32>
    %581 = math.log %580 : vector<2x1xf32>
    %582 = vector.broadcast %581 : vector<2x1xf32> to vector<2x8xf32>
    %583 = arith.subf %577, %582 : vector<2x8xf32>
    %584 = vector.extract_strided_slice %2 {offsets = [1, 0, 0], sizes = [1, 2, 8], strides = [1, 1, 1]} : vector<8x2x8xf32> to vector<1x2x8xf32>
    %585 = vector.shape_cast %584 : vector<1x2x8xf32> to vector<2x8xf32>
    %586 = arith.addf %583, %585 : vector<2x8xf32>
    %cst_134 = arith.constant dense<0xFF800000> : vector<2xf32>
    %587 = vector.multi_reduction <maximumf>, %586, %cst_134 [1] : vector<2x8xf32> to vector<2xf32>
    %588 = vector.shape_cast %587 : vector<2xf32> to vector<2x1xf32>
    %589 = vector.broadcast %588 : vector<2x1xf32> to vector<2x8xf32>
    %590 = arith.cmpf oge, %586, %589 : vector<2x8xf32>
    %c8_i32_135 = arith.constant 8 : i32
    %591 = vector.broadcast %c8_i32_135 : i32 to vector<2x8xi32>
    %592 = arith.select %590, %382, %591 : vector<2x8xi1>, vector<2x8xi32>
    %cst_136 = arith.constant dense<2147483647> : vector<2xi32>
    %593 = vector.multi_reduction <minsi>, %592, %cst_136 [1] : vector<2x8xi32> to vector<2xi32>
    %594 = vector.shape_cast %593 : vector<2xi32> to vector<2x1xi32>
    %595 = vector.broadcast %594 : vector<2x1xi32> to vector<2x8xi32>
    %596 = arith.cmpi eq, %382, %595 : vector<2x8xi32>
    %cst_137 = arith.constant 0.000000e+00 : f32
    %597 = vector.broadcast %cst_137 : f32 to vector<2x8xf32>
    %598 = arith.select %596, %597, %498 : vector<2x8xi1>, vector<2x8xf32>
    %cst_138 = arith.constant 0.000000e+00 : f32
    %599 = vector.broadcast %cst_138 : f32 to vector<2x8xf32>
    %600 = arith.select %596, %583, %599 : vector<2x8xi1>, vector<2x8xf32>
    %cst_139 = arith.constant dense<0.000000e+00> : vector<2xf32>
    %601 = vector.multi_reduction <add>, %600, %cst_139 [1] : vector<2x8xf32> to vector<2xf32>
    %602 = vector.shape_cast %601 : vector<2xf32> to vector<2x1xf32>
    %603 = arith.sitofp %594 : vector<2x1xi32> to vector<2x1xf32>
    %604 = vector.broadcast %603 : vector<2x1xf32> to vector<2x128xf32>
    %605 = vector.broadcast %394 : vector<1x128xf32> to vector<2x128xf32>
    %606 = arith.mulf %604, %605 : vector<2x128xf32>
    %cst_140 = arith.constant dense<0.000000e+00> : vector<2x128xf32>
    %607 = tpu.matmul %527, %395, %cst_140 {dimension_numbers = #tpu.dot_dimension_numbers<[1], [0], [0], [1], [0, 0, 1, 1], [], []>} : vector<2x32xf32>, vector<32x128xf32>, vector<2x128xf32> -> vector<2x128xf32>
    %608 = arith.addf %606, %607 : vector<2x128xf32>
    %609 = vector.broadcast %396 : vector<1x128xf32> to vector<2x128xf32>
    %610 = arith.addf %608, %609 : vector<2x128xf32>
    %cst_141 = arith.constant 0.000000e+00 : f32
    %611 = vector.broadcast %cst_141 : f32 to vector<2x128xf32>
    %612 = arith.subf %611, %610 : vector<2x128xf32>
    %613 = math.exp %612 : vector<2x128xf32>
    %cst_142 = arith.constant 1.000000e+00 : f32
    %614 = vector.broadcast %cst_142 : f32 to vector<2x128xf32>
    %615 = arith.addf %614, %613 : vector<2x128xf32>
    %cst_143 = arith.constant 1.000000e+00 : f32
    %616 = vector.broadcast %cst_143 : f32 to vector<2x128xf32>
    %617 = arith.divf %616, %615 : vector<2x128xf32>
    %618 = math.tanh %610 : vector<2x128xf32>
    %619 = vector.extract_strided_slice %617 {offsets = [0, 0], sizes = [2, 32], strides = [1, 1]} : vector<2x128xf32> to vector<2x32xf32>
    %620 = vector.extract_strided_slice %617 {offsets = [0, 32], sizes = [2, 32], strides = [1, 1]} : vector<2x128xf32> to vector<2x32xf32>
    %621 = vector.extract_strided_slice %618 {offsets = [0, 64], sizes = [2, 32], strides = [1, 1]} : vector<2x128xf32> to vector<2x32xf32>
    %622 = vector.extract_strided_slice %617 {offsets = [0, 96], sizes = [2, 32], strides = [1, 1]} : vector<2x128xf32> to vector<2x32xf32>
    %623 = arith.mulf %620, %525 : vector<2x32xf32>
    %624 = arith.mulf %619, %621 : vector<2x32xf32>
    %625 = arith.addf %623, %624 : vector<2x32xf32>
    %626 = math.tanh %625 : vector<2x32xf32>
    %627 = arith.mulf %622, %626 : vector<2x32xf32>
    %cst_144 = arith.constant dense<0.000000e+00> : vector<2x32xf32>
    %628 = tpu.matmul %627, %397, %cst_144 {dimension_numbers = #tpu.dot_dimension_numbers<[1], [0], [0], [1], [0, 0, 1, 1], [], []>} : vector<2x32xf32>, vector<32x32xf32>, vector<2x32xf32> -> vector<2x32xf32>
    %629 = vector.shape_cast %628 : vector<2x32xf32> to vector<2x1x32xf32>
    %630 = vector.broadcast %629 : vector<2x1x32xf32> to vector<2x8x32xf32>
    %631 = arith.addf %391, %630 : vector<2x8x32xf32>
    %632 = math.tanh %631 : vector<2x8x32xf32>
    %633 = vector.shape_cast %398 : vector<1x32xf32> to vector<1x1x32xf32>
    %634 = vector.broadcast %633 : vector<1x1x32xf32> to vector<2x8x32xf32>
    %635 = arith.mulf %632, %634 : vector<2x8x32xf32>
    %cst_145 = arith.constant dense<0.000000e+00> : vector<2x8xf32>
    %636 = vector.multi_reduction <add>, %635, %cst_145 [2] : vector<2x8x32xf32> to vector<2x8xf32>
    %637 = vector.broadcast %399 : vector<1x1xf32> to vector<2x8xf32>
    %638 = arith.addf %636, %637 : vector<2x8xf32>
    %cst_146 = arith.constant 1.000000e+00 : f32
    %639 = vector.broadcast %cst_146 : f32 to vector<2x8xf32>
    %640 = arith.subf %639, %598 : vector<2x8xf32>
    %cst_147 = arith.constant 1.000000e+10 : f32
    %641 = vector.broadcast %cst_147 : f32 to vector<2x8xf32>
    %642 = arith.mulf %641, %640 : vector<2x8xf32>
    %643 = arith.subf %638, %642 : vector<2x8xf32>
    %cst_148 = arith.constant dense<0xFF800000> : vector<2xf32>
    %644 = vector.multi_reduction <maximumf>, %643, %cst_148 [1] : vector<2x8xf32> to vector<2xf32>
    %645 = vector.shape_cast %644 : vector<2xf32> to vector<2x1xf32>
    %646 = vector.broadcast %645 : vector<2x1xf32> to vector<2x8xf32>
    %647 = arith.subf %643, %646 : vector<2x8xf32>
    %648 = math.exp %647 : vector<2x8xf32>
    %cst_149 = arith.constant dense<0.000000e+00> : vector<2xf32>
    %649 = vector.multi_reduction <add>, %648, %cst_149 [1] : vector<2x8xf32> to vector<2xf32>
    %650 = vector.shape_cast %649 : vector<2xf32> to vector<2x1xf32>
    %651 = vector.broadcast %650 : vector<2x1xf32> to vector<2x8xf32>
    %652 = arith.divf %648, %651 : vector<2x8xf32>
    %653 = vector.shape_cast %652 : vector<2x8xf32> to vector<2x8x1xf32>
    %654 = vector.broadcast %653 : vector<2x8x1xf32> to vector<2x8x32xf32>
    %655 = arith.mulf %654, %381 : vector<2x8x32xf32>
    %cst_150 = arith.constant dense<0.000000e+00> : vector<2x32xf32>
    %656 = vector.multi_reduction <add>, %655, %cst_150 [1] : vector<2x8x32xf32> to vector<2x32xf32>
    %657 = arith.addf %656, %627 : vector<2x32xf32>
    %cst_151 = arith.constant dense<0.000000e+00> : vector<2x32xf32>
    %658 = tpu.matmul %657, %400, %cst_151 {dimension_numbers = #tpu.dot_dimension_numbers<[1], [0], [0], [1], [0, 0, 1, 1], [], []>} : vector<2x32xf32>, vector<32x32xf32>, vector<2x32xf32> -> vector<2x32xf32>
    %659 = vector.shape_cast %658 : vector<2x32xf32> to vector<2x1x32xf32>
    %660 = vector.broadcast %659 : vector<2x1x32xf32> to vector<2x8x32xf32>
    %661 = arith.addf %393, %660 : vector<2x8x32xf32>
    %662 = math.tanh %661 : vector<2x8x32xf32>
    %663 = vector.shape_cast %401 : vector<1x32xf32> to vector<1x1x32xf32>
    %664 = vector.broadcast %663 : vector<1x1x32xf32> to vector<2x8x32xf32>
    %665 = arith.mulf %662, %664 : vector<2x8x32xf32>
    %cst_152 = arith.constant dense<0.000000e+00> : vector<2x8xf32>
    %666 = vector.multi_reduction <add>, %665, %cst_152 [2] : vector<2x8x32xf32> to vector<2x8xf32>
    %667 = vector.broadcast %402 : vector<1x1xf32> to vector<2x8xf32>
    %668 = arith.addf %666, %667 : vector<2x8xf32>
    %cst_153 = arith.constant 1.000000e+00 : f32
    %669 = vector.broadcast %cst_153 : f32 to vector<2x8xf32>
    %670 = arith.subf %669, %598 : vector<2x8xf32>
    %cst_154 = arith.constant 1.000000e+10 : f32
    %671 = vector.broadcast %cst_154 : f32 to vector<2x8xf32>
    %672 = arith.mulf %671, %670 : vector<2x8xf32>
    %673 = arith.subf %668, %672 : vector<2x8xf32>
    %cst_155 = arith.constant dense<0xFF800000> : vector<2xf32>
    %674 = vector.multi_reduction <maximumf>, %673, %cst_155 [1] : vector<2x8xf32> to vector<2xf32>
    %675 = vector.shape_cast %674 : vector<2xf32> to vector<2x1xf32>
    %676 = vector.broadcast %675 : vector<2x1xf32> to vector<2x8xf32>
    %677 = arith.subf %673, %676 : vector<2x8xf32>
    %678 = math.exp %677 : vector<2x8xf32>
    %cst_156 = arith.constant dense<0.000000e+00> : vector<2xf32>
    %679 = vector.multi_reduction <add>, %678, %cst_156 [1] : vector<2x8xf32> to vector<2xf32>
    %680 = vector.shape_cast %679 : vector<2xf32> to vector<2x1xf32>
    %681 = math.log %680 : vector<2x1xf32>
    %682 = vector.broadcast %681 : vector<2x1xf32> to vector<2x8xf32>
    %683 = arith.subf %677, %682 : vector<2x8xf32>
    %684 = vector.extract_strided_slice %2 {offsets = [2, 0, 0], sizes = [1, 2, 8], strides = [1, 1, 1]} : vector<8x2x8xf32> to vector<1x2x8xf32>
    %685 = vector.shape_cast %684 : vector<1x2x8xf32> to vector<2x8xf32>
    %686 = arith.addf %683, %685 : vector<2x8xf32>
    %cst_157 = arith.constant dense<0xFF800000> : vector<2xf32>
    %687 = vector.multi_reduction <maximumf>, %686, %cst_157 [1] : vector<2x8xf32> to vector<2xf32>
    %688 = vector.shape_cast %687 : vector<2xf32> to vector<2x1xf32>
    %689 = vector.broadcast %688 : vector<2x1xf32> to vector<2x8xf32>
    %690 = arith.cmpf oge, %686, %689 : vector<2x8xf32>
    %c8_i32_158 = arith.constant 8 : i32
    %691 = vector.broadcast %c8_i32_158 : i32 to vector<2x8xi32>
    %692 = arith.select %690, %382, %691 : vector<2x8xi1>, vector<2x8xi32>
    %cst_159 = arith.constant dense<2147483647> : vector<2xi32>
    %693 = vector.multi_reduction <minsi>, %692, %cst_159 [1] : vector<2x8xi32> to vector<2xi32>
    %694 = vector.shape_cast %693 : vector<2xi32> to vector<2x1xi32>
    %695 = vector.broadcast %694 : vector<2x1xi32> to vector<2x8xi32>
    %696 = arith.cmpi eq, %382, %695 : vector<2x8xi32>
    %cst_160 = arith.constant 0.000000e+00 : f32
    %697 = vector.broadcast %cst_160 : f32 to vector<2x8xf32>
    %698 = arith.select %696, %697, %598 : vector<2x8xi1>, vector<2x8xf32>
    %cst_161 = arith.constant 0.000000e+00 : f32
    %699 = vector.broadcast %cst_161 : f32 to vector<2x8xf32>
    %700 = arith.select %696, %683, %699 : vector<2x8xi1>, vector<2x8xf32>
    %cst_162 = arith.constant dense<0.000000e+00> : vector<2xf32>
    %701 = vector.multi_reduction <add>, %700, %cst_162 [1] : vector<2x8xf32> to vector<2xf32>
    %702 = vector.shape_cast %701 : vector<2xf32> to vector<2x1xf32>
    %703 = arith.sitofp %694 : vector<2x1xi32> to vector<2x1xf32>
    %704 = vector.broadcast %703 : vector<2x1xf32> to vector<2x128xf32>
    %705 = vector.broadcast %394 : vector<1x128xf32> to vector<2x128xf32>
    %706 = arith.mulf %704, %705 : vector<2x128xf32>
    %cst_163 = arith.constant dense<0.000000e+00> : vector<2x128xf32>
    %707 = tpu.matmul %627, %395, %cst_163 {dimension_numbers = #tpu.dot_dimension_numbers<[1], [0], [0], [1], [0, 0, 1, 1], [], []>} : vector<2x32xf32>, vector<32x128xf32>, vector<2x128xf32> -> vector<2x128xf32>
    %708 = arith.addf %706, %707 : vector<2x128xf32>
    %709 = vector.broadcast %396 : vector<1x128xf32> to vector<2x128xf32>
    %710 = arith.addf %708, %709 : vector<2x128xf32>
    %cst_164 = arith.constant 0.000000e+00 : f32
    %711 = vector.broadcast %cst_164 : f32 to vector<2x128xf32>
    %712 = arith.subf %711, %710 : vector<2x128xf32>
    %713 = math.exp %712 : vector<2x128xf32>
    %cst_165 = arith.constant 1.000000e+00 : f32
    %714 = vector.broadcast %cst_165 : f32 to vector<2x128xf32>
    %715 = arith.addf %714, %713 : vector<2x128xf32>
    %cst_166 = arith.constant 1.000000e+00 : f32
    %716 = vector.broadcast %cst_166 : f32 to vector<2x128xf32>
    %717 = arith.divf %716, %715 : vector<2x128xf32>
    %718 = math.tanh %710 : vector<2x128xf32>
    %719 = vector.extract_strided_slice %717 {offsets = [0, 0], sizes = [2, 32], strides = [1, 1]} : vector<2x128xf32> to vector<2x32xf32>
    %720 = vector.extract_strided_slice %717 {offsets = [0, 32], sizes = [2, 32], strides = [1, 1]} : vector<2x128xf32> to vector<2x32xf32>
    %721 = vector.extract_strided_slice %718 {offsets = [0, 64], sizes = [2, 32], strides = [1, 1]} : vector<2x128xf32> to vector<2x32xf32>
    %722 = vector.extract_strided_slice %717 {offsets = [0, 96], sizes = [2, 32], strides = [1, 1]} : vector<2x128xf32> to vector<2x32xf32>
    %723 = arith.mulf %720, %625 : vector<2x32xf32>
    %724 = arith.mulf %719, %721 : vector<2x32xf32>
    %725 = arith.addf %723, %724 : vector<2x32xf32>
    %726 = math.tanh %725 : vector<2x32xf32>
    %727 = arith.mulf %722, %726 : vector<2x32xf32>
    %cst_167 = arith.constant dense<0.000000e+00> : vector<2x32xf32>
    %728 = tpu.matmul %727, %397, %cst_167 {dimension_numbers = #tpu.dot_dimension_numbers<[1], [0], [0], [1], [0, 0, 1, 1], [], []>} : vector<2x32xf32>, vector<32x32xf32>, vector<2x32xf32> -> vector<2x32xf32>
    %729 = vector.shape_cast %728 : vector<2x32xf32> to vector<2x1x32xf32>
    %730 = vector.broadcast %729 : vector<2x1x32xf32> to vector<2x8x32xf32>
    %731 = arith.addf %391, %730 : vector<2x8x32xf32>
    %732 = math.tanh %731 : vector<2x8x32xf32>
    %733 = vector.shape_cast %398 : vector<1x32xf32> to vector<1x1x32xf32>
    %734 = vector.broadcast %733 : vector<1x1x32xf32> to vector<2x8x32xf32>
    %735 = arith.mulf %732, %734 : vector<2x8x32xf32>
    %cst_168 = arith.constant dense<0.000000e+00> : vector<2x8xf32>
    %736 = vector.multi_reduction <add>, %735, %cst_168 [2] : vector<2x8x32xf32> to vector<2x8xf32>
    %737 = vector.broadcast %399 : vector<1x1xf32> to vector<2x8xf32>
    %738 = arith.addf %736, %737 : vector<2x8xf32>
    %cst_169 = arith.constant 1.000000e+00 : f32
    %739 = vector.broadcast %cst_169 : f32 to vector<2x8xf32>
    %740 = arith.subf %739, %698 : vector<2x8xf32>
    %cst_170 = arith.constant 1.000000e+10 : f32
    %741 = vector.broadcast %cst_170 : f32 to vector<2x8xf32>
    %742 = arith.mulf %741, %740 : vector<2x8xf32>
    %743 = arith.subf %738, %742 : vector<2x8xf32>
    %cst_171 = arith.constant dense<0xFF800000> : vector<2xf32>
    %744 = vector.multi_reduction <maximumf>, %743, %cst_171 [1] : vector<2x8xf32> to vector<2xf32>
    %745 = vector.shape_cast %744 : vector<2xf32> to vector<2x1xf32>
    %746 = vector.broadcast %745 : vector<2x1xf32> to vector<2x8xf32>
    %747 = arith.subf %743, %746 : vector<2x8xf32>
    %748 = math.exp %747 : vector<2x8xf32>
    %cst_172 = arith.constant dense<0.000000e+00> : vector<2xf32>
    %749 = vector.multi_reduction <add>, %748, %cst_172 [1] : vector<2x8xf32> to vector<2xf32>
    %750 = vector.shape_cast %749 : vector<2xf32> to vector<2x1xf32>
    %751 = vector.broadcast %750 : vector<2x1xf32> to vector<2x8xf32>
    %752 = arith.divf %748, %751 : vector<2x8xf32>
    %753 = vector.shape_cast %752 : vector<2x8xf32> to vector<2x8x1xf32>
    %754 = vector.broadcast %753 : vector<2x8x1xf32> to vector<2x8x32xf32>
    %755 = arith.mulf %754, %381 : vector<2x8x32xf32>
    %cst_173 = arith.constant dense<0.000000e+00> : vector<2x32xf32>
    %756 = vector.multi_reduction <add>, %755, %cst_173 [1] : vector<2x8x32xf32> to vector<2x32xf32>
    %757 = arith.addf %756, %727 : vector<2x32xf32>
    %cst_174 = arith.constant dense<0.000000e+00> : vector<2x32xf32>
    %758 = tpu.matmul %757, %400, %cst_174 {dimension_numbers = #tpu.dot_dimension_numbers<[1], [0], [0], [1], [0, 0, 1, 1], [], []>} : vector<2x32xf32>, vector<32x32xf32>, vector<2x32xf32> -> vector<2x32xf32>
    %759 = vector.shape_cast %758 : vector<2x32xf32> to vector<2x1x32xf32>
    %760 = vector.broadcast %759 : vector<2x1x32xf32> to vector<2x8x32xf32>
    %761 = arith.addf %393, %760 : vector<2x8x32xf32>
    %762 = math.tanh %761 : vector<2x8x32xf32>
    %763 = vector.shape_cast %401 : vector<1x32xf32> to vector<1x1x32xf32>
    %764 = vector.broadcast %763 : vector<1x1x32xf32> to vector<2x8x32xf32>
    %765 = arith.mulf %762, %764 : vector<2x8x32xf32>
    %cst_175 = arith.constant dense<0.000000e+00> : vector<2x8xf32>
    %766 = vector.multi_reduction <add>, %765, %cst_175 [2] : vector<2x8x32xf32> to vector<2x8xf32>
    %767 = vector.broadcast %402 : vector<1x1xf32> to vector<2x8xf32>
    %768 = arith.addf %766, %767 : vector<2x8xf32>
    %cst_176 = arith.constant 1.000000e+00 : f32
    %769 = vector.broadcast %cst_176 : f32 to vector<2x8xf32>
    %770 = arith.subf %769, %698 : vector<2x8xf32>
    %cst_177 = arith.constant 1.000000e+10 : f32
    %771 = vector.broadcast %cst_177 : f32 to vector<2x8xf32>
    %772 = arith.mulf %771, %770 : vector<2x8xf32>
    %773 = arith.subf %768, %772 : vector<2x8xf32>
    %cst_178 = arith.constant dense<0xFF800000> : vector<2xf32>
    %774 = vector.multi_reduction <maximumf>, %773, %cst_178 [1] : vector<2x8xf32> to vector<2xf32>
    %775 = vector.shape_cast %774 : vector<2xf32> to vector<2x1xf32>
    %776 = vector.broadcast %775 : vector<2x1xf32> to vector<2x8xf32>
    %777 = arith.subf %773, %776 : vector<2x8xf32>
    %778 = math.exp %777 : vector<2x8xf32>
    %cst_179 = arith.constant dense<0.000000e+00> : vector<2xf32>
    %779 = vector.multi_reduction <add>, %778, %cst_179 [1] : vector<2x8xf32> to vector<2xf32>
    %780 = vector.shape_cast %779 : vector<2xf32> to vector<2x1xf32>
    %781 = math.log %780 : vector<2x1xf32>
    %782 = vector.broadcast %781 : vector<2x1xf32> to vector<2x8xf32>
    %783 = arith.subf %777, %782 : vector<2x8xf32>
    %784 = vector.extract_strided_slice %2 {offsets = [3, 0, 0], sizes = [1, 2, 8], strides = [1, 1, 1]} : vector<8x2x8xf32> to vector<1x2x8xf32>
    %785 = vector.shape_cast %784 : vector<1x2x8xf32> to vector<2x8xf32>
    %786 = arith.addf %783, %785 : vector<2x8xf32>
    %cst_180 = arith.constant dense<0xFF800000> : vector<2xf32>
    %787 = vector.multi_reduction <maximumf>, %786, %cst_180 [1] : vector<2x8xf32> to vector<2xf32>
    %788 = vector.shape_cast %787 : vector<2xf32> to vector<2x1xf32>
    %789 = vector.broadcast %788 : vector<2x1xf32> to vector<2x8xf32>
    %790 = arith.cmpf oge, %786, %789 : vector<2x8xf32>
    %c8_i32_181 = arith.constant 8 : i32
    %791 = vector.broadcast %c8_i32_181 : i32 to vector<2x8xi32>
    %792 = arith.select %790, %382, %791 : vector<2x8xi1>, vector<2x8xi32>
    %cst_182 = arith.constant dense<2147483647> : vector<2xi32>
    %793 = vector.multi_reduction <minsi>, %792, %cst_182 [1] : vector<2x8xi32> to vector<2xi32>
    %794 = vector.shape_cast %793 : vector<2xi32> to vector<2x1xi32>
    %795 = vector.broadcast %794 : vector<2x1xi32> to vector<2x8xi32>
    %796 = arith.cmpi eq, %382, %795 : vector<2x8xi32>
    %cst_183 = arith.constant 0.000000e+00 : f32
    %797 = vector.broadcast %cst_183 : f32 to vector<2x8xf32>
    %798 = arith.select %796, %797, %698 : vector<2x8xi1>, vector<2x8xf32>
    %cst_184 = arith.constant 0.000000e+00 : f32
    %799 = vector.broadcast %cst_184 : f32 to vector<2x8xf32>
    %800 = arith.select %796, %783, %799 : vector<2x8xi1>, vector<2x8xf32>
    %cst_185 = arith.constant dense<0.000000e+00> : vector<2xf32>
    %801 = vector.multi_reduction <add>, %800, %cst_185 [1] : vector<2x8xf32> to vector<2xf32>
    %802 = vector.shape_cast %801 : vector<2xf32> to vector<2x1xf32>
    %803 = arith.sitofp %794 : vector<2x1xi32> to vector<2x1xf32>
    %804 = vector.broadcast %803 : vector<2x1xf32> to vector<2x128xf32>
    %805 = vector.broadcast %394 : vector<1x128xf32> to vector<2x128xf32>
    %806 = arith.mulf %804, %805 : vector<2x128xf32>
    %cst_186 = arith.constant dense<0.000000e+00> : vector<2x128xf32>
    %807 = tpu.matmul %727, %395, %cst_186 {dimension_numbers = #tpu.dot_dimension_numbers<[1], [0], [0], [1], [0, 0, 1, 1], [], []>} : vector<2x32xf32>, vector<32x128xf32>, vector<2x128xf32> -> vector<2x128xf32>
    %808 = arith.addf %806, %807 : vector<2x128xf32>
    %809 = vector.broadcast %396 : vector<1x128xf32> to vector<2x128xf32>
    %810 = arith.addf %808, %809 : vector<2x128xf32>
    %cst_187 = arith.constant 0.000000e+00 : f32
    %811 = vector.broadcast %cst_187 : f32 to vector<2x128xf32>
    %812 = arith.subf %811, %810 : vector<2x128xf32>
    %813 = math.exp %812 : vector<2x128xf32>
    %cst_188 = arith.constant 1.000000e+00 : f32
    %814 = vector.broadcast %cst_188 : f32 to vector<2x128xf32>
    %815 = arith.addf %814, %813 : vector<2x128xf32>
    %cst_189 = arith.constant 1.000000e+00 : f32
    %816 = vector.broadcast %cst_189 : f32 to vector<2x128xf32>
    %817 = arith.divf %816, %815 : vector<2x128xf32>
    %818 = math.tanh %810 : vector<2x128xf32>
    %819 = vector.extract_strided_slice %817 {offsets = [0, 0], sizes = [2, 32], strides = [1, 1]} : vector<2x128xf32> to vector<2x32xf32>
    %820 = vector.extract_strided_slice %817 {offsets = [0, 32], sizes = [2, 32], strides = [1, 1]} : vector<2x128xf32> to vector<2x32xf32>
    %821 = vector.extract_strided_slice %818 {offsets = [0, 64], sizes = [2, 32], strides = [1, 1]} : vector<2x128xf32> to vector<2x32xf32>
    %822 = vector.extract_strided_slice %817 {offsets = [0, 96], sizes = [2, 32], strides = [1, 1]} : vector<2x128xf32> to vector<2x32xf32>
    %823 = arith.mulf %820, %725 : vector<2x32xf32>
    %824 = arith.mulf %819, %821 : vector<2x32xf32>
    %825 = arith.addf %823, %824 : vector<2x32xf32>
    %826 = math.tanh %825 : vector<2x32xf32>
    %827 = arith.mulf %822, %826 : vector<2x32xf32>
    %cst_190 = arith.constant dense<0.000000e+00> : vector<2x32xf32>
    %828 = tpu.matmul %827, %397, %cst_190 {dimension_numbers = #tpu.dot_dimension_numbers<[1], [0], [0], [1], [0, 0, 1, 1], [], []>} : vector<2x32xf32>, vector<32x32xf32>, vector<2x32xf32> -> vector<2x32xf32>
    %829 = vector.shape_cast %828 : vector<2x32xf32> to vector<2x1x32xf32>
    %830 = vector.broadcast %829 : vector<2x1x32xf32> to vector<2x8x32xf32>
    %831 = arith.addf %391, %830 : vector<2x8x32xf32>
    %832 = math.tanh %831 : vector<2x8x32xf32>
    %833 = vector.shape_cast %398 : vector<1x32xf32> to vector<1x1x32xf32>
    %834 = vector.broadcast %833 : vector<1x1x32xf32> to vector<2x8x32xf32>
    %835 = arith.mulf %832, %834 : vector<2x8x32xf32>
    %cst_191 = arith.constant dense<0.000000e+00> : vector<2x8xf32>
    %836 = vector.multi_reduction <add>, %835, %cst_191 [2] : vector<2x8x32xf32> to vector<2x8xf32>
    %837 = vector.broadcast %399 : vector<1x1xf32> to vector<2x8xf32>
    %838 = arith.addf %836, %837 : vector<2x8xf32>
    %cst_192 = arith.constant 1.000000e+00 : f32
    %839 = vector.broadcast %cst_192 : f32 to vector<2x8xf32>
    %840 = arith.subf %839, %798 : vector<2x8xf32>
    %cst_193 = arith.constant 1.000000e+10 : f32
    %841 = vector.broadcast %cst_193 : f32 to vector<2x8xf32>
    %842 = arith.mulf %841, %840 : vector<2x8xf32>
    %843 = arith.subf %838, %842 : vector<2x8xf32>
    %cst_194 = arith.constant dense<0xFF800000> : vector<2xf32>
    %844 = vector.multi_reduction <maximumf>, %843, %cst_194 [1] : vector<2x8xf32> to vector<2xf32>
    %845 = vector.shape_cast %844 : vector<2xf32> to vector<2x1xf32>
    %846 = vector.broadcast %845 : vector<2x1xf32> to vector<2x8xf32>
    %847 = arith.subf %843, %846 : vector<2x8xf32>
    %848 = math.exp %847 : vector<2x8xf32>
    %cst_195 = arith.constant dense<0.000000e+00> : vector<2xf32>
    %849 = vector.multi_reduction <add>, %848, %cst_195 [1] : vector<2x8xf32> to vector<2xf32>
    %850 = vector.shape_cast %849 : vector<2xf32> to vector<2x1xf32>
    %851 = vector.broadcast %850 : vector<2x1xf32> to vector<2x8xf32>
    %852 = arith.divf %848, %851 : vector<2x8xf32>
    %853 = vector.shape_cast %852 : vector<2x8xf32> to vector<2x8x1xf32>
    %854 = vector.broadcast %853 : vector<2x8x1xf32> to vector<2x8x32xf32>
    %855 = arith.mulf %854, %381 : vector<2x8x32xf32>
    %cst_196 = arith.constant dense<0.000000e+00> : vector<2x32xf32>
    %856 = vector.multi_reduction <add>, %855, %cst_196 [1] : vector<2x8x32xf32> to vector<2x32xf32>
    %857 = arith.addf %856, %827 : vector<2x32xf32>
    %cst_197 = arith.constant dense<0.000000e+00> : vector<2x32xf32>
    %858 = tpu.matmul %857, %400, %cst_197 {dimension_numbers = #tpu.dot_dimension_numbers<[1], [0], [0], [1], [0, 0, 1, 1], [], []>} : vector<2x32xf32>, vector<32x32xf32>, vector<2x32xf32> -> vector<2x32xf32>
    %859 = vector.shape_cast %858 : vector<2x32xf32> to vector<2x1x32xf32>
    %860 = vector.broadcast %859 : vector<2x1x32xf32> to vector<2x8x32xf32>
    %861 = arith.addf %393, %860 : vector<2x8x32xf32>
    %862 = math.tanh %861 : vector<2x8x32xf32>
    %863 = vector.shape_cast %401 : vector<1x32xf32> to vector<1x1x32xf32>
    %864 = vector.broadcast %863 : vector<1x1x32xf32> to vector<2x8x32xf32>
    %865 = arith.mulf %862, %864 : vector<2x8x32xf32>
    %cst_198 = arith.constant dense<0.000000e+00> : vector<2x8xf32>
    %866 = vector.multi_reduction <add>, %865, %cst_198 [2] : vector<2x8x32xf32> to vector<2x8xf32>
    %867 = vector.broadcast %402 : vector<1x1xf32> to vector<2x8xf32>
    %868 = arith.addf %866, %867 : vector<2x8xf32>
    %cst_199 = arith.constant 1.000000e+00 : f32
    %869 = vector.broadcast %cst_199 : f32 to vector<2x8xf32>
    %870 = arith.subf %869, %798 : vector<2x8xf32>
    %cst_200 = arith.constant 1.000000e+10 : f32
    %871 = vector.broadcast %cst_200 : f32 to vector<2x8xf32>
    %872 = arith.mulf %871, %870 : vector<2x8xf32>
    %873 = arith.subf %868, %872 : vector<2x8xf32>
    %cst_201 = arith.constant dense<0xFF800000> : vector<2xf32>
    %874 = vector.multi_reduction <maximumf>, %873, %cst_201 [1] : vector<2x8xf32> to vector<2xf32>
    %875 = vector.shape_cast %874 : vector<2xf32> to vector<2x1xf32>
    %876 = vector.broadcast %875 : vector<2x1xf32> to vector<2x8xf32>
    %877 = arith.subf %873, %876 : vector<2x8xf32>
    %878 = math.exp %877 : vector<2x8xf32>
    %cst_202 = arith.constant dense<0.000000e+00> : vector<2xf32>
    %879 = vector.multi_reduction <add>, %878, %cst_202 [1] : vector<2x8xf32> to vector<2xf32>
    %880 = vector.shape_cast %879 : vector<2xf32> to vector<2x1xf32>
    %881 = math.log %880 : vector<2x1xf32>
    %882 = vector.broadcast %881 : vector<2x1xf32> to vector<2x8xf32>
    %883 = arith.subf %877, %882 : vector<2x8xf32>
    %884 = vector.extract_strided_slice %2 {offsets = [4, 0, 0], sizes = [1, 2, 8], strides = [1, 1, 1]} : vector<8x2x8xf32> to vector<1x2x8xf32>
    %885 = vector.shape_cast %884 : vector<1x2x8xf32> to vector<2x8xf32>
    %886 = arith.addf %883, %885 : vector<2x8xf32>
    %cst_203 = arith.constant dense<0xFF800000> : vector<2xf32>
    %887 = vector.multi_reduction <maximumf>, %886, %cst_203 [1] : vector<2x8xf32> to vector<2xf32>
    %888 = vector.shape_cast %887 : vector<2xf32> to vector<2x1xf32>
    %889 = vector.broadcast %888 : vector<2x1xf32> to vector<2x8xf32>
    %890 = arith.cmpf oge, %886, %889 : vector<2x8xf32>
    %c8_i32_204 = arith.constant 8 : i32
    %891 = vector.broadcast %c8_i32_204 : i32 to vector<2x8xi32>
    %892 = arith.select %890, %382, %891 : vector<2x8xi1>, vector<2x8xi32>
    %cst_205 = arith.constant dense<2147483647> : vector<2xi32>
    %893 = vector.multi_reduction <minsi>, %892, %cst_205 [1] : vector<2x8xi32> to vector<2xi32>
    %894 = vector.shape_cast %893 : vector<2xi32> to vector<2x1xi32>
    %895 = vector.broadcast %894 : vector<2x1xi32> to vector<2x8xi32>
    %896 = arith.cmpi eq, %382, %895 : vector<2x8xi32>
    %cst_206 = arith.constant 0.000000e+00 : f32
    %897 = vector.broadcast %cst_206 : f32 to vector<2x8xf32>
    %898 = arith.select %896, %897, %798 : vector<2x8xi1>, vector<2x8xf32>
    %cst_207 = arith.constant 0.000000e+00 : f32
    %899 = vector.broadcast %cst_207 : f32 to vector<2x8xf32>
    %900 = arith.select %896, %883, %899 : vector<2x8xi1>, vector<2x8xf32>
    %cst_208 = arith.constant dense<0.000000e+00> : vector<2xf32>
    %901 = vector.multi_reduction <add>, %900, %cst_208 [1] : vector<2x8xf32> to vector<2xf32>
    %902 = vector.shape_cast %901 : vector<2xf32> to vector<2x1xf32>
    %903 = arith.sitofp %894 : vector<2x1xi32> to vector<2x1xf32>
    %904 = vector.broadcast %903 : vector<2x1xf32> to vector<2x128xf32>
    %905 = vector.broadcast %394 : vector<1x128xf32> to vector<2x128xf32>
    %906 = arith.mulf %904, %905 : vector<2x128xf32>
    %cst_209 = arith.constant dense<0.000000e+00> : vector<2x128xf32>
    %907 = tpu.matmul %827, %395, %cst_209 {dimension_numbers = #tpu.dot_dimension_numbers<[1], [0], [0], [1], [0, 0, 1, 1], [], []>} : vector<2x32xf32>, vector<32x128xf32>, vector<2x128xf32> -> vector<2x128xf32>
    %908 = arith.addf %906, %907 : vector<2x128xf32>
    %909 = vector.broadcast %396 : vector<1x128xf32> to vector<2x128xf32>
    %910 = arith.addf %908, %909 : vector<2x128xf32>
    %cst_210 = arith.constant 0.000000e+00 : f32
    %911 = vector.broadcast %cst_210 : f32 to vector<2x128xf32>
    %912 = arith.subf %911, %910 : vector<2x128xf32>
    %913 = math.exp %912 : vector<2x128xf32>
    %cst_211 = arith.constant 1.000000e+00 : f32
    %914 = vector.broadcast %cst_211 : f32 to vector<2x128xf32>
    %915 = arith.addf %914, %913 : vector<2x128xf32>
    %cst_212 = arith.constant 1.000000e+00 : f32
    %916 = vector.broadcast %cst_212 : f32 to vector<2x128xf32>
    %917 = arith.divf %916, %915 : vector<2x128xf32>
    %918 = math.tanh %910 : vector<2x128xf32>
    %919 = vector.extract_strided_slice %917 {offsets = [0, 0], sizes = [2, 32], strides = [1, 1]} : vector<2x128xf32> to vector<2x32xf32>
    %920 = vector.extract_strided_slice %917 {offsets = [0, 32], sizes = [2, 32], strides = [1, 1]} : vector<2x128xf32> to vector<2x32xf32>
    %921 = vector.extract_strided_slice %918 {offsets = [0, 64], sizes = [2, 32], strides = [1, 1]} : vector<2x128xf32> to vector<2x32xf32>
    %922 = vector.extract_strided_slice %917 {offsets = [0, 96], sizes = [2, 32], strides = [1, 1]} : vector<2x128xf32> to vector<2x32xf32>
    %923 = arith.mulf %920, %825 : vector<2x32xf32>
    %924 = arith.mulf %919, %921 : vector<2x32xf32>
    %925 = arith.addf %923, %924 : vector<2x32xf32>
    %926 = math.tanh %925 : vector<2x32xf32>
    %927 = arith.mulf %922, %926 : vector<2x32xf32>
    %cst_213 = arith.constant dense<0.000000e+00> : vector<2x32xf32>
    %928 = tpu.matmul %927, %397, %cst_213 {dimension_numbers = #tpu.dot_dimension_numbers<[1], [0], [0], [1], [0, 0, 1, 1], [], []>} : vector<2x32xf32>, vector<32x32xf32>, vector<2x32xf32> -> vector<2x32xf32>
    %929 = vector.shape_cast %928 : vector<2x32xf32> to vector<2x1x32xf32>
    %930 = vector.broadcast %929 : vector<2x1x32xf32> to vector<2x8x32xf32>
    %931 = arith.addf %391, %930 : vector<2x8x32xf32>
    %932 = math.tanh %931 : vector<2x8x32xf32>
    %933 = vector.shape_cast %398 : vector<1x32xf32> to vector<1x1x32xf32>
    %934 = vector.broadcast %933 : vector<1x1x32xf32> to vector<2x8x32xf32>
    %935 = arith.mulf %932, %934 : vector<2x8x32xf32>
    %cst_214 = arith.constant dense<0.000000e+00> : vector<2x8xf32>
    %936 = vector.multi_reduction <add>, %935, %cst_214 [2] : vector<2x8x32xf32> to vector<2x8xf32>
    %937 = vector.broadcast %399 : vector<1x1xf32> to vector<2x8xf32>
    %938 = arith.addf %936, %937 : vector<2x8xf32>
    %cst_215 = arith.constant 1.000000e+00 : f32
    %939 = vector.broadcast %cst_215 : f32 to vector<2x8xf32>
    %940 = arith.subf %939, %898 : vector<2x8xf32>
    %cst_216 = arith.constant 1.000000e+10 : f32
    %941 = vector.broadcast %cst_216 : f32 to vector<2x8xf32>
    %942 = arith.mulf %941, %940 : vector<2x8xf32>
    %943 = arith.subf %938, %942 : vector<2x8xf32>
    %cst_217 = arith.constant dense<0xFF800000> : vector<2xf32>
    %944 = vector.multi_reduction <maximumf>, %943, %cst_217 [1] : vector<2x8xf32> to vector<2xf32>
    %945 = vector.shape_cast %944 : vector<2xf32> to vector<2x1xf32>
    %946 = vector.broadcast %945 : vector<2x1xf32> to vector<2x8xf32>
    %947 = arith.subf %943, %946 : vector<2x8xf32>
    %948 = math.exp %947 : vector<2x8xf32>
    %cst_218 = arith.constant dense<0.000000e+00> : vector<2xf32>
    %949 = vector.multi_reduction <add>, %948, %cst_218 [1] : vector<2x8xf32> to vector<2xf32>
    %950 = vector.shape_cast %949 : vector<2xf32> to vector<2x1xf32>
    %951 = vector.broadcast %950 : vector<2x1xf32> to vector<2x8xf32>
    %952 = arith.divf %948, %951 : vector<2x8xf32>
    %953 = vector.shape_cast %952 : vector<2x8xf32> to vector<2x8x1xf32>
    %954 = vector.broadcast %953 : vector<2x8x1xf32> to vector<2x8x32xf32>
    %955 = arith.mulf %954, %381 : vector<2x8x32xf32>
    %cst_219 = arith.constant dense<0.000000e+00> : vector<2x32xf32>
    %956 = vector.multi_reduction <add>, %955, %cst_219 [1] : vector<2x8x32xf32> to vector<2x32xf32>
    %957 = arith.addf %956, %927 : vector<2x32xf32>
    %cst_220 = arith.constant dense<0.000000e+00> : vector<2x32xf32>
    %958 = tpu.matmul %957, %400, %cst_220 {dimension_numbers = #tpu.dot_dimension_numbers<[1], [0], [0], [1], [0, 0, 1, 1], [], []>} : vector<2x32xf32>, vector<32x32xf32>, vector<2x32xf32> -> vector<2x32xf32>
    %959 = vector.shape_cast %958 : vector<2x32xf32> to vector<2x1x32xf32>
    %960 = vector.broadcast %959 : vector<2x1x32xf32> to vector<2x8x32xf32>
    %961 = arith.addf %393, %960 : vector<2x8x32xf32>
    %962 = math.tanh %961 : vector<2x8x32xf32>
    %963 = vector.shape_cast %401 : vector<1x32xf32> to vector<1x1x32xf32>
    %964 = vector.broadcast %963 : vector<1x1x32xf32> to vector<2x8x32xf32>
    %965 = arith.mulf %962, %964 : vector<2x8x32xf32>
    %cst_221 = arith.constant dense<0.000000e+00> : vector<2x8xf32>
    %966 = vector.multi_reduction <add>, %965, %cst_221 [2] : vector<2x8x32xf32> to vector<2x8xf32>
    %967 = vector.broadcast %402 : vector<1x1xf32> to vector<2x8xf32>
    %968 = arith.addf %966, %967 : vector<2x8xf32>
    %cst_222 = arith.constant 1.000000e+00 : f32
    %969 = vector.broadcast %cst_222 : f32 to vector<2x8xf32>
    %970 = arith.subf %969, %898 : vector<2x8xf32>
    %cst_223 = arith.constant 1.000000e+10 : f32
    %971 = vector.broadcast %cst_223 : f32 to vector<2x8xf32>
    %972 = arith.mulf %971, %970 : vector<2x8xf32>
    %973 = arith.subf %968, %972 : vector<2x8xf32>
    %cst_224 = arith.constant dense<0xFF800000> : vector<2xf32>
    %974 = vector.multi_reduction <maximumf>, %973, %cst_224 [1] : vector<2x8xf32> to vector<2xf32>
    %975 = vector.shape_cast %974 : vector<2xf32> to vector<2x1xf32>
    %976 = vector.broadcast %975 : vector<2x1xf32> to vector<2x8xf32>
    %977 = arith.subf %973, %976 : vector<2x8xf32>
    %978 = math.exp %977 : vector<2x8xf32>
    %cst_225 = arith.constant dense<0.000000e+00> : vector<2xf32>
    %979 = vector.multi_reduction <add>, %978, %cst_225 [1] : vector<2x8xf32> to vector<2xf32>
    %980 = vector.shape_cast %979 : vector<2xf32> to vector<2x1xf32>
    %981 = math.log %980 : vector<2x1xf32>
    %982 = vector.broadcast %981 : vector<2x1xf32> to vector<2x8xf32>
    %983 = arith.subf %977, %982 : vector<2x8xf32>
    %984 = vector.extract_strided_slice %2 {offsets = [5, 0, 0], sizes = [1, 2, 8], strides = [1, 1, 1]} : vector<8x2x8xf32> to vector<1x2x8xf32>
    %985 = vector.shape_cast %984 : vector<1x2x8xf32> to vector<2x8xf32>
    %986 = arith.addf %983, %985 : vector<2x8xf32>
    %cst_226 = arith.constant dense<0xFF800000> : vector<2xf32>
    %987 = vector.multi_reduction <maximumf>, %986, %cst_226 [1] : vector<2x8xf32> to vector<2xf32>
    %988 = vector.shape_cast %987 : vector<2xf32> to vector<2x1xf32>
    %989 = vector.broadcast %988 : vector<2x1xf32> to vector<2x8xf32>
    %990 = arith.cmpf oge, %986, %989 : vector<2x8xf32>
    %c8_i32_227 = arith.constant 8 : i32
    %991 = vector.broadcast %c8_i32_227 : i32 to vector<2x8xi32>
    %992 = arith.select %990, %382, %991 : vector<2x8xi1>, vector<2x8xi32>
    %cst_228 = arith.constant dense<2147483647> : vector<2xi32>
    %993 = vector.multi_reduction <minsi>, %992, %cst_228 [1] : vector<2x8xi32> to vector<2xi32>
    %994 = vector.shape_cast %993 : vector<2xi32> to vector<2x1xi32>
    %995 = vector.broadcast %994 : vector<2x1xi32> to vector<2x8xi32>
    %996 = arith.cmpi eq, %382, %995 : vector<2x8xi32>
    %cst_229 = arith.constant 0.000000e+00 : f32
    %997 = vector.broadcast %cst_229 : f32 to vector<2x8xf32>
    %998 = arith.select %996, %997, %898 : vector<2x8xi1>, vector<2x8xf32>
    %cst_230 = arith.constant 0.000000e+00 : f32
    %999 = vector.broadcast %cst_230 : f32 to vector<2x8xf32>
    %1000 = arith.select %996, %983, %999 : vector<2x8xi1>, vector<2x8xf32>
    %cst_231 = arith.constant dense<0.000000e+00> : vector<2xf32>
    %1001 = vector.multi_reduction <add>, %1000, %cst_231 [1] : vector<2x8xf32> to vector<2xf32>
    %1002 = vector.shape_cast %1001 : vector<2xf32> to vector<2x1xf32>
    %1003 = arith.sitofp %994 : vector<2x1xi32> to vector<2x1xf32>
    %1004 = vector.broadcast %1003 : vector<2x1xf32> to vector<2x128xf32>
    %1005 = vector.broadcast %394 : vector<1x128xf32> to vector<2x128xf32>
    %1006 = arith.mulf %1004, %1005 : vector<2x128xf32>
    %cst_232 = arith.constant dense<0.000000e+00> : vector<2x128xf32>
    %1007 = tpu.matmul %927, %395, %cst_232 {dimension_numbers = #tpu.dot_dimension_numbers<[1], [0], [0], [1], [0, 0, 1, 1], [], []>} : vector<2x32xf32>, vector<32x128xf32>, vector<2x128xf32> -> vector<2x128xf32>
    %1008 = arith.addf %1006, %1007 : vector<2x128xf32>
    %1009 = vector.broadcast %396 : vector<1x128xf32> to vector<2x128xf32>
    %1010 = arith.addf %1008, %1009 : vector<2x128xf32>
    %cst_233 = arith.constant 0.000000e+00 : f32
    %1011 = vector.broadcast %cst_233 : f32 to vector<2x128xf32>
    %1012 = arith.subf %1011, %1010 : vector<2x128xf32>
    %1013 = math.exp %1012 : vector<2x128xf32>
    %cst_234 = arith.constant 1.000000e+00 : f32
    %1014 = vector.broadcast %cst_234 : f32 to vector<2x128xf32>
    %1015 = arith.addf %1014, %1013 : vector<2x128xf32>
    %cst_235 = arith.constant 1.000000e+00 : f32
    %1016 = vector.broadcast %cst_235 : f32 to vector<2x128xf32>
    %1017 = arith.divf %1016, %1015 : vector<2x128xf32>
    %1018 = math.tanh %1010 : vector<2x128xf32>
    %1019 = vector.extract_strided_slice %1017 {offsets = [0, 0], sizes = [2, 32], strides = [1, 1]} : vector<2x128xf32> to vector<2x32xf32>
    %1020 = vector.extract_strided_slice %1017 {offsets = [0, 32], sizes = [2, 32], strides = [1, 1]} : vector<2x128xf32> to vector<2x32xf32>
    %1021 = vector.extract_strided_slice %1018 {offsets = [0, 64], sizes = [2, 32], strides = [1, 1]} : vector<2x128xf32> to vector<2x32xf32>
    %1022 = vector.extract_strided_slice %1017 {offsets = [0, 96], sizes = [2, 32], strides = [1, 1]} : vector<2x128xf32> to vector<2x32xf32>
    %1023 = arith.mulf %1020, %925 : vector<2x32xf32>
    %1024 = arith.mulf %1019, %1021 : vector<2x32xf32>
    %1025 = arith.addf %1023, %1024 : vector<2x32xf32>
    %1026 = math.tanh %1025 : vector<2x32xf32>
    %1027 = arith.mulf %1022, %1026 : vector<2x32xf32>
    %cst_236 = arith.constant dense<0.000000e+00> : vector<2x32xf32>
    %1028 = tpu.matmul %1027, %397, %cst_236 {dimension_numbers = #tpu.dot_dimension_numbers<[1], [0], [0], [1], [0, 0, 1, 1], [], []>} : vector<2x32xf32>, vector<32x32xf32>, vector<2x32xf32> -> vector<2x32xf32>
    %1029 = vector.shape_cast %1028 : vector<2x32xf32> to vector<2x1x32xf32>
    %1030 = vector.broadcast %1029 : vector<2x1x32xf32> to vector<2x8x32xf32>
    %1031 = arith.addf %391, %1030 : vector<2x8x32xf32>
    %1032 = math.tanh %1031 : vector<2x8x32xf32>
    %1033 = vector.shape_cast %398 : vector<1x32xf32> to vector<1x1x32xf32>
    %1034 = vector.broadcast %1033 : vector<1x1x32xf32> to vector<2x8x32xf32>
    %1035 = arith.mulf %1032, %1034 : vector<2x8x32xf32>
    %cst_237 = arith.constant dense<0.000000e+00> : vector<2x8xf32>
    %1036 = vector.multi_reduction <add>, %1035, %cst_237 [2] : vector<2x8x32xf32> to vector<2x8xf32>
    %1037 = vector.broadcast %399 : vector<1x1xf32> to vector<2x8xf32>
    %1038 = arith.addf %1036, %1037 : vector<2x8xf32>
    %cst_238 = arith.constant 1.000000e+00 : f32
    %1039 = vector.broadcast %cst_238 : f32 to vector<2x8xf32>
    %1040 = arith.subf %1039, %998 : vector<2x8xf32>
    %cst_239 = arith.constant 1.000000e+10 : f32
    %1041 = vector.broadcast %cst_239 : f32 to vector<2x8xf32>
    %1042 = arith.mulf %1041, %1040 : vector<2x8xf32>
    %1043 = arith.subf %1038, %1042 : vector<2x8xf32>
    %cst_240 = arith.constant dense<0xFF800000> : vector<2xf32>
    %1044 = vector.multi_reduction <maximumf>, %1043, %cst_240 [1] : vector<2x8xf32> to vector<2xf32>
    %1045 = vector.shape_cast %1044 : vector<2xf32> to vector<2x1xf32>
    %1046 = vector.broadcast %1045 : vector<2x1xf32> to vector<2x8xf32>
    %1047 = arith.subf %1043, %1046 : vector<2x8xf32>
    %1048 = math.exp %1047 : vector<2x8xf32>
    %cst_241 = arith.constant dense<0.000000e+00> : vector<2xf32>
    %1049 = vector.multi_reduction <add>, %1048, %cst_241 [1] : vector<2x8xf32> to vector<2xf32>
    %1050 = vector.shape_cast %1049 : vector<2xf32> to vector<2x1xf32>
    %1051 = vector.broadcast %1050 : vector<2x1xf32> to vector<2x8xf32>
    %1052 = arith.divf %1048, %1051 : vector<2x8xf32>
    %1053 = vector.shape_cast %1052 : vector<2x8xf32> to vector<2x8x1xf32>
    %1054 = vector.broadcast %1053 : vector<2x8x1xf32> to vector<2x8x32xf32>
    %1055 = arith.mulf %1054, %381 : vector<2x8x32xf32>
    %cst_242 = arith.constant dense<0.000000e+00> : vector<2x32xf32>
    %1056 = vector.multi_reduction <add>, %1055, %cst_242 [1] : vector<2x8x32xf32> to vector<2x32xf32>
    %1057 = arith.addf %1056, %1027 : vector<2x32xf32>
    %cst_243 = arith.constant dense<0.000000e+00> : vector<2x32xf32>
    %1058 = tpu.matmul %1057, %400, %cst_243 {dimension_numbers = #tpu.dot_dimension_numbers<[1], [0], [0], [1], [0, 0, 1, 1], [], []>} : vector<2x32xf32>, vector<32x32xf32>, vector<2x32xf32> -> vector<2x32xf32>
    %1059 = vector.shape_cast %1058 : vector<2x32xf32> to vector<2x1x32xf32>
    %1060 = vector.broadcast %1059 : vector<2x1x32xf32> to vector<2x8x32xf32>
    %1061 = arith.addf %393, %1060 : vector<2x8x32xf32>
    %1062 = math.tanh %1061 : vector<2x8x32xf32>
    %1063 = vector.shape_cast %401 : vector<1x32xf32> to vector<1x1x32xf32>
    %1064 = vector.broadcast %1063 : vector<1x1x32xf32> to vector<2x8x32xf32>
    %1065 = arith.mulf %1062, %1064 : vector<2x8x32xf32>
    %cst_244 = arith.constant dense<0.000000e+00> : vector<2x8xf32>
    %1066 = vector.multi_reduction <add>, %1065, %cst_244 [2] : vector<2x8x32xf32> to vector<2x8xf32>
    %1067 = vector.broadcast %402 : vector<1x1xf32> to vector<2x8xf32>
    %1068 = arith.addf %1066, %1067 : vector<2x8xf32>
    %cst_245 = arith.constant 1.000000e+00 : f32
    %1069 = vector.broadcast %cst_245 : f32 to vector<2x8xf32>
    %1070 = arith.subf %1069, %998 : vector<2x8xf32>
    %cst_246 = arith.constant 1.000000e+10 : f32
    %1071 = vector.broadcast %cst_246 : f32 to vector<2x8xf32>
    %1072 = arith.mulf %1071, %1070 : vector<2x8xf32>
    %1073 = arith.subf %1068, %1072 : vector<2x8xf32>
    %cst_247 = arith.constant dense<0xFF800000> : vector<2xf32>
    %1074 = vector.multi_reduction <maximumf>, %1073, %cst_247 [1] : vector<2x8xf32> to vector<2xf32>
    %1075 = vector.shape_cast %1074 : vector<2xf32> to vector<2x1xf32>
    %1076 = vector.broadcast %1075 : vector<2x1xf32> to vector<2x8xf32>
    %1077 = arith.subf %1073, %1076 : vector<2x8xf32>
    %1078 = math.exp %1077 : vector<2x8xf32>
    %cst_248 = arith.constant dense<0.000000e+00> : vector<2xf32>
    %1079 = vector.multi_reduction <add>, %1078, %cst_248 [1] : vector<2x8xf32> to vector<2xf32>
    %1080 = vector.shape_cast %1079 : vector<2xf32> to vector<2x1xf32>
    %1081 = math.log %1080 : vector<2x1xf32>
    %1082 = vector.broadcast %1081 : vector<2x1xf32> to vector<2x8xf32>
    %1083 = arith.subf %1077, %1082 : vector<2x8xf32>
    %1084 = vector.extract_strided_slice %2 {offsets = [6, 0, 0], sizes = [1, 2, 8], strides = [1, 1, 1]} : vector<8x2x8xf32> to vector<1x2x8xf32>
    %1085 = vector.shape_cast %1084 : vector<1x2x8xf32> to vector<2x8xf32>
    %1086 = arith.addf %1083, %1085 : vector<2x8xf32>
    %cst_249 = arith.constant dense<0xFF800000> : vector<2xf32>
    %1087 = vector.multi_reduction <maximumf>, %1086, %cst_249 [1] : vector<2x8xf32> to vector<2xf32>
    %1088 = vector.shape_cast %1087 : vector<2xf32> to vector<2x1xf32>
    %1089 = vector.broadcast %1088 : vector<2x1xf32> to vector<2x8xf32>
    %1090 = arith.cmpf oge, %1086, %1089 : vector<2x8xf32>
    %c8_i32_250 = arith.constant 8 : i32
    %1091 = vector.broadcast %c8_i32_250 : i32 to vector<2x8xi32>
    %1092 = arith.select %1090, %382, %1091 : vector<2x8xi1>, vector<2x8xi32>
    %cst_251 = arith.constant dense<2147483647> : vector<2xi32>
    %1093 = vector.multi_reduction <minsi>, %1092, %cst_251 [1] : vector<2x8xi32> to vector<2xi32>
    %1094 = vector.shape_cast %1093 : vector<2xi32> to vector<2x1xi32>
    %1095 = vector.broadcast %1094 : vector<2x1xi32> to vector<2x8xi32>
    %1096 = arith.cmpi eq, %382, %1095 : vector<2x8xi32>
    %cst_252 = arith.constant 0.000000e+00 : f32
    %1097 = vector.broadcast %cst_252 : f32 to vector<2x8xf32>
    %1098 = arith.select %1096, %1097, %998 : vector<2x8xi1>, vector<2x8xf32>
    %cst_253 = arith.constant 0.000000e+00 : f32
    %1099 = vector.broadcast %cst_253 : f32 to vector<2x8xf32>
    %1100 = arith.select %1096, %1083, %1099 : vector<2x8xi1>, vector<2x8xf32>
    %cst_254 = arith.constant dense<0.000000e+00> : vector<2xf32>
    %1101 = vector.multi_reduction <add>, %1100, %cst_254 [1] : vector<2x8xf32> to vector<2xf32>
    %1102 = vector.shape_cast %1101 : vector<2xf32> to vector<2x1xf32>
    %1103 = arith.sitofp %1094 : vector<2x1xi32> to vector<2x1xf32>
    %1104 = vector.broadcast %1103 : vector<2x1xf32> to vector<2x128xf32>
    %1105 = vector.broadcast %394 : vector<1x128xf32> to vector<2x128xf32>
    %1106 = arith.mulf %1104, %1105 : vector<2x128xf32>
    %cst_255 = arith.constant dense<0.000000e+00> : vector<2x128xf32>
    %1107 = tpu.matmul %1027, %395, %cst_255 {dimension_numbers = #tpu.dot_dimension_numbers<[1], [0], [0], [1], [0, 0, 1, 1], [], []>} : vector<2x32xf32>, vector<32x128xf32>, vector<2x128xf32> -> vector<2x128xf32>
    %1108 = arith.addf %1106, %1107 : vector<2x128xf32>
    %1109 = vector.broadcast %396 : vector<1x128xf32> to vector<2x128xf32>
    %1110 = arith.addf %1108, %1109 : vector<2x128xf32>
    %cst_256 = arith.constant 0.000000e+00 : f32
    %1111 = vector.broadcast %cst_256 : f32 to vector<2x128xf32>
    %1112 = arith.subf %1111, %1110 : vector<2x128xf32>
    %1113 = math.exp %1112 : vector<2x128xf32>
    %cst_257 = arith.constant 1.000000e+00 : f32
    %1114 = vector.broadcast %cst_257 : f32 to vector<2x128xf32>
    %1115 = arith.addf %1114, %1113 : vector<2x128xf32>
    %cst_258 = arith.constant 1.000000e+00 : f32
    %1116 = vector.broadcast %cst_258 : f32 to vector<2x128xf32>
    %1117 = arith.divf %1116, %1115 : vector<2x128xf32>
    %1118 = math.tanh %1110 : vector<2x128xf32>
    %1119 = vector.extract_strided_slice %1117 {offsets = [0, 0], sizes = [2, 32], strides = [1, 1]} : vector<2x128xf32> to vector<2x32xf32>
    %1120 = vector.extract_strided_slice %1117 {offsets = [0, 32], sizes = [2, 32], strides = [1, 1]} : vector<2x128xf32> to vector<2x32xf32>
    %1121 = vector.extract_strided_slice %1118 {offsets = [0, 64], sizes = [2, 32], strides = [1, 1]} : vector<2x128xf32> to vector<2x32xf32>
    %1122 = vector.extract_strided_slice %1117 {offsets = [0, 96], sizes = [2, 32], strides = [1, 1]} : vector<2x128xf32> to vector<2x32xf32>
    %1123 = arith.mulf %1120, %1025 : vector<2x32xf32>
    %1124 = arith.mulf %1119, %1121 : vector<2x32xf32>
    %1125 = arith.addf %1123, %1124 : vector<2x32xf32>
    %1126 = math.tanh %1125 : vector<2x32xf32>
    %1127 = arith.mulf %1122, %1126 : vector<2x32xf32>
    %cst_259 = arith.constant dense<0.000000e+00> : vector<2x32xf32>
    %1128 = tpu.matmul %1127, %397, %cst_259 {dimension_numbers = #tpu.dot_dimension_numbers<[1], [0], [0], [1], [0, 0, 1, 1], [], []>} : vector<2x32xf32>, vector<32x32xf32>, vector<2x32xf32> -> vector<2x32xf32>
    %1129 = vector.shape_cast %1128 : vector<2x32xf32> to vector<2x1x32xf32>
    %1130 = vector.broadcast %1129 : vector<2x1x32xf32> to vector<2x8x32xf32>
    %1131 = arith.addf %391, %1130 : vector<2x8x32xf32>
    %1132 = math.tanh %1131 : vector<2x8x32xf32>
    %1133 = vector.shape_cast %398 : vector<1x32xf32> to vector<1x1x32xf32>
    %1134 = vector.broadcast %1133 : vector<1x1x32xf32> to vector<2x8x32xf32>
    %1135 = arith.mulf %1132, %1134 : vector<2x8x32xf32>
    %cst_260 = arith.constant dense<0.000000e+00> : vector<2x8xf32>
    %1136 = vector.multi_reduction <add>, %1135, %cst_260 [2] : vector<2x8x32xf32> to vector<2x8xf32>
    %1137 = vector.broadcast %399 : vector<1x1xf32> to vector<2x8xf32>
    %1138 = arith.addf %1136, %1137 : vector<2x8xf32>
    %cst_261 = arith.constant 1.000000e+00 : f32
    %1139 = vector.broadcast %cst_261 : f32 to vector<2x8xf32>
    %1140 = arith.subf %1139, %1098 : vector<2x8xf32>
    %cst_262 = arith.constant 1.000000e+10 : f32
    %1141 = vector.broadcast %cst_262 : f32 to vector<2x8xf32>
    %1142 = arith.mulf %1141, %1140 : vector<2x8xf32>
    %1143 = arith.subf %1138, %1142 : vector<2x8xf32>
    %cst_263 = arith.constant dense<0xFF800000> : vector<2xf32>
    %1144 = vector.multi_reduction <maximumf>, %1143, %cst_263 [1] : vector<2x8xf32> to vector<2xf32>
    %1145 = vector.shape_cast %1144 : vector<2xf32> to vector<2x1xf32>
    %1146 = vector.broadcast %1145 : vector<2x1xf32> to vector<2x8xf32>
    %1147 = arith.subf %1143, %1146 : vector<2x8xf32>
    %1148 = math.exp %1147 : vector<2x8xf32>
    %cst_264 = arith.constant dense<0.000000e+00> : vector<2xf32>
    %1149 = vector.multi_reduction <add>, %1148, %cst_264 [1] : vector<2x8xf32> to vector<2xf32>
    %1150 = vector.shape_cast %1149 : vector<2xf32> to vector<2x1xf32>
    %1151 = vector.broadcast %1150 : vector<2x1xf32> to vector<2x8xf32>
    %1152 = arith.divf %1148, %1151 : vector<2x8xf32>
    %1153 = vector.shape_cast %1152 : vector<2x8xf32> to vector<2x8x1xf32>
    %1154 = vector.broadcast %1153 : vector<2x8x1xf32> to vector<2x8x32xf32>
    %1155 = arith.mulf %1154, %381 : vector<2x8x32xf32>
    %cst_265 = arith.constant dense<0.000000e+00> : vector<2x32xf32>
    %1156 = vector.multi_reduction <add>, %1155, %cst_265 [1] : vector<2x8x32xf32> to vector<2x32xf32>
    %1157 = arith.addf %1156, %1127 : vector<2x32xf32>
    %cst_266 = arith.constant dense<0.000000e+00> : vector<2x32xf32>
    %1158 = tpu.matmul %1157, %400, %cst_266 {dimension_numbers = #tpu.dot_dimension_numbers<[1], [0], [0], [1], [0, 0, 1, 1], [], []>} : vector<2x32xf32>, vector<32x32xf32>, vector<2x32xf32> -> vector<2x32xf32>
    %1159 = vector.shape_cast %1158 : vector<2x32xf32> to vector<2x1x32xf32>
    %1160 = vector.broadcast %1159 : vector<2x1x32xf32> to vector<2x8x32xf32>
    %1161 = arith.addf %393, %1160 : vector<2x8x32xf32>
    %1162 = math.tanh %1161 : vector<2x8x32xf32>
    %1163 = vector.shape_cast %401 : vector<1x32xf32> to vector<1x1x32xf32>
    %1164 = vector.broadcast %1163 : vector<1x1x32xf32> to vector<2x8x32xf32>
    %1165 = arith.mulf %1162, %1164 : vector<2x8x32xf32>
    %cst_267 = arith.constant dense<0.000000e+00> : vector<2x8xf32>
    %1166 = vector.multi_reduction <add>, %1165, %cst_267 [2] : vector<2x8x32xf32> to vector<2x8xf32>
    %1167 = vector.broadcast %402 : vector<1x1xf32> to vector<2x8xf32>
    %1168 = arith.addf %1166, %1167 : vector<2x8xf32>
    %cst_268 = arith.constant 1.000000e+00 : f32
    %1169 = vector.broadcast %cst_268 : f32 to vector<2x8xf32>
    %1170 = arith.subf %1169, %1098 : vector<2x8xf32>
    %cst_269 = arith.constant 1.000000e+10 : f32
    %1171 = vector.broadcast %cst_269 : f32 to vector<2x8xf32>
    %1172 = arith.mulf %1171, %1170 : vector<2x8xf32>
    %1173 = arith.subf %1168, %1172 : vector<2x8xf32>
    %cst_270 = arith.constant dense<0xFF800000> : vector<2xf32>
    %1174 = vector.multi_reduction <maximumf>, %1173, %cst_270 [1] : vector<2x8xf32> to vector<2xf32>
    %1175 = vector.shape_cast %1174 : vector<2xf32> to vector<2x1xf32>
    %1176 = vector.broadcast %1175 : vector<2x1xf32> to vector<2x8xf32>
    %1177 = arith.subf %1173, %1176 : vector<2x8xf32>
    %1178 = math.exp %1177 : vector<2x8xf32>
    %cst_271 = arith.constant dense<0.000000e+00> : vector<2xf32>
    %1179 = vector.multi_reduction <add>, %1178, %cst_271 [1] : vector<2x8xf32> to vector<2xf32>
    %1180 = vector.shape_cast %1179 : vector<2xf32> to vector<2x1xf32>
    %1181 = math.log %1180 : vector<2x1xf32>
    %1182 = vector.broadcast %1181 : vector<2x1xf32> to vector<2x8xf32>
    %1183 = arith.subf %1177, %1182 : vector<2x8xf32>
    %1184 = vector.extract_strided_slice %2 {offsets = [7, 0, 0], sizes = [1, 2, 8], strides = [1, 1, 1]} : vector<8x2x8xf32> to vector<1x2x8xf32>
    %1185 = vector.shape_cast %1184 : vector<1x2x8xf32> to vector<2x8xf32>
    %1186 = arith.addf %1183, %1185 : vector<2x8xf32>
    %cst_272 = arith.constant dense<0xFF800000> : vector<2xf32>
    %1187 = vector.multi_reduction <maximumf>, %1186, %cst_272 [1] : vector<2x8xf32> to vector<2xf32>
    %1188 = vector.shape_cast %1187 : vector<2xf32> to vector<2x1xf32>
    %1189 = vector.broadcast %1188 : vector<2x1xf32> to vector<2x8xf32>
    %1190 = arith.cmpf oge, %1186, %1189 : vector<2x8xf32>
    %c8_i32_273 = arith.constant 8 : i32
    %1191 = vector.broadcast %c8_i32_273 : i32 to vector<2x8xi32>
    %1192 = arith.select %1190, %382, %1191 : vector<2x8xi1>, vector<2x8xi32>
    %cst_274 = arith.constant dense<2147483647> : vector<2xi32>
    %1193 = vector.multi_reduction <minsi>, %1192, %cst_274 [1] : vector<2x8xi32> to vector<2xi32>
    %1194 = vector.shape_cast %1193 : vector<2xi32> to vector<2x1xi32>
    %1195 = vector.broadcast %1194 : vector<2x1xi32> to vector<2x8xi32>
    %1196 = arith.cmpi eq, %382, %1195 : vector<2x8xi32>
    %cst_275 = arith.constant 0.000000e+00 : f32
    %1197 = vector.broadcast %cst_275 : f32 to vector<2x8xf32>
    %1198 = arith.select %1196, %1183, %1197 : vector<2x8xi1>, vector<2x8xf32>
    %cst_276 = arith.constant dense<0.000000e+00> : vector<2xf32>
    %1199 = vector.multi_reduction <add>, %1198, %cst_276 [1] : vector<2x8xf32> to vector<2xf32>
    %1200 = vector.shape_cast %1199 : vector<2xf32> to vector<2x1xf32>
    %1201 = tpu.concatenate %494, %594, %694, %794, %894, %994, %1094, %1194 in 1 : vector<2x1xi32>, vector<2x1xi32>, vector<2x1xi32>, vector<2x1xi32>, vector<2x1xi32>, vector<2x1xi32>, vector<2x1xi32>, vector<2x1xi32> -> vector<2x8xi32>
    %1202 = tpu.concatenate %502, %602, %702, %802, %902, %1002, %1102, %1200 in 1 : vector<2x1xf32>, vector<2x1xf32>, vector<2x1xf32>, vector<2x1xf32>, vector<2x1xf32>, vector<2x1xf32>, vector<2x1xf32>, vector<2x1xf32> -> vector<2x8xf32>
    %1203 = arith.mulf %1202, %386 : vector<2x8xf32>
    %c0_277 = arith.constant 0 : index
    %c0_278 = arith.constant 0 : index
    %1204 = vector.load %arg19[%c0_277, %c0_278] : memref<2x8xf32, #tpu.memory_space<vmem>>, vector<2x8xf32>
    tpu.vector_store %arg19[%c0_277, %c0_278], %1203 {strides = array<i32>} : memref<2x8xf32, #tpu.memory_space<vmem>>, vector<2x8xf32>,
    %1205 = arith.muli %1201, %385 : vector<2x8xi32>
    %c1_i32_279 = arith.constant 1 : i32
    %1206 = vector.broadcast %c1_i32_279 : i32 to vector<2x8xi32>
    %1207 = arith.subi %385, %1206 : vector<2x8xi32>
    %1208 = arith.addi %1205, %1207 : vector<2x8xi32>
    %c0_280 = arith.constant 0 : index
    %c0_281 = arith.constant 0 : index
    %1209 = vector.load %arg20[%c0_280, %c0_281] : memref<2x8xi32, #tpu.memory_space<vmem>>, vector<2x8xi32>
    tpu.vector_store %arg20[%c0_280, %c0_281], %1208 {strides = array<i32>} : memref<2x8xi32, #tpu.memory_space<vmem>>, vector<2x8xi32>,
    return
  }
}

</mosaic_0001>

<bundles_post_ra>
// kernel: actor_pointer_forward.1
= control target key start
LH: loop header
LB: loop body
LE: loop exit
PB: predicated region body
PF: predicated region fallthrough
CT: control target
= control target key end

     0   :  { %s10913_s0 = inlined_call_operand.vmem [shape: s32[2,1], index: 0, kind: input, shape index: {}]   ;;  %s10914_s1 = inlined_call_operand.hbm [shape: f32[2,8], index: 1, kind: input, shape index: {}]   ;;  %s10915_s2 = inlined_call_operand.vmem [shape: f32[8,2,8], index: 2, kind: input, shape index: {}]   ;;  %s10916_s3 = inlined_call_operand.vmem [shape: f32[1,32], index: 3, kind: input, shape index: {}]   ;;  %s10917_s4 = inlined_call_operand.hbm [shape: f32[1,32], index: 4, kind: input, shape index: {}]   ;;  %s10918_s5 = inlined_call_operand.hbm [shape: f32[1,32], index: 5, kind: input, shape index: {}]   ;;  %s10919_s6 = inlined_call_operand.vmem [shape: f32[32,128], index: 6, kind: input, shape index: {}]   ;;  %s10920_s7 = inlined_call_operand.vmem [shape: f32[32,128], index: 7, kind: input, shape index: {}]   ;;  %s10921_s8 = inlined_call_operand.hbm [shape: f32[1,128], index: 8, kind: input, shape index: {}]   ;;  %s10922_s9 = inlined_call_operand.hbm [shape: f32[1,128], index: 9, kind: input, shape index: {}]   ;;  %s10923_s10 = inlined_call_operand.vmem [shape: f32[32,128], index: 10, kind: input, shape index: {}]   ;;  %s10924_s11 = inlined_call_operand.vmem [shape: f32[1,128], index: 11, kind: input, shape index: {}]   ;;  %s10925_s12 = inlined_call_operand.vmem [shape: f32[32,64], index: 12, kind: input, shape index: {}]   ;;  %s10926_s13 = inlined_call_operand.vmem [shape: f32[32,32], index: 13, kind: input, shape index: {}]   ;;  %s10927_s14 = inlined_call_operand.vmem [shape: f32[1,32], index: 14, kind: input, shape index: {}]   ;;  %s10928_s15 = inlined_call_operand.<no memory space> [shape: f32[1,1], index: 15, kind: input, shape index: {}]   ;;  %s10929_s16 = inlined_call_operand.vmem [shape: f32[32,32], index: 16, kind: input, shape index: {}]   ;;  %s10930_s17 = inlined_call_operand.vmem [shape: f32[1,32], index: 17, kind: input, shape index: {}]   ;;  %s10931_s19 = inlined_call_operand.hbm [shape: f32[2,8], index: 19, kind: output, shape index: {0}]   ;;  %s10932_s20 = inlined_call_operand.hbm [shape: s32[2,8], index: 20, kind: output, shape index: {1}]   ;;  %s10933_s18 = inlined_call_operand.<no memory space> [shape: f32[1,1], index: 18, kind: input, shape index: {}]  }
   0x1   :  { %10947 = sst [smem:[#allocation24_spill]] %s10913_s0  ;;  %v26_v0 = vstv %s10928_s15  ;;  %v28_v1 = vstv %s10933_s18 }
   0x2   :  { %10948 = sst [smem:[#allocation25_spill]] %s10914_s1  ;;  %27 = vst [vmem:[#allocation2] sm:$0x1] %v26_v0  ;;  %29 = vst [vmem:[#allocation3] sm:$0x1] %v28_v1 }
   0x3   :  { %10949 = sst [smem:[#allocation26_spill]] %s10915_s2 }
   0x4   :  { %10950 = sst [smem:[#allocation27_spill]] %s10916_s3 }
   0x5   :  { %10951 = sst [smem:[#allocation28_spill]] %s10917_s4 }
   0x6   :  { %30 = vsyncpa [#allocation5], 0 }
   0x7   :  { %31 = vsyncpa [#allocation8], 0 }
   0x8   :  { %32 = vsyncpa [#allocation11], 0 }
   0x9   :  { %33 = vsyncpa [#allocation6], 0 }
   0xa   :  { %34 = vsyncpa [#allocation15], 0  ;;  %s8886_s2 = smov [#allocation7]   ;;  %s8887_s3 = smov [#allocation10]  }
   0xb   :  { %s57_s25 = sshll.u32 %s8886_s2, 4  ;;  %s81_s26 = sshll.u32 %s8887_s3, 4  ;;  %s58_s25 = int_to_ptr.vmem [resolvable:$true] %s57_s25  ;;  %s82_s26 = int_to_ptr.vmem [resolvable:$true] %s81_s26 }
   0xc   :  { %s10952_s15 = sld [smem:[#allocation28_spill]] }
  0x12   :  { %s8722_s4 = scalar_lea.hbm %s10952_s15, 16 }
  0x13   :  { %p8723_p0 = scmp.ne.s32.totalorder %s10952_s15, %s8722_s4  ;;  %p8726_p1 = scmp.lt.u32.totalorder %s8722_s4, %s10952_s15 }
  0x15   :  { %p8728_p2 = pnand %p8726_p1, %p8723_p0 }
  0x17   :  { %8731 = shalt.err (!%p8728_p2)
}
  0x18   :  { %s8732_s21 = scalar_lea.vmem %s58_s25, 16  ;;  %s8736_s1 = scalar_lea.vmem %s58_s25, 32 }
  0x19   :  { %p8733_p3 = scmp.ne.s32.totalorder %s58_s25, %s8732_s21  ;;  %p8737_p4 = scmp.lt.s32.totalorder %s58_s25, %s58_s25 }
  0x1a   :  { %p8738_p5 = scmp.lt.s32.totalorder %s8736_s1, %s8732_s21 }
  0x1c   :  { %p8739_p6 = por %p8738_p5, %p8737_p4 }
  0x1e   :  { %p8740_p7 = pnand %p8739_p6, %p8733_p3 }
  0x20   :  { %8743 = shalt.err (!%p8740_p7)
}
  0x21   :  { %60 = dma.hbm_to_vmem [thread:$0]  %s10952_s15, 16, %s58_s25, [#allocation8]  }
  0x22   :  { %s8744_s3 = scalar_lea.hbm %s10921_s8, 16 }
  0x23   :  { %p8745_p8 = scmp.ne.s32.totalorder %s10921_s8, %s8744_s3  ;;  %p8748_p9 = scmp.lt.u32.totalorder %s8744_s3, %s10921_s8 }
  0x25   :  { %p8750_p10 = pnand %p8748_p9, %p8745_p8 }
  0x27   :  { %8753 = shalt.err (!%p8750_p10)
}
  0x28   :  { %s8754_s30 = scalar_lea.vmem %s82_s26, 16  ;;  %s8758_s18 = scalar_lea.vmem %s82_s26, 32 }
  0x29   :  { %p8755_p11 = scmp.ne.s32.totalorder %s82_s26, %s8754_s30  ;;  %p8759_p12 = scmp.lt.s32.totalorder %s82_s26, %s82_s26 }
  0x2a   :  { %p8760_p13 = scmp.lt.s32.totalorder %s8758_s18, %s8754_s30 }
  0x2c   :  { %p8761_p0 = por %p8760_p13, %p8759_p12 }
  0x2e   :  { %p8762_p1 = pnand %p8761_p0, %p8755_p11 }
  0x30   :  { %8765 = shalt.err (!%p8762_p1)
}
  0x31   :  { %84 = dma.hbm_to_vmem [thread:$0]  %s10921_s8, 16, %s82_s26, [#allocation11]  }
  0x32   :  { %s8888_s0 = smov [#allocation4]   ;;  %s8889_s1 = smov [#allocation9]  }
  0x33   :  { %s43_s21 = sshll.u32 %s8888_s0, 4  ;;  %s67_s22 = sshll.u32 %s8889_s1, 4  ;;  %s44_s21 = int_to_ptr.vmem [resolvable:$true] %s43_s21  ;;  %s68_s22 = int_to_ptr.vmem [resolvable:$true] %s67_s22 }
  0x34   :  { %s10953_s2 = sld [smem:[#allocation25_spill]] }
  0x3a   :  { %s8766_s3 = scalar_lea.hbm %s10953_s2, 32 }
  0x3b   :  { %p8767_p2 = scmp.ne.s32.totalorder %s10953_s2, %s8766_s3  ;;  %p8770_p3 = scmp.lt.u32.totalorder %s8766_s3, %s10953_s2 }
  0x3d   :  { %p8772_p4 = pnand %p8770_p3, %p8767_p2 }
  0x3f   :  { %8775 = shalt.err (!%p8772_p4)
}
  0x40   :  { %s8776_s8 = scalar_lea.vmem %s44_s21, 32  ;;  %p8781_p6 = scmp.lt.s32.totalorder %s44_s21, %s44_s21 }
  0x41   :  { %p8777_p5 = scmp.ne.s32.totalorder %s44_s21, %s8776_s8  ;;  %p8782_p7 = scmp.lt.s32.totalorder %s8776_s8, %s8776_s8 }
  0x43   :  { %p8783_p8 = por %p8782_p7, %p8781_p6 }
  0x45   :  { %p8784_p9 = pnand %p8783_p8, %p8777_p5 }
  0x47   :  { %8787 = shalt.err (!%p8784_p9)
}
  0x48   :  { %46 = dma.hbm_to_vmem [thread:$0]  %s10953_s2, 32, %s44_s21, [#allocation5]  }
  0x49   :  { %s8788_s15 = scalar_lea.hbm %s10918_s5, 16 }
  0x4a   :  { %p8789_p10 = scmp.ne.s32.totalorder %s10918_s5, %s8788_s15  ;;  %p8792_p11 = scmp.lt.u32.totalorder %s8788_s15, %s10918_s5 }
  0x4c   :  { %p8794_p12 = pnand %p8792_p11, %p8789_p10 }
  0x4e   :  { %8797 = shalt.err (!%p8794_p12)
}
  0x4f   :  { %s8798_s3 = scalar_lea.vmem %s68_s22, 16  ;;  %s8802_s27 = scalar_lea.vmem %s68_s22, 32 }
  0x50   :  { %p8799_p13 = scmp.ne.s32.totalorder %s68_s22, %s8798_s3  ;;  %p8803_p0 = scmp.lt.s32.totalorder %s68_s22, %s68_s22 }
  0x51   :  { %p8804_p1 = scmp.lt.s32.totalorder %s8802_s27, %s8798_s3 }
  0x53   :  { %p8805_p2 = por %p8804_p1, %p8803_p0 }
  0x55   :  { %p8806_p3 = pnand %p8805_p2, %p8799_p13 }
  0x57   :  { %8809 = shalt.err (!%p8806_p3)
}
  0x58   :  { %70 = dma.hbm_to_vmem [thread:$0]  %s10918_s5, 16, %s68_s22, [#allocation8]  }
  0x59   :  { %s8890_s28 = smov [#allocation12]   ;;  %s8810_s26 = scalar_lea.hbm %s10922_s9, 16 }
  0x5a   :  { %s91_s4 = sshll.u32 %s8890_s28, 4  ;;  %p8811_p4 = scmp.ne.s32.totalorder %s10922_s9, %s8810_s26  ;;  %s92_s4 = int_to_ptr.vmem [resolvable:$true] %s91_s4 }
  0x5b   :  { %p8814_p5 = scmp.lt.u32.totalorder %s8810_s26, %s10922_s9 }
  0x5d   :  { %p8816_p6 = pnand %p8814_p5, %p8811_p4 }
  0x5f   :  { %8819 = shalt.err (!%p8816_p6)
}
  0x60   :  { %s8820_s0 = scalar_lea.vmem %s92_s4, 16  ;;  %s8824_s5 = scalar_lea.vmem %s92_s4, 32 }
  0x61   :  { %p8821_p7 = scmp.ne.s32.totalorder %s92_s4, %s8820_s0  ;;  %p8825_p8 = scmp.lt.s32.totalorder %s92_s4, %s92_s4 }
  0x62   :  { %p8826_p9 = scmp.lt.s32.totalorder %s8824_s5, %s8820_s0 }
  0x64   :  { %p8827_p10 = por %p8826_p9, %p8825_p8 }
  0x66   :  { %p8828_p11 = pnand %p8827_p10, %p8821_p7 }
  0x68   :  { %8831 = shalt.err (!%p8828_p11)
}
  0x69   :  { %94 = dma.hbm_to_vmem [thread:$0]  %s10922_s9, 16, %s92_s4, [#allocation11]  }
  0x6a   :  { %8876 = dma.done.wait [#allocation5], 32  }
  0x6b   :  { %8877 = vsyncadd [#allocation5], 4294967264 }
  0x6c   :  { %8878 = dma.done.wait [#allocation8], 32  }
  0x6d   :  { %8879 = vsyncadd [#allocation8], 4294967264 }
  0x6e   :  { %8880 = dma.done.wait [#allocation11], 32  }
  0x6f   :  { %8881 = vsyncadd [#allocation11], 4294967264  ;;  %v138_v2 = vlaneseq  ;;  %v129_v6 = vld [vmem:[#allocation4] sm:$0x3]  ;;  %v210_v10 = vld [vmem:[%s10919_s6 + $0x8] sm:$0xff]  ;;  %v10939_v14 = vmov 0.0|0.0  }
  0x70   :  { %v209_v9 = vld [vmem:[%s10919_s6] sm:$0xff]  ;;  %v302_v13 = vld [vmem:[%s10920_s7 + $0x8] sm:$0xff]  ;;  %8125 = vmatprep.subr.bf16.mxu1 %v10939_v14  ;;  %v211_v16 = vld [vmem:[%s10919_s6 + $0x10] sm:$0xff]  ;;  %vm8892_vm0 = vmmov 0   ;;  %v10941_v21 = vmov 0.0   ;;  %s10954_s0 = sld [smem:[#allocation27_spill]] }
  0x71   :  { %v9073_v3 = vshrl.u32 %v138_v2, 7  ;;  %v301_v11 = vld [vmem:[%s10920_s7] sm:$0xff]  ;;  %v8117_v12 = vpack.c.bf16 %v210_v10, %v209_v9  ;;  %v212_v17 = vld [vmem:[%s10919_s6 + $0x18] sm:$0xff]  ;;  %v303_v18 = vld [vmem:[%s10920_s7 + $0x10] sm:$0xff]  ;;  %7762 = vmatprep.mubr.msk.f32.mxu1 %vm8892_vm0, %v10941_v21  ;;  %vm161_vm1 = vcmask 261120   ;;  %s8894_s5 = smov 64  }
  0x72   :  { %v9096_v15 = vpack.c.bf16 %v302_v13, %v301_v11  ;;  %v8121_v19 = vpack.c.bf16 %v212_v17, %v211_v16  ;;  %v304_v20 = vld [vmem:[%s10920_s7 + $0x18] sm:$0xff]  ;;  %v7517_v54 = vld [vmem:[#allocation7] ss:$0 sm:$0xff]  ;;  %v7518_v57 = vld [vmem:[#allocation9] ss:$0 sm:$0xff]  ;;  %s8895_s22 = smov 32  }
  0x73   :  { %v9076_v4 = vsub.s32 0, %v9073_v3  ;;  %v9079_v5 = vsub.s32 1, %v9073_v3  ;;  %8118 = vmatprep.subr.bf16.mxu0 %v8117_v12  ;;  %v9114_v22 = vpack.c.bf16 %v304_v20, %v303_v18  ;;  %v7519_v0 = vld [vmem:[#allocation10] ss:$0 sm:$0xff]  ;;  %s10955_s23 = sld [smem:[#allocation24_spill]]  ;;  %vm443_vm3 = vcmask 1041409  }
  0x74   :  { %8127 = vmatpush3.bf16.msra.mxu1 %v9096_v15  ;;  %8120 = vmatpush3.bf16.msra.mxu0 %v8117_v12  ;;  %s8897_s24 = smov 96   ;;  %vm1929_vm5 = vcmask 1040384   ;;  %vm1932_vm7 = vcmask 1041408   ;;  %vm1935_vm9 = vcmask 1042432   ;;  %vm1938_vm11 = vcmask 1043456  }
  0x75   :  { %v141_v7 = vrot.slane %v129_v6, %v9076_v4  ;;  %v148_v8 = vrot.slane %v129_v6, %v9079_v5  ;;  %8128 = vmatprep.subr.bf16.mxu1 %v10939_v14  ;;  %8122 = vmatprep.subr.bf16.mxu0 %v8121_v19  ;;  %vm1941_vm13 = vcmask 1044480   ;;  %vm1944_vm15 = vcmask 1045504  }
  0x76   :  { %v7516_v23 = vld [vmem:[%s10954_s0] ss:$0 sm:$0xff] }
  0x77   :  { %143 = vbcast.lane.b32.xlu0 %v141_v7, 256 }
  0x78   :  { %8130 = vmatpush3.bf16.msra.mxu1 %v9114_v22  ;;  %8124 = vmatpush3.bf16.msra.mxu0 %v8121_v19 }
  0x79   :  { %8131 = vmatprep.subr.bf16.mxu0 %v10939_v14  ;;  %8137 = vmatprep.subr.bf16.mxu1 %v10939_v14 }
  0x7b   :  { %150 = vbcast.lane.b32.xlu0 %v148_v8, 256  ;;  %7763 = vmatmul.mubr.f32.vlgmr.msra.gmra.mrb[0].mxu1 %v10941_v21 }
  0x7c   :  { %8139 = vmatpush3.bf16.msra.mxu1 %v9096_v15  ;;  %7784 = vmatprep.mubr.msk.f32.mxu1 %vm8892_vm0, %v10941_v21 }
  0x7d   :  { %8140 = vmatprep.subr.bf16.mxu1 %v10939_v14 }
  0x80   :  { %8142 = vmatpush3.bf16.msra.mxu1 %v9114_v22 }
  0x81   :  { %8149 = vmatprep.subr.bf16.mxu1 %v10939_v14 }
  0xe9   :  { %v144_v24 = vpop.permute.xlu0 %143 }
  0xea   :  { %v159_v25 = vmul.f32 %v7516_v23, %v144_v24 }
  0xec   :  { %v162_v28 = vsel %vm161_vm1, %v159_v25, 0.0 }
  0xed   :  { %v151_v26 = vpop.permute.xlu0 %150 }
  0xee   :  { %v160_v27 = vmul.f32 %v7516_v23, %v151_v26 }
  0xf0   :  { %v163_v29 = vsel %vm161_vm1, %v160_v27, 0.0 }
  0xf1   :  { %v164_v30 = vadd.f32 %v163_v29, %v162_v28 }
  0xf3   :  { %v165_v31 = vrot.slane %v164_v30, 4 }
  0xf5   :  { %v166_v32 = vadd.f32 %v165_v31, %v164_v30  ;;  %v10938_v31 = vmov 0  }
  0xf6   :  { %8340 = vset.pattern.permute.xlu0 %v10938_v31  ;;  %8341 = vset.pattern.permute.xlu1 %v10938_v31 }
  0xf7   :  { %v167_v33 = vrot.slane %v166_v32, 2 }
  0xf9   :  { %v168_v34 = vadd.f32 %v167_v33, %v166_v32 }
  0xfb   :  { %v169_v35 = vrot.slane %v168_v34, 1 }
  0xfd   :  { %v170_v36 = vadd.f32 %v169_v35, %v168_v34 }
  0xff   :  { %v172_v37 = vmul.f32 0.0625, %v170_v36 }
 0x101   :  { %v173_v38 = vsub.f32 %v159_v25, %v172_v37  ;;  %v174_v39 = vsub.f32 %v160_v27, %v172_v37 }
 0x103   :  { %v175_v40 = vmul.f32 %v173_v38, %v173_v38  ;;  %v176_v41 = vmul.f32 %v174_v39, %v174_v39 }
 0x105   :  { %v177_v42 = vsel %vm161_vm1, %v175_v40, 0.0  ;;  %v178_v43 = vsel %vm161_vm1, %v176_v41, 0.0 }
 0x106   :  { %v179_v44 = vadd.f32 %v178_v43, %v177_v42 }
 0x108   :  { %v180_v45 = vrot.slane %v179_v44, 4 }
 0x10a   :  { %v181_v46 = vadd.f32 %v180_v45, %v179_v44 }
 0x10c   :  { %v182_v47 = vrot.slane %v181_v46, 2 }
 0x10e   :  { %v183_v48 = vadd.f32 %v182_v47, %v181_v46 }
 0x110   :  { %v184_v49 = vrot.slane %v183_v48, 1 }
 0x112   :  { %v185_v50 = vadd.f32 %v184_v49, %v183_v48 }
 0x114   :  { %v186_v51 = vmul.f32 0.0625, %v185_v50 }
 0x116   :  { %v187_v52 = vadd.f32 1e-05, %v186_v51 }
 0x118   :  { %8342 = vrsqrt.f32 %v187_v52 }
 0x122   :  { %v8343_v53 = vpop.eup %8342 }
 0x123   :  { %v190_v55 = vmul.f32 %v8343_v53, %v174_v39  ;;  %v189_v56 = vmul.f32 %v8343_v53, %v173_v38  ;;  %v9156_v39 = vld [vmem:[%s10955_s23] sm:$0x3] }
 0x124   :  { %vm432_vm2 = vcmp.gt.s32.totalorder %v9156_v39, 0  ;;  %vm601_vm4 = vcmp.gt.s32.totalorder %v9156_v39, 1  ;;  %vm772_vm6 = vcmp.gt.s32.totalorder %v9156_v39, 2  ;;  %vm945_vm8 = vcmp.gt.s32.totalorder %v9156_v39, 3 }
 0x125   :  { %v198_v58 = vmul.f32 %v7517_v54, %v189_v56  ;;  %v199_v59 = vmul.f32 %v7517_v54, %v190_v55  ;;  %v7522_v41 = vsel %vm432_vm2, 1.0, %v10941_v21  ;;  %vm1118_vm10 = vcmp.gt.s32.totalorder %v9156_v39, 4 }
 0x126   :  { %v449_v43 = vsub.f32 1.0, %v7522_v41  ;;  %vm1291_vm12 = vcmp.gt.s32.totalorder %v9156_v39, 5 }
 0x127   :  { %v207_v60 = vadd.f32 %v7518_v57, %v198_v58  ;;  %v208_v61 = vadd.f32 %v7518_v57, %v199_v59 }
 0x129   :  { %7751 = vmatprep.mubr.msk.f32.mxu0 %vm161_vm1, %v207_v60 }
 0x12a   :  { %7752 = vmatmul.mubr.msk.f32.vlgmr.msra.gmra.mrb[0].mxu0 %vm161_vm1, %v208_v61 }
 0x12b   :  { %8133 = vmatpush3.bf16.msra.mxu0 %v9096_v15  ;;  %7773 = vmatprep.mubr.msk.f32.mxu0 %vm8892_vm0, %v10941_v21 }
 0x12c   :  { %8134 = vmatprep.subr.bf16.mxu0 %v10939_v14 }
 0x12f   :  { %8136 = vmatpush3.bf16.msra.mxu0 %v9114_v22 }
 0x130   :  { %8143 = vmatprep.subr.bf16.mxu0 %v10939_v14 }
 0x14e   :  { %v374_v62 = vpop.f32.mrb[0].mxu1 }
 0x14f   :  { %v7764_v63 = vpop.f32.mrb[1].mxu1  ;;  %v379_v1 = vrot.slane %v374_v62, 1 }
 0x1fd   :  { %v7753_v6 = vpop.f32.mrb[0].mxu0 }
 0x1fe   :  { %v9141_v7 = vadd.f32 %v7753_v6, %v7519_v0  ;;  %v292_v8 = vpop.f32.mrb[1].mxu0 }
 0x1ff   :  { %v9143_v9 = vadd.f32 %v7519_v0, %v292_v8 }
 0x200   :  { %v383_v10 = vadd.f32 %v379_v1, %v9141_v7 }
 0x201   :  { %v382_v11 = vadd.f32 %v374_v62, %v9143_v9 }
 0x202   :  { %8344 = vtanh.f32 %v383_v10  ;;  %v385_v16 = vsub.f32 0.0, %v383_v10 }
 0x203   :  { %8346 = vtanh.f32 %v382_v11  ;;  %v384_v18 = vsub.f32 0.0, %v382_v11 }
 0x204   :  { %v388_v17 = vmul.f32 1.442695, %v385_v16 }
 0x205   :  { %v386_v19 = vmul.f32 1.442695, %v384_v18 }
 0x206   :  { %8348 = vpow2.f32 %v388_v17 }
 0x207   :  { %8350 = vpow2.f32 %v386_v19 }
 0x20c   :  { %v8345_v12 = vpop.eup %8344 }
 0x20d   :  { %404 = vrot.lane.b32.xlu1 %v8345_v12, %s8894_s5  ;;  %v8347_v13 = vpop.eup %8346 }
 0x210   :  { %v8349_v20 = vpop.eup %8348 }
 0x211   :  { %402 = vrot.lane.b32.xlu1 %v8347_v13, %s8894_s5  ;;  %v391_v23 = vadd.f32 1.0, %v8349_v20  ;;  %v8351_v24 = vpop.eup %8350 }
 0x212   :  { %v390_v25 = vadd.f32 1.0, %v8351_v24 }
 0x213   :  { %8352 = vrcp.f32 %v391_v23 }
 0x214   :  { %8354 = vrcp.f32 %v390_v25 }
 0x21d   :  { %v8353_v26 = vpop.eup %8352 }
 0x21e   :  { %v8355_v29 = vpop.eup %8354  ;;  %v399_v33 = vmul.f32 0.0, %v8353_v26 }
 0x21f   :  { %v398_v36 = vmul.f32 0.0, %v8355_v29 }
 0x27f   :  { %v405_v27 = vpop.permute.xlu1 %404 }
 0x280   :  { %v409_v28 = vmul.f32 %v8353_v26, %v405_v27 }
 0x282   :  { %414 = vrot.lane.b32.xlu0 %v409_v28, %s8895_s22 }
 0x283   :  { %v403_v30 = vpop.permute.xlu1 %402 }
 0x284   :  { %v408_v32 = vmul.f32 %v8355_v29, %v403_v30 }
 0x286   :  { %412 = vrot.lane.b32.xlu1 %v408_v32, %s8895_s22 }
 0x2f4   :  { %v415_v34 = vpop.permute.xlu0 %414 }
 0x2f5   :  { %v419_v35 = vadd.f32 %v415_v34, %v399_v33 }
 0x2f7   :  { %8356 = vtanh.f32 %v419_v35  ;;  %v459_v44 = vrot.slane %v419_v35, 7 }
 0x2f8   :  { %v413_v37 = vpop.permute.xlu1 %412 }
 0x2f9   :  { %v418_v38 = vadd.f32 %v413_v37, %v398_v36 }
 0x2fb   :  { %8358 = vtanh.f32 %v418_v38  ;;  %v460_v45 = vsel %vm443_vm3, %v459_v44, %v418_v38  ;;  %v7524_v38 = vsel %vm601_vm4, 1.0, %v10941_v21  ;;  %vm1947_vm4 = vcmask 1046528  }
 0x301   :  { %v8357_v40 = vpop.eup %8356 }
 0x302   :  { %426 = vrot.lane.b32.xlu0 %v8357_v40, %s8894_s5 }
 0x305   :  { %v8359_v42 = vpop.eup %8358 }
 0x306   :  { %424 = vrot.lane.b32.xlu1 %v8359_v42, %s8894_s5  ;;  %437 = vperm.xlu0 %8340, %v7522_v41   ;;  %v617_v41 = vsub.f32 1.0, %v7524_v38 }
 0x30a   :  { %461 = vrot.lane.b32.xlu0 %v460_v45, %s8897_s24  ;;  %452 = vperm.xlu1 %8341, %v449_v43  }
 0x374   :  { %v427_v46 = vpop.permute.xlu0 %426 }
 0x375   :  { %v431_v47 = vmul.f32 %v8353_v26, %v427_v46 }
 0x377   :  { %v442_v49 = vrot.slane %v431_v47, 7 }
 0x378   :  { %v425_v48 = vpop.permute.xlu1 %424 }
 0x379   :  { %v430_v50 = vmul.f32 %v8355_v29, %v425_v48 }
 0x37b   :  { %v444_v51 = vsel %vm443_vm3, %v442_v49, %v430_v50 }
 0x37c   :  { %445 = vrot.lane.b32.xlu1 %v444_v51, %s8895_s22  ;;  %v8898_v51 = vmov 1966171168  }
 0x385   :  { %v438_v53 = vpop.permute.xlu0 %437 }
 0x389   :  { %v453_v52 = vpop.permute.xlu1 %452  ;;  %v462_v63 = vpop.permute.xlu0 %461 }
 0x38a   :  { %v455_v55 = vmul.f32 0.0, %v453_v52  ;;  %v464_v0 = vmul.f32 %v462_v63, %v438_v53  ;;  %v1675_v52 = vunpack.c.l.s4 %v8898_v51 }
 0x38c   :  { %v9181_v6 = vadd.f32 %v464_v0, %v455_v55 }
 0x38e   :  { %v560_v10 = vrot.slane %v9181_v6, 7 }
 0x3ee   :  { %v446_v54 = vpop.permute.xlu1 %445 }
 0x3ef   :  { %v9166_v56 = vmul.f32 %v446_v54, %v438_v53  ;;  %v1676_v53 = vunpack.c.0.s8 %v1675_v52 }
 0x3f1   :  { %v9169_v57 = vadd.f32 %v455_v55, %v9166_v56  ;;  %v9200_v55 = vsub.s32 %v1676_v53, %v9073_v3 }
 0x3f3   :  { %7774 = vmatmul.mubr.msk.f32.vlgmr.msra.gmra.mrb[2].mxu0 %vm161_vm1, %v9169_v57 }
 0x3f4   :  { %8145 = vmatpush3.bf16.msra.mxu0 %v9096_v15  ;;  %7795 = vmatprep.mubr.msk.f32.mxu0 %vm8892_vm0, %v10941_v21 }
 0x3f5   :  { %8146 = vmatprep.subr.bf16.mxu0 %v10939_v14 }
 0x3f8   :  { %8148 = vmatpush3.bf16.msra.mxu0 %v9114_v22 }
 0x3f9   :  { %8155 = vmatprep.subr.bf16.mxu0 %v10939_v14 }
 0x4c6   :  { %v535_v58 = vpop.f32.mrb[2].mxu0 }
 0x4c7   :  { %v540_v59 = vrot.slane %v535_v58, 7  ;;  %v544_v60 = vadd.f32 %v535_v58, %v9141_v7  ;;  %v7775_v61 = vpop.f32.mrb[3].mxu0 }
 0x4c9   :  { %v543_v62 = vadd.f32 %v540_v59, %v9143_v9  ;;  %8360 = vtanh.f32 %v544_v60  ;;  %v546_v11 = vsub.f32 0.0, %v544_v60  ;;  %v1680_v60 = vrot.slane %v9166_v56, %v9200_v55 }
 0x4cb   :  { %8362 = vtanh.f32 %v543_v62  ;;  %v545_v12 = vsub.f32 0.0, %v543_v62  ;;  %v549_v13 = vmul.f32 1.442695, %v546_v11  ;;  %v1688_v56 = vrot.slane %v1680_v60, %v9200_v55 }
 0x4cd   :  { %v547_v16 = vmul.f32 1.442695, %v545_v12  ;;  %8364 = vpow2.f32 %v549_v13 }
 0x4cf   :  { %8366 = vpow2.f32 %v547_v16 }
 0x4d3   :  { %v8361_v1 = vpop.eup %8360 }
 0x4d4   :  { %573 = vrot.lane.b32.xlu0 %v8361_v1, %s8894_s5  ;;  %v1681_v1 = vcombine.high %v1680_v60, %v1680_v60  ;;  %v7526_v60 = vsel %vm772_vm6, 1.0, %v10941_v21  ;;  %vm2353_vm6 = vcmask 58368  }
 0x4d5   :  { %v8363_v8 = vpop.eup %8362 }
 0x4d6   :  { %571 = vrot.lane.b32.xlu1 %v8363_v8, %s8894_s5  ;;  %v1695_v12 = vrot.slane %v1681_v1, %v9200_v55 }
 0x4d7   :  { %v8365_v17 = vpop.eup %8364 }
 0x4d8   :  { %563 = vrot.lane.b32.xlu0 %v9181_v6, %s8895_s22  ;;  %v552_v19 = vadd.f32 1.0, %v8365_v17 }
 0x4d9   :  { %v8367_v18 = vpop.eup %8366 }
 0x4da   :  { %561 = vrot.lane.b32.xlu1 %v560_v10, %s8895_s22  ;;  %v551_v20 = vadd.f32 1.0, %v8367_v18  ;;  %8368 = vrcp.f32 %v552_v19 }
 0x4dc   :  { %8370 = vrcp.f32 %v551_v20 }
 0x4e4   :  { %v8369_v23 = vpop.eup %8368 }
 0x4e6   :  { %v8371_v26 = vpop.eup %8370 }
 0x546   :  { %v574_v24 = vpop.permute.xlu0 %573 }
 0x547   :  { %v578_v25 = vmul.f32 %v8369_v23, %v574_v24 }
 0x548   :  { %v572_v27 = vpop.permute.xlu1 %571 }
 0x549   :  { %v577_v28 = vmul.f32 %v8371_v26, %v572_v27  ;;  %583 = vrot.lane.b32.xlu0 %v578_v25, %s8895_s22 }
 0x54a   :  { %v564_v29 = vpop.permute.xlu0 %563 }
 0x54b   :  { %581 = vrot.lane.b32.xlu1 %v577_v28, %s8895_s22  ;;  %v568_v32 = vmul.f32 %v8369_v23, %v564_v29 }
 0x54c   :  { %v562_v30 = vpop.permute.xlu1 %561 }
 0x54d   :  { %v567_v34 = vmul.f32 %v8371_v26, %v562_v30 }
 0x5bb   :  { %v584_v33 = vpop.permute.xlu0 %583 }
 0x5bc   :  { %v588_v35 = vadd.f32 %v584_v33, %v568_v32 }
 0x5bd   :  { %v582_v36 = vpop.permute.xlu1 %581 }
 0x5be   :  { %8372 = vtanh.f32 %v588_v35  ;;  %v587_v37 = vadd.f32 %v582_v36, %v567_v34 }
 0x5c0   :  { %8374 = vtanh.f32 %v587_v37  ;;  %v627_v43 = vrot.slane %v587_v37, 1 }
 0x5c2   :  { %v628_v44 = vsel %vm443_vm3, %v588_v35, %v627_v43 }
 0x5c8   :  { %v8373_v40 = vpop.eup %8372 }
 0x5c9   :  { %595 = vrot.lane.b32.xlu0 %v8373_v40, %s8894_s5 }
 0x5ca   :  { %v8375_v42 = vpop.eup %8374 }
 0x5cb   :  { %593 = vrot.lane.b32.xlu1 %v8375_v42, %s8894_s5 }
 0x5cd   :  { %620 = vperm.xlu0 %8340, %v617_v41  }
 0x5cf   :  { %606 = vperm.xlu1 %8341, %v7524_v38  }
 0x5d1   :  { %629 = vrot.lane.b32.xlu0 %v628_v44, %s8897_s24 }
 0x63b   :  { %v596_v45 = vpop.permute.xlu0 %595 }
 0x63c   :  { %v600_v48 = vmul.f32 %v8369_v23, %v596_v45 }
 0x63d   :  { %v594_v46 = vpop.permute.xlu1 %593 }
 0x63e   :  { %v599_v47 = vmul.f32 %v8371_v26, %v594_v46 }
 0x640   :  { %v611_v49 = vrot.slane %v599_v47, 1 }
 0x642   :  { %v612_v50 = vsel %vm443_vm3, %v600_v48, %v611_v49 }
 0x643   :  { %613 = vrot.lane.b32.xlu1 %v612_v50, %s8895_s22 }
 0x64c   :  { %v621_v58 = vpop.permute.xlu0 %620 }
 0x64d   :  { %v623_v61 = vmul.f32 %v621_v58, %v9169_v57  ;;  %v633_v28 = vmul.f32 %v621_v58, %v9181_v6 }
 0x64e   :  { %v607_v54 = vpop.permute.xlu1 %606 }
 0x650   :  { %v630_v26 = vpop.permute.xlu0 %629 }
 0x651   :  { %v632_v27 = vmul.f32 %v630_v26, %v607_v54 }
 0x653   :  { %v9229_v29 = vadd.f32 %v633_v28, %v632_v27 }
 0x655   :  { %v730_v33 = vrot.slane %v9229_v29, 6  ;;  %v731_v34 = vrot.slane %v9229_v29, 7 }
 0x6b5   :  { %v614_v59 = vpop.permute.xlu1 %613 }
 0x6b6   :  { %v616_v62 = vmul.f32 %v614_v59, %v607_v54 }
 0x6b8   :  { %v9205_v63 = vadd.f32 %v623_v61, %v616_v62  ;;  %v1705_v0 = vrot.slane %v616_v62, %v9200_v55 }
 0x6ba   :  { %v1706_v8 = vcombine.high %v1705_v0, %v1705_v0  ;;  %v1713_v10 = vrot.slane %v1705_v0, %v9200_v55  ;;  %7785 = vmatmul.mubr.msk.f32.vlgmr.msra.gmra.mrb[2].mxu1 %vm161_vm1, %v9205_v63  ;;  %v789_v0 = vsub.f32 1.0, %v7526_v60 }
 0x6bb   :  { %8151 = vmatpush3.bf16.msra.mxu1 %v9096_v15  ;;  %7806 = vmatprep.mubr.msk.f32.mxu1 %vm8892_vm0, %v10941_v21 }
 0x6bc   :  { %v1720_v57 = vrot.slane %v1706_v8, %v9200_v55  ;;  %v1862_v11 = vrot.slane %v1713_v10, %v9076_v4  ;;  %8152 = vmatprep.subr.bf16.mxu1 %v10939_v14 }
 0x6be   :  { %v1866_v13 = vrot.slane %v1720_v57, %v9076_v4  ;;  %v9220_v16 = vsel %vm1929_vm5, %v1688_v56, %v1862_v11 }
 0x6bf   :  { %8154 = vmatpush3.bf16.msra.mxu1 %v9114_v22 }
 0x6c0   :  { %v9223_v17 = vsel %vm1929_vm5, %v1695_v12, %v1866_v13  ;;  %8161 = vmatprep.subr.bf16.mxu1 %v10939_v14 }
 0x78d   :  { %v704_v18 = vpop.f32.mrb[2].mxu1 }
 0x78e   :  { %v709_v19 = vrot.slane %v704_v18, 6  ;;  %v710_v20 = vrot.slane %v704_v18, 7  ;;  %v7786_v23 = vpop.f32.mrb[3].mxu1 }
 0x790   :  { %v713_v24 = vadd.f32 %v709_v19, %v9143_v9  ;;  %v714_v25 = vadd.f32 %v710_v20, %v9141_v7 }
 0x792   :  { %8376 = vtanh.f32 %v713_v24  ;;  %v715_v35 = vsub.f32 0.0, %v713_v24  ;;  %v716_v36 = vsub.f32 0.0, %v714_v25 }
 0x793   :  { %8378 = vtanh.f32 %v714_v25 }
 0x794   :  { %v717_v37 = vmul.f32 1.442695, %v715_v35  ;;  %v719_v6 = vmul.f32 1.442695, %v716_v36 }
 0x796   :  { %8380 = vpow2.f32 %v717_v37 }
 0x797   :  { %8382 = vpow2.f32 %v719_v6 }
 0x79c   :  { %v8377_v30 = vpop.eup %8376 }
 0x79d   :  { %v8379_v32 = vpop.eup %8378  ;;  %742 = vrot.lane.b32.xlu1 %v8377_v30, %s8894_s5 }
 0x79e   :  { %744 = vrot.lane.b32.xlu0 %v8379_v32, %s8894_s5 }
 0x7a0   :  { %v8381_v38 = vpop.eup %8380 }
 0x7a1   :  { %732 = vrot.lane.b32.xlu1 %v730_v33, %s8895_s22  ;;  %v8383_v40 = vpop.eup %8382  ;;  %v721_v41 = vadd.f32 1.0, %v8381_v38 }
 0x7a2   :  { %734 = vrot.lane.b32.xlu0 %v731_v34, %s8895_s22  ;;  %v722_v42 = vadd.f32 1.0, %v8383_v40 }
 0x7a3   :  { %8384 = vrcp.f32 %v721_v41 }
 0x7a4   :  { %8386 = vrcp.f32 %v722_v42 }
 0x7ad   :  { %v8385_v43 = vpop.eup %8384 }
 0x7ae   :  { %v8387_v45 = vpop.eup %8386 }
 0x80f   :  { %v743_v44 = vpop.permute.xlu1 %742 }
 0x810   :  { %v745_v46 = vpop.permute.xlu0 %744  ;;  %v748_v47 = vmul.f32 %v8385_v43, %v743_v44 }
 0x811   :  { %v749_v48 = vmul.f32 %v8387_v45, %v745_v46 }
 0x812   :  { %752 = vrot.lane.b32.xlu1 %v748_v47, %s8895_s22 }
 0x813   :  { %754 = vrot.lane.b32.xlu0 %v749_v48, %s8895_s22  ;;  %v733_v49 = vpop.permute.xlu1 %732 }
 0x814   :  { %v735_v50 = vpop.permute.xlu0 %734  ;;  %v738_v51 = vmul.f32 %v8385_v43, %v733_v49 }
 0x815   :  { %v739_v52 = vmul.f32 %v8387_v45, %v735_v50 }
 0x884   :  { %v753_v53 = vpop.permute.xlu1 %752 }
 0x885   :  { %v755_v54 = vpop.permute.xlu0 %754  ;;  %v758_v58 = vadd.f32 %v753_v53, %v738_v51 }
 0x886   :  { %v759_v59 = vadd.f32 %v755_v54, %v739_v52 }
 0x887   :  { %8388 = vtanh.f32 %v758_v58  ;;  %v799_v8 = vrot.slane %v758_v58, 2 }
 0x888   :  { %8390 = vtanh.f32 %v759_v59  ;;  %v800_v1 = vrot.slane %v759_v59, 1 }
 0x88a   :  { %v801_v10 = vsel %vm443_vm3, %v800_v1, %v799_v8 }
 0x891   :  { %v8389_v61 = vpop.eup %8388 }
 0x892   :  { %v8391_v62 = vpop.eup %8390  ;;  %764 = vrot.lane.b32.xlu1 %v8389_v61, %s8894_s5 }
 0x893   :  { %766 = vrot.lane.b32.xlu0 %v8391_v62, %s8894_s5 }
 0x896   :  { %777 = vperm.xlu1 %8341, %v7526_v60  }
 0x897   :  { %792 = vperm.xlu0 %8340, %v789_v0  }
 0x89b   :  { %802 = vrot.lane.b32.xlu0 %v801_v10, %s8897_s24 }
 0x904   :  { %v765_v56 = vpop.permute.xlu1 %764 }
 0x905   :  { %v767_v57 = vpop.permute.xlu0 %766  ;;  %v770_v11 = vmul.f32 %v8385_v43, %v765_v56 }
 0x906   :  { %v771_v12 = vmul.f32 %v8387_v45, %v767_v57 }
 0x907   :  { %v782_v13 = vrot.slane %v770_v11, 2 }
 0x908   :  { %v783_v18 = vrot.slane %v771_v12, 1 }
 0x90a   :  { %v784_v19 = vsel %vm443_vm3, %v783_v18, %v782_v13 }
 0x90b   :  { %785 = vrot.lane.b32.xlu1 %v784_v19, %s8895_s22  ;;  %v7528_v19 = vsel %vm945_vm8, 1.0, %v10941_v21 }
 0x915   :  { %v778_v20 = vpop.permute.xlu1 %777 }
 0x916   :  { %v793_v23 = vpop.permute.xlu0 %792 }
 0x917   :  { %v795_v25 = vmul.f32 %v793_v23, %v9205_v63  ;;  %v806_v44 = vmul.f32 %v793_v23, %v9229_v29 }
 0x91a   :  { %v803_v43 = vpop.permute.xlu0 %802 }
 0x97d   :  { %v786_v24 = vpop.permute.xlu1 %785 }
 0x97e   :  { %v788_v26 = vmul.f32 %v786_v24, %v778_v20  ;;  %v962_v24 = vsub.f32 1.0, %v7528_v19 }
 0x980   :  { %v9248_v27 = vadd.f32 %v795_v25, %v788_v26  ;;  %v1728_v28 = vrot.slane %v788_v26, %v9200_v55 }
 0x982   :  { %v1729_v30 = vcombine.high %v1728_v28, %v1728_v28  ;;  %v1736_v32 = vrot.slane %v1728_v28, %v9200_v55  ;;  %7796 = vmatmul.mubr.msk.f32.vlgmr.msra.gmra.mrb[4].mxu0 %vm161_vm1, %v9248_v27 }
 0x983   :  { %8157 = vmatpush3.bf16.msra.mxu0 %v9096_v15  ;;  %7817 = vmatprep.mubr.msk.f32.mxu0 %vm8892_vm0, %v10941_v21 }
 0x984   :  { %v1743_v33 = vrot.slane %v1729_v30, %v9200_v55  ;;  %v1872_v63 = vrot.slane %v1736_v32, %v9076_v4  ;;  %8158 = vmatprep.subr.bf16.mxu0 %v10939_v14 }
 0x986   :  { %v1876_v34 = vrot.slane %v1743_v33, %v9076_v4  ;;  %v9262_v35 = vsel %vm1932_vm7, %v9220_v16, %v1872_v63  ;;  %v805_v16 = vmul.f32 %v803_v43, %v778_v20 }
 0x987   :  { %8160 = vmatpush3.bf16.msra.mxu0 %v9114_v22 }
 0x988   :  { %v9266_v36 = vsel %vm1932_vm7, %v9223_v17, %v1876_v34  ;;  %8167 = vmatprep.subr.bf16.mxu0 %v10939_v14  ;;  %v9272_v45 = vadd.f32 %v806_v44, %v805_v16 }
 0x98a   :  { %v903_v47 = vrot.slane %v9272_v45, 5  ;;  %v904_v48 = vrot.slane %v9272_v45, 6 }
 0xa55   :  { %v877_v37 = vpop.f32.mrb[4].mxu0 }
 0xa56   :  { %v882_v6 = vrot.slane %v877_v37, 5  ;;  %v883_v38 = vrot.slane %v877_v37, 6  ;;  %v7797_v40 = vpop.f32.mrb[5].mxu0 }
 0xa58   :  { %v886_v41 = vadd.f32 %v882_v6, %v9143_v9  ;;  %v887_v42 = vadd.f32 %v883_v38, %v9141_v7 }
 0xa5a   :  { %8392 = vtanh.f32 %v886_v41  ;;  %v888_v49 = vsub.f32 0.0, %v886_v41  ;;  %v889_v50 = vsub.f32 0.0, %v887_v42 }
 0xa5b   :  { %8394 = vtanh.f32 %v887_v42 }
 0xa5c   :  { %v890_v51 = vmul.f32 1.442695, %v888_v49  ;;  %v892_v29 = vmul.f32 1.442695, %v889_v50 }
 0xa5e   :  { %8396 = vpow2.f32 %v890_v51 }
 0xa5f   :  { %8398 = vpow2.f32 %v892_v29 }
 0xa64   :  { %v8393_v17 = vpop.eup %8392 }
 0xa65   :  { %v8395_v46 = vpop.eup %8394  ;;  %915 = vrot.lane.b32.xlu1 %v8393_v17, %s8894_s5 }
 0xa66   :  { %917 = vrot.lane.b32.xlu0 %v8395_v46, %s8894_s5 }
 0xa68   :  { %v8397_v52 = vpop.eup %8396 }
 0xa69   :  { %905 = vrot.lane.b32.xlu1 %v903_v47, %s8895_s22  ;;  %v8399_v53 = vpop.eup %8398  ;;  %v894_v54 = vadd.f32 1.0, %v8397_v52 }
 0xa6a   :  { %907 = vrot.lane.b32.xlu0 %v904_v48, %s8895_s22  ;;  %v895_v58 = vadd.f32 1.0, %v8399_v53 }
 0xa6b   :  { %8400 = vrcp.f32 %v894_v54 }
 0xa6c   :  { %8402 = vrcp.f32 %v895_v58 }
 0xa75   :  { %v8401_v59 = vpop.eup %8400 }
 0xa76   :  { %v8403_v61 = vpop.eup %8402 }
 0xad7   :  { %v916_v60 = vpop.permute.xlu1 %915 }
 0xad8   :  { %v918_v62 = vpop.permute.xlu0 %917  ;;  %v921_v0 = vmul.f32 %v8401_v59, %v916_v60 }
 0xad9   :  { %v922_v1 = vmul.f32 %v8403_v61, %v918_v62 }
 0xada   :  { %925 = vrot.lane.b32.xlu1 %v921_v0, %s8895_s22 }
 0xadb   :  { %927 = vrot.lane.b32.xlu0 %v922_v1, %s8895_s22  ;;  %v906_v8 = vpop.permute.xlu1 %905 }
 0xadc   :  { %v908_v10 = vpop.permute.xlu0 %907  ;;  %v911_v56 = vmul.f32 %v8401_v59, %v906_v8 }
 0xadd   :  { %v912_v57 = vmul.f32 %v8403_v61, %v908_v10 }
 0xb4c   :  { %v926_v11 = vpop.permute.xlu1 %925 }
 0xb4d   :  { %v928_v12 = vpop.permute.xlu0 %927  ;;  %v931_v13 = vadd.f32 %v926_v11, %v911_v56 }
 0xb4e   :  { %v932_v18 = vadd.f32 %v928_v12, %v912_v57 }
 0xb4f   :  { %8404 = vtanh.f32 %v931_v13  ;;  %v972_v26 = vrot.slane %v931_v13, 3 }
 0xb50   :  { %8406 = vtanh.f32 %v932_v18  ;;  %v973_v25 = vrot.slane %v932_v18, 2 }
 0xb52   :  { %v974_v28 = vsel %vm443_vm3, %v973_v25, %v972_v26 }
 0xb59   :  { %v8405_v20 = vpop.eup %8404 }
 0xb5a   :  { %v8407_v23 = vpop.eup %8406  ;;  %937 = vrot.lane.b32.xlu1 %v8405_v20, %s8894_s5 }
 0xb5b   :  { %939 = vrot.lane.b32.xlu0 %v8407_v23, %s8894_s5 }
 0xb5e   :  { %950 = vperm.xlu1 %8341, %v7528_v19  }
 0xb5f   :  { %965 = vperm.xlu0 %8340, %v962_v24  }
 0xb63   :  { %975 = vrot.lane.b32.xlu0 %v974_v28, %s8897_s24 }
 0xbcc   :  { %v938_v30 = vpop.permute.xlu1 %937 }
 0xbcd   :  { %v940_v32 = vpop.permute.xlu0 %939  ;;  %v943_v33 = vmul.f32 %v8401_v59, %v938_v30 }
 0xbce   :  { %v944_v63 = vmul.f32 %v8403_v61, %v940_v32 }
 0xbcf   :  { %v955_v34 = vrot.slane %v943_v33, 3 }
 0xbd0   :  { %v956_v37 = vrot.slane %v944_v63, 2 }
 0xbd2   :  { %v957_v6 = vsel %vm443_vm3, %v956_v37, %v955_v34 }
 0xbd3   :  { %958 = vrot.lane.b32.xlu1 %v957_v6, %s8895_s22  ;;  %v7530_v6 = vsel %vm1118_vm10, 1.0, %v10941_v21 }
 0xbdd   :  { %v951_v38 = vpop.permute.xlu1 %950 }
 0xbde   :  { %v966_v40 = vpop.permute.xlu0 %965 }
 0xbdf   :  { %v968_v42 = vmul.f32 %v966_v40, %v9248_v27 }
 0xbe2   :  { %v976_v59 = vpop.permute.xlu0 %975 }
 0xbe3   :  { %v978_v60 = vmul.f32 %v976_v59, %v951_v38 }
 0xc45   :  { %v959_v41 = vpop.permute.xlu1 %958 }
 0xc46   :  { %v961_v43 = vmul.f32 %v959_v41, %v951_v38  ;;  %v1135_v41 = vsub.f32 1.0, %v7530_v6 }
 0xc48   :  { %v9291_v16 = vadd.f32 %v968_v42, %v961_v43  ;;  %v1751_v44 = vrot.slane %v961_v43, %v9200_v55 }
 0xc4a   :  { %v1752_v17 = vcombine.high %v1751_v44, %v1751_v44  ;;  %v1759_v46 = vrot.slane %v1751_v44, %v9200_v55  ;;  %7807 = vmatmul.mubr.msk.f32.vlgmr.msra.gmra.mrb[4].mxu1 %vm161_vm1, %v9291_v16 }
 0xc4b   :  { %8163 = vmatpush3.bf16.msra.mxu1 %v9096_v15  ;;  %7828 = vmatprep.mubr.msk.f32.mxu1 %vm8892_vm0, %v10941_v21 }
 0xc4c   :  { %v1766_v47 = vrot.slane %v1752_v17, %v9200_v55  ;;  %v1882_v27 = vrot.slane %v1759_v46, %v9076_v4  ;;  %8164 = vmatprep.subr.bf16.mxu1 %v10939_v14 }
 0xc4e   :  { %v1886_v48 = vrot.slane %v1766_v47, %v9076_v4  ;;  %v9305_v49 = vsel %vm1935_vm9, %v9262_v35, %v1882_v27  ;;  %v979_v35 = vmul.f32 %v966_v40, %v9272_v45 }
 0xc4f   :  { %8166 = vmatpush3.bf16.msra.mxu1 %v9114_v22 }
 0xc50   :  { %v9309_v50 = vsel %vm1935_vm9, %v9266_v36, %v1886_v48  ;;  %v9314_v61 = vadd.f32 %v979_v35, %v978_v60 }
 0xc52   :  { %v1076_v36 = vrot.slane %v9314_v61, 4  ;;  %v1077_v1 = vrot.slane %v9314_v61, 5 }
 0xd1d   :  { %v1050_v51 = vpop.f32.mrb[4].mxu1 }
 0xd1e   :  { %v1055_v29 = vrot.slane %v1050_v51, 4  ;;  %v1056_v52 = vrot.slane %v1050_v51, 5  ;;  %v7808_v53 = vpop.f32.mrb[5].mxu1 }
 0xd20   :  { %v1059_v54 = vadd.f32 %v1055_v29, %v9143_v9  ;;  %v1060_v58 = vadd.f32 %v1056_v52, %v9141_v7 }
 0xd22   :  { %8408 = vtanh.f32 %v1059_v54  ;;  %v1061_v8 = vsub.f32 0.0, %v1059_v54  ;;  %v1062_v10 = vsub.f32 0.0, %v1060_v58 }
 0xd23   :  { %8410 = vtanh.f32 %v1060_v58 }
 0xd24   :  { %v1063_v56 = vmul.f32 1.442695, %v1061_v8  ;;  %v1065_v45 = vmul.f32 1.442695, %v1062_v10 }
 0xd26   :  { %8412 = vpow2.f32 %v1063_v56 }
 0xd27   :  { %8414 = vpow2.f32 %v1065_v45 }
 0xd2c   :  { %v8409_v62 = vpop.eup %8408 }
 0xd2d   :  { %v8411_v0 = vpop.eup %8410  ;;  %1088 = vrot.lane.b32.xlu1 %v8409_v62, %s8894_s5 }
 0xd2e   :  { %1090 = vrot.lane.b32.xlu0 %v8411_v0, %s8894_s5 }
 0xd30   :  { %v8413_v57 = vpop.eup %8412 }
 0xd31   :  { %1078 = vrot.lane.b32.xlu1 %v1076_v36, %s8895_s22  ;;  %v8415_v11 = vpop.eup %8414  ;;  %v1067_v12 = vadd.f32 1.0, %v8413_v57 }
 0xd32   :  { %1080 = vrot.lane.b32.xlu0 %v1077_v1, %s8895_s22  ;;  %v1068_v13 = vadd.f32 1.0, %v8415_v11 }
 0xd33   :  { %8416 = vrcp.f32 %v1067_v12 }
 0xd34   :  { %8418 = vrcp.f32 %v1068_v13 }
 0xd3d   :  { %v8417_v18 = vpop.eup %8416 }
 0xd3e   :  { %v8419_v20 = vpop.eup %8418 }
 0xd9f   :  { %v1089_v19 = vpop.permute.xlu1 %1088 }
 0xda0   :  { %v1091_v23 = vpop.permute.xlu0 %1090  ;;  %v1094_v24 = vmul.f32 %v8417_v18, %v1089_v19 }
 0xda1   :  { %v1095_v25 = vmul.f32 %v8419_v20, %v1091_v23 }
 0xda2   :  { %1098 = vrot.lane.b32.xlu1 %v1094_v24, %s8895_s22 }
 0xda3   :  { %1100 = vrot.lane.b32.xlu0 %v1095_v25, %s8895_s22  ;;  %v1079_v26 = vpop.permute.xlu1 %1078 }
 0xda4   :  { %v1081_v28 = vpop.permute.xlu0 %1080  ;;  %v1084_v30 = vmul.f32 %v8417_v18, %v1079_v26 }
 0xda5   :  { %v1085_v32 = vmul.f32 %v8419_v20, %v1081_v28 }
 0xe14   :  { %v1099_v33 = vpop.permute.xlu1 %1098 }
 0xe15   :  { %v1101_v63 = vpop.permute.xlu0 %1100  ;;  %v1104_v34 = vadd.f32 %v1099_v33, %v1084_v30 }
 0xe16   :  { %v1105_v37 = vadd.f32 %v1101_v63, %v1085_v32 }
 0xe17   :  { %8420 = vtanh.f32 %v1104_v34  ;;  %v1145_v43 = vrot.slane %v1104_v34, 4 }
 0xe18   :  { %8422 = vtanh.f32 %v1105_v37  ;;  %v1146_v42 = vrot.slane %v1105_v37, 3 }
 0xe1a   :  { %v1147_v44 = vsel %vm443_vm3, %v1146_v42, %v1145_v43 }
 0xe21   :  { %v8421_v38 = vpop.eup %8420 }
 0xe22   :  { %v8423_v40 = vpop.eup %8422  ;;  %1110 = vrot.lane.b32.xlu1 %v8421_v38, %s8894_s5 }
 0xe23   :  { %1112 = vrot.lane.b32.xlu0 %v8423_v40, %s8894_s5 }
 0xe26   :  { %1123 = vperm.xlu1 %8341, %v7530_v6  }
 0xe27   :  { %1138 = vperm.xlu0 %8340, %v1135_v41  }
 0xe2b   :  { %1148 = vrot.lane.b32.xlu0 %v1147_v44, %s8897_s24 }
 0xe94   :  { %v1111_v17 = vpop.permute.xlu1 %1110 }
 0xe95   :  { %v1113_v46 = vpop.permute.xlu0 %1112  ;;  %v1116_v47 = vmul.f32 %v8417_v18, %v1111_v17 }
 0xe96   :  { %v1117_v27 = vmul.f32 %v8419_v20, %v1113_v46 }
 0xe97   :  { %v1128_v48 = vrot.slane %v1116_v47, 4 }
 0xe98   :  { %v1129_v51 = vrot.slane %v1117_v27, 3 }
 0xe9a   :  { %v1130_v29 = vsel %vm443_vm3, %v1129_v51, %v1128_v48  ;;  %v7532_v48 = vsel %vm1291_vm12, 1.0, %v10941_v21 }
 0xe9b   :  { %1131 = vrot.lane.b32.xlu1 %v1130_v29, %s8895_s22 }
 0xea5   :  { %v1124_v52 = vpop.permute.xlu1 %1123 }
 0xea6   :  { %v1139_v53 = vpop.permute.xlu0 %1138 }
 0xea7   :  { %v1141_v58 = vmul.f32 %v1139_v53, %v9291_v16  ;;  %v1152_v18 = vmul.f32 %v1139_v53, %v9314_v61 }
 0xeaa   :  { %v1149_v13 = vpop.permute.xlu0 %1148 }
 0xf0d   :  { %v1132_v54 = vpop.permute.xlu1 %1131 }
 0xf0e   :  { %v1134_v59 = vmul.f32 %v1132_v54, %v1124_v52 }
 0xf10   :  { %v9333_v60 = vadd.f32 %v1141_v58, %v1134_v59  ;;  %v1774_v35 = vrot.slane %v1134_v59, %v9200_v55 }
 0xf12   :  { %v1775_v62 = vcombine.high %v1774_v35, %v1774_v35  ;;  %v1782_v0 = vrot.slane %v1774_v35, %v9200_v55  ;;  %7818 = vmatmul.mubr.msk.f32.vlgmr.msra.gmra.mrb[6].mxu0 %vm161_vm1, %v9333_v60 }
 0xf13   :  { %8169 = vmatpush3.bf16.msra.mxu0 %v9096_v15  ;;  %7839 = vmatprep.mubr.msk.f32.mxu0 %vm8892_vm0, %v10941_v21 }
 0xf14   :  { %v1789_v36 = vrot.slane %v1775_v62, %v9200_v55  ;;  %v1892_v16 = vrot.slane %v1782_v0, %v9076_v4  ;;  %8170 = vmatprep.subr.bf16.mxu0 %v10939_v14 }
 0xf16   :  { %v1896_v1 = vrot.slane %v1789_v36, %v9076_v4  ;;  %v9347_v8 = vsel %vm1938_vm11, %v9305_v49, %v1892_v16  ;;  %v1151_v49 = vmul.f32 %v1149_v13, %v1124_v52  ;;  %v1308_v52 = vsub.f32 1.0, %v7532_v48 }
 0xf17   :  { %8172 = vmatpush3.bf16.msra.mxu0 %v9114_v22 }
 0xf18   :  { %v9351_v10 = vsel %vm1938_vm11, %v9309_v50, %v1896_v1  ;;  %8181 = vmatprep.subr.bf16.mxu0 %v10939_v14  ;;  %v9357_v22 = vadd.f32 %v1152_v18, %v1151_v49 }
 0xf1a   :  { %v1249_v20 = vrot.slane %v9357_v22, 3  ;;  %v1250_v23 = vrot.slane %v9357_v22, 4 }
 0xfe5   :  { %v1223_v15 = vpop.f32.mrb[6].mxu0 }
 0xfe6   :  { %v1228_v56 = vrot.slane %v1223_v15, 3  ;;  %v1229_v45 = vrot.slane %v1223_v15, 4  ;;  %v7819_v57 = vpop.f32.mrb[7].mxu0 }
 0xfe8   :  { %v1232_v11 = vadd.f32 %v1228_v56, %v9143_v9  ;;  %v1233_v12 = vadd.f32 %v1229_v45, %v9141_v7 }
 0xfea   :  { %8424 = vtanh.f32 %v1232_v11  ;;  %v1234_v24 = vsub.f32 0.0, %v1232_v11  ;;  %v1235_v25 = vsub.f32 0.0, %v1233_v12 }
 0xfeb   :  { %8426 = vtanh.f32 %v1233_v12 }
 0xfec   :  { %v1236_v26 = vmul.f32 1.442695, %v1234_v24  ;;  %v1238_v61 = vmul.f32 1.442695, %v1235_v25 }
 0xfee   :  { %8428 = vpow2.f32 %v1236_v26 }
 0xfef   :  { %8430 = vpow2.f32 %v1238_v61 }
 0xff4   :  { %v8425_v50 = vpop.eup %8424 }
 0xff5   :  { %v8427_v19 = vpop.eup %8426  ;;  %1261 = vrot.lane.b32.xlu1 %v8425_v50, %s8894_s5 }
 0xff6   :  { %1263 = vrot.lane.b32.xlu0 %v8427_v19, %s8894_s5 }
 0xff8   :  { %v8429_v28 = vpop.eup %8428 }
 0xff9   :  { %1251 = vrot.lane.b32.xlu1 %v1249_v20, %s8895_s22  ;;  %v8431_v30 = vpop.eup %8430  ;;  %v1240_v32 = vadd.f32 1.0, %v8429_v28 }
 0xffa   :  { %1253 = vrot.lane.b32.xlu0 %v1250_v23, %s8895_s22  ;;  %v1241_v33 = vadd.f32 1.0, %v8431_v30 }
 0xffb   :  { %8432 = vrcp.f32 %v1240_v32 }
 0xffc   :  { %8434 = vrcp.f32 %v1241_v33 }
0x1005   :  { %v8433_v63 = vpop.eup %8432 }
0x1006   :  { %v8435_v37 = vpop.eup %8434 }
0x1067   :  { %v1262_v34 = vpop.permute.xlu1 %1261 }
0x1068   :  { %v1264_v6 = vpop.permute.xlu0 %1263  ;;  %v1267_v38 = vmul.f32 %v8433_v63, %v1262_v34 }
0x1069   :  { %v1268_v40 = vmul.f32 %v8435_v37, %v1264_v6 }
0x106a   :  { %1271 = vrot.lane.b32.xlu1 %v1267_v38, %s8895_s22 }
0x106b   :  { %1273 = vrot.lane.b32.xlu0 %v1268_v40, %s8895_s22  ;;  %v1252_v41 = vpop.permute.xlu1 %1251 }
0x106c   :  { %v1254_v42 = vpop.permute.xlu0 %1253  ;;  %v1257_v43 = vmul.f32 %v8433_v63, %v1252_v41 }
0x106d   :  { %v1258_v44 = vmul.f32 %v8435_v37, %v1254_v42 }
0x10dc   :  { %v1272_v17 = vpop.permute.xlu1 %1271 }
0x10dd   :  { %v1274_v46 = vpop.permute.xlu0 %1273  ;;  %v1277_v47 = vadd.f32 %v1272_v17, %v1257_v43 }
0x10de   :  { %v1278_v27 = vadd.f32 %v1274_v46, %v1258_v44 }
0x10df   :  { %8436 = vtanh.f32 %v1277_v47  ;;  %v1318_v54 = vrot.slane %v1277_v47, 5 }
0x10e0   :  { %8438 = vtanh.f32 %v1278_v27  ;;  %v1319_v53 = vrot.slane %v1278_v27, 4 }
0x10e2   :  { %v1320_v58 = vsel %vm443_vm3, %v1319_v53, %v1318_v54 }
0x10e9   :  { %v8437_v51 = vpop.eup %8436 }
0x10ea   :  { %v8439_v29 = vpop.eup %8438  ;;  %1283 = vrot.lane.b32.xlu1 %v8437_v51, %s8894_s5 }
0x10eb   :  { %1285 = vrot.lane.b32.xlu0 %v8439_v29, %s8894_s5 }
0x10ee   :  { %1296 = vperm.xlu1 %8341, %v7532_v48  }
0x10ef   :  { %1311 = vperm.xlu0 %8340, %v1308_v52  }
0x10f3   :  { %1321 = vrot.lane.b32.xlu0 %v1320_v58, %s8897_s24 }
0x115c   :  { %v1284_v59 = vpop.permute.xlu1 %1283 }
0x115d   :  { %v1286_v35 = vpop.permute.xlu0 %1285  ;;  %v1289_v39 = vmul.f32 %v8433_v63, %v1284_v59 }
0x115e   :  { %v1290_v62 = vmul.f32 %v8435_v37, %v1286_v35 }
0x115f   :  { %v1301_v0 = vrot.slane %v1289_v39, 5 }
0x1160   :  { %v1302_v36 = vrot.slane %v1290_v62, 4  ;;  %v9407_v62 = vld [vmem:[%s10955_s23] sm:$0x3] }
0x1161   :  { %vm1464_vm14 = vcmp.gt.s32.totalorder %v9407_v62, 6  ;;  %vm1637_vm2 = vcmp.gt.s32.totalorder %v9407_v62, 7 }
0x1162   :  { %v1303_v16 = vsel %vm443_vm3, %v1302_v36, %v1301_v0  ;;  %v7534_v0 = vsel %vm1464_vm14, 1.0, %v10941_v21 }
0x1163   :  { %1304 = vrot.lane.b32.xlu1 %v1303_v16, %s8895_s22 }
0x116d   :  { %v1297_v1 = vpop.permute.xlu1 %1296 }
0x116e   :  { %v1312_v15 = vpop.permute.xlu0 %1311 }
0x116f   :  { %v1314_v45 = vmul.f32 %v1312_v15, %v9333_v60  ;;  %v1325_v33 = vmul.f32 %v1312_v15, %v9357_v22 }
0x1172   :  { %v1322_v30 = vpop.permute.xlu0 %1321 }
0x1173   :  { %v1324_v32 = vmul.f32 %v1322_v30, %v1297_v1 }
0x1175   :  { %v9394_v63 = vadd.f32 %v1325_v33, %v1324_v32 }
0x1177   :  { %v1423_v37 = vrot.slane %v9394_v63, 3 }
0x11d5   :  { %v1305_v56 = vpop.permute.xlu1 %1304 }
0x11d6   :  { %v1307_v57 = vmul.f32 %v1305_v56, %v1297_v1  ;;  %v1481_v1 = vsub.f32 1.0, %v7534_v0 }
0x11d8   :  { %v9376_v11 = vadd.f32 %v1314_v45, %v1307_v57  ;;  %v1797_v12 = vrot.slane %v1307_v57, %v9200_v55 }
0x11da   :  { %v1798_v13 = vcombine.high %v1797_v12, %v1797_v12  ;;  %v1805_v49 = vrot.slane %v1797_v12, %v9200_v55  ;;  %7829 = vmatmul.mubr.msk.f32.vlgmr.msra.gmra.mrb[6].mxu1 %vm161_vm1, %v9376_v11 }
0x11dc   :  { %v1812_v18 = vrot.slane %v1798_v13, %v9200_v55  ;;  %v1902_v50 = vrot.slane %v1805_v49, %v9076_v4 }
0x11de   :  { %v1906_v19 = vrot.slane %v1812_v18, %v9076_v4  ;;  %v9386_v60 = vsel %vm1941_vm13, %v9347_v8, %v1902_v50 }
0x11e0   :  { %v9389_v20 = vsel %vm1941_vm13, %v9351_v10, %v1906_v19  ;;  %v1422_v10 = vrot.slane %v9394_v63, 2 }
0x12ad   :  { %v1396_v23 = vpop.f32.mrb[6].mxu1 }
0x12ae   :  { %v1401_v24 = vrot.slane %v1396_v23, 2  ;;  %v1402_v25 = vrot.slane %v1396_v23, 3  ;;  %v7830_v26 = vpop.f32.mrb[7].mxu1 }
0x12b0   :  { %v1405_v61 = vadd.f32 %v1401_v24, %v9143_v9  ;;  %v1406_v28 = vadd.f32 %v1402_v25, %v9141_v7 }
0x12b2   :  { %8440 = vtanh.f32 %v1405_v61  ;;  %v1407_v6 = vsub.f32 0.0, %v1405_v61  ;;  %v1408_v38 = vsub.f32 0.0, %v1406_v28 }
0x12b3   :  { %8442 = vtanh.f32 %v1406_v28 }
0x12b4   :  { %v1409_v40 = vmul.f32 1.442695, %v1407_v6  ;;  %v1411_v22 = vmul.f32 1.442695, %v1408_v38 }
0x12b6   :  { %8444 = vpow2.f32 %v1409_v40 }
0x12b7   :  { %8446 = vpow2.f32 %v1411_v22 }
0x12bc   :  { %v8441_v8 = vpop.eup %8440 }
0x12bd   :  { %v8443_v34 = vpop.eup %8442  ;;  %1434 = vrot.lane.b32.xlu1 %v8441_v8, %s8894_s5 }
0x12be   :  { %1436 = vrot.lane.b32.xlu0 %v8443_v34, %s8894_s5 }
0x12c0   :  { %v8445_v41 = vpop.eup %8444 }
0x12c1   :  { %1424 = vrot.lane.b32.xlu1 %v1422_v10, %s8895_s22  ;;  %v8447_v42 = vpop.eup %8446  ;;  %v1413_v43 = vadd.f32 1.0, %v8445_v41 }
0x12c2   :  { %1426 = vrot.lane.b32.xlu0 %v1423_v37, %s8895_s22  ;;  %v1414_v44 = vadd.f32 1.0, %v8447_v42 }
0x12c3   :  { %8448 = vrcp.f32 %v1413_v43 }
0x12c4   :  { %8450 = vrcp.f32 %v1414_v44 }
0x12cd   :  { %v8449_v17 = vpop.eup %8448 }
0x12ce   :  { %v8451_v47 = vpop.eup %8450 }
0x132f   :  { %v1435_v46 = vpop.permute.xlu1 %1434 }
0x1330   :  { %v1437_v27 = vpop.permute.xlu0 %1436  ;;  %v1440_v48 = vmul.f32 %v8449_v17, %v1435_v46 }
0x1331   :  { %v1441_v51 = vmul.f32 %v8451_v47, %v1437_v27 }
0x1332   :  { %1444 = vrot.lane.b32.xlu1 %v1440_v48, %s8895_s22 }
0x1333   :  { %1446 = vrot.lane.b32.xlu0 %v1441_v51, %s8895_s22  ;;  %v1425_v29 = vpop.permute.xlu1 %1424 }
0x1334   :  { %v1427_v52 = vpop.permute.xlu0 %1426  ;;  %v1430_v53 = vmul.f32 %v8449_v17, %v1425_v29 }
0x1335   :  { %v1431_v54 = vmul.f32 %v8451_v47, %v1427_v52 }
0x13a4   :  { %v1445_v58 = vpop.permute.xlu1 %1444 }
0x13a5   :  { %v1447_v59 = vpop.permute.xlu0 %1446  ;;  %v1450_v35 = vadd.f32 %v1445_v58, %v1430_v53 }
0x13a6   :  { %v1451_v39 = vadd.f32 %v1447_v59, %v1431_v54 }
0x13a7   :  { %8452 = vtanh.f32 %v1450_v35  ;;  %v1491_v56 = vrot.slane %v1450_v35, 6 }
0x13a8   :  { %8454 = vtanh.f32 %v1451_v39  ;;  %v1492_v15 = vrot.slane %v1451_v39, 5 }
0x13aa   :  { %v1493_v45 = vsel %vm443_vm3, %v1492_v15, %v1491_v56 }
0x13b1   :  { %v8453_v36 = vpop.eup %8452 }
0x13b2   :  { %v8455_v16 = vpop.eup %8454  ;;  %1456 = vrot.lane.b32.xlu1 %v8453_v36, %s8894_s5 }
0x13b3   :  { %1458 = vrot.lane.b32.xlu0 %v8455_v16, %s8894_s5 }
0x13b6   :  { %1469 = vperm.xlu1 %8341, %v7534_v0  }
0x13b7   :  { %1484 = vperm.xlu0 %8340, %v1481_v1  }
0x13bb   :  { %1494 = vrot.lane.b32.xlu0 %v1493_v45, %s8897_s24 }
0x1424   :  { %v1457_v57 = vpop.permute.xlu1 %1456 }
0x1425   :  { %v1459_v12 = vpop.permute.xlu0 %1458  ;;  %v1462_v13 = vmul.f32 %v8449_v17, %v1457_v57 }
0x1426   :  { %v1463_v49 = vmul.f32 %v8451_v47, %v1459_v12 }
0x1427   :  { %v1474_v18 = vrot.slane %v1462_v13, 6  ;;  %v7536_v13 = vsel %vm1637_vm2, 1.0, %v10941_v21 }
0x1428   :  { %v1475_v50 = vrot.slane %v1463_v49, 5 }
0x142a   :  { %v1476_v19 = vsel %vm443_vm3, %v1475_v50, %v1474_v18  ;;  %v1654_v50 = vsub.f32 1.0, %v7536_v13 }
0x142b   :  { %1477 = vrot.lane.b32.xlu1 %v1476_v19, %s8895_s22 }
0x1435   :  { %v1470_v23 = vpop.permute.xlu1 %1469 }
0x1436   :  { %v1485_v24 = vpop.permute.xlu0 %1484 }
0x1437   :  { %v1487_v26 = vmul.f32 %v1485_v24, %v9376_v11  ;;  %v1498_v17 = vmul.f32 %v1485_v24, %v9394_v63 }
0x143a   :  { %v1495_v43 = vpop.permute.xlu0 %1494 }
0x143b   :  { %v1497_v44 = vmul.f32 %v1495_v43, %v1470_v23 }
0x143d   :  { %v9438_v46 = vadd.f32 %v1498_v17, %v1497_v44 }
0x149d   :  { %v1478_v25 = vpop.permute.xlu1 %1477 }
0x149e   :  { %v1480_v61 = vmul.f32 %v1478_v25, %v1470_v23  ;;  %v2044_v25 = vld [vmem:[%s10923_s10] sm:$0xff] }
0x14a0   :  { %v9418_v28 = vadd.f32 %v1487_v26, %v1480_v61  ;;  %v1820_v30 = vrot.slane %v1480_v61, %v9200_v55  ;;  %v2045_v26 = vld [vmem:[%s10923_s10 + $0x8] sm:$0xff] }
0x14a1   :  { %v9460_v61 = vpack.c.bf16 %v2045_v26, %v2044_v25 }
0x14a2   :  { %v1821_v32 = vcombine.high %v1820_v30, %v1820_v30  ;;  %v1828_v33 = vrot.slane %v1820_v30, %v9200_v55  ;;  %7840 = vmatmul.mubr.msk.f32.vlgmr.msra.gmra.mrb[8].mxu0 %vm161_vm1, %v9418_v28  ;;  %v2046_v30 = vld [vmem:[%s10923_s10 + $0x10] sm:$0xff] }
0x14a3   :  { %7861 = vmatprep.mubr.msk.f32.mxu0 %vm8892_vm0, %v10941_v21  ;;  %8183 = vmatpush3.bf16.msra.mxu0 %v9460_v61 }
0x14a4   :  { %v1835_v8 = vrot.slane %v1821_v32, %v9200_v55  ;;  %v1912_v34 = vrot.slane %v1828_v33, %v9076_v4  ;;  %8184 = vmatprep.subr.bf16.mxu0 %v10939_v14  ;;  %v2047_v32 = vld [vmem:[%s10923_s10 + $0x18] sm:$0xff] }
0x14a5   :  { %v9470_v33 = vpack.c.bf16 %v2047_v32, %v2046_v30 }
0x14a6   :  { %v1916_v11 = vrot.slane %v1835_v8, %v9076_v4  ;;  %v9430_v10 = vsel %vm1944_vm15, %v9386_v60, %v1912_v34  ;;  %v1958_v8 = vld [vmem:[%s10925_s12] sm:$0xff]  ;;  %v1959_v34 = vld [vmem:[%s10925_s12 + $0x8] sm:$0xff] }
0x14a7   :  { %8186 = vmatpush3.bf16.msra.mxu0 %v9470_v33 }
0x14a8   :  { %v9433_v37 = vsel %vm1944_vm15, %v9389_v20, %v1916_v11  ;;  %v1595_v20 = vrot.slane %v9438_v46, 1  ;;  %v8173_v11 = vpack.c.bf16 %v1959_v34, %v1958_v8  ;;  %8193 = vmatprep.subr.bf16.mxu0 %v10939_v14  ;;  %v2049_v8 = vld [vmem:[%s10926_s13] sm:$0xff]  ;;  %v2050_v34 = vld [vmem:[%s10926_s13 + $0x8] sm:$0xff] }
0x14aa   :  { %8174 = vmatprep.subr.bf16.mxu1 %v8173_v11 }
0x14ab   :  { %8176 = vmatpush3.bf16.msra.mxu1 %v8173_v11  ;;  %v2051_v11 = vld [vmem:[%s10926_s13 + $0x10] sm:$0xff] }
0x1575   :  { %v1569_v6 = vpop.f32.mrb[8].mxu0 }
0x1576   :  { %v1574_v38 = vrot.slane %v1569_v6, 1  ;;  %v1575_v40 = vrot.slane %v1569_v6, 2  ;;  %v7841_v22 = vpop.f32.mrb[9].mxu0  ;;  %v1960_v6 = vld [vmem:[%s10925_s12 + $0x10] sm:$0xff] }
0x1578   :  { %v1578_v41 = vadd.f32 %v1574_v38, %v9143_v9  ;;  %v1579_v42 = vadd.f32 %v1575_v40, %v9141_v7  ;;  %v1596_v9 = vrot.slane %v9438_v46, 2  ;;  %v1961_v38 = vld [vmem:[%s10925_s12 + $0x18] sm:$0xff]  ;;  %s10958_s12 = sld [smem:[#allocation26_spill]] }
0x1579   :  { %v8177_v40 = vpack.c.bf16 %v1961_v38, %v1960_v6  ;;  %v9541_v6 = vpack.c.bf16 %v2050_v34, %v2049_v8  ;;  %v2052_v38 = vld [vmem:[%s10926_s13 + $0x18] sm:$0xff] }
0x157a   :  { %8456 = vtanh.f32 %v1578_v41  ;;  %v1580_v7 = vsub.f32 0.0, %v1578_v41  ;;  %v1581_v27 = vsub.f32 0.0, %v1579_v42 }
0x157b   :  { %8458 = vtanh.f32 %v1579_v42  ;;  %8178 = vmatprep.subr.bf16.mxu1 %v8177_v40 }
0x157c   :  { %v1582_v48 = vmul.f32 1.442695, %v1580_v7  ;;  %v1584_v63 = vmul.f32 1.442695, %v1581_v27  ;;  %8180 = vmatpush3.bf16.msra.mxu1 %v8177_v40 }
0x157d   :  { %8187 = vmatprep.subr.bf16.mxu1 %v10939_v14 }
0x157e   :  { %8460 = vpow2.f32 %v1582_v48 }
0x157f   :  { %8462 = vpow2.f32 %v1584_v63 }
0x1584   :  { %v8457_v60 = vpop.eup %8456 }
0x1585   :  { %v8459_v47 = vpop.eup %8458  ;;  %1607 = vrot.lane.b32.xlu1 %v8457_v60, %s8894_s5 }
0x1586   :  { %1609 = vrot.lane.b32.xlu0 %v8459_v47, %s8894_s5 }
0x1588   :  { %v8461_v51 = vpop.eup %8460 }
0x1589   :  { %1597 = vrot.lane.b32.xlu1 %v1595_v20, %s8895_s22  ;;  %v8463_v29 = vpop.eup %8462  ;;  %v1586_v52 = vadd.f32 1.0, %v8461_v51 }
0x158a   :  { %1599 = vrot.lane.b32.xlu0 %v1596_v9, %s8895_s22  ;;  %v1587_v53 = vadd.f32 1.0, %v8463_v29 }
0x158b   :  { %8464 = vrcp.f32 %v1586_v52 }
0x158c   :  { %8466 = vrcp.f32 %v1587_v53 }
0x1595   :  { %v8465_v54 = vpop.eup %8464 }
0x1596   :  { %v8467_v59 = vpop.eup %8466 }
0x15f7   :  { %v1608_v58 = vpop.permute.xlu1 %1607 }
0x15f8   :  { %v1610_v35 = vpop.permute.xlu0 %1609  ;;  %v1613_v39 = vmul.f32 %v8465_v54, %v1608_v58 }
0x15f9   :  { %v1614_v0 = vmul.f32 %v8467_v59, %v1610_v35 }
0x15fa   :  { %1617 = vrot.lane.b32.xlu1 %v1613_v39, %s8895_s22 }
0x15fb   :  { %1619 = vrot.lane.b32.xlu0 %v1614_v0, %s8895_s22  ;;  %v1598_v36 = vpop.permute.xlu1 %1597  ;;  %v9512_v0 = vld [vmem:[#allocation12] ss:$0 sm:$0xff] }
0x15fc   :  { %v1600_v16 = vpop.permute.xlu0 %1599  ;;  %v1603_v1 = vmul.f32 %v8465_v54, %v1598_v36  ;;  %v2067_v36 = vmul.f32 -1.0, %v9512_v0 }
0x15fd   :  { %v1604_v15 = vmul.f32 %v8467_v59, %v1600_v16 }
0x166c   :  { %v1618_v56 = vpop.permute.xlu1 %1617 }
0x166d   :  { %v1620_v45 = vpop.permute.xlu0 %1619  ;;  %v1623_v57 = vadd.f32 %v1618_v56, %v1603_v1 }
0x166e   :  { %v1624_v12 = vadd.f32 %v1620_v45, %v1604_v15 }
0x166f   :  { %8468 = vtanh.f32 %v1623_v57  ;;  %v1664_v23 = vrot.slane %v1623_v57, 7 }
0x1670   :  { %8470 = vtanh.f32 %v1624_v12  ;;  %v1665_v19 = vrot.slane %v1624_v12, 6 }
0x1672   :  { %v1666_v24 = vsel %vm443_vm3, %v1665_v19, %v1664_v23 }
0x1679   :  { %v8469_v49 = vpop.eup %8468 }
0x167a   :  { %v8471_v18 = vpop.eup %8470  ;;  %1629 = vrot.lane.b32.xlu1 %v8469_v49, %s8894_s5 }
0x167b   :  { %1631 = vrot.lane.b32.xlu0 %v8471_v18, %s8894_s5 }
0x167e   :  { %1642 = vperm.xlu1 %8341, %v7536_v13  }
0x167f   :  { %1657 = vperm.xlu0 %8340, %v1654_v50  }
0x1683   :  { %1667 = vrot.lane.b32.xlu0 %v1666_v24, %s8897_s24 }
0x16ec   :  { %v1630_v22 = vpop.permute.xlu1 %1629 }
0x16ed   :  { %v1632_v41 = vpop.permute.xlu0 %1631  ;;  %v1635_v42 = vmul.f32 %v8465_v54, %v1630_v22 }
0x16ee   :  { %v1636_v43 = vmul.f32 %v8467_v59, %v1632_v41 }
0x16ef   :  { %v1647_v44 = vrot.slane %v1635_v42, 7 }
0x16f0   :  { %v1648_v17 = vrot.slane %v1636_v43, 6 }
0x16f2   :  { %v1649_v60 = vsel %vm443_vm3, %v1648_v17, %v1647_v44 }
0x16f3   :  { %1650 = vrot.lane.b32.xlu1 %v1649_v60, %s8895_s22 }
0x16fd   :  { %v1643_v20 = vpop.permute.xlu1 %1642 }
0x16fe   :  { %v1658_v47 = vpop.permute.xlu0 %1657 }
0x16ff   :  { %v1671_v7 = vmul.f32 %v1658_v47, %v9438_v46  ;;  %v1660_v51 = vmul.f32 %v1658_v47, %v9418_v28 }
0x1702   :  { %v1668_v9 = vpop.permute.xlu0 %1667 }
0x1703   :  { %v1670_v27 = vmul.f32 %v1668_v9, %v1643_v20 }
0x1705   :  { %v1672_v48 = vadd.f32 %v1671_v7, %v1670_v27 }
0x1707   :  { %2157 = vrot.lane.b32.xlu0 %v1672_v48, %s8895_s22 }
0x1765   :  { %v1651_v63 = vpop.permute.xlu1 %1650 }
0x1766   :  { %v1653_v29 = vmul.f32 %v1651_v63, %v1643_v20 }
0x1768   :  { %v1661_v52 = vadd.f32 %v1660_v51, %v1653_v29  ;;  %v1843_v53 = vrot.slane %v1653_v29, %v9200_v55  ;;  %v9582_v51 = vld [vmem:[%s10927_s14] ss:$0 sm:$0xff] }
0x176a   :  { %v1844_v54 = vcombine.high %v1843_v53, %v1843_v53  ;;  %v1851_v58 = vrot.slane %v1843_v53, %v9200_v55  ;;  %7862 = vmatmul.mubr.msk.f32.vlgmr.msra.gmra.mrb[10].mxu0 %vm161_vm1, %v1661_v52  ;;  %v9585_v52 = vand.u32 127, %v138_v2 }
0x176b   :  { %7883 = vmatprep.mubr.msk.f32.mxu0 %vm8892_vm0, %v10941_v21 }
0x176c   :  { %v1858_v46 = vrot.slane %v1844_v54, %v9200_v55  ;;  %v1922_v59 = vrot.slane %v1851_v58, %v9076_v4 }
0x176e   :  { %v1926_v35 = vrot.slane %v1858_v46, %v9076_v4  ;;  %v9501_v28 = vsel %vm1947_vm4, %v9430_v10, %v1922_v59  ;;  %v9518_v10 = vld [vmem:[%s10924_s11] ss:$0 sm:$0xff] }
0x176f   :  { %7850 = vmatprep.mubr.msk.f32.mxu1 %vm161_vm1, %v9501_v28 }
0x1770   :  { %v9506_v39 = vsel %vm1947_vm4, %v9433_v37, %v1926_v35 }
0x1771   :  { %7851 = vmatmul.mubr.msk.f32.vlgmr.msra.gmra.mrb[8].mxu1 %vm161_vm1, %v9506_v39 }
0x1772   :  { %7872 = vmatprep.mubr.msk.f32.mxu1 %vm8892_vm0, %v10941_v21  ;;  %8189 = vmatpush3.bf16.msra.mxu1 %v9541_v6 }
0x1773   :  { %8190 = vmatprep.subr.bf16.mxu1 %v10939_v14 }
0x1779   :  { %v2158_v24 = vpop.permute.xlu0 %2157 }
0x183d   :  { %v2137_v16 = vpop.f32.mrb[10].mxu0 }
0x183e   :  { %v2141_v1 = vadd.f32 %v2137_v16, %v2067_v36  ;;  %v7863_v15 = vpop.f32.mrb[11].mxu0 }
0x1840   :  { %v2148_v37 = vadd.f32 %v9518_v10, %v2141_v1 }
0x1842   :  { %8472 = vtanh.f32 %v2148_v37  ;;  %v2149_v12 = vsub.f32 0.0, %v2148_v37  ;;  %v7545_v37 = vld [vmem:[#allocation2] ss:$0 sm:$0xff] }
0x1844   :  { %v9521_v56 = vpop.f32.mrb[8].mxu1  ;;  %v2150_v13 = vmul.f32 1.442695, %v2149_v12 }
0x1845   :  { %v9523_v45 = vpop.f32.mrb[9].mxu1 }
0x1846   :  { %8474 = vpow2.f32 %v2150_v13 }
0x184c   :  { %v8473_v57 = vpop.eup %8472 }
0x184d   :  { %2162 = vrot.lane.b32.xlu1 %v8473_v57, %s8894_s5 }
0x1850   :  { %v8475_v49 = vpop.eup %8474 }
0x1851   :  { %v2152_v18 = vadd.f32 1.0, %v8475_v49 }
0x1853   :  { %8476 = vrcp.f32 %v2152_v18 }
0x185d   :  { %v8477_v50 = vpop.eup %8476 }
0x185e   :  { %v2160_v25 = vmul.f32 %v8477_v50, %v2158_v24 }
0x18bf   :  { %v2163_v19 = vpop.permute.xlu1 %2162 }
0x18c0   :  { %v2165_v23 = vmul.f32 %v8477_v50, %v2163_v19 }
0x18c2   :  { %2167 = vrot.lane.b32.xlu1 %v2165_v23, %s8895_s22 }
0x1934   :  { %v2168_v26 = vpop.permute.xlu1 %2167 }
0x1935   :  { %v9527_v30 = vadd.f32 %v2168_v26, %v2160_v25  ;;  %v9616_v25 = vsub.s32 %v9585_v52, %v9073_v3 }
0x1937   :  { %8478 = vtanh.f32 %v9527_v30 }
0x1941   :  { %v8479_v32 = vpop.eup %8478 }
0x1942   :  { %2173 = vrot.lane.b32.xlu0 %v8479_v32, %s8894_s5 }
0x1946   :  { %1953 = vperm.xlu0 %8340, %v9407_v62   ;;  %v9547_v62 = vpack.c.bf16 %v2052_v38, %v2051_v11 }
0x1948   :  { %8192 = vmatpush3.bf16.msra.mxu1 %v9547_v62 }
0x1949   :  { %8199 = vmatprep.subr.bf16.mxu1 %v10939_v14 }
0x19b4   :  { %v2174_v40 = vpop.permute.xlu0 %2173 }
0x19b5   :  { %v9552_v22 = vmul.f32 %v8477_v50, %v2174_v40 }
0x19b7   :  { %2178 = vrot.lane.b32.xlu1 %v9552_v22, %s8895_s22 }
0x19c5   :  { %v9588_v58 = vpop.permute.xlu0 %1953 }
0x19c6   :  { %10956 = vst [vmem:[#allocation21_spill] sm:$0xff] %v9588_v58  ;;  %vm1955_vm5 = vcmp.lt.s32.totalorder %v9585_v52, %v9588_v58 }
0x19c7   :  { %v9599_v2 = vsel %vm1955_vm5, 1.0, %v10941_v21 }
0x19c8   :  { %10957 = vst [vmem:[#allocation22_spill] sm:$0xff] %v9599_v2  ;;  %v2314_v36 = vsub.f32 1.0, %v9599_v2 }
0x19ca   :  { %v2315_v16 = vmul.f32 1e+10, %v2314_v36 }
0x19cc   :  { %v2320_v1 = vrot.slane %v2315_v16, %v9076_v4  ;;  %v2327_v15 = vrot.slane %v2315_v16, %v9079_v5 }
0x1a29   :  { %v9556_v41 = vpop.permute.xlu1 %2178 }
0x1a2a   :  { %7873 = vmatmul.mubr.msk.f32.vlgmr.msra.gmra.mrb[10].mxu1 %vm161_vm1, %v9556_v41 }
0x1a2b   :  { %8201 = vmatpush3.bf16.msra.mxu1 %v9460_v61  ;;  %7894 = vmatprep.mubr.msk.f32.mxu1 %vm8892_vm0, %v10941_v21 }
0x1a2c   :  { %8202 = vmatprep.subr.bf16.mxu1 %v10939_v14 }
0x1a2f   :  { %8204 = vmatpush3.bf16.msra.mxu1 %v9470_v33 }
0x1a30   :  { %8211 = vmatprep.subr.bf16.mxu1 %v10939_v14 }
0x1a32   :  { %7895 = vmatmul.mubr.msk.f32.vlgmr.msra.gmra.mrb[12].mxu1 %vm161_vm1, %v9556_v41 }
0x1a33   :  { %7916 = vmatprep.mubr.msk.f32.mxu1 %vm8892_vm0, %v10941_v21 }
0x1afd   :  { %v2248_v42 = vpop.f32.mrb[10].mxu1 }
0x1afe   :  { %v2259_v43 = vrot.slane %v2248_v42, %v9200_v55  ;;  %v7874_v44 = vpop.f32.mrb[11].mxu1 }
0x1b00   :  { %v2260_v17 = vcombine.high %v2259_v43, %v2259_v43  ;;  %v2267_v60 = vrot.slane %v2259_v43, %v9200_v55 }
0x1b02   :  { %v2274_v47 = vrot.slane %v2260_v17, %v9200_v55  ;;  %v2278_v20 = vrot.slane %v2267_v60, %v9076_v4 }
0x1b04   :  { %v2282_v9 = vrot.slane %v2274_v47, %v9076_v4  ;;  %v2285_v7 = vadd.f32 %v2278_v20, %v9523_v45 }
0x1b05   :  { %v9576_v27 = vpop.f32.mrb[12].mxu1 }
0x1b06   :  { %v2286_v48 = vadd.f32 %v9521_v56, %v2282_v9  ;;  %8480 = vtanh.f32 %v2285_v7  ;;  %v7896_v63 = vpop.f32.mrb[13].mxu1 }
0x1b08   :  { %8482 = vtanh.f32 %v2286_v48 }
0x1b10   :  { %v8481_v29 = vpop.eup %8480 }
0x1b11   :  { %v2295_v53 = vmul.f32 %v8481_v29, %v9582_v51 }
0x1b12   :  { %v8483_v54 = vpop.eup %8482 }
0x1b13   :  { %v2297_v46 = vsel %vm161_vm1, %v2295_v53, 0.0  ;;  %v2296_v59 = vmul.f32 %v8483_v54, %v9582_v51 }
0x1b14   :  { %2298 = vadd.xlane.f32.xlu1 %v2297_v46 }
0x1b15   :  { %v2300_v35 = vsel %vm161_vm1, %v2296_v59, 0.0 }
0x1b16   :  { %2301 = vadd.xlane.f32.xlu0 %v2300_v35 }
0x1b25   :  { %2322 = vbcast.lane.b32.xlu1 %v2320_v1, 256 }
0x1b29   :  { %2329 = vbcast.lane.b32.xlu1 %v2327_v15, 256  ;;  %v2436_v15 = vrot.slane %v9552_v22, 1  ;;  %v2057_v22 = vld [vmem:[%s10929_s16 + $0x10] sm:$0xff] }
0x1b2c   :  { %2309 = vperm.xlu0 %8340, %v7545_v37   ;;  %v2055_v37 = vld [vmem:[%s10929_s16] sm:$0xff] }
0x1ba1   :  { %v2299_v57 = vpop.xlane.xlu1 %2298 }
0x1ba3   :  { %v2302_v12 = vpop.xlane.xlu0 %2301 }
0x1ba5   :  { %v9604_v13 = vpop.permute.xlu1 %2322 }
0x1ba9   :  { %v9610_v19 = vpop.permute.xlu1 %2329 }
0x1bab   :  { %v9606_v49 = vpop.permute.xlu0 %2309 }
0x1bac   :  { %v2313_v18 = vadd.f32 %v9606_v49, %v2302_v12  ;;  %v2312_v50 = vadd.f32 %v9606_v49, %v2299_v57  ;;  %v2056_v57 = vld [vmem:[%s10929_s16 + $0x8] sm:$0xff] }
0x1bad   :  { %v9638_v12 = vpack.c.bf16 %v2056_v57, %v2055_v37 }
0x1bae   :  { %v2334_v23 = vsub.f32 %v2313_v18, %v9610_v19  ;;  %v2333_v24 = vsub.f32 %v2312_v50, %v9604_v13  ;;  %v2058_v18 = vld [vmem:[%s10929_s16 + $0x18] sm:$0xff] }
0x1baf   :  { %8195 = vmatpush3.bf16.msra.mxu0 %v9638_v12  ;;  %8213 = vmatpush3.bf16.msra.mxu1 %v9638_v12  ;;  %v9650_v50 = vpack.c.bf16 %v2058_v18, %v2057_v22 }
0x1bb0   :  { %2341 = vperm.xlu1 %8341, %v2334_v23   ;;  %2338 = vperm.xlu0 %8340, %v2333_v24  }
0x1bb1   :  { %8196 = vmatprep.subr.bf16.mxu0 %v10939_v14  ;;  %8214 = vmatprep.subr.bf16.mxu1 %v10939_v14 }
0x1bb3   :  { %8198 = vmatpush3.bf16.msra.mxu0 %v9650_v50  ;;  %8216 = vmatpush3.bf16.msra.mxu1 %v9650_v50 }
0x1bb4   :  { %8205 = vmatprep.subr.bf16.mxu0 %v10939_v14  ;;  %8223 = vmatprep.subr.bf16.mxu1 %v10939_v14 }
0x1c2f   :  { %v2342_v26 = vpop.permute.xlu1 %2341  ;;  %v2339_v32 = vpop.permute.xlu0 %2338 }
0x1c30   :  { %v2350_v8 = vrot.slane %v2342_v26, %v9616_v25  ;;  %v2346_v34 = vrot.slane %v2339_v32, %v9616_v25 }
0x1c32   :  { %v2351_v11 = vsel %vm443_vm3, %v2350_v8, %v2346_v34 }
0x1c33   :  { %v2354_v38 = vsel %vm2353_vm6, %v2351_v11, -inf }
0x1c34   :  { %2355 = vmax.xlane.f32.xlu0 %v2354_v38 }
0x1cc1   :  { %v2356_v40 = vpop.xlane.xlu0 %2355 }
0x1cc2   :  { %v2361_v42 = vrot.slane %v2356_v40, %v9076_v4  ;;  %v2365_v43 = vrot.slane %v2356_v40, %v9079_v5 }
0x1cc4   :  { %v2368_v44 = vsub.f32 %v2333_v24, %v2361_v42  ;;  %v2369_v3 = vsub.f32 %v2334_v23, %v2365_v43 }
0x1cc6   :  { %v2370_v17 = vmul.f32 1.442695, %v2368_v44  ;;  %v2372_v60 = vmul.f32 1.442695, %v2369_v3 }
0x1cc8   :  { %8484 = vpow2.f32 %v2370_v17 }
0x1cc9   :  { %8486 = vpow2.f32 %v2372_v60 }
0x1cd2   :  { %v8485_v47 = vpop.eup %8484 }
0x1cd3   :  { %2377 = vperm.xlu1 %8341, %v8485_v47   ;;  %v8487_v20 = vpop.eup %8486 }
0x1cd7   :  { %2380 = vperm.xlu1 %8341, %v8487_v20  }
0x1d52   :  { %v2378_v9 = vpop.permute.xlu1 %2377 }
0x1d53   :  { %v2385_v48 = vrot.slane %v2378_v9, %v9616_v25 }
0x1d56   :  { %v2381_v7 = vpop.permute.xlu1 %2380 }
0x1d57   :  { %v2389_v63 = vrot.slane %v2381_v7, %v9616_v25 }
0x1d59   :  { %v2390_v29 = vsel %vm443_vm3, %v2389_v63, %v2385_v48 }
0x1d5a   :  { %v2392_v53 = vsel %vm2353_vm6, %v2390_v29, 0.0 }
0x1d5b   :  { %2393 = vadd.xlane.f32.xlu1 %v2392_v53 }
0x1de8   :  { %v2394_v54 = vpop.xlane.xlu1 %2393 }
0x1de9   :  { %v2399_v46 = vrot.slane %v2394_v54, %v9076_v4  ;;  %v2403_v59 = vrot.slane %v2394_v54, %v9079_v5  ;;  %v7547_v54 = vld [vmem:[%s10930_s17] ss:$0 sm:$0xff] }
0x1deb   :  { %8488 = vrcp.f32 %v2399_v46 }
0x1dec   :  { %8490 = vrcp.f32 %v2403_v59 }
0x1df5   :  { %v8489_v35 = vpop.eup %8488 }
0x1df6   :  { %v8491_v36 = vpop.eup %8490  ;;  %v2407_v16 = vmul.f32 %v8489_v35, %v8485_v47 }
0x1df7   :  { %v2409_v1 = vmul.f32 %v8491_v36, %v8487_v20 }
0x1df8   :  { %2412 = vperm.xlu1 %8341, %v2407_v16  }
0x1df9   :  { %2417 = vperm.xlu0 %8340, %v2409_v1  }
0x1dfc   :  { %2565 = vrot.lane.b32.xlu1 %v7547_v54, %s8895_s22 }
0x1dfd   :  { %2437 = vrot.lane.b32.xlu0 %v2436_v15, %s8895_s22 }
0x1e77   :  { %v2413_v23 = vpop.permute.xlu1 %2412 }
0x1e78   :  { %v2418_v24 = vpop.permute.xlu0 %2417  ;;  %v2420_v26 = vmul.f32 %v2413_v23, %v9501_v28 }
0x1e79   :  { %v2421_v32 = vmul.f32 %v2418_v24, %v9506_v39 }
0x1e7a   :  { %v2422_v8 = vsel %vm161_vm1, %v2420_v26, 0.0 }
0x1e7b   :  { %v2429_v34 = vsel %vm161_vm1, %v2421_v32, 0.0  ;;  %v2423_v11 = vrot.slane %v2422_v8, 4  ;;  %v9682_v23 = vpop.permute.xlu1 %2565 }
0x1e7c   :  { %v2430_v38 = vrot.slane %v2429_v34, 4  ;;  %v2438_v7 = vpop.permute.xlu0 %2437 }
0x1e7d   :  { %v2424_v40 = vadd.f32 %v2423_v11, %v2422_v8 }
0x1e7e   :  { %v2431_v42 = vadd.f32 %v2430_v38, %v2429_v34 }
0x1e7f   :  { %v2425_v43 = vrot.slane %v2424_v40, 2 }
0x1e80   :  { %v2432_v44 = vrot.slane %v2431_v42, 2 }
0x1e81   :  { %v2426_v3 = vadd.f32 %v2425_v43, %v2424_v40 }
0x1e82   :  { %v2433_v17 = vadd.f32 %v2432_v44, %v2431_v42  ;;  %v7548_v42 = vld [vmem:[#allocation3] ss:$0 sm:$0xff] }
0x1e83   :  { %v2427_v60 = vrot.slane %v2426_v3, 1 }
0x1e84   :  { %v2434_v47 = vrot.slane %v2433_v17, 1 }
0x1e85   :  { %v2428_v20 = vadd.f32 %v2427_v60, %v2426_v3 }
0x1e86   :  { %v2435_v9 = vadd.f32 %v2434_v47, %v2433_v17 }
0x1e87   :  { %v2441_v29 = vadd.f32 %v2428_v20, %v9556_v41 }
0x1e88   :  { %v2442_v48 = vadd.f32 %v2438_v7, %v2435_v9 }
0x1e8a   :  { %v2445_v63 = vrot.slane %v2442_v48, 7 }
0x1e8c   :  { %v2446_v53 = vsel %vm443_vm3, %v2445_v63, %v2441_v29 }
0x1e8d   :  { %7884 = vmatmul.mubr.msk.f32.vlgmr.msra.gmra.mrb[12].mxu0 %vm161_vm1, %v2446_v53 }
0x1e8e   :  { %8207 = vmatpush3.bf16.msra.mxu0 %v9541_v6  ;;  %7905 = vmatprep.mubr.msk.f32.mxu0 %vm8892_vm0, %v10941_v21 }
0x1e8f   :  { %8208 = vmatprep.subr.bf16.mxu0 %v10939_v14 }
0x1e92   :  { %8210 = vmatpush3.bf16.msra.mxu0 %v9547_v62 }
0x1e93   :  { %8217 = vmatprep.subr.bf16.mxu0 %v10939_v14 }
0x1f60   :  { %v2515_v41 = vpop.f32.mrb[12].mxu0 }
0x1f61   :  { %v2526_v46 = vrot.slane %v2515_v41, %v9200_v55  ;;  %v7885_v59 = vpop.f32.mrb[13].mxu0 }
0x1f63   :  { %v2527_v35 = vcombine.high %v2526_v46, %v2526_v46  ;;  %v2534_v36 = vrot.slane %v2526_v46, %v9200_v55 }
0x1f65   :  { %v2541_v16 = vrot.slane %v2527_v35, %v9200_v55  ;;  %v2545_v1 = vrot.slane %v2534_v36, %v9076_v4 }
0x1f67   :  { %2550 = vrot.lane.b32.xlu0 %v2545_v1, %s8895_s22  ;;  %v2549_v15 = vrot.slane %v2541_v16, %v9076_v4  ;;  %v130_v1 = vld [vmem:[%s10958_s12] sm:$0x3] }
0x1f6b   :  { %2552 = vrot.lane.b32.xlu0 %v2549_v15, %s8895_s22  ;;  %v2675_v15 = vrot.slane %v130_v1, %v9076_v4 }
0x1fd9   :  { %v2551_v37 = vpop.permute.xlu0 %2550 }
0x1fda   :  { %v2556_v57 = vadd.f32 %v2551_v37, %v9523_v45 }
0x1fdc   :  { %8492 = vtanh.f32 %v2556_v57 }
0x1fdd   :  { %v2553_v22 = vpop.permute.xlu0 %2552 }
0x1fde   :  { %v2557_v18 = vadd.f32 %v9521_v56, %v2553_v22 }
0x1fe0   :  { %8494 = vtanh.f32 %v2557_v18 }
0x1fe6   :  { %v8493_v24 = vpop.eup %8492 }
0x1fe7   :  { %v2568_v26 = vmul.f32 %v8493_v24, %v9682_v23 }
0x1fe9   :  { %2572 = vrot.lane.b32.xlu0 %v2568_v26, %s8897_s24 }
0x1fea   :  { %v8495_v32 = vpop.eup %8494 }
0x1feb   :  { %v2569_v8 = vmul.f32 %v8495_v32, %v9682_v23  ;;  %v2682_v32 = vrot.slane %v130_v1, %v9079_v5 }
0x1fed   :  { %2574 = vrot.lane.b32.xlu1 %v2569_v8, %s8897_s24 }
0x205b   :  { %v2573_v34 = vpop.permute.xlu0 %2572 }
0x205c   :  { %v2578_v11 = vsel %vm161_vm1, %v2573_v34, 0.0 }
0x205d   :  { %2579 = vadd.xlane.f32.xlu0 %v2578_v11 }
0x205f   :  { %v2575_v38 = vpop.permute.xlu1 %2574 }
0x2060   :  { %v2581_v40 = vsel %vm161_vm1, %v2575_v38, 0.0 }
0x2061   :  { %2582 = vadd.xlane.f32.xlu1 %v2581_v40 }
0x2073   :  { %2590 = vperm.xlu0 %8340, %v7548_v42  }
0x20ea   :  { %v2580_v43 = vpop.xlane.xlu0 %2579 }
0x20ee   :  { %v2583_v44 = vpop.xlane.xlu1 %2582 }
0x20f2   :  { %v9690_v3 = vpop.permute.xlu0 %2590 }
0x20f3   :  { %v2594_v17 = vadd.f32 %v9690_v3, %v2583_v44  ;;  %v2593_v60 = vadd.f32 %v9690_v3, %v2580_v43 }
0x20f5   :  { %v2596_v47 = vsub.f32 %v2594_v17, %v9610_v19  ;;  %v2595_v20 = vsub.f32 %v2593_v60, %v9604_v13 }
0x20f7   :  { %2603 = vperm.xlu0 %8340, %v2596_v47   ;;  %2600 = vperm.xlu1 %8341, %v2595_v20  }
0x2176   :  { %v2604_v9 = vpop.permute.xlu0 %2603  ;;  %v2601_v7 = vpop.permute.xlu1 %2600 }
0x2177   :  { %v2612_v48 = vrot.slane %v2604_v9, %v9616_v25  ;;  %v2608_v63 = vrot.slane %v2601_v7, %v9616_v25 }
0x2179   :  { %v2613_v29 = vsel %vm443_vm3, %v2612_v48, %v2608_v63 }
0x217a   :  { %v2615_v53 = vsel %vm2353_vm6, %v2613_v29, -inf }
0x217b   :  { %2616 = vmax.xlane.f32.xlu1 %v2615_v53 }
0x218c   :  { %2677 = vbcast.lane.b32.xlu1 %v2675_v15, 256 }
0x2208   :  { %v2617_v54 = vpop.xlane.xlu1 %2616 }
0x2209   :  { %v2622_v41 = vrot.slane %v2617_v54, %v9076_v4  ;;  %v2626_v19 = vrot.slane %v2617_v54, %v9079_v5 }
0x220b   :  { %v2629_v46 = vsub.f32 %v2595_v20, %v2622_v41  ;;  %v2630_v13 = vsub.f32 %v2596_v47, %v2626_v19 }
0x220c   :  { %v2678_v42 = vpop.permute.xlu1 %2677 }
0x220d   :  { %v2631_v59 = vmul.f32 1.442695, %v2629_v46  ;;  %v2633_v35 = vmul.f32 1.442695, %v2630_v13 }
0x220f   :  { %8496 = vpow2.f32 %v2631_v59 }
0x2210   :  { %8498 = vpow2.f32 %v2633_v35 }
0x2219   :  { %v8497_v36 = vpop.eup %8496 }
0x221a   :  { %2638 = vperm.xlu0 %8340, %v8497_v36   ;;  %v8499_v16 = vpop.eup %8498 }
0x221e   :  { %2641 = vperm.xlu0 %8340, %v8499_v16  }
0x2299   :  { %v2639_v37 = vpop.permute.xlu0 %2638 }
0x229a   :  { %v2646_v22 = vrot.slane %v2639_v37, %v9616_v25 }
0x229d   :  { %v2642_v57 = vpop.permute.xlu0 %2641 }
0x229e   :  { %v2650_v18 = vrot.slane %v2642_v57, %v9616_v25 }
0x22a0   :  { %v2651_v24 = vsel %vm443_vm3, %v2650_v18, %v2646_v22 }
0x22a1   :  { %v2653_v26 = vsel %vm2353_vm6, %v2651_v24, 0.0 }
0x22a2   :  { %2654 = vadd.xlane.f32.xlu0 %v2653_v26 }
0x22b8   :  { %2684 = vbcast.lane.b32.xlu0 %v2682_v32, 256 }
0x22bc   :  { %2725 = vbcast.lane.b32.xlu0 %v9585_v52, 256 }
0x232f   :  { %v2655_v8 = vpop.xlane.xlu0 %2654 }
0x2330   :  { %8500 = vlog2.f32 %v2655_v8 }
0x2333   :  { %v2685_v60 = vpop.permute.xlu0 %2684 }
0x2337   :  { %v9726_v19 = vpop.permute.xlu0 %2725 }
0x233a   :  { %v8501_v34 = vpop.eup %8500 }
0x233b   :  { %v2657_v11 = vmul.f32 0.6931472, %v8501_v34 }
0x233d   :  { %v2666_v38 = vrot.slane %v2657_v11, %v9079_v5  ;;  %v2662_v40 = vrot.slane %v2657_v11, %v9076_v4 }
0x233f   :  { %v9714_v43 = vsub.f32 %v2629_v46, %v2662_v40  ;;  %v9716_v44 = vsub.f32 %v2630_v13, %v2666_v38 }
0x2341   :  { %v2688_v17 = vadd.f32 %v2678_v42, %v9714_v43  ;;  %v2689_v47 = vadd.f32 %v2685_v60, %v9716_v44 }
0x2343   :  { %2693 = vperm.xlu1 %8341, %v2688_v17  }
0x2347   :  { %2696 = vperm.xlu1 %8341, %v2689_v47  }
0x23c2   :  { %v2694_v20 = vpop.permute.xlu1 %2693 }
0x23c3   :  { %v2701_v7 = vrot.slane %v2694_v20, %v9616_v25 }
0x23c6   :  { %v2697_v9 = vpop.permute.xlu1 %2696 }
0x23c7   :  { %v2705_v48 = vrot.slane %v2697_v9, %v9616_v25 }
0x23c9   :  { %v2706_v63 = vsel %vm443_vm3, %v2705_v48, %v2701_v7 }
0x23ca   :  { %v2708_v29 = vsel %vm2353_vm6, %v2706_v63, -inf }
0x23cb   :  { %2709 = vmax.xlane.f32.xlu1 %v2708_v29 }
0x2458   :  { %v2710_v53 = vpop.xlane.xlu1 %2709 }
0x2459   :  { %v2715_v54 = vrot.slane %v2710_v53, %v9076_v4  ;;  %v2719_v41 = vrot.slane %v2710_v53, %v9079_v5 }
0x245b   :  { %vm2722_vm7 = vcmp.ge.f32.partialorder %v2688_v17, %v2715_v54  ;;  %vm2723_vm8 = vcmp.ge.f32.partialorder %v2689_v47, %v2719_v41 }
0x245c   :  { %v2727_v46 = vsel %vm2722_vm7, %v9726_v19, 8  ;;  %v2728_v13 = vsel %vm2723_vm8, %v9726_v19, 8  ;;  %vm7458_vm7 = vcmask 7168   ;;  %vm7460_vm8 = vcmask 15360  }
0x245d   :  { %2730 = vperm.xlu0 %8340, %v2727_v46  }
0x2461   :  { %2733 = vperm.xlu0 %8340, %v2728_v13  }
0x24dc   :  { %v2731_v59 = vpop.permute.xlu0 %2730 }
0x24dd   :  { %v2738_v36 = vrot.slane %v2731_v59, %v9616_v25 }
0x24e0   :  { %v2734_v35 = vpop.permute.xlu0 %2733 }
0x24e1   :  { %v2742_v16 = vrot.slane %v2734_v35, %v9616_v25 }
0x24e3   :  { %v2743_v1 = vsel %vm443_vm3, %v2742_v16, %v2738_v36 }
0x24e4   :  { %v2744_v15 = vsel %vm2353_vm6, %v2743_v1, 2147483647 }
0x24e5   :  { %v2746_v37 = vshra.s32 %v2744_v15, 16  ;;  %v2745_v22 = vand.u32 65535, %v2744_v15 }
0x24e7   :  { %v2748_v57 = vcvt.s32.f32 %v2746_v37  ;;  %v2747_v24 = vcvt.s32.f32 %v2745_v22 }
0x24e9   :  { %2749 = vmin.xlane.f32.xlu0 %v2748_v57 }
0x2576   :  { %v2750_v18 = vpop.xlane.xlu0 %2749 }
0x2577   :  { %vm2751_vm9 = vcmp.eq.f32.partialorder %v2748_v57, %v2750_v18  ;;  %v2756_v32 = vcvt.f32.s32 %v2750_v18 }
0x2578   :  { %v2752_v26 = vsel %vm2751_vm9, %v2747_v24, inf }
0x2579   :  { %2753 = vmin.xlane.f32.xlu1 %v2752_v26  ;;  %v2757_v34 = vshll.u32 %v2756_v32, 16 }
0x2606   :  { %v2754_v8 = vpop.xlane.xlu1 %2753 }
0x2607   :  { %v2755_v11 = vcvt.f32.s32 %v2754_v8 }
0x2609   :  { %v9734_v38 = vadd.s32 %v2757_v34, %v2755_v11 }
0x260b   :  { %v2783_v40 = vcvt.s32.f32 %v9734_v38  ;;  %vm2759_vm10 = vcmp.eq.s32.totalorder %v9585_v52, %v9734_v38 }
0x260d   :  { %v2784_v42 = vmul.f32 %v9512_v0, %v2783_v40 }
0x260f   :  { %v2855_v17 = vadd.f32 %v9576_v27, %v2784_v42  ;;  %v9788_v42 = vsel %vm2759_vm10, 0.0, %v9599_v2 }
0x2611   :  { %v2856_v60 = vadd.f32 %v9518_v10, %v2855_v17  ;;  %v3003_v17 = vsub.f32 1.0, %v9788_v42 }
0x2613   :  { %8502 = vtanh.f32 %v2856_v60  ;;  %v2857_v20 = vsub.f32 0.0, %v2856_v60  ;;  %v3004_v60 = vmul.f32 1e+10, %v3003_v17 }
0x2615   :  { %v2858_v9 = vmul.f32 1.442695, %v2857_v20 }
0x2617   :  { %8504 = vpow2.f32 %v2858_v9 }
0x261d   :  { %v8503_v47 = vpop.eup %8502 }
0x261e   :  { %2866 = vrot.lane.b32.xlu1 %v8503_v47, %s8894_s5  ;;  %v3016_v47 = vrot.slane %v3004_v60, %v9079_v5 }
0x2621   :  { %v8505_v7 = vpop.eup %8504 }
0x2622   :  { %v2860_v48 = vadd.f32 1.0, %v8505_v7 }
0x2624   :  { %8506 = vrcp.f32 %v2860_v48 }
0x262e   :  { %v8507_v63 = vpop.eup %8506 }
0x262f   :  { %v2864_v0 = vmul.f32 %v8507_v63, %v9527_v30 }
0x2690   :  { %v2867_v29 = vpop.permute.xlu1 %2866 }
0x2691   :  { %v2869_v53 = vmul.f32 %v8507_v63, %v2867_v29 }
0x2693   :  { %2871 = vrot.lane.b32.xlu0 %v2869_v53, %s8895_s22 }
0x2705   :  { %v2872_v27 = vpop.permute.xlu0 %2871 }
0x2706   :  { %v9743_v54 = vadd.f32 %v2872_v27, %v2864_v0 }
0x2708   :  { %8508 = vtanh.f32 %v9743_v54 }
0x2712   :  { %v8509_v10 = vpop.eup %8508 }
0x2713   :  { %2877 = vrot.lane.b32.xlu1 %v8509_v10, %s8894_s5 }
0x2785   :  { %v2878_v41 = vpop.permute.xlu1 %2877 }
0x2786   :  { %v9747_v46 = vmul.f32 %v8507_v63, %v2878_v41 }
0x2788   :  { %2882 = vrot.lane.b32.xlu1 %v9747_v46, %s8895_s22 }
0x27fa   :  { %v9751_v13 = vpop.permute.xlu1 %2882 }
0x27fb   :  { %7906 = vmatmul.mubr.msk.f32.vlgmr.msra.gmra.mrb[14].mxu0 %vm161_vm1, %v9751_v13 }
0x27fc   :  { %8219 = vmatpush3.bf16.msra.mxu0 %v9460_v61  ;;  %7927 = vmatprep.mubr.msk.f32.mxu0 %vm8892_vm0, %v10941_v21 }
0x27fd   :  { %8220 = vmatprep.subr.bf16.mxu0 %v10939_v14 }
0x2800   :  { %8222 = vmatpush3.bf16.msra.mxu0 %v9470_v33 }
0x2801   :  { %8229 = vmatprep.subr.bf16.mxu0 %v10939_v14 }
0x2803   :  { %7928 = vmatmul.mubr.msk.f32.vlgmr.msra.gmra.mrb[16].mxu0 %vm161_vm1, %v9751_v13 }
0x2804   :  { %8231 = vmatpush3.bf16.msra.mxu0 %v9638_v12  ;;  %7949 = vmatprep.mubr.msk.f32.mxu0 %vm8892_vm0, %v10941_v21 }
0x2805   :  { %8232 = vmatprep.subr.bf16.mxu0 %v10939_v14 }
0x2808   :  { %8234 = vmatpush3.bf16.msra.mxu0 %v9650_v50 }
0x2809   :  { %8241 = vmatprep.subr.bf16.mxu0 %v10939_v14 }
0x28ce   :  { %v2952_v30 = vpop.f32.mrb[14].mxu0 }
0x28cf   :  { %v2963_v59 = vrot.slane %v2952_v30, %v9200_v55  ;;  %v7907_v35 = vpop.f32.mrb[15].mxu0 }
0x28d1   :  { %v2964_v36 = vcombine.high %v2963_v59, %v2963_v59  ;;  %v2971_v16 = vrot.slane %v2963_v59, %v9200_v55 }
0x28d3   :  { %v2978_v1 = vrot.slane %v2964_v36, %v9200_v55  ;;  %v2982_v15 = vrot.slane %v2971_v16, %v9076_v4 }
0x28d5   :  { %v2986_v37 = vrot.slane %v2978_v1, %v9076_v4  ;;  %v2989_v57 = vadd.f32 %v2982_v15, %v9523_v45 }
0x28d6   :  { %v9775_v22 = vpop.f32.mrb[16].mxu0 }
0x28d7   :  { %v2990_v18 = vadd.f32 %v9521_v56, %v2986_v37  ;;  %8510 = vtanh.f32 %v2989_v57  ;;  %v7929_v24 = vpop.f32.mrb[17].mxu0 }
0x28d9   :  { %8512 = vtanh.f32 %v2990_v18 }
0x28e1   :  { %v8511_v26 = vpop.eup %8510 }
0x28e2   :  { %v2993_v32 = vmul.f32 %v8511_v26, %v9582_v51 }
0x28e3   :  { %v8513_v8 = vpop.eup %8512 }
0x28e4   :  { %v2995_v34 = vsel %vm161_vm1, %v2993_v32, 0.0  ;;  %v2994_v11 = vmul.f32 %v8513_v8, %v9582_v51  ;;  %v3009_v51 = vrot.slane %v3004_v60, %v9076_v4 }
0x28e5   :  { %2996 = vadd.xlane.f32.xlu1 %v2995_v34 }
0x28e6   :  { %v2998_v40 = vsel %vm161_vm1, %v2994_v11, 0.0 }
0x28e7   :  { %2999 = vadd.xlane.f32.xlu0 %v2998_v40 }
0x28f6   :  { %3018 = vbcast.lane.b32.xlu1 %v3016_v47, 256 }
0x28fd   :  { %3011 = vbcast.lane.b32.xlu0 %v3009_v51, 256 }
0x2972   :  { %v2997_v20 = vpop.xlane.xlu1 %2996 }
0x2973   :  { %v3001_v63 = vadd.f32 %v2997_v20, %v9606_v49 }
0x2974   :  { %v3000_v9 = vpop.xlane.xlu0 %2999 }
0x2975   :  { %v3002_v7 = vadd.f32 %v3000_v9, %v9606_v49 }
0x2976   :  { %v9794_v48 = vpop.permute.xlu1 %3018 }
0x2977   :  { %v3023_v29 = vsub.f32 %v3002_v7, %v9794_v48 }
0x2978   :  { %v9798_v53 = vpop.permute.xlu0 %3011 }
0x2979   :  { %v3022_v0 = vsub.f32 %v3001_v63, %v9798_v53  ;;  %3030 = vperm.xlu0 %8340, %v3023_v29  }
0x297b   :  { %3027 = vperm.xlu1 %8341, %v3022_v0  }
0x29f8   :  { %v3031_v27 = vpop.permute.xlu0 %3030 }
0x29f9   :  { %v3039_v41 = vrot.slane %v3031_v27, %v9616_v25 }
0x29fa   :  { %v3028_v10 = vpop.permute.xlu1 %3027 }
0x29fb   :  { %v3035_v30 = vrot.slane %v3028_v10, %v9616_v25 }
0x29fd   :  { %v3040_v59 = vsel %vm443_vm3, %v3039_v41, %v3035_v30 }
0x29fe   :  { %v3042_v35 = vsel %vm2353_vm6, %v3040_v59, -inf }
0x29ff   :  { %3043 = vmax.xlane.f32.xlu1 %v3042_v35 }
0x2a8c   :  { %v3044_v36 = vpop.xlane.xlu1 %3043 }
0x2a8d   :  { %v3049_v16 = vrot.slane %v3044_v36, %v9076_v4  ;;  %v3053_v1 = vrot.slane %v3044_v36, %v9079_v5 }
0x2a8f   :  { %v3056_v15 = vsub.f32 %v3022_v0, %v3049_v16  ;;  %v3057_v37 = vsub.f32 %v3023_v29, %v3053_v1  ;;  %v3124_v29 = vrot.slane %v9747_v46, 1 }
0x2a91   :  { %v3058_v57 = vmul.f32 1.442695, %v3056_v15  ;;  %v3060_v18 = vmul.f32 1.442695, %v3057_v37 }
0x2a93   :  { %8514 = vpow2.f32 %v3058_v57 }
0x2a94   :  { %8516 = vpow2.f32 %v3060_v18 }
0x2a9d   :  { %v8515_v24 = vpop.eup %8514 }
0x2a9e   :  { %3065 = vperm.xlu0 %8340, %v8515_v24   ;;  %v8517_v26 = vpop.eup %8516 }
0x2aa2   :  { %3068 = vperm.xlu0 %8340, %v8517_v26  }
0x2b1d   :  { %v3066_v32 = vpop.permute.xlu0 %3065 }
0x2b1e   :  { %v3073_v34 = vrot.slane %v3066_v32, %v9616_v25 }
0x2b21   :  { %v3069_v8 = vpop.permute.xlu0 %3068 }
0x2b22   :  { %v3077_v11 = vrot.slane %v3069_v8, %v9616_v25 }
0x2b24   :  { %v3078_v40 = vsel %vm443_vm3, %v3077_v11, %v3073_v34 }
0x2b25   :  { %v3080_v17 = vsel %vm2353_vm6, %v3078_v40, 0.0 }
0x2b26   :  { %3081 = vadd.xlane.f32.xlu0 %v3080_v17 }
0x2bb3   :  { %v3082_v60 = vpop.xlane.xlu0 %3081 }
0x2bb4   :  { %v3087_v47 = vrot.slane %v3082_v60, %v9076_v4  ;;  %v3091_v51 = vrot.slane %v3082_v60, %v9079_v5 }
0x2bb6   :  { %8518 = vrcp.f32 %v3087_v47 }
0x2bb7   :  { %8520 = vrcp.f32 %v3091_v51 }
0x2bc0   :  { %v8519_v20 = vpop.eup %8518 }
0x2bc1   :  { %v8521_v9 = vpop.eup %8520  ;;  %v3095_v7 = vmul.f32 %v8519_v20, %v8515_v24 }
0x2bc2   :  { %v3097_v63 = vmul.f32 %v8521_v9, %v8517_v26 }
0x2bc3   :  { %3100 = vperm.xlu0 %8340, %v3095_v7  }
0x2bc4   :  { %3105 = vperm.xlu1 %8341, %v3097_v63  }
0x2bc8   :  { %3125 = vrot.lane.b32.xlu1 %v3124_v29, %s8895_s22 }
0x2c42   :  { %v3101_v0 = vpop.permute.xlu0 %3100 }
0x2c43   :  { %v3106_v27 = vpop.permute.xlu1 %3105  ;;  %v3108_v10 = vmul.f32 %v3101_v0, %v9501_v28 }
0x2c44   :  { %v3109_v41 = vmul.f32 %v3106_v27, %v9506_v39 }
0x2c45   :  { %v3110_v30 = vsel %vm161_vm1, %v3108_v10, 0.0 }
0x2c46   :  { %v3117_v59 = vsel %vm161_vm1, %v3109_v41, 0.0  ;;  %v3111_v35 = vrot.slane %v3110_v30, 4 }
0x2c47   :  { %v3118_v36 = vrot.slane %v3117_v59, 4  ;;  %v3126_v8 = vpop.permute.xlu1 %3125 }
0x2c48   :  { %v3112_v16 = vadd.f32 %v3111_v35, %v3110_v30 }
0x2c49   :  { %v3119_v1 = vadd.f32 %v3118_v36, %v3117_v59 }
0x2c4a   :  { %v3113_v15 = vrot.slane %v3112_v16, 2 }
0x2c4b   :  { %v3120_v37 = vrot.slane %v3119_v1, 2 }
0x2c4c   :  { %v3114_v57 = vadd.f32 %v3113_v15, %v3112_v16 }
0x2c4d   :  { %v3121_v46 = vadd.f32 %v3120_v37, %v3119_v1 }
0x2c4e   :  { %v3115_v18 = vrot.slane %v3114_v57, 1 }
0x2c4f   :  { %v3122_v24 = vrot.slane %v3121_v46, 1 }
0x2c50   :  { %v3116_v26 = vadd.f32 %v3115_v18, %v3114_v57 }
0x2c51   :  { %v3123_v32 = vadd.f32 %v3122_v24, %v3121_v46 }
0x2c52   :  { %v3129_v40 = vadd.f32 %v3116_v26, %v9751_v13 }
0x2c53   :  { %v3130_v34 = vadd.f32 %v3126_v8, %v3123_v32 }
0x2c55   :  { %v3133_v11 = vrot.slane %v3130_v34, 7 }
0x2c57   :  { %v3134_v17 = vsel %vm443_vm3, %v3133_v11, %v3129_v40 }
0x2c58   :  { %7917 = vmatmul.mubr.msk.f32.vlgmr.msra.gmra.mrb[14].mxu1 %vm161_vm1, %v3134_v17 }
0x2c59   :  { %8225 = vmatpush3.bf16.msra.mxu1 %v9541_v6  ;;  %7938 = vmatprep.mubr.msk.f32.mxu1 %vm8892_vm0, %v10941_v21 }
0x2c5a   :  { %8226 = vmatprep.subr.bf16.mxu1 %v10939_v14 }
0x2c5d   :  { %8228 = vmatpush3.bf16.msra.mxu1 %v9547_v62 }
0x2c5e   :  { %8235 = vmatprep.subr.bf16.mxu1 %v10939_v14 }
0x2d2b   :  { %v3203_v60 = vpop.f32.mrb[14].mxu1 }
0x2d2c   :  { %v3214_v47 = vrot.slane %v3203_v60, %v9200_v55  ;;  %v7918_v51 = vpop.f32.mrb[15].mxu1 }
0x2d2e   :  { %v3215_v13 = vcombine.high %v3214_v47, %v3214_v47  ;;  %v3222_v20 = vrot.slane %v3214_v47, %v9200_v55 }
0x2d30   :  { %v3229_v9 = vrot.slane %v3215_v13, %v9200_v55  ;;  %v3233_v7 = vrot.slane %v3222_v20, %v9076_v4 }
0x2d32   :  { %3238 = vrot.lane.b32.xlu1 %v3233_v7, %s8895_s22  ;;  %v3237_v63 = vrot.slane %v3229_v9, %v9076_v4 }
0x2d36   :  { %3240 = vrot.lane.b32.xlu1 %v3237_v63, %s8895_s22  ;;  %v131_v63 = vld [vmem:[%s10958_s12 + $0x2] sm:$0x3] }
0x2da4   :  { %v3239_v29 = vpop.permute.xlu1 %3238 }
0x2da5   :  { %v3244_v0 = vadd.f32 %v3239_v29, %v9523_v45  ;;  %v3346_v29 = vrot.slane %v131_v63, %v9076_v4 }
0x2da7   :  { %8522 = vtanh.f32 %v3244_v0 }
0x2da8   :  { %v3241_v27 = vpop.permute.xlu1 %3240 }
0x2da9   :  { %v3245_v10 = vadd.f32 %v9521_v56, %v3241_v27 }
0x2dab   :  { %8524 = vtanh.f32 %v3245_v10 }
0x2db1   :  { %v8523_v41 = vpop.eup %8522 }
0x2db2   :  { %v3248_v30 = vmul.f32 %v8523_v41, %v9682_v23 }
0x2db4   :  { %3252 = vrot.lane.b32.xlu0 %v3248_v30, %s8897_s24 }
0x2db5   :  { %v8525_v59 = vpop.eup %8524 }
0x2db6   :  { %v3249_v35 = vmul.f32 %v8525_v59, %v9682_v23 }
0x2db8   :  { %3254 = vrot.lane.b32.xlu1 %v3249_v35, %s8897_s24  ;;  %v3353_v35 = vrot.slane %v131_v63, %v9079_v5 }
0x2e26   :  { %v3253_v36 = vpop.permute.xlu0 %3252 }
0x2e27   :  { %v3258_v16 = vsel %vm161_vm1, %v3253_v36, 0.0 }
0x2e28   :  { %3259 = vadd.xlane.f32.xlu0 %v3258_v16 }
0x2e2a   :  { %v3255_v1 = vpop.permute.xlu1 %3254 }
0x2e2b   :  { %v3261_v15 = vsel %vm161_vm1, %v3255_v1, 0.0 }
0x2e2c   :  { %3262 = vadd.xlane.f32.xlu1 %v3261_v15 }
0x2eb5   :  { %v3260_v37 = vpop.xlane.xlu0 %3259 }
0x2eb6   :  { %v3264_v57 = vadd.f32 %v3260_v37, %v9690_v3 }
0x2eb8   :  { %v3266_v46 = vsub.f32 %v3264_v57, %v9798_v53 }
0x2eb9   :  { %v3263_v18 = vpop.xlane.xlu1 %3262 }
0x2eba   :  { %v3265_v24 = vadd.f32 %v3263_v18, %v9690_v3  ;;  %3271 = vperm.xlu0 %8340, %v3266_v46  }
0x2ebc   :  { %v3267_v26 = vsub.f32 %v3265_v24, %v9794_v48 }
0x2ebe   :  { %3274 = vperm.xlu1 %8341, %v3267_v26  }
0x2f39   :  { %v3272_v32 = vpop.permute.xlu0 %3271 }
0x2f3a   :  { %v3279_v34 = vrot.slane %v3272_v32, %v9616_v25 }
0x2f3d   :  { %v3275_v8 = vpop.permute.xlu1 %3274 }
0x2f3e   :  { %v3283_v11 = vrot.slane %v3275_v8, %v9616_v25 }
0x2f40   :  { %v3284_v40 = vsel %vm443_vm3, %v3283_v11, %v3279_v34 }
0x2f41   :  { %v3286_v17 = vsel %vm2353_vm6, %v3284_v40, -inf }
0x2f42   :  { %3287 = vmax.xlane.f32.xlu0 %v3286_v17 }
0x2f58   :  { %3348 = vbcast.lane.b32.xlu0 %v3346_v29, 256 }
0x2fcf   :  { %v3288_v60 = vpop.xlane.xlu0 %3287 }
0x2fd0   :  { %v3293_v53 = vrot.slane %v3288_v60, %v9076_v4  ;;  %v3297_v47 = vrot.slane %v3288_v60, %v9079_v5 }
0x2fd2   :  { %v3300_v51 = vsub.f32 %v3266_v46, %v3293_v53  ;;  %v3301_v13 = vsub.f32 %v3267_v26, %v3297_v47 }
0x2fd3   :  { %v3349_v57 = vpop.permute.xlu0 %3348 }
0x2fd4   :  { %v3302_v48 = vmul.f32 1.442695, %v3300_v51  ;;  %v3304_v20 = vmul.f32 1.442695, %v3301_v13 }
0x2fd6   :  { %8526 = vpow2.f32 %v3302_v48 }
0x2fd7   :  { %8528 = vpow2.f32 %v3304_v20 }
0x2fe0   :  { %v8527_v9 = vpop.eup %8526 }
0x2fe1   :  { %3309 = vperm.xlu1 %8341, %v8527_v9   ;;  %v8529_v7 = vpop.eup %8528 }
0x2fe5   :  { %3312 = vperm.xlu1 %8341, %v8529_v7  }
0x3060   :  { %v3310_v0 = vpop.permute.xlu1 %3309 }
0x3061   :  { %v3317_v10 = vrot.slane %v3310_v0, %v9616_v25 }
0x3064   :  { %v3313_v27 = vpop.permute.xlu1 %3312 }
0x3065   :  { %v3321_v41 = vrot.slane %v3313_v27, %v9616_v25 }
0x3067   :  { %v3322_v30 = vsel %vm443_vm3, %v3321_v41, %v3317_v10 }
0x3068   :  { %v3324_v59 = vsel %vm2353_vm6, %v3322_v30, 0.0 }
0x3069   :  { %3325 = vadd.xlane.f32.xlu1 %v3324_v59 }
0x307a   :  { %3355 = vbcast.lane.b32.xlu1 %v3353_v35, 256 }
0x30f6   :  { %v3326_v36 = vpop.xlane.xlu1 %3325 }
0x30f7   :  { %8530 = vlog2.f32 %v3326_v36 }
0x30fa   :  { %v3356_v26 = vpop.permute.xlu1 %3355 }
0x3101   :  { %v8531_v16 = vpop.eup %8530 }
0x3102   :  { %v3328_v1 = vmul.f32 0.6931472, %v8531_v16 }
0x3104   :  { %v3337_v15 = vrot.slane %v3328_v1, %v9079_v5  ;;  %v3333_v37 = vrot.slane %v3328_v1, %v9076_v4 }
0x3106   :  { %v9864_v46 = vsub.f32 %v3300_v51, %v3333_v37  ;;  %v9866_v18 = vsub.f32 %v3301_v13, %v3337_v15 }
0x3108   :  { %v3359_v24 = vadd.f32 %v3349_v57, %v9864_v46  ;;  %v3360_v32 = vadd.f32 %v3356_v26, %v9866_v18 }
0x310a   :  { %3364 = vperm.xlu0 %8340, %v3359_v24  }
0x310e   :  { %3367 = vperm.xlu0 %8340, %v3360_v32  }
0x3189   :  { %v3365_v8 = vpop.permute.xlu0 %3364 }
0x318a   :  { %v3372_v11 = vrot.slane %v3365_v8, %v9616_v25  ;;  %v9892_v8 = vld [vmem:[%s10924_s11] ss:$0 sm:$0xff] }
0x318d   :  { %v3368_v34 = vpop.permute.xlu0 %3367 }
0x318e   :  { %v3376_v40 = vrot.slane %v3368_v34, %v9616_v25 }
0x3190   :  { %v3377_v17 = vsel %vm443_vm3, %v3376_v40, %v3372_v11 }
0x3191   :  { %v3379_v60 = vsel %vm2353_vm6, %v3377_v17, -inf }
0x3192   :  { %3380 = vmax.xlane.f32.xlu0 %v3379_v60 }
0x321f   :  { %v3381_v53 = vpop.xlane.xlu0 %3380 }
0x3220   :  { %v3386_v47 = vrot.slane %v3381_v53, %v9076_v4  ;;  %v3390_v51 = vrot.slane %v3381_v53, %v9079_v5 }
0x3222   :  { %vm3393_vm11 = vcmp.ge.f32.partialorder %v3359_v24, %v3386_v47  ;;  %vm3394_vm12 = vcmp.ge.f32.partialorder %v3360_v32, %v3390_v51  ;;  %v9885_v24 = vld [vmem:[#allocation12] ss:$0 sm:$0xff] }
0x3223   :  { %v3395_v13 = vsel %vm3393_vm11, %v9726_v19, 8  ;;  %v3396_v48 = vsel %vm3394_vm12, %v9726_v19, 8 }
0x3224   :  { %3398 = vperm.xlu1 %8341, %v3395_v13  }
0x3228   :  { %3401 = vperm.xlu1 %8341, %v3396_v48  }
0x32a3   :  { %v3399_v20 = vpop.permute.xlu1 %3398 }
0x32a4   :  { %v3406_v7 = vrot.slane %v3399_v20, %v9616_v25 }
0x32a7   :  { %v3402_v9 = vpop.permute.xlu1 %3401 }
0x32a8   :  { %v3410_v63 = vrot.slane %v3402_v9, %v9616_v25 }
0x32aa   :  { %v3411_v29 = vsel %vm443_vm3, %v3410_v63, %v3406_v7 }
0x32ab   :  { %v3412_v0 = vsel %vm2353_vm6, %v3411_v29, 2147483647 }
0x32ac   :  { %v3414_v27 = vshra.s32 %v3412_v0, 16  ;;  %v3413_v41 = vand.u32 65535, %v3412_v0 }
0x32ae   :  { %v3416_v10 = vcvt.s32.f32 %v3414_v27  ;;  %v3415_v59 = vcvt.s32.f32 %v3413_v41 }
0x32b0   :  { %3417 = vmin.xlane.f32.xlu1 %v3416_v10 }
0x333d   :  { %v3418_v30 = vpop.xlane.xlu1 %3417 }
0x333e   :  { %vm3419_vm13 = vcmp.eq.f32.partialorder %v3416_v10, %v3418_v30  ;;  %v3424_v36 = vcvt.f32.s32 %v3418_v30 }
0x333f   :  { %v3420_v35 = vsel %vm3419_vm13, %v3415_v59, inf }
0x3340   :  { %3421 = vmin.xlane.f32.xlu0 %v3420_v35  ;;  %v3425_v1 = vshll.u32 %v3424_v36, 16 }
0x33cd   :  { %v3422_v16 = vpop.xlane.xlu0 %3421 }
0x33ce   :  { %v3423_v15 = vcvt.f32.s32 %v3422_v16 }
0x33d0   :  { %v9882_v37 = vadd.s32 %v3425_v1, %v3423_v15 }
0x33d2   :  { %v3451_v57 = vcvt.s32.f32 %v9882_v37  ;;  %vm3427_vm14 = vcmp.eq.s32.totalorder %v9585_v52, %v9882_v37 }
0x33d4   :  { %v3452_v26 = vmul.f32 %v9885_v24, %v3451_v57 }
0x33d6   :  { %v3523_v32 = vadd.f32 %v9775_v22, %v3452_v26  ;;  %v9936_v26 = vld [vmem:[%s10927_s14] ss:$0 sm:$0xff] }
0x33d8   :  { %v3524_v34 = vadd.f32 %v9892_v8, %v3523_v32 }
0x33da   :  { %8532 = vtanh.f32 %v3524_v34  ;;  %v3525_v40 = vsub.f32 0.0, %v3524_v34 }
0x33dc   :  { %v3526_v17 = vmul.f32 1.442695, %v3525_v40 }
0x33de   :  { %8534 = vpow2.f32 %v3526_v17 }
0x33e4   :  { %v8533_v11 = vpop.eup %8532 }
0x33e5   :  { %3534 = vrot.lane.b32.xlu0 %v8533_v11, %s8894_s5 }
0x33e8   :  { %v8535_v60 = vpop.eup %8534 }
0x33e9   :  { %v3528_v53 = vadd.f32 1.0, %v8535_v60  ;;  %v9948_v60 = vsel %vm3427_vm14, 0.0, %v9788_v42 }
0x33eb   :  { %8536 = vrcp.f32 %v3528_v53  ;;  %v3671_v53 = vsub.f32 1.0, %v9948_v60 }
0x33f5   :  { %v8537_v47 = vpop.eup %8536 }
0x33f6   :  { %v3532_v13 = vmul.f32 %v8537_v47, %v9743_v54 }
0x3457   :  { %v3535_v51 = vpop.permute.xlu0 %3534 }
0x3458   :  { %v3537_v22 = vmul.f32 %v8537_v47, %v3535_v51 }
0x345a   :  { %3539 = vrot.lane.b32.xlu1 %v3537_v22, %s8895_s22 }
0x34cc   :  { %v3540_v48 = vpop.permute.xlu1 %3539 }
0x34cd   :  { %v9898_v20 = vadd.f32 %v3540_v48, %v3532_v13 }
0x34cf   :  { %8538 = vtanh.f32 %v9898_v20 }
0x34d9   :  { %v8539_v9 = vpop.eup %8538 }
0x34da   :  { %3545 = vrot.lane.b32.xlu0 %v8539_v9, %s8894_s5 }
0x354c   :  { %v3546_v7 = vpop.permute.xlu0 %3545 }
0x354d   :  { %v9902_v63 = vmul.f32 %v8537_v47, %v3546_v7  ;;  %v3672_v47 = vmul.f32 1e+10, %v3671_v53 }
0x354f   :  { %3550 = vrot.lane.b32.xlu0 %v9902_v63, %s8895_s22  ;;  %v3684_v51 = vrot.slane %v3672_v47, %v9079_v5  ;;  %v3677_v22 = vrot.slane %v3672_v47, %v9076_v4 }
0x35c1   :  { %v9906_v29 = vpop.permute.xlu0 %3550 }
0x35c2   :  { %7939 = vmatmul.mubr.msk.f32.vlgmr.msra.gmra.mrb[16].mxu1 %vm161_vm1, %v9906_v29 }
0x35c3   :  { %8237 = vmatpush3.bf16.msra.mxu1 %v9460_v61  ;;  %7960 = vmatprep.mubr.msk.f32.mxu1 %vm8892_vm0, %v10941_v21 }
0x35c4   :  { %8238 = vmatprep.subr.bf16.mxu1 %v10939_v14 }
0x35c7   :  { %8240 = vmatpush3.bf16.msra.mxu1 %v9470_v33 }
0x35c8   :  { %8247 = vmatprep.subr.bf16.mxu1 %v10939_v14 }
0x35ca   :  { %7961 = vmatmul.mubr.msk.f32.vlgmr.msra.gmra.mrb[18].mxu1 %vm161_vm1, %v9906_v29 }
0x35cb   :  { %8249 = vmatpush3.bf16.msra.mxu1 %v9638_v12  ;;  %7982 = vmatprep.mubr.msk.f32.mxu1 %vm8892_vm0, %v10941_v21 }
0x35cc   :  { %8250 = vmatprep.subr.bf16.mxu1 %v10939_v14 }
0x35cf   :  { %8252 = vmatpush3.bf16.msra.mxu1 %v9650_v50 }
0x35d0   :  { %8259 = vmatprep.subr.bf16.mxu1 %v10939_v14 }
0x3695   :  { %v3620_v54 = vpop.f32.mrb[16].mxu1 }
0x3696   :  { %v3631_v0 = vrot.slane %v3620_v54, %v9200_v55  ;;  %v7940_v27 = vpop.f32.mrb[17].mxu1 }
0x3698   :  { %v3632_v10 = vcombine.high %v3631_v0, %v3631_v0  ;;  %v3639_v41 = vrot.slane %v3631_v0, %v9200_v55 }
0x369a   :  { %v3646_v30 = vrot.slane %v3632_v10, %v9200_v55  ;;  %v3650_v59 = vrot.slane %v3639_v41, %v9076_v4 }
0x369c   :  { %v3654_v35 = vrot.slane %v3646_v30, %v9076_v4  ;;  %v3657_v36 = vadd.f32 %v3650_v59, %v9523_v45 }
0x369d   :  { %v9930_v16 = vpop.f32.mrb[18].mxu1 }
0x369e   :  { %v3658_v1 = vadd.f32 %v9521_v56, %v3654_v35  ;;  %8540 = vtanh.f32 %v3657_v36  ;;  %v7962_v15 = vpop.f32.mrb[19].mxu1 }
0x36a0   :  { %8542 = vtanh.f32 %v3658_v1 }
0x36a8   :  { %v8541_v57 = vpop.eup %8540 }
0x36a9   :  { %v3661_v32 = vmul.f32 %v9936_v26, %v8541_v57 }
0x36aa   :  { %v8543_v34 = vpop.eup %8542 }
0x36ab   :  { %v3663_v11 = vsel %vm161_vm1, %v3661_v32, 0.0  ;;  %v3662_v40 = vmul.f32 %v9936_v26, %v8543_v34 }
0x36ac   :  { %3664 = vadd.xlane.f32.xlu1 %v3663_v11 }
0x36ad   :  { %v3666_v17 = vsel %vm161_vm1, %v3662_v40, 0.0 }
0x36ae   :  { %3667 = vadd.xlane.f32.xlu0 %v3666_v17 }
0x36bd   :  { %3686 = vbcast.lane.b32.xlu1 %v3684_v51, 256 }
0x36c4   :  { %3679 = vbcast.lane.b32.xlu0 %v3677_v22, 256 }
0x3739   :  { %v3665_v13 = vpop.xlane.xlu1 %3664 }
0x373a   :  { %v3669_v54 = vadd.f32 %v3665_v13, %v9606_v49 }
0x373b   :  { %v3668_v48 = vpop.xlane.xlu0 %3667 }
0x373c   :  { %v3670_v9 = vadd.f32 %v3668_v48, %v9606_v49 }
0x373d   :  { %v9954_v7 = vpop.permute.xlu1 %3686 }
0x373e   :  { %v3691_v42 = vsub.f32 %v3670_v9, %v9954_v7 }
0x373f   :  { %v9958_v0 = vpop.permute.xlu0 %3679 }
0x3740   :  { %v3690_v27 = vsub.f32 %v3669_v54, %v9958_v0  ;;  %3698 = vperm.xlu0 %8340, %v3691_v42  }
0x3742   :  { %3695 = vperm.xlu1 %8341, %v3690_v27  }
0x37bf   :  { %v3699_v10 = vpop.permute.xlu0 %3698 }
0x37c0   :  { %v3707_v30 = vrot.slane %v3699_v10, %v9616_v25 }
0x37c1   :  { %v3696_v41 = vpop.permute.xlu1 %3695 }
0x37c2   :  { %v3703_v59 = vrot.slane %v3696_v41, %v9616_v25 }
0x37c4   :  { %v3708_v35 = vsel %vm443_vm3, %v3707_v30, %v3703_v59 }
0x37c5   :  { %v3710_v36 = vsel %vm2353_vm6, %v3708_v35, -inf  ;;  %v3792_v35 = vrot.slane %v9902_v63, 1 }
0x37c6   :  { %3711 = vmax.xlane.f32.xlu1 %v3710_v36 }
0x3853   :  { %v3712_v1 = vpop.xlane.xlu1 %3711 }
0x3854   :  { %v3717_v15 = vrot.slane %v3712_v1, %v9076_v4  ;;  %v3721_v57 = vrot.slane %v3712_v1, %v9079_v5 }
0x3856   :  { %v3724_v32 = vsub.f32 %v3690_v27, %v3717_v15  ;;  %v3725_v34 = vsub.f32 %v3691_v42, %v3721_v57 }
0x3858   :  { %v3726_v11 = vmul.f32 1.442695, %v3724_v32  ;;  %v3728_v40 = vmul.f32 1.442695, %v3725_v34 }
0x385a   :  { %8544 = vpow2.f32 %v3726_v11 }
0x385b   :  { %8546 = vpow2.f32 %v3728_v40 }
0x3864   :  { %v8545_v17 = vpop.eup %8544 }
0x3865   :  { %3733 = vperm.xlu0 %8340, %v8545_v17   ;;  %v8547_v53 = vpop.eup %8546 }
0x3869   :  { %3736 = vperm.xlu0 %8340, %v8547_v53  }
0x38e4   :  { %v3734_v47 = vpop.permute.xlu0 %3733 }
0x38e5   :  { %v3741_v22 = vrot.slane %v3734_v47, %v9616_v25 }
0x38e8   :  { %v3737_v51 = vpop.permute.xlu0 %3736 }
0x38e9   :  { %v3745_v13 = vrot.slane %v3737_v51, %v9616_v25 }
0x38eb   :  { %v3746_v48 = vsel %vm443_vm3, %v3745_v13, %v3741_v22 }
0x38ec   :  { %v3748_v9 = vsel %vm2353_vm6, %v3746_v48, 0.0 }
0x38ed   :  { %3749 = vadd.xlane.f32.xlu0 %v3748_v9 }
0x397a   :  { %v3750_v54 = vpop.xlane.xlu0 %3749 }
0x397b   :  { %v3755_v42 = vrot.slane %v3750_v54, %v9076_v4  ;;  %v3759_v27 = vrot.slane %v3750_v54, %v9079_v5 }
0x397d   :  { %8548 = vrcp.f32 %v3755_v42 }
0x397e   :  { %8550 = vrcp.f32 %v3759_v27 }
0x3987   :  { %v8549_v10 = vpop.eup %8548 }
0x3988   :  { %v8551_v41 = vpop.eup %8550  ;;  %v3763_v30 = vmul.f32 %v8549_v10, %v8545_v17 }
0x3989   :  { %v3765_v59 = vmul.f32 %v8551_v41, %v8547_v53 }
0x398a   :  { %3768 = vperm.xlu0 %8340, %v3763_v30  }
0x398b   :  { %3773 = vperm.xlu1 %8341, %v3765_v59  }
0x398f   :  { %3793 = vrot.lane.b32.xlu1 %v3792_v35, %s8895_s22 }
0x3a09   :  { %v3769_v36 = vpop.permute.xlu0 %3768 }
0x3a0a   :  { %v3774_v1 = vpop.permute.xlu1 %3773  ;;  %v3776_v15 = vmul.f32 %v3769_v36, %v9501_v28 }
0x3a0b   :  { %v3777_v57 = vmul.f32 %v3774_v1, %v9506_v39 }
0x3a0c   :  { %v3778_v32 = vsel %vm161_vm1, %v3776_v15, 0.0 }
0x3a0d   :  { %v3785_v34 = vsel %vm161_vm1, %v3777_v57, 0.0  ;;  %v3779_v11 = vrot.slane %v3778_v32, 4 }
0x3a0e   :  { %v3786_v40 = vrot.slane %v3785_v34, 4  ;;  %v3794_v42 = vpop.permute.xlu1 %3793 }
0x3a0f   :  { %v3780_v17 = vadd.f32 %v3779_v11, %v3778_v32 }
0x3a10   :  { %v3787_v53 = vadd.f32 %v3786_v40, %v3785_v34 }
0x3a11   :  { %v3781_v47 = vrot.slane %v3780_v17, 2 }
0x3a12   :  { %v3788_v51 = vrot.slane %v3787_v53, 2 }
0x3a13   :  { %v3782_v22 = vadd.f32 %v3781_v47, %v3780_v17 }
0x3a14   :  { %v3789_v63 = vadd.f32 %v3788_v51, %v3787_v53 }
0x3a15   :  { %v3783_v13 = vrot.slane %v3782_v22, 1 }
0x3a16   :  { %v3790_v48 = vrot.slane %v3789_v63, 1 }
0x3a17   :  { %v3784_v9 = vadd.f32 %v3783_v13, %v3782_v22 }
0x3a18   :  { %v3791_v54 = vadd.f32 %v3790_v48, %v3789_v63 }
0x3a19   :  { %v3797_v41 = vadd.f32 %v3784_v9, %v9906_v29 }
0x3a1a   :  { %v3798_v27 = vadd.f32 %v3794_v42, %v3791_v54 }
0x3a1c   :  { %v3801_v10 = vrot.slane %v3798_v27, 7 }
0x3a1e   :  { %v3802_v30 = vsel %vm443_vm3, %v3801_v10, %v3797_v41 }
0x3a1f   :  { %7950 = vmatmul.mubr.msk.f32.vlgmr.msra.gmra.mrb[18].mxu0 %vm161_vm1, %v3802_v30 }
0x3a20   :  { %8243 = vmatpush3.bf16.msra.mxu0 %v9541_v6  ;;  %7971 = vmatprep.mubr.msk.f32.mxu0 %vm8892_vm0, %v10941_v21 }
0x3a21   :  { %8244 = vmatprep.subr.bf16.mxu0 %v10939_v14 }
0x3a24   :  { %8246 = vmatpush3.bf16.msra.mxu0 %v9547_v62 }
0x3a25   :  { %8253 = vmatprep.subr.bf16.mxu0 %v10939_v14 }
0x3af2   :  { %v3871_v59 = vpop.f32.mrb[18].mxu0 }
0x3af3   :  { %v3882_v35 = vrot.slane %v3871_v59, %v9200_v55  ;;  %v7951_v36 = vpop.f32.mrb[19].mxu0 }
0x3af5   :  { %v3883_v29 = vcombine.high %v3882_v35, %v3882_v35  ;;  %v3890_v1 = vrot.slane %v3882_v35, %v9200_v55 }
0x3af7   :  { %v3897_v15 = vrot.slane %v3883_v29, %v9200_v55  ;;  %v3901_v57 = vrot.slane %v3890_v1, %v9076_v4 }
0x3af9   :  { %3906 = vrot.lane.b32.xlu1 %v3901_v57, %s8895_s22  ;;  %v3905_v32 = vrot.slane %v3897_v15, %v9076_v4 }
0x3afd   :  { %3908 = vrot.lane.b32.xlu1 %v3905_v32, %s8895_s22 }
0x3b6b   :  { %v3907_v34 = vpop.permute.xlu1 %3906 }
0x3b6c   :  { %v3912_v11 = vadd.f32 %v3907_v34, %v9523_v45 }
0x3b6e   :  { %8552 = vtanh.f32 %v3912_v11 }
0x3b6f   :  { %v3909_v40 = vpop.permute.xlu1 %3908 }
0x3b70   :  { %v3913_v17 = vadd.f32 %v9521_v56, %v3909_v40 }
0x3b72   :  { %8554 = vtanh.f32 %v3913_v17 }
0x3b78   :  { %v8553_v53 = vpop.eup %8552 }
0x3b79   :  { %v3916_v47 = vmul.f32 %v8553_v53, %v9682_v23 }
0x3b7b   :  { %3920 = vrot.lane.b32.xlu0 %v3916_v47, %s8897_s24  ;;  %v132_v47 = vld [vmem:[%s10958_s12 + $0x4] sm:$0x3] }
0x3b7c   :  { %v8555_v51 = vpop.eup %8554 }
0x3b7d   :  { %v3917_v22 = vmul.f32 %v8555_v51, %v9682_v23  ;;  %v4014_v51 = vrot.slane %v132_v47, %v9076_v4 }
0x3b7f   :  { %3922 = vrot.lane.b32.xlu1 %v3917_v22, %s8897_s24 }
0x3bed   :  { %v3921_v63 = vpop.permute.xlu0 %3920 }
0x3bee   :  { %v3926_v13 = vsel %vm161_vm1, %v3921_v63, 0.0 }
0x3bef   :  { %3927 = vadd.xlane.f32.xlu0 %v3926_v13 }
0x3bf1   :  { %v3923_v48 = vpop.permute.xlu1 %3922 }
0x3bf2   :  { %v3929_v9 = vsel %vm161_vm1, %v3923_v48, 0.0 }
0x3bf3   :  { %3930 = vadd.xlane.f32.xlu1 %v3929_v9 }
0x3c7c   :  { %v3928_v54 = vpop.xlane.xlu0 %3927 }
0x3c7d   :  { %v3932_v42 = vadd.f32 %v3928_v54, %v9690_v3 }
0x3c7f   :  { %v3934_v27 = vsub.f32 %v3932_v42, %v9958_v0  ;;  %v4021_v42 = vrot.slane %v132_v47, %v9079_v5 }
0x3c80   :  { %v3931_v10 = vpop.xlane.xlu1 %3930 }
0x3c81   :  { %v3933_v41 = vadd.f32 %v3931_v10, %v9690_v3  ;;  %3939 = vperm.xlu0 %8340, %v3934_v27  }
0x3c83   :  { %v3935_v30 = vsub.f32 %v3933_v41, %v9954_v7 }
0x3c85   :  { %3942 = vperm.xlu1 %8341, %v3935_v30  }
0x3d00   :  { %v3940_v59 = vpop.permute.xlu0 %3939 }
0x3d01   :  { %v3947_v36 = vrot.slane %v3940_v59, %v9616_v25 }
0x3d04   :  { %v3943_v35 = vpop.permute.xlu1 %3942 }
0x3d05   :  { %v3951_v29 = vrot.slane %v3943_v35, %v9616_v25 }
0x3d07   :  { %v3952_v1 = vsel %vm443_vm3, %v3951_v29, %v3947_v36 }
0x3d08   :  { %v3954_v15 = vsel %vm2353_vm6, %v3952_v1, -inf }
0x3d09   :  { %3955 = vmax.xlane.f32.xlu0 %v3954_v15 }
0x3d1f   :  { %4016 = vbcast.lane.b32.xlu0 %v4014_v51, 256 }
0x3d96   :  { %v3956_v57 = vpop.xlane.xlu0 %3955 }
0x3d97   :  { %v3961_v0 = vrot.slane %v3956_v57, %v9076_v4  ;;  %v3965_v32 = vrot.slane %v3956_v57, %v9079_v5 }
0x3d99   :  { %v3968_v34 = vsub.f32 %v3934_v27, %v3961_v0  ;;  %v3969_v11 = vsub.f32 %v3935_v30, %v3965_v32 }
0x3d9a   :  { %v4017_v35 = vpop.permute.xlu0 %4016 }
0x3d9b   :  { %v3970_v7 = vmul.f32 1.442695, %v3968_v34  ;;  %v3972_v40 = vmul.f32 1.442695, %v3969_v11 }
0x3d9d   :  { %8556 = vpow2.f32 %v3970_v7 }
0x3d9e   :  { %8558 = vpow2.f32 %v3972_v40 }
0x3da7   :  { %v8557_v17 = vpop.eup %8556 }
0x3da8   :  { %3977 = vperm.xlu1 %8341, %v8557_v17   ;;  %v8559_v53 = vpop.eup %8558 }
0x3dac   :  { %3980 = vperm.xlu1 %8341, %v8559_v53  }
0x3e27   :  { %v3978_v22 = vpop.permute.xlu1 %3977 }
0x3e28   :  { %v3985_v13 = vrot.slane %v3978_v22, %v9616_v25 }
0x3e2b   :  { %v3981_v63 = vpop.permute.xlu1 %3980 }
0x3e2c   :  { %v3989_v48 = vrot.slane %v3981_v63, %v9616_v25 }
0x3e2e   :  { %v3990_v9 = vsel %vm443_vm3, %v3989_v48, %v3985_v13 }
0x3e2f   :  { %v3992_v54 = vsel %vm2353_vm6, %v3990_v9, 0.0 }
0x3e30   :  { %3993 = vadd.xlane.f32.xlu1 %v3992_v54 }
0x3e41   :  { %4023 = vbcast.lane.b32.xlu1 %v4021_v42, 256 }
0x3ebd   :  { %v3994_v27 = vpop.xlane.xlu1 %3993 }
0x3ebe   :  { %8560 = vlog2.f32 %v3994_v27 }
0x3ec1   :  { %v4024_v15 = vpop.permute.xlu1 %4023 }
0x3ec8   :  { %v8561_v10 = vpop.eup %8560 }
0x3ec9   :  { %v3996_v41 = vmul.f32 0.6931472, %v8561_v10 }
0x3ecb   :  { %v4005_v30 = vrot.slane %v3996_v41, %v9079_v5  ;;  %v4001_v59 = vrot.slane %v3996_v41, %v9076_v4 }
0x3ecd   :  { %v10024_v36 = vsub.f32 %v3968_v34, %v4001_v59  ;;  %v10026_v29 = vsub.f32 %v3969_v11, %v4005_v30 }
0x3ecf   :  { %v4027_v1 = vadd.f32 %v4017_v35, %v10024_v36  ;;  %v4028_v57 = vadd.f32 %v4024_v15, %v10026_v29 }
0x3ed1   :  { %4032 = vperm.xlu0 %8340, %v4027_v1  }
0x3ed5   :  { %4035 = vperm.xlu0 %8340, %v4028_v57  }
0x3f50   :  { %v4033_v0 = vpop.permute.xlu0 %4032 }
0x3f51   :  { %v4040_v7 = vrot.slane %v4033_v0, %v9616_v25 }
0x3f54   :  { %v4036_v32 = vpop.permute.xlu0 %4035 }
0x3f55   :  { %v4044_v40 = vrot.slane %v4036_v32, %v9616_v25 }
0x3f57   :  { %v4045_v17 = vsel %vm443_vm3, %v4044_v40, %v4040_v7  ;;  %v7459_v7 = vsel %vm7458_vm7, %v9734_v38, %v9882_v37 }
0x3f58   :  { %v4047_v34 = vsel %vm2353_vm6, %v4045_v17, -inf }
0x3f59   :  { %4048 = vmax.xlane.f32.xlu0 %v4047_v34 }
0x3fe6   :  { %v4049_v11 = vpop.xlane.xlu0 %4048 }
0x3fe7   :  { %v4054_v53 = vrot.slane %v4049_v11, %v9076_v4  ;;  %v4058_v47 = vrot.slane %v4049_v11, %v9079_v5 }
0x3fe9   :  { %vm4061_vm15 = vcmp.ge.f32.partialorder %v4027_v1, %v4054_v53  ;;  %vm4062_vm2 = vcmp.ge.f32.partialorder %v4028_v57, %v4058_v47 }
0x3fea   :  { %v4063_v51 = vsel %vm4061_vm15, %v9726_v19, 8  ;;  %v4064_v22 = vsel %vm4062_vm2, %v9726_v19, 8  ;;  %vm7462_vm15 = vcmask 23552  }
0x3feb   :  { %4066 = vperm.xlu1 %8341, %v4063_v51  }
0x3fef   :  { %4069 = vperm.xlu1 %8341, %v4064_v22  }
0x406a   :  { %v4067_v63 = vpop.permute.xlu1 %4066 }
0x406b   :  { %v4074_v48 = vrot.slane %v4067_v63, %v9616_v25 }
0x406e   :  { %v4070_v13 = vpop.permute.xlu1 %4069 }
0x406f   :  { %v4078_v9 = vrot.slane %v4070_v13, %v9616_v25 }
0x4071   :  { %v4079_v54 = vsel %vm443_vm3, %v4078_v9, %v4074_v48 }
0x4072   :  { %v4080_v42 = vsel %vm2353_vm6, %v4079_v54, 2147483647 }
0x4073   :  { %v4082_v27 = vshra.s32 %v4080_v42, 16  ;;  %v4081_v41 = vand.u32 65535, %v4080_v42 }
0x4075   :  { %v4084_v10 = vcvt.s32.f32 %v4082_v27  ;;  %v4083_v59 = vcvt.s32.f32 %v4081_v41 }
0x4077   :  { %4085 = vmin.xlane.f32.xlu1 %v4084_v10 }
0x4104   :  { %v4086_v30 = vpop.xlane.xlu1 %4085 }
0x4105   :  { %vm4087_vm4 = vcmp.eq.f32.partialorder %v4084_v10, %v4086_v30  ;;  %v4092_v1 = vcvt.f32.s32 %v4086_v30 }
0x4106   :  { %v4088_v35 = vsel %vm4087_vm4, %v4083_v59, inf }
0x4107   :  { %4089 = vmin.xlane.f32.xlu0 %v4088_v35  ;;  %v4093_v57 = vshll.u32 %v4092_v1, 16 }
0x4194   :  { %v4090_v15 = vpop.xlane.xlu0 %4089 }
0x4195   :  { %v4091_v0 = vcvt.f32.s32 %v4090_v15 }
0x4197   :  { %v10042_v32 = vadd.s32 %v4093_v57, %v4091_v0 }
0x4199   :  { %v4119_v40 = vcvt.s32.f32 %v10042_v32  ;;  %v10050_v17 = vsel %vm7460_vm8, %v7459_v7, %v10042_v32  ;;  %vm4095_vm9 = vcmp.eq.s32.totalorder %v9585_v52, %v10042_v32 }
0x419b   :  { %v4120_v34 = vmul.f32 %v9885_v24, %v4119_v40 }
0x419d   :  { %v4191_v11 = vadd.f32 %v9930_v16, %v4120_v34 }
0x419f   :  { %v4192_v53 = vadd.f32 %v9892_v8, %v4191_v11 }
0x41a1   :  { %8562 = vtanh.f32 %v4192_v53  ;;  %v4193_v51 = vsub.f32 0.0, %v4192_v53 }
0x41a3   :  { %v4194_v22 = vmul.f32 1.442695, %v4193_v51 }
0x41a5   :  { %8564 = vpow2.f32 %v4194_v22 }
0x41ab   :  { %v8563_v47 = vpop.eup %8562 }
0x41ac   :  { %4202 = vrot.lane.b32.xlu0 %v8563_v47, %s8894_s5 }
0x41af   :  { %v8565_v63 = vpop.eup %8564 }
0x41b0   :  { %v4196_v13 = vadd.f32 1.0, %v8565_v63 }
0x41b2   :  { %8566 = vrcp.f32 %v4196_v13 }
0x41bc   :  { %v8567_v48 = vpop.eup %8566 }
0x41bd   :  { %v4200_v24 = vmul.f32 %v8567_v48, %v9898_v20 }
0x421e   :  { %v4203_v9 = vpop.permute.xlu0 %4202 }
0x421f   :  { %v4205_v54 = vmul.f32 %v8567_v48, %v4203_v9 }
0x4221   :  { %4207 = vrot.lane.b32.xlu1 %v4205_v54, %s8895_s22 }
0x4293   :  { %v4208_v16 = vpop.permute.xlu1 %4207 }
0x4294   :  { %v10058_v42 = vadd.f32 %v4208_v16, %v4200_v24 }
0x4296   :  { %8568 = vtanh.f32 %v10058_v42 }
0x42a0   :  { %v8569_v8 = vpop.eup %8568 }
0x42a1   :  { %4213 = vrot.lane.b32.xlu0 %v8569_v8, %s8894_s5 }
0x4313   :  { %v4214_v27 = vpop.permute.xlu0 %4213 }
0x4314   :  { %v10062_v10 = vmul.f32 %v8567_v48, %v4214_v27  ;;  %v10103_v48 = vsel %vm4095_vm9, 0.0, %v9948_v60 }
0x4315   :  { %v4339_v9 = vsub.f32 1.0, %v10103_v48 }
0x4316   :  { %4218 = vrot.lane.b32.xlu0 %v10062_v10, %s8895_s22 }
0x4317   :  { %v4340_v54 = vmul.f32 1e+10, %v4339_v9 }
0x4319   :  { %v4352_v24 = vrot.slane %v4340_v54, %v9079_v5 }
0x4388   :  { %v10066_v41 = vpop.permute.xlu0 %4218 }
0x4389   :  { %7972 = vmatmul.mubr.msk.f32.vlgmr.msra.gmra.mrb[20].mxu0 %vm161_vm1, %v10066_v41 }
0x438a   :  { %8255 = vmatpush3.bf16.msra.mxu0 %v9460_v61  ;;  %7993 = vmatprep.mubr.msk.f32.mxu0 %vm8892_vm0, %v10941_v21 }
0x438b   :  { %8256 = vmatprep.subr.bf16.mxu0 %v10939_v14 }
0x438e   :  { %8258 = vmatpush3.bf16.msra.mxu0 %v9470_v33 }
0x438f   :  { %8265 = vmatprep.subr.bf16.mxu0 %v10939_v14 }
0x4391   :  { %7994 = vmatmul.mubr.msk.f32.vlgmr.msra.gmra.mrb[22].mxu0 %vm161_vm1, %v10066_v41 }
0x4392   :  { %8267 = vmatpush3.bf16.msra.mxu0 %v9638_v12  ;;  %8015 = vmatprep.mubr.msk.f32.mxu0 %vm8892_vm0, %v10941_v21 }
0x4393   :  { %8268 = vmatprep.subr.bf16.mxu0 %v10939_v14 }
0x4396   :  { %8270 = vmatpush3.bf16.msra.mxu0 %v9650_v50 }
0x4397   :  { %8277 = vmatprep.subr.bf16.mxu0 %v10939_v14 }
0x445c   :  { %v4288_v20 = vpop.f32.mrb[20].mxu0 }
0x445d   :  { %v4299_v30 = vrot.slane %v4288_v20, %v9200_v55  ;;  %v7973_v59 = vpop.f32.mrb[21].mxu0 }
0x445f   :  { %v4300_v35 = vcombine.high %v4299_v30, %v4299_v30  ;;  %v4307_v1 = vrot.slane %v4299_v30, %v9200_v55 }
0x4461   :  { %v4314_v15 = vrot.slane %v4300_v35, %v9200_v55  ;;  %v4318_v57 = vrot.slane %v4307_v1, %v9076_v4 }
0x4463   :  { %v4322_v0 = vrot.slane %v4314_v15, %v9076_v4  ;;  %v4325_v7 = vadd.f32 %v4318_v57, %v9523_v45 }
0x4464   :  { %v10090_v40 = vpop.f32.mrb[22].mxu0 }
0x4465   :  { %v4326_v34 = vadd.f32 %v9521_v56, %v4322_v0  ;;  %8570 = vtanh.f32 %v4325_v7  ;;  %v7995_v11 = vpop.f32.mrb[23].mxu0 }
0x4467   :  { %8572 = vtanh.f32 %v4326_v34 }
0x446f   :  { %v8571_v53 = vpop.eup %8570 }
0x4470   :  { %v4329_v47 = vmul.f32 %v9936_v26, %v8571_v53 }
0x4471   :  { %v8573_v51 = vpop.eup %8572 }
0x4472   :  { %v4331_v22 = vsel %vm161_vm1, %v4329_v47, 0.0  ;;  %v4330_v63 = vmul.f32 %v9936_v26, %v8573_v51  ;;  %v4345_v26 = vrot.slane %v4340_v54, %v9076_v4 }
0x4473   :  { %4332 = vadd.xlane.f32.xlu1 %v4331_v22 }
0x4474   :  { %v4334_v13 = vsel %vm161_vm1, %v4330_v63, 0.0 }
0x4475   :  { %4335 = vadd.xlane.f32.xlu0 %v4334_v13 }
0x4484   :  { %4354 = vbcast.lane.b32.xlu1 %v4352_v24, 256 }
0x448b   :  { %4347 = vbcast.lane.b32.xlu0 %v4345_v26, 256 }
0x4500   :  { %v4333_v16 = vpop.xlane.xlu1 %4332 }
0x4501   :  { %v4337_v30 = vadd.f32 %v4333_v16, %v9606_v49 }
0x4502   :  { %v4336_v8 = vpop.xlane.xlu0 %4335 }
0x4503   :  { %v4338_v27 = vadd.f32 %v4336_v8, %v9606_v49 }
0x4504   :  { %v10109_v20 = vpop.permute.xlu1 %4354 }
0x4505   :  { %v4359_v60 = vsub.f32 %v4338_v27, %v10109_v20 }
0x4506   :  { %v10113_v59 = vpop.permute.xlu0 %4347 }
0x4507   :  { %v4358_v35 = vsub.f32 %v4337_v30, %v10113_v59  ;;  %4366 = vperm.xlu0 %8340, %v4359_v60  }
0x4509   :  { %4363 = vperm.xlu1 %8341, %v4358_v35  }
0x4586   :  { %v4367_v1 = vpop.permute.xlu0 %4366 }
0x4587   :  { %v4375_v57 = vrot.slane %v4367_v1, %v9616_v25 }
0x4588   :  { %v4364_v15 = vpop.permute.xlu1 %4363 }
0x4589   :  { %v4371_v0 = vrot.slane %v4364_v15, %v9616_v25 }
0x458b   :  { %v4376_v7 = vsel %vm443_vm3, %v4375_v57, %v4371_v0 }
0x458c   :  { %v4378_v34 = vsel %vm2353_vm6, %v4376_v7, -inf }
0x458d   :  { %4379 = vmax.xlane.f32.xlu1 %v4378_v34  ;;  %v4460_v34 = vrot.slane %v10062_v10, 1 }
0x461a   :  { %v4380_v11 = vpop.xlane.xlu1 %4379 }
0x461b   :  { %v4385_v53 = vrot.slane %v4380_v11, %v9076_v4  ;;  %v4389_v47 = vrot.slane %v4380_v11, %v9079_v5 }
0x461d   :  { %v4392_v51 = vsub.f32 %v4358_v35, %v4385_v53  ;;  %v4393_v22 = vsub.f32 %v4359_v60, %v4389_v47 }
0x461f   :  { %v4394_v63 = vmul.f32 1.442695, %v4392_v51  ;;  %v4396_v13 = vmul.f32 1.442695, %v4393_v22 }
0x4621   :  { %8574 = vpow2.f32 %v4394_v63 }
0x4622   :  { %8576 = vpow2.f32 %v4396_v13 }
0x462b   :  { %v8575_v9 = vpop.eup %8574 }
0x462c   :  { %4401 = vperm.xlu0 %8340, %v8575_v9   ;;  %v8577_v54 = vpop.eup %8576 }
0x4630   :  { %4404 = vperm.xlu0 %8340, %v8577_v54  }
0x46ab   :  { %v4402_v24 = vpop.permute.xlu0 %4401 }
0x46ac   :  { %v4409_v16 = vrot.slane %v4402_v24, %v9616_v25 }
0x46af   :  { %v4405_v26 = vpop.permute.xlu0 %4404 }
0x46b0   :  { %v4413_v8 = vrot.slane %v4405_v26, %v9616_v25 }
0x46b2   :  { %v4414_v27 = vsel %vm443_vm3, %v4413_v8, %v4409_v16 }
0x46b3   :  { %v4416_v30 = vsel %vm2353_vm6, %v4414_v27, 0.0 }
0x46b4   :  { %4417 = vadd.xlane.f32.xlu0 %v4416_v30 }
0x4741   :  { %v4418_v60 = vpop.xlane.xlu0 %4417 }
0x4742   :  { %v4423_v35 = vrot.slane %v4418_v60, %v9076_v4  ;;  %v4427_v1 = vrot.slane %v4418_v60, %v9079_v5 }
0x4744   :  { %8578 = vrcp.f32 %v4423_v35 }
0x4745   :  { %8580 = vrcp.f32 %v4427_v1 }
0x474e   :  { %v8579_v15 = vpop.eup %8578 }
0x474f   :  { %v8581_v57 = vpop.eup %8580  ;;  %v4431_v0 = vmul.f32 %v8579_v15, %v8575_v9 }
0x4750   :  { %v4433_v7 = vmul.f32 %v8581_v57, %v8577_v54 }
0x4751   :  { %4436 = vperm.xlu0 %8340, %v4431_v0  }
0x4752   :  { %4441 = vperm.xlu1 %8341, %v4433_v7  }
0x4756   :  { %4461 = vrot.lane.b32.xlu1 %v4460_v34, %s8895_s22 }
0x47d0   :  { %v4437_v11 = vpop.permute.xlu0 %4436 }
0x47d1   :  { %v4442_v53 = vpop.permute.xlu1 %4441  ;;  %v4444_v47 = vmul.f32 %v4437_v11, %v9501_v28 }
0x47d2   :  { %v4445_v51 = vmul.f32 %v4442_v53, %v9506_v39 }
0x47d3   :  { %v4446_v22 = vsel %vm161_vm1, %v4444_v47, 0.0 }
0x47d4   :  { %v4453_v63 = vsel %vm161_vm1, %v4445_v51, 0.0  ;;  %v4447_v13 = vrot.slane %v4446_v22, 4 }
0x47d5   :  { %v4454_v24 = vrot.slane %v4453_v63, 4  ;;  %v4462_v1 = vpop.permute.xlu1 %4461 }
0x47d6   :  { %v4448_v9 = vadd.f32 %v4447_v13, %v4446_v22 }
0x47d7   :  { %v4455_v54 = vadd.f32 %v4454_v24, %v4453_v63 }
0x47d8   :  { %v4449_v26 = vrot.slane %v4448_v9, 2 }
0x47d9   :  { %v4456_v16 = vrot.slane %v4455_v54, 2 }
0x47da   :  { %v4450_v8 = vadd.f32 %v4449_v26, %v4448_v9 }
0x47db   :  { %v4457_v10 = vadd.f32 %v4456_v16, %v4455_v54 }
0x47dc   :  { %v4451_v27 = vrot.slane %v4450_v8, 1 }
0x47dd   :  { %v4458_v30 = vrot.slane %v4457_v10, 1 }
0x47de   :  { %v4452_v60 = vadd.f32 %v4451_v27, %v4450_v8 }
0x47df   :  { %v4459_v35 = vadd.f32 %v4458_v30, %v4457_v10 }
0x47e0   :  { %v4465_v0 = vadd.f32 %v4452_v60, %v10066_v41 }
0x47e1   :  { %v4466_v15 = vadd.f32 %v4462_v1, %v4459_v35 }
0x47e3   :  { %v4469_v57 = vrot.slane %v4466_v15, 7 }
0x47e5   :  { %v4470_v7 = vsel %vm443_vm3, %v4469_v57, %v4465_v0 }
0x47e6   :  { %7983 = vmatmul.mubr.msk.f32.vlgmr.msra.gmra.mrb[20].mxu1 %vm161_vm1, %v4470_v7 }
0x47e7   :  { %8261 = vmatpush3.bf16.msra.mxu1 %v9541_v6  ;;  %8004 = vmatprep.mubr.msk.f32.mxu1 %vm8892_vm0, %v10941_v21 }
0x47e8   :  { %8262 = vmatprep.subr.bf16.mxu1 %v10939_v14 }
0x47eb   :  { %8264 = vmatpush3.bf16.msra.mxu1 %v9547_v62 }
0x47ec   :  { %8271 = vmatprep.subr.bf16.mxu1 %v10939_v14 }
0x48b9   :  { %v4539_v34 = vpop.f32.mrb[20].mxu1 }
0x48ba   :  { %v4550_v11 = vrot.slane %v4539_v34, %v9200_v55  ;;  %v7984_v53 = vpop.f32.mrb[21].mxu1 }
0x48bc   :  { %v4551_v41 = vcombine.high %v4550_v11, %v4550_v11  ;;  %v4558_v47 = vrot.slane %v4550_v11, %v9200_v55 }
0x48be   :  { %v4565_v51 = vrot.slane %v4551_v41, %v9200_v55  ;;  %v4569_v22 = vrot.slane %v4558_v47, %v9076_v4 }
0x48c0   :  { %4574 = vrot.lane.b32.xlu1 %v4569_v22, %s8895_s22  ;;  %v4573_v63 = vrot.slane %v4565_v51, %v9076_v4 }
0x48c4   :  { %4576 = vrot.lane.b32.xlu1 %v4573_v63, %s8895_s22 }
0x4932   :  { %v4575_v13 = vpop.permute.xlu1 %4574 }
0x4933   :  { %v4580_v24 = vadd.f32 %v4575_v13, %v9523_v45 }
0x4935   :  { %8582 = vtanh.f32 %v4580_v24 }
0x4936   :  { %v4577_v9 = vpop.permute.xlu1 %4576 }
0x4937   :  { %v4581_v54 = vadd.f32 %v9521_v56, %v4577_v9 }
0x4939   :  { %8584 = vtanh.f32 %v4581_v54 }
0x493f   :  { %v8583_v26 = vpop.eup %8582 }
0x4940   :  { %v4584_v16 = vmul.f32 %v8583_v26, %v9682_v23 }
0x4942   :  { %4588 = vrot.lane.b32.xlu0 %v4584_v16, %s8897_s24 }
0x4943   :  { %v8585_v8 = vpop.eup %8584 }
0x4944   :  { %v4585_v10 = vmul.f32 %v8585_v8, %v9682_v23  ;;  %v133_v8 = vld [vmem:[%s10958_s12 + $0x6] sm:$0x3] }
0x4946   :  { %4590 = vrot.lane.b32.xlu1 %v4585_v10, %s8897_s24  ;;  %v4682_v10 = vrot.slane %v133_v8, %v9076_v4 }
0x49b4   :  { %v4589_v27 = vpop.permute.xlu0 %4588 }
0x49b5   :  { %v4594_v30 = vsel %vm161_vm1, %v4589_v27, 0.0 }
0x49b6   :  { %4595 = vadd.xlane.f32.xlu0 %v4594_v30 }
0x49b8   :  { %v4591_v60 = vpop.permute.xlu1 %4590 }
0x49b9   :  { %v4597_v35 = vsel %vm161_vm1, %v4591_v60, 0.0 }
0x49ba   :  { %4598 = vadd.xlane.f32.xlu1 %v4597_v35 }
0x4a43   :  { %v4596_v1 = vpop.xlane.xlu0 %4595 }
0x4a44   :  { %v4600_v15 = vadd.f32 %v4596_v1, %v9690_v3 }
0x4a46   :  { %v4602_v57 = vsub.f32 %v4600_v15, %v10113_v59 }
0x4a47   :  { %v4599_v0 = vpop.xlane.xlu1 %4598 }
0x4a48   :  { %v4601_v7 = vadd.f32 %v4599_v0, %v9690_v3  ;;  %4607 = vperm.xlu0 %8340, %v4602_v57  }
0x4a4a   :  { %v4603_v34 = vsub.f32 %v4601_v7, %v10109_v20 }
0x4a4c   :  { %4610 = vperm.xlu1 %8341, %v4603_v34  }
0x4ac7   :  { %v4608_v11 = vpop.permute.xlu0 %4607 }
0x4ac8   :  { %v4615_v41 = vrot.slane %v4608_v11, %v9616_v25 }
0x4acb   :  { %v4611_v53 = vpop.permute.xlu1 %4610 }
0x4acc   :  { %v4619_v47 = vrot.slane %v4611_v53, %v9616_v25 }
0x4ace   :  { %v4620_v51 = vsel %vm443_vm3, %v4619_v47, %v4615_v41 }
0x4acf   :  { %v4622_v22 = vsel %vm2353_vm6, %v4620_v51, -inf }
0x4ad0   :  { %4623 = vmax.xlane.f32.xlu0 %v4622_v22 }
0x4ae6   :  { %4684 = vbcast.lane.b32.xlu0 %v4682_v10, 256 }
0x4b5d   :  { %v4624_v63 = vpop.xlane.xlu0 %4623 }
0x4b5e   :  { %v4629_v59 = vrot.slane %v4624_v63, %v9076_v4  ;;  %v4633_v13 = vrot.slane %v4624_v63, %v9079_v5 }
0x4b60   :  { %v4636_v24 = vsub.f32 %v4602_v57, %v4629_v59  ;;  %v4637_v9 = vsub.f32 %v4603_v34, %v4633_v13  ;;  %v4689_v57 = vrot.slane %v133_v8, %v9079_v5 }
0x4b61   :  { %v4685_v41 = vpop.permute.xlu0 %4684 }
0x4b62   :  { %v4638_v20 = vmul.f32 1.442695, %v4636_v24  ;;  %v4640_v54 = vmul.f32 1.442695, %v4637_v9 }
0x4b64   :  { %8586 = vpow2.f32 %v4638_v20 }
0x4b65   :  { %8588 = vpow2.f32 %v4640_v54 }
0x4b6e   :  { %v8587_v26 = vpop.eup %8586 }
0x4b6f   :  { %4645 = vperm.xlu1 %8341, %v8587_v26   ;;  %v8589_v16 = vpop.eup %8588 }
0x4b73   :  { %4648 = vperm.xlu1 %8341, %v8589_v16  }
0x4bee   :  { %v4646_v27 = vpop.permute.xlu1 %4645 }
0x4bef   :  { %v4653_v60 = vrot.slane %v4646_v27, %v9616_v25 }
0x4bf2   :  { %v4649_v30 = vpop.permute.xlu1 %4648 }
0x4bf3   :  { %v4657_v35 = vrot.slane %v4649_v30, %v9616_v25 }
0x4bf5   :  { %v4658_v1 = vsel %vm443_vm3, %v4657_v35, %v4653_v60 }
0x4bf6   :  { %v4660_v15 = vsel %vm2353_vm6, %v4658_v1, 0.0 }
0x4bf7   :  { %4661 = vadd.xlane.f32.xlu1 %v4660_v15 }
0x4c08   :  { %4691 = vbcast.lane.b32.xlu1 %v4689_v57, 256 }
0x4c84   :  { %v4662_v0 = vpop.xlane.xlu1 %4661 }
0x4c85   :  { %8590 = vlog2.f32 %v4662_v0 }
0x4c88   :  { %v4692_v63 = vpop.permute.xlu1 %4691 }
0x4c8f   :  { %v8591_v7 = vpop.eup %8590 }
0x4c90   :  { %v4664_v34 = vmul.f32 0.6931472, %v8591_v7 }
0x4c92   :  { %v4673_v11 = vrot.slane %v4664_v34, %v9079_v5  ;;  %v4669_v53 = vrot.slane %v4664_v34, %v9076_v4 }
0x4c94   :  { %v10179_v47 = vsub.f32 %v4636_v24, %v4669_v53  ;;  %v10181_v51 = vsub.f32 %v4637_v9, %v4673_v11 }
0x4c96   :  { %v4695_v22 = vadd.f32 %v4685_v41, %v10179_v47  ;;  %v4696_v59 = vadd.f32 %v4692_v63, %v10181_v51 }
0x4c98   :  { %4700 = vperm.xlu0 %8340, %v4695_v22  }
0x4c9c   :  { %4703 = vperm.xlu0 %8340, %v4696_v59  }
0x4d17   :  { %v4701_v13 = vpop.permute.xlu0 %4700 }
0x4d18   :  { %v4708_v54 = vrot.slane %v4701_v13, %v9616_v25 }
0x4d1b   :  { %v4704_v20 = vpop.permute.xlu0 %4703 }
0x4d1c   :  { %v4712_v26 = vrot.slane %v4704_v20, %v9616_v25 }
0x4d1e   :  { %v4713_v16 = vsel %vm443_vm3, %v4712_v26, %v4708_v54 }
0x4d1f   :  { %v4715_v24 = vsel %vm2353_vm6, %v4713_v16, -inf }
0x4d20   :  { %4716 = vmax.xlane.f32.xlu0 %v4715_v24  ;;  %v10205_v24 = vld [vmem:[#allocation12] ss:$0 sm:$0xff] }
0x4dad   :  { %v4717_v9 = vpop.xlane.xlu0 %4716 }
0x4dae   :  { %v4722_v8 = vrot.slane %v4717_v9, %v9076_v4  ;;  %v4726_v10 = vrot.slane %v4717_v9, %v9079_v5 }
0x4db0   :  { %vm4729_vm11 = vcmp.ge.f32.partialorder %v4695_v22, %v4722_v8  ;;  %vm4730_vm12 = vcmp.ge.f32.partialorder %v4696_v59, %v4726_v10  ;;  %v10212_v10 = vld [vmem:[%s10924_s11] ss:$0 sm:$0xff] }
0x4db1   :  { %v4731_v27 = vsel %vm4729_vm11, %v9726_v19, 8  ;;  %v4732_v30 = vsel %vm4730_vm12, %v9726_v19, 8 }
0x4db2   :  { %4734 = vperm.xlu1 %8341, %v4731_v27  }
0x4db6   :  { %4737 = vperm.xlu1 %8341, %v4732_v30  }
0x4e31   :  { %v4735_v60 = vpop.permute.xlu1 %4734 }
0x4e32   :  { %v4742_v1 = vrot.slane %v4735_v60, %v9616_v25 }
0x4e35   :  { %v4738_v35 = vpop.permute.xlu1 %4737 }
0x4e36   :  { %v4746_v15 = vrot.slane %v4738_v35, %v9616_v25 }
0x4e38   :  { %v4747_v57 = vsel %vm443_vm3, %v4746_v15, %v4742_v1 }
0x4e39   :  { %v4748_v0 = vsel %vm2353_vm6, %v4747_v57, 2147483647 }
0x4e3a   :  { %v4750_v7 = vshra.s32 %v4748_v0, 16  ;;  %v4749_v11 = vand.u32 65535, %v4748_v0 }
0x4e3c   :  { %v4752_v34 = vcvt.s32.f32 %v4750_v7  ;;  %v4751_v41 = vcvt.s32.f32 %v4749_v11 }
0x4e3e   :  { %4753 = vmin.xlane.f32.xlu1 %v4752_v34 }
0x4ecb   :  { %v4754_v53 = vpop.xlane.xlu1 %4753 }
0x4ecc   :  { %vm4755_vm13 = vcmp.eq.f32.partialorder %v4752_v34, %v4754_v53  ;;  %v4760_v63 = vcvt.f32.s32 %v4754_v53 }
0x4ecd   :  { %v4756_v22 = vsel %vm4755_vm13, %v4751_v41, inf  ;;  %vm7464_vm13 = vcmask 31744  }
0x4ece   :  { %4757 = vmin.xlane.f32.xlu0 %v4756_v22  ;;  %v4761_v13 = vshll.u32 %v4760_v63, 16 }
0x4f5b   :  { %v4758_v59 = vpop.xlane.xlu0 %4757 }
0x4f5c   :  { %v4759_v20 = vcvt.f32.s32 %v4758_v59 }
0x4f5e   :  { %v10197_v54 = vadd.s32 %v4761_v13, %v4759_v20 }
0x4f60   :  { %v4787_v26 = vcvt.s32.f32 %v10197_v54  ;;  %v10203_v16 = vsel %vm7462_vm15, %v10050_v17, %v10197_v54  ;;  %vm4763_vm2 = vcmp.eq.s32.totalorder %v9585_v52, %v10197_v54 }
0x4f62   :  { %v4788_v9 = vmul.f32 %v10205_v24, %v4787_v26 }
0x4f64   :  { %v4859_v8 = vadd.f32 %v10090_v40, %v4788_v9 }
0x4f66   :  { %v4860_v27 = vadd.f32 %v10212_v10, %v4859_v8 }
0x4f68   :  { %8592 = vtanh.f32 %v4860_v27  ;;  %v4861_v60 = vsub.f32 0.0, %v4860_v27 }
0x4f6a   :  { %v4862_v17 = vmul.f32 1.442695, %v4861_v60 }
0x4f6c   :  { %8594 = vpow2.f32 %v4862_v17 }
0x4f72   :  { %v8593_v30 = vpop.eup %8592 }
0x4f73   :  { %4870 = vrot.lane.b32.xlu0 %v8593_v30, %s8894_s5 }
0x4f76   :  { %v8595_v35 = vpop.eup %8594 }
0x4f77   :  { %v4864_v1 = vadd.f32 1.0, %v8595_v35 }
0x4f79   :  { %8596 = vrcp.f32 %v4864_v1  ;;  %v10256_v1 = vld [vmem:[%s10927_s14] ss:$0 sm:$0xff] }
0x4f83   :  { %v8597_v15 = vpop.eup %8596 }
0x4f84   :  { %v4868_v0 = vmul.f32 %v8597_v15, %v10058_v42 }
0x4fe5   :  { %v4871_v57 = vpop.permute.xlu0 %4870 }
0x4fe6   :  { %v4873_v40 = vmul.f32 %v8597_v15, %v4871_v57 }
0x4fe8   :  { %4875 = vrot.lane.b32.xlu1 %v4873_v40, %s8895_s22 }
0x505a   :  { %v4876_v7 = vpop.permute.xlu1 %4875 }
0x505b   :  { %v10218_v34 = vadd.f32 %v4876_v7, %v4868_v0 }
0x505d   :  { %8598 = vtanh.f32 %v10218_v34 }
0x5067   :  { %v8599_v11 = vpop.eup %8598 }
0x5068   :  { %4881 = vrot.lane.b32.xlu0 %v8599_v11, %s8894_s5  ;;  %v10268_v11 = vsel %vm4763_vm2, 0.0, %v10103_v48 }
0x50da   :  { %v4882_v53 = vpop.permute.xlu0 %4881 }
0x50db   :  { %v10222_v41 = vmul.f32 %v8597_v15, %v4882_v53  ;;  %v5007_v53 = vsub.f32 1.0, %v10268_v11 }
0x50dd   :  { %4886 = vrot.lane.b32.xlu0 %v10222_v41, %s8895_s22 }
0x514f   :  { %v10226_v22 = vpop.permute.xlu0 %4886 }
0x5150   :  { %8005 = vmatmul.mubr.msk.f32.vlgmr.msra.gmra.mrb[22].mxu1 %vm161_vm1, %v10226_v22 }
0x5151   :  { %8273 = vmatpush3.bf16.msra.mxu1 %v9460_v61  ;;  %8026 = vmatprep.mubr.msk.f32.mxu1 %vm8892_vm0, %v10941_v21 }
0x5152   :  { %8274 = vmatprep.subr.bf16.mxu1 %v10939_v14 }
0x5155   :  { %8276 = vmatpush3.bf16.msra.mxu1 %v9470_v33 }
0x5156   :  { %8283 = vmatprep.subr.bf16.mxu1 %v10939_v14 }
0x5158   :  { %8027 = vmatmul.mubr.msk.f32.vlgmr.msra.gmra.mrb[24].mxu1 %vm161_vm1, %v10226_v22 }
0x5159   :  { %8285 = vmatpush3.bf16.msra.mxu1 %v9638_v12  ;;  %8048 = vmatprep.mubr.msk.f32.mxu1 %vm8892_vm0, %v10941_v21 }
0x515a   :  { %8286 = vmatprep.subr.bf16.mxu1 %v10939_v14 }
0x515d   :  { %8288 = vmatpush3.bf16.msra.mxu1 %v9650_v50 }
0x515e   :  { %8295 = vmatprep.subr.bf16.mxu1 %v10939_v14 }
0x5223   :  { %v4956_v42 = vpop.f32.mrb[22].mxu1 }
0x5224   :  { %v4967_v63 = vrot.slane %v4956_v42, %v9200_v55  ;;  %v8006_v59 = vpop.f32.mrb[23].mxu1  ;;  %v5008_v42 = vmul.f32 1e+10, %v5007_v53 }
0x5226   :  { %v4968_v13 = vcombine.high %v4967_v63, %v4967_v63  ;;  %v4975_v20 = vrot.slane %v4967_v63, %v9200_v55  ;;  %v5020_v63 = vrot.slane %v5008_v42, %v9079_v5  ;;  %v5013_v59 = vrot.slane %v5008_v42, %v9076_v4 }
0x5228   :  { %v4982_v26 = vrot.slane %v4968_v13, %v9200_v55  ;;  %v4986_v9 = vrot.slane %v4975_v20, %v9076_v4 }
0x522a   :  { %v4990_v8 = vrot.slane %v4982_v26, %v9076_v4  ;;  %v4993_v27 = vadd.f32 %v4986_v9, %v9523_v45 }
0x522b   :  { %v10250_v30 = vpop.f32.mrb[24].mxu1 }
0x522c   :  { %v4994_v60 = vadd.f32 %v9521_v56, %v4990_v8  ;;  %8600 = vtanh.f32 %v4993_v27  ;;  %v8028_v17 = vpop.f32.mrb[25].mxu1 }
0x522e   :  { %8602 = vtanh.f32 %v4994_v60 }
0x5236   :  { %v8601_v35 = vpop.eup %8600 }
0x5237   :  { %v4997_v15 = vmul.f32 %v10256_v1, %v8601_v35 }
0x5238   :  { %v8603_v57 = vpop.eup %8602 }
0x5239   :  { %v4999_v40 = vsel %vm161_vm1, %v4997_v15, 0.0  ;;  %v4998_v0 = vmul.f32 %v10256_v1, %v8603_v57 }
0x523a   :  { %5000 = vadd.xlane.f32.xlu1 %v4999_v40 }
0x523b   :  { %v5002_v7 = vsel %vm161_vm1, %v4998_v0, 0.0 }
0x523c   :  { %5003 = vadd.xlane.f32.xlu0 %v5002_v7 }
0x524b   :  { %5022 = vbcast.lane.b32.xlu1 %v5020_v63, 256 }
0x5252   :  { %5015 = vbcast.lane.b32.xlu0 %v5013_v59, 256 }
0x52c7   :  { %v5001_v13 = vpop.xlane.xlu1 %5000 }
0x52c8   :  { %v5005_v8 = vadd.f32 %v5001_v13, %v9606_v49 }
0x52c9   :  { %v5004_v20 = vpop.xlane.xlu0 %5003 }
0x52ca   :  { %v5006_v26 = vadd.f32 %v5004_v20, %v9606_v49 }
0x52cb   :  { %v10274_v9 = vpop.permute.xlu1 %5022 }
0x52cc   :  { %v5027_v48 = vsub.f32 %v5006_v26, %v10274_v9 }
0x52cd   :  { %v10278_v27 = vpop.permute.xlu0 %5015 }
0x52ce   :  { %v5026_v60 = vsub.f32 %v5005_v8, %v10278_v27  ;;  %5034 = vperm.xlu0 %8340, %v5027_v48  }
0x52d0   :  { %5031 = vperm.xlu1 %8341, %v5026_v60  }
0x534d   :  { %v5035_v17 = vpop.permute.xlu0 %5034 }
0x534e   :  { %v5043_v15 = vrot.slane %v5035_v17, %v9616_v25 }
0x534f   :  { %v5032_v35 = vpop.permute.xlu1 %5031 }
0x5350   :  { %v5039_v57 = vrot.slane %v5032_v35, %v9616_v25 }
0x5352   :  { %v5044_v40 = vsel %vm443_vm3, %v5043_v15, %v5039_v57 }
0x5353   :  { %v5046_v0 = vsel %vm2353_vm6, %v5044_v40, -inf }
0x5354   :  { %5047 = vmax.xlane.f32.xlu1 %v5046_v0 }
0x53e1   :  { %v5048_v7 = vpop.xlane.xlu1 %5047 }
0x53e2   :  { %v5053_v53 = vrot.slane %v5048_v7, %v9076_v4  ;;  %v5057_v42 = vrot.slane %v5048_v7, %v9079_v5 }
0x53e4   :  { %v5060_v63 = vsub.f32 %v5026_v60, %v5053_v53  ;;  %v5061_v59 = vsub.f32 %v5027_v48, %v5057_v42 }
0x53e6   :  { %v5062_v13 = vmul.f32 1.442695, %v5060_v63  ;;  %v5064_v20 = vmul.f32 1.442695, %v5061_v59 }
0x53e8   :  { %8604 = vpow2.f32 %v5062_v13  ;;  %v5128_v13 = vrot.slane %v10222_v41, 1 }
0x53e9   :  { %8606 = vpow2.f32 %v5064_v20 }
0x53f2   :  { %v8605_v26 = vpop.eup %8604 }
0x53f3   :  { %5069 = vperm.xlu0 %8340, %v8605_v26   ;;  %v8607_v8 = vpop.eup %8606 }
0x53f7   :  { %5072 = vperm.xlu0 %8340, %v8607_v8  }
0x5472   :  { %v5070_v17 = vpop.permute.xlu0 %5069 }
0x5473   :  { %v5077_v15 = vrot.slane %v5070_v17, %v9616_v25 }
0x5476   :  { %v5073_v35 = vpop.permute.xlu0 %5072 }
0x5477   :  { %v5081_v57 = vrot.slane %v5073_v35, %v9616_v25 }
0x5479   :  { %v5082_v40 = vsel %vm443_vm3, %v5081_v57, %v5077_v15 }
0x547a   :  { %v5084_v0 = vsel %vm2353_vm6, %v5082_v40, 0.0 }
0x547b   :  { %5085 = vadd.xlane.f32.xlu0 %v5084_v0 }
0x5508   :  { %v5086_v48 = vpop.xlane.xlu0 %5085 }
0x5509   :  { %v5091_v60 = vrot.slane %v5086_v48, %v9076_v4  ;;  %v5095_v7 = vrot.slane %v5086_v48, %v9079_v5 }
0x550b   :  { %8608 = vrcp.f32 %v5091_v60 }
0x550c   :  { %8610 = vrcp.f32 %v5095_v7 }
0x5515   :  { %v8609_v53 = vpop.eup %8608 }
0x5516   :  { %v8611_v42 = vpop.eup %8610  ;;  %v5099_v63 = vmul.f32 %v8609_v53, %v8605_v26 }
0x5517   :  { %v5101_v59 = vmul.f32 %v8611_v42, %v8607_v8 }
0x5518   :  { %5104 = vperm.xlu0 %8340, %v5099_v63  }
0x5519   :  { %5109 = vperm.xlu1 %8341, %v5101_v59  }
0x551d   :  { %5129 = vrot.lane.b32.xlu1 %v5128_v13, %s8895_s22 }
0x5597   :  { %v5105_v20 = vpop.permute.xlu0 %5104 }
0x5598   :  { %v5110_v17 = vpop.permute.xlu1 %5109  ;;  %v5112_v35 = vmul.f32 %v5105_v20, %v9501_v28 }
0x5599   :  { %v5113_v15 = vmul.f32 %v5110_v17, %v9506_v39 }
0x559a   :  { %v5114_v57 = vsel %vm161_vm1, %v5112_v35, 0.0 }
0x559b   :  { %v5121_v40 = vsel %vm161_vm1, %v5113_v15, 0.0  ;;  %v5115_v0 = vrot.slane %v5114_v57, 4  ;;  %v10959_v15 = vmov 0.0|0.0  }
0x559c   :  { %v5122_v48 = vrot.slane %v5121_v40, 4  ;;  %v5130_v31 = vpop.permute.xlu1 %5129 }
0x559d   :  { %v5116_v26 = vadd.f32 %v5115_v0, %v5114_v57 }
0x559e   :  { %v5123_v8 = vadd.f32 %v5122_v48, %v5121_v40 }
0x559f   :  { %v5117_v60 = vrot.slane %v5116_v26, 2 }
0x55a0   :  { %v5124_v7 = vrot.slane %v5123_v8, 2 }
0x55a1   :  { %v5118_v53 = vadd.f32 %v5117_v60, %v5116_v26 }
0x55a2   :  { %v5125_v41 = vadd.f32 %v5124_v7, %v5123_v8 }
0x55a3   :  { %v5119_v42 = vrot.slane %v5118_v53, 1 }
0x55a4   :  { %v5126_v63 = vrot.slane %v5125_v41, 1 }
0x55a5   :  { %v5120_v59 = vadd.f32 %v5119_v42, %v5118_v53 }
0x55a6   :  { %v5127_v13 = vadd.f32 %v5126_v63, %v5125_v41 }
0x55a7   :  { %v5133_v17 = vadd.f32 %v5120_v59, %v10226_v22 }
0x55a8   :  { %v5134_v20 = vadd.f32 %v5130_v31, %v5127_v13 }
0x55aa   :  { %v5137_v14 = vrot.slane %v5134_v20, 7 }
0x55ac   :  { %v5138_v35 = vsel %vm443_vm3, %v5137_v14, %v5133_v17 }
0x55ad   :  { %8016 = vmatmul.mubr.msk.f32.vlgmr.msra.gmra.mrb[24].mxu0 %vm161_vm1, %v5138_v35 }
0x55ae   :  { %8279 = vmatpush3.bf16.msra.mxu0 %v9541_v6  ;;  %8037 = vmatprep.mubr.msk.f32.mxu0 %vm8892_vm0, %v10941_v21 }
0x55af   :  { %8280 = vmatprep.subr.bf16.mxu0 %v10959_v15 }
0x55b2   :  { %8282 = vmatpush3.bf16.msra.mxu0 %v9547_v62 }
0x55b3   :  { %8289 = vmatprep.subr.bf16.mxu0 %v10959_v15 }
0x5680   :  { %v5207_v57 = vpop.f32.mrb[24].mxu0 }
0x5681   :  { %v5218_v31 = vrot.slane %v5207_v57, %v9200_v55  ;;  %v8017_v40 = vpop.f32.mrb[25].mxu0 }
0x5683   :  { %v5219_v22 = vcombine.high %v5218_v31, %v5218_v31  ;;  %v5226_v14 = vrot.slane %v5218_v31, %v9200_v55 }
0x5685   :  { %v5233_v0 = vrot.slane %v5219_v22, %v9200_v55  ;;  %v5237_v48 = vrot.slane %v5226_v14, %v9076_v4 }
0x5687   :  { %5242 = vrot.lane.b32.xlu1 %v5237_v48, %s8895_s22  ;;  %v5241_v26 = vrot.slane %v5233_v0, %v9076_v4 }
0x568b   :  { %5244 = vrot.lane.b32.xlu1 %v5241_v26, %s8895_s22 }
0x56f9   :  { %v5243_v8 = vpop.permute.xlu1 %5242 }
0x56fa   :  { %v5248_v60 = vadd.f32 %v5243_v8, %v9523_v45 }
0x56fc   :  { %8612 = vtanh.f32 %v5248_v60 }
0x56fd   :  { %v5245_v7 = vpop.permute.xlu1 %5244 }
0x56fe   :  { %v5249_v53 = vadd.f32 %v9521_v56, %v5245_v7 }
0x5700   :  { %8614 = vtanh.f32 %v5249_v53 }
0x5706   :  { %v8613_v41 = vpop.eup %8612 }
0x5707   :  { %v5252_v42 = vmul.f32 %v8613_v41, %v9682_v23 }
0x5709   :  { %5256 = vrot.lane.b32.xlu0 %v5252_v42, %s8897_s24 }
0x570a   :  { %v8615_v63 = vpop.eup %8614 }
0x570b   :  { %v5253_v59 = vmul.f32 %v8615_v63, %v9682_v23 }
0x570d   :  { %5258 = vrot.lane.b32.xlu1 %v5253_v59, %s8897_s24 }
0x577b   :  { %v5257_v13 = vpop.permute.xlu0 %5256 }
0x577c   :  { %v5262_v20 = vsel %vm161_vm1, %v5257_v13, 0.0 }
0x577d   :  { %5263 = vadd.xlane.f32.xlu0 %v5262_v20 }
0x577f   :  { %v5259_v17 = vpop.permute.xlu1 %5258 }
0x5780   :  { %v5265_v35 = vsel %vm161_vm1, %v5259_v17, 0.0 }
0x5781   :  { %5266 = vadd.xlane.f32.xlu1 %v5265_v35  ;;  %v134_v35 = vld [vmem:[%s10958_s12 + $0x8] sm:$0x3] }
0x580a   :  { %v5264_v57 = vpop.xlane.xlu0 %5263 }
0x580b   :  { %v5268_v31 = vadd.f32 %v5264_v57, %v9690_v3  ;;  %v5350_v57 = vrot.slane %v134_v35, %v9076_v4 }
0x580d   :  { %v5270_v40 = vsub.f32 %v5268_v31, %v10278_v27 }
0x580e   :  { %v5267_v22 = vpop.xlane.xlu1 %5266 }
0x580f   :  { %v5269_v14 = vadd.f32 %v5267_v22, %v9690_v3  ;;  %5275 = vperm.xlu0 %8340, %v5270_v40  }
0x5811   :  { %v5271_v0 = vsub.f32 %v5269_v14, %v10274_v9 }
0x5813   :  { %5278 = vperm.xlu1 %8341, %v5271_v0  }
0x588e   :  { %v5276_v48 = vpop.permute.xlu0 %5275 }
0x588f   :  { %v5283_v8 = vrot.slane %v5276_v48, %v9616_v25 }
0x5892   :  { %v5279_v26 = vpop.permute.xlu1 %5278 }
0x5893   :  { %v5287_v60 = vrot.slane %v5279_v26, %v9616_v25  ;;  %v5357_v26 = vrot.slane %v134_v35, %v9079_v5 }
0x5895   :  { %v5288_v7 = vsel %vm443_vm3, %v5287_v60, %v5283_v8 }
0x5896   :  { %v5290_v53 = vsel %vm2353_vm6, %v5288_v7, -inf }
0x5897   :  { %5291 = vmax.xlane.f32.xlu0 %v5290_v53 }
0x58ad   :  { %5352 = vbcast.lane.b32.xlu0 %v5350_v57, 256 }
0x5924   :  { %v5292_v41 = vpop.xlane.xlu0 %5291 }
0x5925   :  { %v5297_v27 = vrot.slane %v5292_v41, %v9076_v4  ;;  %v5301_v42 = vrot.slane %v5292_v41, %v9079_v5 }
0x5927   :  { %v5304_v63 = vsub.f32 %v5270_v40, %v5297_v27  ;;  %v5305_v59 = vsub.f32 %v5271_v0, %v5301_v42 }
0x5928   :  { %v5353_v27 = vpop.permute.xlu0 %5352 }
0x5929   :  { %v5306_v9 = vmul.f32 1.442695, %v5304_v63  ;;  %v5308_v13 = vmul.f32 1.442695, %v5305_v59 }
0x592b   :  { %8616 = vpow2.f32 %v5306_v9 }
0x592c   :  { %8618 = vpow2.f32 %v5308_v13 }
0x5935   :  { %v8617_v20 = vpop.eup %8616 }
0x5936   :  { %5313 = vperm.xlu1 %8341, %v8617_v20   ;;  %v8619_v17 = vpop.eup %8618 }
0x593a   :  { %5316 = vperm.xlu1 %8341, %v8619_v17  }
0x59b5   :  { %v5314_v31 = vpop.permute.xlu1 %5313 }
0x59b6   :  { %v5321_v40 = vrot.slane %v5314_v31, %v9616_v25 }
0x59b9   :  { %v5317_v22 = vpop.permute.xlu1 %5316 }
0x59ba   :  { %v5325_v14 = vrot.slane %v5317_v22, %v9616_v25 }
0x59bc   :  { %v5326_v0 = vsel %vm443_vm3, %v5325_v14, %v5321_v40 }
0x59bd   :  { %v5328_v48 = vsel %vm2353_vm6, %v5326_v0, 0.0 }
0x59be   :  { %5329 = vadd.xlane.f32.xlu1 %v5328_v48 }
0x59cf   :  { %5359 = vbcast.lane.b32.xlu1 %v5357_v26, 256 }
0x5a4b   :  { %v5330_v8 = vpop.xlane.xlu1 %5329 }
0x5a4c   :  { %8620 = vlog2.f32 %v5330_v8 }
0x5a4f   :  { %v5360_v20 = vpop.permute.xlu1 %5359 }
0x5a56   :  { %v8621_v60 = vpop.eup %8620 }
0x5a57   :  { %v5332_v7 = vmul.f32 0.6931472, %v8621_v60 }
0x5a59   :  { %v5341_v53 = vrot.slane %v5332_v7, %v9079_v5  ;;  %v5337_v41 = vrot.slane %v5332_v7, %v9076_v4 }
0x5a5b   :  { %v10344_v42 = vsub.f32 %v5304_v63, %v5337_v41  ;;  %v10346_v9 = vsub.f32 %v5305_v59, %v5341_v53 }
0x5a5d   :  { %v5363_v13 = vadd.f32 %v5353_v27, %v10344_v42  ;;  %v5364_v17 = vadd.f32 %v5360_v20, %v10346_v9 }
0x5a5f   :  { %5368 = vperm.xlu0 %8340, %v5363_v13  }
0x5a63   :  { %5371 = vperm.xlu0 %8340, %v5364_v17  }
0x5ade   :  { %v5369_v35 = vpop.permute.xlu0 %5368 }
0x5adf   :  { %v5376_v31 = vrot.slane %v5369_v35, %v9616_v25 }
0x5ae2   :  { %v5372_v57 = vpop.permute.xlu0 %5371 }
0x5ae3   :  { %v5380_v22 = vrot.slane %v5372_v57, %v9616_v25 }
0x5ae5   :  { %v5381_v40 = vsel %vm443_vm3, %v5380_v22, %v5376_v31 }
0x5ae6   :  { %v5383_v63 = vsel %vm2353_vm6, %v5381_v40, -inf }
0x5ae7   :  { %5384 = vmax.xlane.f32.xlu0 %v5383_v63 }
0x5b74   :  { %v5385_v59 = vpop.xlane.xlu0 %5384 }
0x5b75   :  { %v5390_v14 = vrot.slane %v5385_v59, %v9076_v4  ;;  %v5394_v0 = vrot.slane %v5385_v59, %v9079_v5 }
0x5b77   :  { %vm5397_vm4 = vcmp.ge.f32.partialorder %v5363_v13, %v5390_v14  ;;  %vm5398_vm11 = vcmp.ge.f32.partialorder %v5364_v17, %v5394_v0 }
0x5b78   :  { %v5399_v48 = vsel %vm5397_vm4, %v9726_v19, 8  ;;  %v5400_v26 = vsel %vm5398_vm11, %v9726_v19, 8 }
0x5b79   :  { %5402 = vperm.xlu1 %8341, %v5399_v48  }
0x5b7d   :  { %5405 = vperm.xlu1 %8341, %v5400_v26  }
0x5bf8   :  { %v5403_v8 = vpop.permute.xlu1 %5402 }
0x5bf9   :  { %v5410_v7 = vrot.slane %v5403_v8, %v9616_v25 }
0x5bfc   :  { %v5406_v60 = vpop.permute.xlu1 %5405 }
0x5bfd   :  { %v5414_v53 = vrot.slane %v5406_v60, %v9616_v25 }
0x5bff   :  { %v5415_v41 = vsel %vm443_vm3, %v5414_v53, %v5410_v7 }
0x5c00   :  { %v5416_v27 = vsel %vm2353_vm6, %v5415_v41, 2147483647 }
0x5c01   :  { %v5418_v20 = vshra.s32 %v5416_v27, 16  ;;  %v5417_v13 = vand.u32 65535, %v5416_v27 }
0x5c03   :  { %v5420_v35 = vcvt.s32.f32 %v5418_v20  ;;  %v5419_v31 = vcvt.s32.f32 %v5417_v13 }
0x5c05   :  { %5421 = vmin.xlane.f32.xlu1 %v5420_v35 }
0x5c92   :  { %v5422_v57 = vpop.xlane.xlu1 %5421 }
0x5c93   :  { %vm5423_vm12 = vcmp.eq.f32.partialorder %v5420_v35, %v5422_v57  ;;  %v5428_v22 = vcvt.f32.s32 %v5422_v57 }
0x5c94   :  { %v5424_v17 = vsel %vm5423_vm12, %v5419_v31, inf }
0x5c95   :  { %5425 = vmin.xlane.f32.xlu0 %v5424_v17  ;;  %v5429_v63 = vshll.u32 %v5428_v22, 16 }
0x5d22   :  { %v5426_v40 = vpop.xlane.xlu0 %5425 }
0x5d23   :  { %v5427_v59 = vcvt.f32.s32 %v5426_v40 }
0x5d25   :  { %v10362_v14 = vadd.s32 %v5429_v63, %v5427_v59 }
0x5d27   :  { %v5455_v0 = vcvt.s32.f32 %v10362_v14  ;;  %v10368_v48 = vsel %vm7464_vm13, %v10203_v16, %v10362_v14  ;;  %vm5431_vm4 = vcmp.eq.s32.totalorder %v9585_v52, %v10362_v14 }
0x5d29   :  { %v5456_v26 = vmul.f32 %v10205_v24, %v5455_v0 }
0x5d2b   :  { %v5527_v8 = vadd.f32 %v10250_v30, %v5456_v26 }
0x5d2d   :  { %v5528_v60 = vadd.f32 %v10212_v10, %v5527_v8 }
0x5d2f   :  { %8622 = vtanh.f32 %v5528_v60  ;;  %v5529_v53 = vsub.f32 0.0, %v5528_v60 }
0x5d31   :  { %v5530_v41 = vmul.f32 1.442695, %v5529_v53 }
0x5d33   :  { %8624 = vpow2.f32 %v5530_v41 }
0x5d39   :  { %v8623_v7 = vpop.eup %8622 }
0x5d3a   :  { %5538 = vrot.lane.b32.xlu0 %v8623_v7, %s8894_s5 }
0x5d3d   :  { %v8625_v27 = vpop.eup %8624 }
0x5d3e   :  { %v5532_v20 = vadd.f32 1.0, %v8625_v27 }
0x5d40   :  { %8626 = vrcp.f32 %v5532_v20 }
0x5d4a   :  { %v8627_v35 = vpop.eup %8626 }
0x5d4b   :  { %v5536_v24 = vmul.f32 %v8627_v35, %v10218_v34 }
0x5dac   :  { %v5539_v13 = vpop.permute.xlu0 %5538 }
0x5dad   :  { %v5541_v16 = vmul.f32 %v8627_v35, %v5539_v13 }
0x5daf   :  { %5543 = vrot.lane.b32.xlu1 %v5541_v16, %s8895_s22 }
0x5e21   :  { %v5544_v30 = vpop.permute.xlu1 %5543 }
0x5e22   :  { %v10376_v57 = vadd.f32 %v5544_v30, %v5536_v24 }
0x5e24   :  { %8628 = vtanh.f32 %v10376_v57 }
0x5e2e   :  { %v8629_v10 = vpop.eup %8628 }
0x5e2f   :  { %5549 = vrot.lane.b32.xlu0 %v8629_v10, %s8894_s5  ;;  %v10421_v10 = vsel %vm5431_vm4, 0.0, %v10268_v11 }
0x5ea1   :  { %v5550_v31 = vpop.permute.xlu0 %5549 }
0x5ea2   :  { %v10380_v17 = vmul.f32 %v8627_v35, %v5550_v31  ;;  %v5675_v31 = vsub.f32 1.0, %v10421_v10 }
0x5ea4   :  { %5554 = vrot.lane.b32.xlu0 %v10380_v17, %s8895_s22 }
0x5f16   :  { %v10384_v22 = vpop.permute.xlu0 %5554 }
0x5f17   :  { %8038 = vmatmul.mubr.msk.f32.vlgmr.msra.gmra.mrb[26].mxu0 %vm161_vm1, %v10384_v22 }
0x5f18   :  { %8291 = vmatpush3.bf16.msra.mxu0 %v9460_v61  ;;  %8059 = vmatprep.mubr.msk.f32.mxu0 %vm8892_vm0, %v10941_v21 }
0x5f19   :  { %8292 = vmatprep.subr.bf16.mxu0 %v10959_v15 }
0x5f1c   :  { %8294 = vmatpush3.bf16.msra.mxu0 %v9470_v33 }
0x5f1d   :  { %8301 = vmatprep.subr.bf16.mxu0 %v10959_v15 }
0x5f1f   :  { %8060 = vmatmul.mubr.msk.f32.vlgmr.msra.gmra.mrb[28].mxu0 %vm161_vm1, %v10384_v22 }
0x5f20   :  { %8303 = vmatpush3.bf16.msra.mxu0 %v9638_v12  ;;  %8081 = vmatprep.mubr.msk.f32.mxu0 %vm8892_vm0, %v10941_v21 }
0x5f21   :  { %8304 = vmatprep.subr.bf16.mxu0 %v10959_v15 }
0x5f24   :  { %8306 = vmatpush3.bf16.msra.mxu0 %v9650_v50 }
0x5f25   :  { %8313 = vmatprep.subr.bf16.mxu0 %v10959_v15 }
0x5fea   :  { %v5624_v34 = vpop.f32.mrb[26].mxu0 }
0x5feb   :  { %v5635_v40 = vrot.slane %v5624_v34, %v9200_v55  ;;  %v8039_v63 = vpop.f32.mrb[27].mxu0  ;;  %v5676_v34 = vmul.f32 1e+10, %v5675_v31 }
0x5fed   :  { %v5636_v59 = vcombine.high %v5635_v40, %v5635_v40  ;;  %v5643_v0 = vrot.slane %v5635_v40, %v9200_v55  ;;  %v5688_v40 = vrot.slane %v5676_v34, %v9079_v5 }
0x5fef   :  { %v5650_v26 = vrot.slane %v5636_v59, %v9200_v55  ;;  %v5654_v8 = vrot.slane %v5643_v0, %v9076_v4 }
0x5ff1   :  { %v5658_v60 = vrot.slane %v5650_v26, %v9076_v4  ;;  %v5661_v7 = vadd.f32 %v5654_v8, %v9523_v45 }
0x5ff2   :  { %v10408_v53 = vpop.f32.mrb[28].mxu0 }
0x5ff3   :  { %v5662_v41 = vadd.f32 %v9521_v56, %v5658_v60  ;;  %8630 = vtanh.f32 %v5661_v7  ;;  %v8061_v27 = vpop.f32.mrb[29].mxu0 }
0x5ff5   :  { %8632 = vtanh.f32 %v5662_v41 }
0x5ffd   :  { %v8631_v20 = vpop.eup %8630 }
0x5ffe   :  { %v5665_v35 = vmul.f32 %v10256_v1, %v8631_v20 }
0x5fff   :  { %v8633_v13 = vpop.eup %8632 }
0x6000   :  { %v5667_v16 = vsel %vm161_vm1, %v5665_v35, 0.0  ;;  %v5666_v24 = vmul.f32 %v10256_v1, %v8633_v13  ;;  %v5681_v1 = vrot.slane %v5676_v34, %v9076_v4 }
0x6001   :  { %5668 = vadd.xlane.f32.xlu1 %v5667_v16 }
0x6002   :  { %v5670_v30 = vsel %vm161_vm1, %v5666_v24, 0.0 }
0x6003   :  { %5671 = vadd.xlane.f32.xlu0 %v5670_v30 }
0x6012   :  { %5690 = vbcast.lane.b32.xlu1 %v5688_v40, 256 }
0x6019   :  { %5683 = vbcast.lane.b32.xlu0 %v5681_v1, 256 }
0x608e   :  { %v5669_v63 = vpop.xlane.xlu1 %5668 }
0x608f   :  { %v5673_v8 = vadd.f32 %v5669_v63, %v9606_v49 }
0x6090   :  { %v5672_v59 = vpop.xlane.xlu0 %5671 }
0x6091   :  { %v5674_v0 = vadd.f32 %v5672_v59, %v9606_v49 }
0x6092   :  { %v10427_v26 = vpop.permute.xlu1 %5690 }
0x6093   :  { %v5695_v11 = vsub.f32 %v5674_v0, %v10427_v26 }
0x6094   :  { %v10431_v60 = vpop.permute.xlu0 %5683 }
0x6095   :  { %v5694_v7 = vsub.f32 %v5673_v8, %v10431_v60  ;;  %5702 = vperm.xlu0 %8340, %v5695_v11  }
0x6097   :  { %5699 = vperm.xlu1 %8341, %v5694_v7  }
0x6114   :  { %v5703_v41 = vpop.permute.xlu0 %5702 }
0x6115   :  { %v5711_v20 = vrot.slane %v5703_v41, %v9616_v25 }
0x6116   :  { %v5700_v27 = vpop.permute.xlu1 %5699 }
0x6117   :  { %v5707_v35 = vrot.slane %v5700_v27, %v9616_v25 }
0x6119   :  { %v5712_v13 = vsel %vm443_vm3, %v5711_v20, %v5707_v35 }
0x611a   :  { %v5714_v16 = vsel %vm2353_vm6, %v5712_v13, -inf }
0x611b   :  { %5715 = vmax.xlane.f32.xlu1 %v5714_v16 }
0x61a8   :  { %v5716_v24 = vpop.xlane.xlu1 %5715 }
0x61a9   :  { %v5721_v30 = vrot.slane %v5716_v24, %v9076_v4  ;;  %v5725_v31 = vrot.slane %v5716_v24, %v9079_v5 }
0x61ab   :  { %v5728_v34 = vsub.f32 %v5694_v7, %v5721_v30  ;;  %v5729_v40 = vsub.f32 %v5695_v11, %v5725_v31 }
0x61ad   :  { %v5730_v1 = vmul.f32 1.442695, %v5728_v34  ;;  %v5732_v63 = vmul.f32 1.442695, %v5729_v40  ;;  %v5796_v40 = vrot.slane %v10380_v17, 1 }
0x61af   :  { %8634 = vpow2.f32 %v5730_v1 }
0x61b0   :  { %8636 = vpow2.f32 %v5732_v63 }
0x61b9   :  { %v8635_v59 = vpop.eup %8634 }
0x61ba   :  { %5737 = vperm.xlu0 %8340, %v8635_v59   ;;  %v8637_v0 = vpop.eup %8636 }
0x61be   :  { %5740 = vperm.xlu0 %8340, %v8637_v0  }
0x6239   :  { %v5738_v8 = vpop.permute.xlu0 %5737 }
0x623a   :  { %v5745_v27 = vrot.slane %v5738_v8, %v9616_v25 }
0x623d   :  { %v5741_v41 = vpop.permute.xlu0 %5740 }
0x623e   :  { %v5749_v20 = vrot.slane %v5741_v41, %v9616_v25 }
0x6240   :  { %v5750_v35 = vsel %vm443_vm3, %v5749_v20, %v5745_v27 }
0x6241   :  { %v5752_v13 = vsel %vm2353_vm6, %v5750_v35, 0.0 }
0x6242   :  { %5753 = vadd.xlane.f32.xlu0 %v5752_v13 }
0x62cf   :  { %v5754_v11 = vpop.xlane.xlu0 %5753 }
0x62d0   :  { %v5759_v7 = vrot.slane %v5754_v11, %v9076_v4  ;;  %v5763_v16 = vrot.slane %v5754_v11, %v9079_v5 }
0x62d2   :  { %8638 = vrcp.f32 %v5759_v7 }
0x62d3   :  { %8640 = vrcp.f32 %v5763_v16 }
0x62dc   :  { %v8639_v24 = vpop.eup %8638 }
0x62dd   :  { %v8641_v30 = vpop.eup %8640  ;;  %v5767_v31 = vmul.f32 %v8639_v24, %v8635_v59 }
0x62de   :  { %v5769_v34 = vmul.f32 %v8641_v30, %v8637_v0 }
0x62df   :  { %5772 = vperm.xlu0 %8340, %v5767_v31  }
0x62e0   :  { %5777 = vperm.xlu1 %8341, %v5769_v34  }
0x62e4   :  { %5797 = vrot.lane.b32.xlu1 %v5796_v40, %s8895_s22 }
0x635e   :  { %v5773_v1 = vpop.permute.xlu0 %5772 }
0x635f   :  { %v5778_v63 = vpop.permute.xlu1 %5777  ;;  %v5780_v8 = vmul.f32 %v5773_v1, %v9501_v28 }
0x6360   :  { %v5781_v41 = vmul.f32 %v5778_v63, %v9506_v39 }
0x6361   :  { %v5782_v27 = vsel %vm161_vm1, %v5780_v8, 0.0 }
0x6362   :  { %v5789_v20 = vsel %vm161_vm1, %v5781_v41, 0.0  ;;  %v5783_v35 = vrot.slane %v5782_v27, 4  ;;  %v10960_v41 = vmov 0.0  }
0x6363   :  { %v5790_v13 = vrot.slane %v5789_v20, 4  ;;  %v5798_v40 = vpop.permute.xlu1 %5797 }
0x6364   :  { %v5784_v59 = vadd.f32 %v5783_v35, %v5782_v27 }
0x6365   :  { %v5791_v0 = vadd.f32 %v5790_v13, %v5789_v20 }
0x6366   :  { %v5785_v11 = vrot.slane %v5784_v59, 2 }
0x6367   :  { %v5792_v7 = vrot.slane %v5791_v0, 2 }
0x6368   :  { %v5786_v16 = vadd.f32 %v5785_v11, %v5784_v59 }
0x6369   :  { %v5793_v17 = vadd.f32 %v5792_v7, %v5791_v0 }
0x636a   :  { %v5787_v24 = vrot.slane %v5786_v16, 1 }
0x636b   :  { %v5794_v30 = vrot.slane %v5793_v17, 1 }
0x636c   :  { %v5788_v31 = vadd.f32 %v5787_v24, %v5786_v16 }
0x636d   :  { %v5795_v34 = vadd.f32 %v5794_v30, %v5793_v17 }
0x636e   :  { %v5801_v63 = vadd.f32 %v5788_v31, %v10384_v22 }
0x636f   :  { %v5802_v1 = vadd.f32 %v5798_v40, %v5795_v34 }
0x6371   :  { %v5805_v21 = vrot.slane %v5802_v1, 7 }
0x6373   :  { %v5806_v8 = vsel %vm443_vm3, %v5805_v21, %v5801_v63 }
0x6374   :  { %8049 = vmatmul.mubr.msk.f32.vlgmr.msra.gmra.mrb[26].mxu1 %vm161_vm1, %v5806_v8 }
0x6375   :  { %8297 = vmatpush3.bf16.msra.mxu1 %v9541_v6  ;;  %8070 = vmatprep.mubr.msk.f32.mxu1 %vm8892_vm0, %v10960_v41 }
0x6376   :  { %8298 = vmatprep.subr.bf16.mxu1 %v10959_v15 }
0x6379   :  { %8300 = vmatpush3.bf16.msra.mxu1 %v9547_v62 }
0x637a   :  { %8307 = vmatprep.subr.bf16.mxu1 %v10959_v15 }
0x6447   :  { %v5875_v27 = vpop.f32.mrb[26].mxu1 }
0x6448   :  { %v5886_v20 = vrot.slane %v5875_v27, %v9200_v55  ;;  %v8050_v35 = vpop.f32.mrb[27].mxu1 }
0x644a   :  { %v5887_v22 = vcombine.high %v5886_v20, %v5886_v20  ;;  %v5894_v21 = vrot.slane %v5886_v20, %v9200_v55 }
0x644c   :  { %v5901_v13 = vrot.slane %v5887_v22, %v9200_v55  ;;  %v5905_v59 = vrot.slane %v5894_v21, %v9076_v4 }
0x644e   :  { %5910 = vrot.lane.b32.xlu1 %v5905_v59, %s8895_s22  ;;  %v5909_v0 = vrot.slane %v5901_v13, %v9076_v4 }
0x6452   :  { %5912 = vrot.lane.b32.xlu1 %v5909_v0, %s8895_s22 }
0x64c0   :  { %v5911_v11 = vpop.permute.xlu1 %5910 }
0x64c1   :  { %v5916_v7 = vadd.f32 %v5911_v11, %v9523_v45 }
0x64c3   :  { %8642 = vtanh.f32 %v5916_v7 }
0x64c4   :  { %v5913_v16 = vpop.permute.xlu1 %5912 }
0x64c5   :  { %v5917_v17 = vadd.f32 %v9521_v56, %v5913_v16 }
0x64c7   :  { %8644 = vtanh.f32 %v5917_v17 }
0x64cd   :  { %v8643_v24 = vpop.eup %8642 }
0x64ce   :  { %v5920_v30 = vmul.f32 %v8643_v24, %v9682_v23 }
0x64d0   :  { %5924 = vrot.lane.b32.xlu0 %v5920_v30, %s8897_s24 }
0x64d1   :  { %v8645_v31 = vpop.eup %8644 }
0x64d2   :  { %v5921_v34 = vmul.f32 %v8645_v31, %v9682_v23 }
0x64d4   :  { %5926 = vrot.lane.b32.xlu1 %v5921_v34, %s8897_s24 }
0x6542   :  { %v5925_v40 = vpop.permute.xlu0 %5924 }
0x6543   :  { %v5930_v1 = vsel %vm161_vm1, %v5925_v40, 0.0 }
0x6544   :  { %5931 = vadd.xlane.f32.xlu0 %v5930_v1 }
0x6546   :  { %v5927_v63 = vpop.permute.xlu1 %5926 }
0x6547   :  { %v5933_v8 = vsel %vm161_vm1, %v5927_v63, 0.0 }
0x6548   :  { %5934 = vadd.xlane.f32.xlu1 %v5933_v8  ;;  %v135_v8 = vld [vmem:[%s10958_s12 + $0xa] sm:$0x3] }
0x65d1   :  { %v5932_v27 = vpop.xlane.xlu0 %5931 }
0x65d2   :  { %v5936_v20 = vadd.f32 %v5932_v27, %v9690_v3  ;;  %v6018_v27 = vrot.slane %v135_v8, %v9076_v4 }
0x65d4   :  { %v5938_v35 = vsub.f32 %v5936_v20, %v10431_v60 }
0x65d5   :  { %v5935_v22 = vpop.xlane.xlu1 %5934 }
0x65d6   :  { %v5937_v21 = vadd.f32 %v5935_v22, %v9690_v3  ;;  %5943 = vperm.xlu0 %8340, %v5938_v35  }
0x65d8   :  { %v5939_v13 = vsub.f32 %v5937_v21, %v10427_v26 }
0x65da   :  { %5946 = vperm.xlu1 %8341, %v5939_v13  }
0x6655   :  { %v5944_v59 = vpop.permute.xlu0 %5943 }
0x6656   :  { %v5951_v11 = vrot.slane %v5944_v59, %v9616_v25 }
0x6659   :  { %v5947_v0 = vpop.permute.xlu1 %5946 }
0x665a   :  { %v5955_v7 = vrot.slane %v5947_v0, %v9616_v25  ;;  %v6025_v0 = vrot.slane %v135_v8, %v9079_v5 }
0x665c   :  { %v5956_v16 = vsel %vm443_vm3, %v5955_v7, %v5951_v11 }
0x665d   :  { %v5958_v17 = vsel %vm2353_vm6, %v5956_v16, -inf }
0x665e   :  { %5959 = vmax.xlane.f32.xlu0 %v5958_v17 }
0x6674   :  { %6020 = vbcast.lane.b32.xlu0 %v6018_v27, 256 }
0x66eb   :  { %v5960_v24 = vpop.xlane.xlu0 %5959 }
0x66ec   :  { %v5965_v60 = vrot.slane %v5960_v24, %v9076_v4  ;;  %v5969_v30 = vrot.slane %v5960_v24, %v9079_v5 }
0x66ee   :  { %v5972_v31 = vsub.f32 %v5938_v35, %v5965_v60  ;;  %v5973_v34 = vsub.f32 %v5939_v13, %v5969_v30 }
0x66ef   :  { %v6021_v60 = vpop.permute.xlu0 %6020 }
0x66f0   :  { %v5974_v26 = vmul.f32 1.442695, %v5972_v31  ;;  %v5976_v40 = vmul.f32 1.442695, %v5973_v34 }
0x66f2   :  { %8646 = vpow2.f32 %v5974_v26 }
0x66f3   :  { %8648 = vpow2.f32 %v5976_v40 }
0x66fc   :  { %v8647_v1 = vpop.eup %8646 }
0x66fd   :  { %5981 = vperm.xlu1 %8341, %v8647_v1   ;;  %v8649_v63 = vpop.eup %8648 }
0x6701   :  { %5984 = vperm.xlu1 %8341, %v8649_v63  }
0x677c   :  { %v5982_v20 = vpop.permute.xlu1 %5981 }
0x677d   :  { %v5989_v35 = vrot.slane %v5982_v20, %v9616_v25 }
0x6780   :  { %v5985_v22 = vpop.permute.xlu1 %5984 }
0x6781   :  { %v5993_v21 = vrot.slane %v5985_v22, %v9616_v25 }
0x6783   :  { %v5994_v13 = vsel %vm443_vm3, %v5993_v21, %v5989_v35 }
0x6784   :  { %v5996_v59 = vsel %vm2353_vm6, %v5994_v13, 0.0 }
0x6785   :  { %5997 = vadd.xlane.f32.xlu1 %v5996_v59 }
0x6796   :  { %6027 = vbcast.lane.b32.xlu1 %v6025_v0, 256 }
0x6812   :  { %v5998_v11 = vpop.xlane.xlu1 %5997 }
0x6813   :  { %8650 = vlog2.f32 %v5998_v11 }
0x6816   :  { %v6028_v1 = vpop.permute.xlu1 %6027 }
0x681d   :  { %v8651_v7 = vpop.eup %8650 }
0x681e   :  { %v6000_v16 = vmul.f32 0.6931472, %v8651_v7 }
0x6820   :  { %v6009_v17 = vrot.slane %v6000_v16, %v9079_v5  ;;  %v6005_v24 = vrot.slane %v6000_v16, %v9076_v4 }
0x6822   :  { %v10497_v30 = vsub.f32 %v5972_v31, %v6005_v24  ;;  %v10499_v26 = vsub.f32 %v5973_v34, %v6009_v17 }
0x6824   :  { %v6031_v40 = vadd.f32 %v6021_v60, %v10497_v30  ;;  %v6032_v63 = vadd.f32 %v6028_v1, %v10499_v26 }
0x6826   :  { %6036 = vperm.xlu0 %8340, %v6031_v40  }
0x682a   :  { %6039 = vperm.xlu0 %8340, %v6032_v63  }
0x68a5   :  { %v6037_v8 = vpop.permute.xlu0 %6036 }
0x68a6   :  { %v6044_v20 = vrot.slane %v6037_v8, %v9616_v25 }
0x68a9   :  { %v6040_v27 = vpop.permute.xlu0 %6039 }
0x68aa   :  { %v6048_v22 = vrot.slane %v6040_v27, %v9616_v25 }
0x68ac   :  { %v6049_v35 = vsel %vm443_vm3, %v6048_v22, %v6044_v20 }
0x68ad   :  { %v6051_v31 = vsel %vm2353_vm6, %v6049_v35, -inf }
0x68ae   :  { %6052 = vmax.xlane.f32.xlu0 %v6051_v31 }
0x693b   :  { %v6053_v34 = vpop.xlane.xlu0 %6052 }
0x693c   :  { %v6058_v21 = vrot.slane %v6053_v34, %v9076_v4  ;;  %v6062_v13 = vrot.slane %v6053_v34, %v9079_v5 }
0x693e   :  { %vm6065_vm11 = vcmp.ge.f32.partialorder %v6031_v40, %v6058_v21  ;;  %vm6066_vm12 = vcmp.ge.f32.partialorder %v6032_v63, %v6062_v13 }
0x693f   :  { %v6067_v59 = vsel %vm6065_vm11, %v9726_v19, 8  ;;  %v6068_v0 = vsel %vm6066_vm12, %v9726_v19, 8  ;;  %vm10946_vm12 = vcmask 39936  }
0x6940   :  { %6070 = vperm.xlu1 %8341, %v6067_v59  }
0x6944   :  { %6073 = vperm.xlu1 %8341, %v6068_v0   ;;  %v10523_v0 = vld [vmem:[#allocation12] ss:$0 sm:$0xff] }
0x69bf   :  { %v6071_v11 = vpop.permute.xlu1 %6070 }
0x69c0   :  { %v6078_v16 = vrot.slane %v6071_v11, %v9616_v25 }
0x69c3   :  { %v6074_v7 = vpop.permute.xlu1 %6073 }
0x69c4   :  { %v6082_v17 = vrot.slane %v6074_v7, %v9616_v25 }
0x69c6   :  { %v6083_v24 = vsel %vm443_vm3, %v6082_v17, %v6078_v16  ;;  %v10530_v16 = vld [vmem:[%s10924_s11] ss:$0 sm:$0xff] }
0x69c7   :  { %v6084_v60 = vsel %vm2353_vm6, %v6083_v24, 2147483647 }
0x69c8   :  { %v6086_v1 = vshra.s32 %v6084_v60, 16  ;;  %v6085_v40 = vand.u32 65535, %v6084_v60 }
0x69ca   :  { %v6088_v8 = vcvt.s32.f32 %v6086_v1  ;;  %v6087_v20 = vcvt.s32.f32 %v6085_v40 }
0x69cc   :  { %6089 = vmin.xlane.f32.xlu1 %v6088_v8 }
0x6a59   :  { %v6090_v27 = vpop.xlane.xlu1 %6089 }
0x6a5a   :  { %vm6091_vm11 = vcmp.eq.f32.partialorder %v6088_v8, %v6090_v27  ;;  %v6096_v22 = vcvt.f32.s32 %v6090_v27 }
0x6a5b   :  { %v6092_v63 = vsel %vm6091_vm11, %v6087_v20, inf }
0x6a5c   :  { %6093 = vmin.xlane.f32.xlu0 %v6092_v63  ;;  %v6097_v31 = vshll.u32 %v6096_v22, 16 }
0x6ae9   :  { %v6094_v35 = vpop.xlane.xlu0 %6093 }
0x6aea   :  { %v6095_v34 = vcvt.f32.s32 %v6094_v35 }
0x6aec   :  { %v10515_v21 = vadd.s32 %v6097_v31, %v6095_v34 }
0x6aee   :  { %10961 = vst [vmem:[#allocation23_spill] sm:$0xff] %v10515_v21  ;;  %v6123_v13 = vcvt.s32.f32 %v10515_v21  ;;  %v10521_v59 = vsel %vm10946_vm12, %v10368_v48, %v10515_v21  ;;  %vm6099_vm11 = vcmp.eq.s32.totalorder %v9585_v52, %v10515_v21 }
0x6af0   :  { %v6124_v11 = vmul.f32 %v10523_v0, %v6123_v13 }
0x6af2   :  { %v6195_v7 = vadd.f32 %v10408_v53, %v6124_v11 }
0x6af4   :  { %v6196_v17 = vadd.f32 %v10530_v16, %v6195_v7 }
0x6af6   :  { %8652 = vtanh.f32 %v6196_v17  ;;  %v6197_v60 = vsub.f32 0.0, %v6196_v17 }
0x6af8   :  { %v6198_v48 = vmul.f32 1.442695, %v6197_v60 }
0x6afa   :  { %8654 = vpow2.f32 %v6198_v48 }
0x6b00   :  { %v8653_v24 = vpop.eup %8652 }
0x6b01   :  { %6206 = vrot.lane.b32.xlu0 %v8653_v24, %s8894_s5 }
0x6b04   :  { %v8655_v1 = vpop.eup %8654 }
0x6b05   :  { %v6200_v8 = vadd.f32 1.0, %v8655_v1 }
0x6b07   :  { %8656 = vrcp.f32 %v6200_v8 }
0x6b11   :  { %v8657_v40 = vpop.eup %8656 }
0x6b12   :  { %v6204_v20 = vmul.f32 %v8657_v40, %v10376_v57 }
0x6b73   :  { %v6207_v27 = vpop.permute.xlu0 %6206 }
0x6b74   :  { %v6209_v53 = vmul.f32 %v8657_v40, %v6207_v27 }
0x6b76   :  { %6211 = vrot.lane.b32.xlu1 %v6209_v53, %s8895_s22 }
0x6be8   :  { %v6212_v63 = vpop.permute.xlu1 %6211 }
0x6be9   :  { %v10536_v22 = vadd.f32 %v6212_v63, %v6204_v20 }
0x6beb   :  { %8658 = vtanh.f32 %v10536_v22 }
0x6bf5   :  { %v8659_v35 = vpop.eup %8658 }
0x6bf6   :  { %6217 = vrot.lane.b32.xlu0 %v8659_v35, %s8894_s5 }
0x6c68   :  { %v6218_v31 = vpop.permute.xlu0 %6217 }
0x6c69   :  { %v10540_v34 = vmul.f32 %v8657_v40, %v6218_v31  ;;  %v10573_v40 = vld [vmem:[%s10927_s14] ss:$0 sm:$0xff]  ;;  %v10585_v31 = vsel %vm6099_vm11, 0.0, %v10421_v10 }
0x6c6b   :  { %6222 = vrot.lane.b32.xlu0 %v10540_v34, %s8895_s22 }
0x6cdd   :  { %v10544_v13 = vpop.permute.xlu0 %6222 }
0x6cde   :  { %8071 = vmatmul.mubr.msk.f32.vlgmr.msra.gmra.mrb[28].mxu1 %vm161_vm1, %v10544_v13 }
0x6cdf   :  { %8309 = vmatpush3.bf16.msra.mxu1 %v9460_v61  ;;  %8092 = vmatprep.mubr.msk.f32.mxu1 %vm8892_vm0, %v10960_v41 }
0x6ce0   :  { %8310 = vmatprep.subr.bf16.mxu1 %v10959_v15 }
0x6ce3   :  { %8312 = vmatpush3.bf16.msra.mxu1 %v9470_v33 }
0x6ce4   :  { %8319 = vmatprep.subr.bf16.mxu1 %v10959_v15 }
0x6ce6   :  { %8093 = vmatmul.mubr.msk.f32.vlgmr.msra.gmra.mrb[30].mxu1 %vm161_vm1, %v10544_v13 }
0x6ce7   :  { %8321 = vmatpush3.bf16.msra.mxu1 %v9638_v12  ;;  %8114 = vmatprep.mubr.msk.f32.mxu1 %vm8892_vm0, %v10960_v41 }
0x6ce8   :  { %8322 = vmatprep.subr.bf16.mxu1 %v10959_v15 }
0x6ceb   :  { %8324 = vmatpush3.bf16.msra.mxu1 %v9650_v50 }
0x6db1   :  { %v6292_v61 = vpop.f32.mrb[28].mxu1 }
0x6db2   :  { %v6303_v57 = vrot.slane %v6292_v61, %v9200_v55  ;;  %v8072_v11 = vpop.f32.mrb[29].mxu1  ;;  %v6343_v61 = vsub.f32 1.0, %v10585_v31 }
0x6db4   :  { %v6304_v7 = vcombine.high %v6303_v57, %v6303_v57  ;;  %v6311_v33 = vrot.slane %v6303_v57, %v9200_v55  ;;  %v6344_v57 = vmul.f32 1e+10, %v6343_v61 }
0x6db6   :  { %v6318_v17 = vrot.slane %v6304_v7, %v9200_v55  ;;  %v6322_v24 = vrot.slane %v6311_v33, %v9076_v4  ;;  %v6356_v11 = vrot.slane %v6344_v57, %v9079_v5  ;;  %v6349_v7 = vrot.slane %v6344_v57, %v9076_v4 }
0x6db8   :  { %v6326_v12 = vrot.slane %v6318_v17, %v9076_v4  ;;  %v6329_v60 = vadd.f32 %v6322_v24, %v9523_v45 }
0x6db9   :  { %v10567_v48 = vpop.f32.mrb[30].mxu1 }
0x6dba   :  { %v6330_v1 = vadd.f32 %v9521_v56, %v6326_v12  ;;  %8660 = vtanh.f32 %v6329_v60  ;;  %v8094_v50 = vpop.f32.mrb[31].mxu1 }
0x6dbc   :  { %8662 = vtanh.f32 %v6330_v1 }
0x6dc4   :  { %v8661_v8 = vpop.eup %8660 }
0x6dc5   :  { %v6333_v27 = vmul.f32 %v10573_v40, %v8661_v8 }
0x6dc6   :  { %v8663_v53 = vpop.eup %8662 }
0x6dc7   :  { %v6335_v20 = vsel %vm161_vm1, %v6333_v27, 0.0  ;;  %v6334_v63 = vmul.f32 %v10573_v40, %v8663_v53 }
0x6dc8   :  { %6336 = vadd.xlane.f32.xlu1 %v6335_v20 }
0x6dc9   :  { %v6338_v35 = vsel %vm161_vm1, %v6334_v63, 0.0 }
0x6dca   :  { %6339 = vadd.xlane.f32.xlu0 %v6338_v35 }
0x6dd9   :  { %6358 = vbcast.lane.b32.xlu1 %v6356_v11, 256 }
0x6de0   :  { %6351 = vbcast.lane.b32.xlu0 %v6349_v7, 256 }
0x6e55   :  { %v6337_v33 = vpop.xlane.xlu1 %6336 }
0x6e56   :  { %v6341_v60 = vadd.f32 %v6337_v33, %v9606_v49 }
0x6e57   :  { %v6340_v17 = vpop.xlane.xlu0 %6339 }
0x6e58   :  { %v6342_v24 = vadd.f32 %v6340_v17, %v9606_v49 }
0x6e59   :  { %v10591_v12 = vpop.permute.xlu1 %6358 }
0x6e5a   :  { %v6363_v10 = vsub.f32 %v6342_v24, %v10591_v12 }
0x6e5b   :  { %v10595_v1 = vpop.permute.xlu0 %6351 }
0x6e5c   :  { %v6362_v50 = vsub.f32 %v6341_v60, %v10595_v1  ;;  %6370 = vperm.xlu0 %8340, %v6363_v10  }
0x6e5e   :  { %6367 = vperm.xlu1 %8341, %v6362_v50  }
0x6edb   :  { %v6371_v8 = vpop.permute.xlu0 %6370 }
0x6edc   :  { %v6379_v53 = vrot.slane %v6371_v8, %v9616_v25 }
0x6edd   :  { %v6368_v27 = vpop.permute.xlu1 %6367 }
0x6ede   :  { %v6375_v20 = vrot.slane %v6368_v27, %v9616_v25 }
0x6ee0   :  { %v6380_v63 = vsel %vm443_vm3, %v6379_v53, %v6375_v20 }
0x6ee1   :  { %v6382_v35 = vsel %vm2353_vm6, %v6380_v63, -inf }
0x6ee2   :  { %6383 = vmax.xlane.f32.xlu1 %v6382_v35 }
0x6f6f   :  { %v6384_v61 = vpop.xlane.xlu1 %6383 }
0x6f70   :  { %v6389_v57 = vrot.slane %v6384_v61, %v9076_v4  ;;  %v6393_v11 = vrot.slane %v6384_v61, %v9079_v5 }
0x6f72   :  { %v6396_v7 = vsub.f32 %v6362_v50, %v6389_v57  ;;  %v6397_v33 = vsub.f32 %v6363_v10, %v6393_v11 }
0x6f74   :  { %v6398_v17 = vmul.f32 1.442695, %v6396_v7  ;;  %v6400_v24 = vmul.f32 1.442695, %v6397_v33 }
0x6f76   :  { %8664 = vpow2.f32 %v6398_v17 }
0x6f77   :  { %8666 = vpow2.f32 %v6400_v24  ;;  %v6464_v24 = vrot.slane %v10540_v34, 1 }
0x6f80   :  { %v8665_v60 = vpop.eup %8664 }
0x6f81   :  { %6405 = vperm.xlu0 %8340, %v8665_v60   ;;  %v8667_v8 = vpop.eup %8666 }
0x6f85   :  { %6408 = vperm.xlu0 %8340, %v8667_v8  }
0x7000   :  { %v6406_v27 = vpop.permute.xlu0 %6405 }
0x7001   :  { %v6413_v20 = vrot.slane %v6406_v27, %v9616_v25 }
0x7004   :  { %v6409_v53 = vpop.permute.xlu0 %6408 }
0x7005   :  { %v6417_v63 = vrot.slane %v6409_v53, %v9616_v25 }
0x7007   :  { %v6418_v35 = vsel %vm443_vm3, %v6417_v63, %v6413_v20 }
0x7008   :  { %v6420_v61 = vsel %vm2353_vm6, %v6418_v35, 0.0 }
0x7009   :  { %6421 = vadd.xlane.f32.xlu0 %v6420_v61 }
0x7096   :  { %v6422_v10 = vpop.xlane.xlu0 %6421 }
0x7097   :  { %v6427_v50 = vrot.slane %v6422_v10, %v9076_v4  ;;  %v6431_v57 = vrot.slane %v6422_v10, %v9079_v5 }
0x7099   :  { %8668 = vrcp.f32 %v6427_v50 }
0x709a   :  { %8670 = vrcp.f32 %v6431_v57 }
0x70a3   :  { %v8669_v11 = vpop.eup %8668 }
0x70a4   :  { %v8671_v7 = vpop.eup %8670  ;;  %v6435_v33 = vmul.f32 %v8669_v11, %v8665_v60 }
0x70a5   :  { %v6437_v17 = vmul.f32 %v8671_v7, %v8667_v8 }
0x70a6   :  { %6440 = vperm.xlu0 %8340, %v6435_v33  }
0x70a7   :  { %6445 = vperm.xlu1 %8341, %v6437_v17  }
0x70ab   :  { %6465 = vrot.lane.b32.xlu1 %v6464_v24, %s8895_s22 }
0x7125   :  { %v6441_v27 = vpop.permute.xlu0 %6440 }
0x7126   :  { %v6446_v53 = vpop.permute.xlu1 %6445  ;;  %v6448_v20 = vmul.f32 %v6441_v27, %v9501_v28 }
0x7127   :  { %v6449_v63 = vmul.f32 %v6446_v53, %v9506_v39 }
0x7128   :  { %v6450_v35 = vsel %vm161_vm1, %v6448_v20, 0.0 }
0x7129   :  { %v6457_v61 = vsel %vm161_vm1, %v6449_v63, 0.0  ;;  %v6451_v10 = vrot.slane %v6450_v35, 4 }
0x712a   :  { %v6458_v50 = vrot.slane %v6457_v61, 4  ;;  %v6466_v21 = vpop.permute.xlu1 %6465 }
0x712b   :  { %v6452_v60 = vadd.f32 %v6451_v10, %v6450_v35 }
0x712c   :  { %v6459_v8 = vadd.f32 %v6458_v50, %v6457_v61 }
0x712d   :  { %v6453_v57 = vrot.slane %v6452_v60, 2 }
0x712e   :  { %v6460_v11 = vrot.slane %v6459_v8, 2 }
0x712f   :  { %v6454_v7 = vadd.f32 %v6453_v57, %v6452_v60 }
0x7130   :  { %v6461_v34 = vadd.f32 %v6460_v11, %v6459_v8 }
0x7131   :  { %v6455_v33 = vrot.slane %v6454_v7, 1 }
0x7132   :  { %v6462_v17 = vrot.slane %v6461_v34, 1 }
0x7133   :  { %v6456_v24 = vadd.f32 %v6455_v33, %v6454_v7 }
0x7134   :  { %v6463_v2 = vadd.f32 %v6462_v17, %v6461_v34 }
0x7135   :  { %v6469_v53 = vadd.f32 %v6456_v24, %v10544_v13 }
0x7136   :  { %v6470_v27 = vadd.f32 %v6466_v21, %v6463_v2 }
0x7138   :  { %v6473_v58 = vrot.slane %v6470_v27, 7 }
0x713a   :  { %v6474_v20 = vsel %vm443_vm3, %v6473_v58, %v6469_v53 }
0x713b   :  { %8082 = vmatmul.mubr.msk.f32.vlgmr.msra.gmra.mrb[30].mxu0 %vm161_vm1, %v6474_v20 }
0x713c   :  { %8315 = vmatpush3.bf16.msra.mxu0 %v9541_v6  ;;  %8103 = vmatprep.mubr.msk.f32.mxu0 %vm8892_vm0, %v10960_v41 }
0x713d   :  { %8316 = vmatprep.subr.bf16.mxu0 %v10959_v15 }
0x7140   :  { %8318 = vmatpush3.bf16.msra.mxu0 %v9547_v62 }
0x720e   :  { %v6543_v63 = vpop.f32.mrb[30].mxu0 }
0x720f   :  { %v6554_v35 = vrot.slane %v6543_v63, %v9200_v55  ;;  %v8083_v2 = vpop.f32.mrb[31].mxu0 }
0x7211   :  { %v6555_v21 = vcombine.high %v6554_v35, %v6554_v35  ;;  %v6562_v13 = vrot.slane %v6554_v35, %v9200_v55 }
0x7213   :  { %v6569_v58 = vrot.slane %v6555_v21, %v9200_v55  ;;  %v6573_v61 = vrot.slane %v6562_v13, %v9076_v4 }
0x7215   :  { %6578 = vrot.lane.b32.xlu1 %v6573_v61, %s8895_s22  ;;  %v6577_v6 = vrot.slane %v6569_v58, %v9076_v4 }
0x7219   :  { %6580 = vrot.lane.b32.xlu1 %v6577_v6, %s8895_s22 }
0x7287   :  { %v6579_v15 = vpop.permute.xlu1 %6578 }
0x7288   :  { %v6584_v62 = vadd.f32 %v6579_v15, %v9523_v45 }
0x728a   :  { %8672 = vtanh.f32 %v6584_v62 }
0x728b   :  { %v6581_v41 = vpop.permute.xlu1 %6580 }
0x728c   :  { %v6585_v10 = vadd.f32 %v9521_v56, %v6581_v41 }
0x728e   :  { %8674 = vtanh.f32 %v6585_v10 }
0x7294   :  { %v8673_v50 = vpop.eup %8672 }
0x7295   :  { %v6588_v60 = vmul.f32 %v8673_v50, %v9682_v23 }
0x7297   :  { %6592 = vrot.lane.b32.xlu0 %v6588_v60, %s8897_s24 }
0x7298   :  { %v8675_v8 = vpop.eup %8674 }
0x7299   :  { %v6589_v57 = vmul.f32 %v8675_v8, %v9682_v23  ;;  %v136_v8 = vld [vmem:[%s10958_s12 + $0xc] sm:$0x3] }
0x729b   :  { %6594 = vrot.lane.b32.xlu1 %v6589_v57, %s8897_s24  ;;  %v6686_v57 = vrot.slane %v136_v8, %v9076_v4 }
0x7309   :  { %v6593_v11 = vpop.permute.xlu0 %6592 }
0x730a   :  { %v6598_v7 = vsel %vm161_vm1, %v6593_v11, 0.0 }
0x730b   :  { %6599 = vadd.xlane.f32.xlu0 %v6598_v7 }
0x730d   :  { %v6595_v34 = vpop.permute.xlu1 %6594 }
0x730e   :  { %v6601_v33 = vsel %vm161_vm1, %v6595_v34, 0.0 }
0x730f   :  { %6602 = vadd.xlane.f32.xlu1 %v6601_v33 }
0x7398   :  { %v6600_v17 = vpop.xlane.xlu0 %6599 }
0x7399   :  { %v6604_v24 = vadd.f32 %v6600_v17, %v9690_v3 }
0x739b   :  { %v6606_v27 = vsub.f32 %v6604_v24, %v10595_v1 }
0x739c   :  { %v6603_v53 = vpop.xlane.xlu1 %6602 }
0x739d   :  { %v6605_v20 = vadd.f32 %v6603_v53, %v9690_v3  ;;  %6611 = vperm.xlu0 %8340, %v6606_v27  }
0x739f   :  { %v6607_v63 = vsub.f32 %v6605_v20, %v10591_v12 }
0x73a1   :  { %6614 = vperm.xlu1 %8341, %v6607_v63  }
0x741c   :  { %v6612_v35 = vpop.permute.xlu0 %6611 }
0x741d   :  { %v6619_v21 = vrot.slane %v6612_v35, %v9616_v25 }
0x7420   :  { %v6615_v2 = vpop.permute.xlu1 %6614 }
0x7421   :  { %v6623_v13 = vrot.slane %v6615_v2, %v9616_v25 }
0x7423   :  { %v6624_v58 = vsel %vm443_vm3, %v6623_v13, %v6619_v21 }
0x7424   :  { %v6626_v61 = vsel %vm2353_vm6, %v6624_v58, -inf }
0x7425   :  { %6627 = vmax.xlane.f32.xlu0 %v6626_v61 }
0x743b   :  { %6688 = vbcast.lane.b32.xlu0 %v6686_v57, 256 }
0x74b2   :  { %v6628_v6 = vpop.xlane.xlu0 %6627 }
0x74b3   :  { %v6633_v1 = vrot.slane %v6628_v6, %v9076_v4  ;;  %v6637_v15 = vrot.slane %v6628_v6, %v9079_v5 }
0x74b5   :  { %v6640_v62 = vsub.f32 %v6606_v27, %v6633_v1  ;;  %v6641_v41 = vsub.f32 %v6607_v63, %v6637_v15  ;;  %v6693_v27 = vrot.slane %v136_v8, %v9079_v5 }
0x74b6   :  { %v6689_v21 = vpop.permute.xlu0 %6688 }
0x74b7   :  { %v6642_v12 = vmul.f32 1.442695, %v6640_v62  ;;  %v6644_v10 = vmul.f32 1.442695, %v6641_v41 }
0x74b9   :  { %8676 = vpow2.f32 %v6642_v12 }
0x74ba   :  { %8678 = vpow2.f32 %v6644_v10 }
0x74c3   :  { %v8677_v50 = vpop.eup %8676 }
0x74c4   :  { %6649 = vperm.xlu1 %8341, %v8677_v50   ;;  %v8679_v60 = vpop.eup %8678 }
0x74c8   :  { %6652 = vperm.xlu1 %8341, %v8679_v60  }
0x7543   :  { %v6650_v11 = vpop.permute.xlu1 %6649 }
0x7544   :  { %v6657_v34 = vrot.slane %v6650_v11, %v9616_v25 }
0x7547   :  { %v6653_v7 = vpop.permute.xlu1 %6652 }
0x7548   :  { %v6661_v33 = vrot.slane %v6653_v7, %v9616_v25 }
0x754a   :  { %v6662_v17 = vsel %vm443_vm3, %v6661_v33, %v6657_v34 }
0x754b   :  { %v6664_v24 = vsel %vm2353_vm6, %v6662_v17, 0.0 }
0x754c   :  { %6665 = vadd.xlane.f32.xlu1 %v6664_v24 }
0x755d   :  { %6695 = vbcast.lane.b32.xlu1 %v6693_v27, 256 }
0x75d9   :  { %v6666_v53 = vpop.xlane.xlu1 %6665 }
0x75da   :  { %8680 = vlog2.f32 %v6666_v53 }
0x75dd   :  { %v6696_v6 = vpop.permute.xlu1 %6695 }
0x75e4   :  { %v8681_v20 = vpop.eup %8680 }
0x75e5   :  { %v6668_v63 = vmul.f32 0.6931472, %v8681_v20 }
0x75e7   :  { %v6677_v35 = vrot.slane %v6668_v63, %v9079_v5  ;;  %v6673_v2 = vrot.slane %v6668_v63, %v9076_v4 }
0x75e9   :  { %v10660_v13 = vsub.f32 %v6640_v62, %v6673_v2  ;;  %v10662_v58 = vsub.f32 %v6641_v41, %v6677_v35 }
0x75eb   :  { %v6699_v61 = vadd.f32 %v6689_v21, %v10660_v13  ;;  %v6700_v1 = vadd.f32 %v6696_v6, %v10662_v58 }
0x75ed   :  { %6704 = vperm.xlu0 %8340, %v6699_v61  }
0x75f1   :  { %6707 = vperm.xlu0 %8340, %v6700_v1  }
0x766c   :  { %v6705_v15 = vpop.permute.xlu0 %6704 }
0x766d   :  { %v6712_v10 = vrot.slane %v6705_v15, %v9616_v25 }
0x7670   :  { %v6708_v12 = vpop.permute.xlu0 %6707 }
0x7671   :  { %v6716_v50 = vrot.slane %v6708_v12, %v9616_v25 }
0x7673   :  { %v6717_v60 = vsel %vm443_vm3, %v6716_v50, %v6712_v10 }
0x7674   :  { %v6719_v62 = vsel %vm2353_vm6, %v6717_v60, -inf }
0x7675   :  { %6720 = vmax.xlane.f32.xlu0 %v6719_v62 }
0x7702   :  { %v6721_v41 = vpop.xlane.xlu0 %6720 }
0x7703   :  { %v6726_v8 = vrot.slane %v6721_v41, %v9076_v4  ;;  %v6730_v57 = vrot.slane %v6721_v41, %v9079_v5 }
0x7705   :  { %vm6733_vm0 = vcmp.ge.f32.partialorder %v6699_v61, %v6726_v8  ;;  %vm6734_vm12 = vcmp.ge.f32.partialorder %v6700_v1, %v6730_v57 }
0x7706   :  { %v6735_v11 = vsel %vm6733_vm0, %v9726_v19, 8  ;;  %v6736_v7 = vsel %vm6734_vm12, %v9726_v19, 8  ;;  %vm7468_vm12 = vcmask 48128  }
0x7707   :  { %6738 = vperm.xlu1 %8341, %v6735_v11  }
0x770b   :  { %6741 = vperm.xlu1 %8341, %v6736_v7  }
0x7786   :  { %v6739_v34 = vpop.permute.xlu1 %6738 }
0x7787   :  { %v6746_v17 = vrot.slane %v6739_v34, %v9616_v25 }
0x778a   :  { %v6742_v33 = vpop.permute.xlu1 %6741 }
0x778b   :  { %v6750_v24 = vrot.slane %v6742_v33, %v9616_v25 }
0x778d   :  { %v6751_v27 = vsel %vm443_vm3, %v6750_v24, %v6746_v17 }
0x778e   :  { %v6752_v53 = vsel %vm2353_vm6, %v6751_v27, 2147483647 }
0x778f   :  { %v6754_v20 = vshra.s32 %v6752_v53, 16  ;;  %v6753_v35 = vand.u32 65535, %v6752_v53 }
0x7791   :  { %v6756_v63 = vcvt.s32.f32 %v6754_v20  ;;  %v6755_v21 = vcvt.s32.f32 %v6753_v35 }
0x7793   :  { %6757 = vmin.xlane.f32.xlu1 %v6756_v63 }
0x7820   :  { %v6758_v2 = vpop.xlane.xlu1 %6757 }
0x7821   :  { %vm6759_vm0 = vcmp.eq.f32.partialorder %v6756_v63, %v6758_v2  ;;  %v6764_v6 = vcvt.f32.s32 %v6758_v2 }
0x7822   :  { %v6760_v61 = vsel %vm6759_vm0, %v6755_v21, inf }
0x7823   :  { %6761 = vmin.xlane.f32.xlu0 %v6760_v61  ;;  %v6765_v15 = vshll.u32 %v6764_v6, 16 }
0x78b0   :  { %v6762_v1 = vpop.xlane.xlu0 %6761 }
0x78b1   :  { %v6763_v12 = vcvt.f32.s32 %v6762_v1 }
0x78b3   :  { %v10678_v10 = vadd.s32 %v6765_v15, %v6763_v12 }
0x78b5   :  { %v6791_v50 = vcvt.s32.f32 %v10678_v10  ;;  %v10684_v60 = vsel %vm7468_vm12, %v10521_v59, %v10678_v10  ;;  %vm6767_vm0 = vcmp.eq.s32.totalorder %v9585_v52, %v10678_v10 }
0x78b7   :  { %v6792_v62 = vmul.f32 %v10523_v0, %v6791_v50 }
0x78b9   :  { %v6863_v41 = vadd.f32 %v10567_v48, %v6792_v62 }
0x78bb   :  { %v6864_v8 = vadd.f32 %v10530_v16, %v6863_v41 }
0x78bd   :  { %8682 = vtanh.f32 %v6864_v8  ;;  %v6865_v11 = vsub.f32 0.0, %v6864_v8 }
0x78bf   :  { %v6866_v7 = vmul.f32 1.442695, %v6865_v11 }
0x78c1   :  { %8684 = vpow2.f32 %v6866_v7 }
0x78c7   :  { %v8683_v57 = vpop.eup %8682 }
0x78c8   :  { %6874 = vrot.lane.b32.xlu0 %v8683_v57, %s8894_s5 }
0x78cb   :  { %v8685_v34 = vpop.eup %8684 }
0x78cc   :  { %v6868_v33 = vadd.f32 1.0, %v8685_v34  ;;  %v6768_v34 = vsel %vm6767_vm0, 0.0, %v10585_v31 }
0x78ce   :  { %8686 = vrcp.f32 %v6868_v33  ;;  %v7011_v33 = vsub.f32 1.0, %v6768_v34 }
0x78d8   :  { %v8687_v17 = vpop.eup %8686 }
0x78d9   :  { %v6872_v0 = vmul.f32 %v8687_v17, %v10536_v22 }
0x793a   :  { %v6875_v24 = vpop.permute.xlu0 %6874 }
0x793b   :  { %v6877_v59 = vmul.f32 %v8687_v17, %v6875_v24 }
0x793d   :  { %6879 = vrot.lane.b32.xlu1 %v6877_v59, %s8895_s22 }
0x79af   :  { %v6880_v48 = vpop.permute.xlu1 %6879 }
0x79b0   :  { %v6882_v27 = vadd.f32 %v6880_v48, %v6872_v0 }
0x79b2   :  { %8688 = vtanh.f32 %v6882_v27 }
0x79bc   :  { %v8689_v16 = vpop.eup %8688 }
0x79bd   :  { %6885 = vrot.lane.b32.xlu0 %v8689_v16, %s8894_s5 }
0x7a2f   :  { %v6886_v53 = vpop.permute.xlu0 %6885 }
0x7a30   :  { %v10693_v20 = vmul.f32 %v8687_v17, %v6886_v53  ;;  %v7012_v17 = vmul.f32 1e+10, %v7011_v33 }
0x7a32   :  { %6890 = vrot.lane.b32.xlu0 %v10693_v20, %s8895_s22  ;;  %v7024_v24 = vrot.slane %v7012_v17, %v9079_v5  ;;  %v7017_v59 = vrot.slane %v7012_v17, %v9076_v4 }
0x7aa4   :  { %v10697_v63 = vpop.permute.xlu0 %6890 }
0x7aa5   :  { %8104 = vmatmul.mubr.msk.f32.vlgmr.msra.gmra.mrb[32].mxu0 %vm161_vm1, %v10697_v63 }
0x7b78   :  { %v6960_v35 = vpop.f32.mrb[32].mxu0 }
0x7b79   :  { %v6971_v22 = vrot.slane %v6960_v35, %v9200_v55  ;;  %v8105_v2 = vpop.f32.mrb[33].mxu0 }
0x7b7b   :  { %v6972_v21 = vcombine.high %v6971_v22, %v6971_v22  ;;  %v6979_v61 = vrot.slane %v6971_v22, %v9200_v55 }
0x7b7d   :  { %v6986_v6 = vrot.slane %v6972_v21, %v9200_v55  ;;  %v6990_v1 = vrot.slane %v6979_v61, %v9076_v4 }
0x7b7f   :  { %v6994_v15 = vrot.slane %v6986_v6, %v9076_v4  ;;  %v6997_v12 = vadd.f32 %v6990_v1, %v9523_v45 }
0x7b81   :  { %v6998_v50 = vadd.f32 %v9521_v56, %v6994_v15  ;;  %8690 = vtanh.f32 %v6997_v12 }
0x7b83   :  { %8692 = vtanh.f32 %v6998_v50 }
0x7b8b   :  { %v8691_v62 = vpop.eup %8690 }
0x7b8c   :  { %v7001_v41 = vmul.f32 %v10573_v40, %v8691_v62 }
0x7b8d   :  { %v8693_v8 = vpop.eup %8692 }
0x7b8e   :  { %v7003_v57 = vsel %vm161_vm1, %v7001_v41, 0.0  ;;  %v7002_v11 = vmul.f32 %v10573_v40, %v8693_v8 }
0x7b8f   :  { %7004 = vadd.xlane.f32.xlu1 %v7003_v57 }
0x7b90   :  { %v7006_v7 = vsel %vm161_vm1, %v7002_v11, 0.0 }
0x7b91   :  { %7007 = vadd.xlane.f32.xlu0 %v7006_v7 }
0x7ba0   :  { %7026 = vbcast.lane.b32.xlu1 %v7024_v24, 256 }
0x7ba7   :  { %7019 = vbcast.lane.b32.xlu0 %v7017_v59, 256 }
0x7c1c   :  { %v7005_v40 = vpop.xlane.xlu1 %7004 }
0x7c1d   :  { %v7009_v16 = vadd.f32 %v7005_v40, %v9606_v49 }
0x7c1e   :  { %v7008_v0 = vpop.xlane.xlu0 %7007 }
0x7c1f   :  { %v7010_v48 = vadd.f32 %v7008_v0, %v9606_v49 }
0x7c20   :  { %v10721_v27 = vpop.permute.xlu1 %7026 }
0x7c21   :  { %v7031_v53 = vsub.f32 %v7010_v48, %v10721_v27 }
0x7c22   :  { %v10725_v35 = vpop.permute.xlu0 %7019 }
0x7c23   :  { %v7030_v31 = vsub.f32 %v7009_v16, %v10725_v35  ;;  %7038 = vperm.xlu0 %8340, %v7031_v53  }
0x7c25   :  { %7035 = vperm.xlu1 %8341, %v7030_v31  }
0x7ca2   :  { %v7039_v22 = vpop.permute.xlu0 %7038 }
0x7ca3   :  { %v7047_v21 = vrot.slane %v7039_v22, %v9616_v25 }
0x7ca4   :  { %v7036_v2 = vpop.permute.xlu1 %7035 }
0x7ca5   :  { %v7043_v61 = vrot.slane %v7036_v2, %v9616_v25  ;;  %v7132_v2 = vrot.slane %v10693_v20, 1 }
0x7ca7   :  { %v7048_v6 = vsel %vm443_vm3, %v7047_v21, %v7043_v61 }
0x7ca8   :  { %v7050_v1 = vsel %vm2353_vm6, %v7048_v6, -inf }
0x7ca9   :  { %7051 = vmax.xlane.f32.xlu1 %v7050_v1 }
0x7d36   :  { %v7052_v49 = vpop.xlane.xlu1 %7051 }
0x7d37   :  { %v7057_v15 = vrot.slane %v7052_v49, %v9076_v4  ;;  %v7061_v12 = vrot.slane %v7052_v49, %v9079_v5 }
0x7d39   :  { %v7064_v50 = vsub.f32 %v7030_v31, %v7057_v15  ;;  %v7065_v62 = vsub.f32 %v7031_v53, %v7061_v12 }
0x7d3b   :  { %v7066_v41 = vmul.f32 1.442695, %v7064_v50  ;;  %v7068_v8 = vmul.f32 1.442695, %v7065_v62 }
0x7d3d   :  { %8694 = vpow2.f32 %v7066_v41 }
0x7d3e   :  { %8696 = vpow2.f32 %v7068_v8 }
0x7d47   :  { %v8695_v57 = vpop.eup %8694 }
0x7d48   :  { %7073 = vperm.xlu0 %8340, %v8695_v57   ;;  %v8697_v11 = vpop.eup %8696 }
0x7d4c   :  { %7076 = vperm.xlu0 %8340, %v8697_v11  }
0x7dc7   :  { %v7074_v7 = vpop.permute.xlu0 %7073 }
0x7dc8   :  { %v7081_v33 = vrot.slane %v7074_v7, %v9616_v25 }
0x7dcb   :  { %v7077_v34 = vpop.permute.xlu0 %7076 }
0x7dcc   :  { %v7085_v17 = vrot.slane %v7077_v34, %v9616_v25 }
0x7dce   :  { %v7086_v24 = vsel %vm443_vm3, %v7085_v17, %v7081_v33 }
0x7dcf   :  { %v7088_v59 = vsel %vm2353_vm6, %v7086_v24, 0.0 }
0x7dd0   :  { %7089 = vadd.xlane.f32.xlu0 %v7088_v59 }
0x7e5d   :  { %v7090_v40 = vpop.xlane.xlu0 %7089 }
0x7e5e   :  { %v7095_v0 = vrot.slane %v7090_v40, %v9076_v4  ;;  %v7099_v48 = vrot.slane %v7090_v40, %v9079_v5 }
0x7e60   :  { %8698 = vrcp.f32 %v7095_v0 }
0x7e61   :  { %8700 = vrcp.f32 %v7099_v48 }
0x7e6a   :  { %v8699_v16 = vpop.eup %8698 }
0x7e6b   :  { %v8701_v53 = vpop.eup %8700  ;;  %v7103_v31 = vmul.f32 %v8699_v16, %v8695_v57 }
0x7e6c   :  { %v7105_v22 = vmul.f32 %v8701_v53, %v8697_v11 }
0x7e6d   :  { %7108 = vperm.xlu0 %8340, %v7103_v31  }
0x7e6e   :  { %7113 = vperm.xlu1 %8341, %v7105_v22  }
0x7e72   :  { %7133 = vrot.lane.b32.xlu1 %v7132_v2, %s8895_s22 }
0x7eec   :  { %v7109_v21 = vpop.permute.xlu0 %7108 }
0x7eed   :  { %v7114_v61 = vpop.permute.xlu1 %7113  ;;  %v7116_v6 = vmul.f32 %v7109_v21, %v9501_v28 }
0x7eee   :  { %v7117_v1 = vmul.f32 %v7114_v61, %v9506_v39 }
0x7eef   :  { %v7118_v49 = vsel %vm161_vm1, %v7116_v6, 0.0 }
0x7ef0   :  { %v7125_v15 = vsel %vm161_vm1, %v7117_v1, 0.0  ;;  %v7119_v12 = vrot.slane %v7118_v49, 4 }
0x7ef1   :  { %v7126_v50 = vrot.slane %v7125_v15, 4  ;;  %v7134_v24 = vpop.permute.xlu1 %7133 }
0x7ef2   :  { %v7120_v62 = vadd.f32 %v7119_v12, %v7118_v49 }
0x7ef3   :  { %v7127_v41 = vadd.f32 %v7126_v50, %v7125_v15 }
0x7ef4   :  { %v7121_v8 = vrot.slane %v7120_v62, 2 }
0x7ef5   :  { %v7128_v57 = vrot.slane %v7127_v41, 2 }
0x7ef6   :  { %v7122_v11 = vadd.f32 %v7121_v8, %v7120_v62 }
0x7ef7   :  { %v7129_v20 = vadd.f32 %v7128_v57, %v7127_v41 }
0x7ef8   :  { %v7123_v7 = vrot.slane %v7122_v11, 1 }
0x7ef9   :  { %v7130_v34 = vrot.slane %v7129_v20, 1 }
0x7efa   :  { %v7124_v33 = vadd.f32 %v7123_v7, %v7122_v11 }
0x7efb   :  { %v7131_v17 = vadd.f32 %v7130_v34, %v7129_v20 }
0x7efc   :  { %v7137_v39 = vadd.f32 %v7124_v33, %v10697_v63 }
0x7efd   :  { %v7138_v28 = vadd.f32 %v7134_v24, %v7131_v17 }
0x7eff   :  { %v7141_v59 = vrot.slane %v7138_v28, 7 }
0x7f01   :  { %v7142_v40 = vsel %vm443_vm3, %v7141_v59, %v7137_v39 }
0x7f02   :  { %8115 = vmatmul.mubr.msk.f32.vlgmr.msra.gmra.mrb[32].mxu1 %vm161_vm1, %v7142_v40 }
0x7fd5   :  { %v7211_v0 = vpop.f32.mrb[32].mxu1 }
0x7fd6   :  { %v7222_v48 = vrot.slane %v7211_v0, %v9200_v55  ;;  %v8116_v16 = vpop.f32.mrb[33].mxu1 }
0x7fd8   :  { %v7223_v53 = vcombine.high %v7222_v48, %v7222_v48  ;;  %v7230_v31 = vrot.slane %v7222_v48, %v9200_v55 }
0x7fda   :  { %v7237_v22 = vrot.slane %v7223_v53, %v9200_v55  ;;  %v7241_v2 = vrot.slane %v7230_v31, %v9076_v4  ;;  %v137_v53 = vld [vmem:[%s10958_s12 + $0xe] sm:$0x3] }
0x7fdb   :  { %v7354_v31 = vrot.slane %v137_v53, %v9076_v4 }
0x7fdc   :  { %7246 = vrot.lane.b32.xlu1 %v7241_v2, %s8895_s22  ;;  %v7245_v63 = vrot.slane %v7237_v22, %v9076_v4 }
0x7fe0   :  { %7248 = vrot.lane.b32.xlu1 %v7245_v63, %s8895_s22 }
0x804e   :  { %v7247_v21 = vpop.permute.xlu1 %7246 }
0x804f   :  { %v7252_v61 = vadd.f32 %v7247_v21, %v9523_v45 }
0x8051   :  { %8702 = vtanh.f32 %v7252_v61 }
0x8052   :  { %v7249_v6 = vpop.permute.xlu1 %7248 }
0x8053   :  { %v7253_v1 = vadd.f32 %v9521_v56, %v7249_v6 }
0x8055   :  { %8704 = vtanh.f32 %v7253_v1  ;;  %v7361_v1 = vrot.slane %v137_v53, %v9079_v5 }
0x805b   :  { %v8703_v49 = vpop.eup %8702 }
0x805c   :  { %v7256_v15 = vmul.f32 %v8703_v49, %v9682_v23 }
0x805e   :  { %7260 = vrot.lane.b32.xlu0 %v7256_v15, %s8897_s24 }
0x805f   :  { %v8705_v55 = vpop.eup %8704 }
0x8060   :  { %v7257_v12 = vmul.f32 %v8705_v55, %v9682_v23 }
0x8062   :  { %7262 = vrot.lane.b32.xlu1 %v7257_v12, %s8897_s24  ;;  %s8899_s24 = smov [#allocation14]  }
0x8063   :  { %s7501_s1 = sshll.u32 %s8899_s24, 4  ;;  %s7502_s1 = int_to_ptr.vmem [resolvable:$true] %s7501_s1 }
0x8064   :  { %s8832_s12 = scalar_lea.vmem %s7502_s1, 32  ;;  %p8837_p13 = scmp.lt.s32.totalorder %s7502_s1, %s7502_s1 }
0x8065   :  { %p8833_p12 = scmp.ne.s32.totalorder %s7502_s1, %s8832_s12  ;;  %p8838_p0 = scmp.lt.s32.totalorder %s8832_s12, %s8832_s12 }
0x8067   :  { %p8839_p1 = por %p8838_p0, %p8837_p13 }
0x8069   :  { %p8840_p2 = pnand %p8839_p1, %p8833_p12 }
0x80d0   :  { %v7261_v50 = vpop.permute.xlu0 %7260 }
0x80d1   :  { %v7266_v62 = vsel %vm161_vm1, %v7261_v50, 0.0 }
0x80d2   :  { %7267 = vadd.xlane.f32.xlu0 %v7266_v62 }
0x80d4   :  { %v7263_v45 = vpop.permute.xlu1 %7262 }
0x80d5   :  { %v7269_v41 = vsel %vm161_vm1, %v7263_v45, 0.0 }
0x80d6   :  { %7270 = vadd.xlane.f32.xlu1 %v7269_v41 }
0x815f   :  { %v7268_v56 = vpop.xlane.xlu0 %7267 }
0x8160   :  { %v7272_v8 = vadd.f32 %v7268_v56, %v9690_v3 }
0x8162   :  { %v7274_v57 = vsub.f32 %v7272_v8, %v10725_v35 }
0x8163   :  { %v7271_v11 = vpop.xlane.xlu1 %7270 }
0x8164   :  { %v7273_v20 = vadd.f32 %v7271_v11, %v9690_v3  ;;  %7279 = vperm.xlu0 %8340, %v7274_v57  }
0x8166   :  { %v7275_v23 = vsub.f32 %v7273_v20, %v10721_v27 }
0x8168   :  { %7282 = vperm.xlu1 %8341, %v7275_v23  }
0x81e3   :  { %v7280_v7 = vpop.permute.xlu0 %7279 }
0x81e4   :  { %v7287_v33 = vrot.slane %v7280_v7, %v9616_v25 }
0x81e7   :  { %v7283_v34 = vpop.permute.xlu1 %7282 }
0x81e8   :  { %v7291_v17 = vrot.slane %v7283_v34, %v9616_v25 }
0x81ea   :  { %v7292_v24 = vsel %vm443_vm3, %v7291_v17, %v7287_v33 }
0x81eb   :  { %v7294_v28 = vsel %vm2353_vm6, %v7292_v24, -inf }
0x81ec   :  { %7295 = vmax.xlane.f32.xlu0 %v7294_v28 }
0x8202   :  { %7356 = vbcast.lane.b32.xlu0 %v7354_v31, 256 }
0x8279   :  { %v7296_v39 = vpop.xlane.xlu0 %7295 }
0x827a   :  { %v7301_v35 = vrot.slane %v7296_v39, %v9076_v4  ;;  %v7305_v3 = vrot.slane %v7296_v39, %v9079_v5 }
0x827c   :  { %v7308_v59 = vsub.f32 %v7274_v57, %v7301_v35  ;;  %v7309_v40 = vsub.f32 %v7275_v23, %v7305_v3 }
0x827d   :  { %v7357_v62 = vpop.permute.xlu0 %7356 }
0x827e   :  { %v7310_v27 = vmul.f32 1.442695, %v7308_v59  ;;  %v7312_v0 = vmul.f32 1.442695, %v7309_v40 }
0x8280   :  { %8706 = vpow2.f32 %v7310_v27 }
0x8281   :  { %8708 = vpow2.f32 %v7312_v0 }
0x828a   :  { %v8707_v48 = vpop.eup %8706 }
0x828b   :  { %7317 = vperm.xlu1 %8341, %v8707_v48   ;;  %v8709_v16 = vpop.eup %8708 }
0x828f   :  { %7320 = vperm.xlu1 %8341, %v8709_v16  }
0x830a   :  { %v7318_v22 = vpop.permute.xlu1 %7317 }
0x830b   :  { %v7325_v63 = vrot.slane %v7318_v22, %v9616_v25 }
0x830e   :  { %v7321_v2 = vpop.permute.xlu1 %7320 }
0x830f   :  { %v7329_v21 = vrot.slane %v7321_v2, %v9616_v25 }
0x8311   :  { %v7330_v61 = vsel %vm443_vm3, %v7329_v21, %v7325_v63 }
0x8312   :  { %v7332_v6 = vsel %vm2353_vm6, %v7330_v61, 0.0 }
0x8313   :  { %7333 = vadd.xlane.f32.xlu1 %v7332_v6 }
0x8324   :  { %7363 = vbcast.lane.b32.xlu1 %v7361_v1, 256 }
0x8328   :  { %2767 = vperm.xlu1 %8341, %v9716_v44  }
0x83a0   :  { %v7334_v49 = vpop.xlane.xlu1 %7333 }
0x83a1   :  { %8710 = vlog2.f32 %v7334_v49 }
0x83a4   :  { %v7364_v8 = vpop.permute.xlu1 %7363 }
0x83a8   :  { %v2768_v7 = vpop.permute.xlu1 %2767 }
0x83a9   :  { %v2776_v24 = vrot.slane %v2768_v7, %v9616_v25 }
0x83ab   :  { %v8711_v15 = vpop.eup %8710 }
0x83ac   :  { %v7336_v55 = vmul.f32 0.6931472, %v8711_v15 }
0x83ae   :  { %v7345_v12 = vrot.slane %v7336_v55, %v9079_v5  ;;  %v7341_v50 = vrot.slane %v7336_v55, %v9076_v4 }
0x83b0   :  { %v10786_v45 = vsub.f32 %v7308_v59, %v7341_v50  ;;  %v10788_v41 = vsub.f32 %v7309_v40, %v7345_v12 }
0x83b2   :  { %v7367_v56 = vadd.f32 %v7357_v62, %v10786_v45  ;;  %v7368_v57 = vadd.f32 %v7364_v8, %v10788_v41 }
0x83b4   :  { %7372 = vperm.xlu0 %8340, %v7367_v56  }
0x83b8   :  { %7375 = vperm.xlu0 %8340, %v7368_v57  }
0x83bc   :  { %2764 = vperm.xlu0 %8340, %v9714_v43  }
0x8433   :  { %v7373_v44 = vpop.permute.xlu0 %7372 }
0x8434   :  { %v7380_v20 = vrot.slane %v7373_v44, %v9616_v25 }
0x8437   :  { %v7376_v11 = vpop.permute.xlu0 %7375 }
0x8438   :  { %v7384_v23 = vrot.slane %v7376_v11, %v9616_v25 }
0x843a   :  { %v7385_v34 = vsel %vm443_vm3, %v7384_v23, %v7380_v20 }
0x843b   :  { %v2765_v33 = vpop.permute.xlu0 %2764  ;;  %v7387_v17 = vsel %vm2353_vm6, %v7385_v34, -inf }
0x843c   :  { %v2772_v28 = vrot.slane %v2765_v33, %v9616_v25  ;;  %7388 = vmax.xlane.f32.xlu1 %v7387_v17 }
0x843e   :  { %v2777_v39 = vsel %vm443_vm3, %v2776_v24, %v2772_v28 }
0x843f   :  { %v2779_v43 = vsel %vm2759_vm10, %v2777_v39, 0.0 }
0x8440   :  { %v2780_v35 = vsel %vm2353_vm6, %v2779_v43, 0.0 }
0x8441   :  { %2781 = vadd.xlane.f32.xlu0 %v2780_v35 }
0x844d   :  { %3435 = vperm.xlu1 %8341, %v9866_v18  }
0x8451   :  { %4100 = vperm.xlu1 %8341, %v10024_v36  }
0x8455   :  { %4103 = vperm.xlu1 %8341, %v10026_v29  }
0x8457   :  { %3432 = vperm.xlu0 %8340, %v9864_v46  }
0x84c9   :  { %v7389_v3 = vpop.xlane.xlu1 %7388 }
0x84ca   :  { %v7394_v59 = vrot.slane %v7389_v3, %v9076_v4  ;;  %v7398_v40 = vrot.slane %v7389_v3, %v9079_v5 }
0x84cc   :  { %vm7401_vm1 = vcmp.ge.f32.partialorder %v7367_v56, %v7394_v59  ;;  %vm7402_vm10 = vcmp.ge.f32.partialorder %v7368_v57, %v7398_v40  ;;  %v10962_v40 = vmov 0  }
0x84cd   :  { %v7403_v38 = vsel %vm7401_vm1, %v9726_v19, 8  ;;  %v7404_v27 = vsel %vm7402_vm10, %v9726_v19, 8  ;;  %v3436_v18 = vpop.permute.xlu1 %3435 }
0x84ce   :  { %7406 = vperm.xlu1 %8341, %v7403_v38   ;;  %v2782_v0 = vpop.xlane.xlu0 %2781  ;;  %v3444_v29 = vrot.slane %v3436_v18, %v9616_v25  ;;  %v1956_v38 = vsel %vm1955_vm5, 1, %v10962_v40 }
0x84d1   :  { %v4101_v16 = vpop.permute.xlu1 %4100 }
0x84d2   :  { %7409 = vperm.xlu1 %8341, %v7404_v27   ;;  %v4108_v31 = vrot.slane %v4101_v16, %v9616_v25 }
0x84d5   :  { %v4104_v53 = vpop.permute.xlu1 %4103 }
0x84d6   :  { %v3433_v36 = vpop.permute.xlu0 %3432  ;;  %v4112_v19 = vrot.slane %v4104_v53, %v9616_v25 }
0x84d7   :  { %v3440_v46 = vrot.slane %v3433_v36, %v9616_v25 }
0x84d8   :  { %v4113_v22 = vsel %vm443_vm3, %v4112_v19, %v4108_v31 }
0x84d9   :  { %v3445_v48 = vsel %vm443_vm3, %v3444_v29, %v3440_v46  ;;  %v4115_v2 = vsel %vm4095_vm9, %v4113_v22, 0.0 }
0x84da   :  { %v3447_v4 = vsel %vm3427_vm14, %v3445_v48, 0.0  ;;  %v4116_v37 = vsel %vm2353_vm6, %v4115_v2, 0.0 }
0x84db   :  { %v3448_v5 = vsel %vm2353_vm6, %v3447_v4, 0.0 }
0x84dc   :  { %3449 = vadd.xlane.f32.xlu0 %v3448_v5 }
0x84f2   :  { %4768 = vperm.xlu0 %8340, %v10179_v47  }
0x84f6   :  { %4117 = vadd.xlane.f32.xlu1 %v4116_v37 }
0x8507   :  { %4771 = vperm.xlu1 %8341, %v10181_v51  }
0x850b   :  { %5436 = vperm.xlu1 %8341, %v10344_v42  }
0x854d   :  { %v7407_v63 = vpop.permute.xlu1 %7406 }
0x854e   :  { %v7414_v61 = vrot.slane %v7407_v63, %v9616_v25 }
0x8551   :  { %v7410_v21 = vpop.permute.xlu1 %7409 }
0x8552   :  { %v7418_v6 = vrot.slane %v7410_v21, %v9616_v25 }
0x8554   :  { %v7419_v1 = vsel %vm443_vm3, %v7418_v6, %v7414_v61 }
0x8555   :  { %v7420_v47 = vsel %vm2353_vm6, %v7419_v1, 2147483647 }
0x8556   :  { %v7422_v49 = vshra.s32 %v7420_v47, 16  ;;  %v7421_v11 = vand.u32 65535, %v7420_v47 }
0x8558   :  { %v7424_v32 = vcvt.s32.f32 %v7422_v49  ;;  %v7423_v23 = vcvt.s32.f32 %v7421_v11 }
0x855a   :  { %7425 = vmin.xlane.f32.xlu1 %v7424_v32 }
0x8569   :  { %v3450_v15 = vpop.xlane.xlu0 %3449 }
0x856a   :  { %v7472_v51 = vsel %vm7458_vm7, %v2782_v0, %v3450_v15  ;;  %vm7470_vm7 = vcmask 56320  }
0x856b   :  { %6104 = vperm.xlu1 %8341, %v10497_v30  }
0x8571   :  { %v4769_v12 = vpop.permute.xlu0 %4768 }
0x8572   :  { %v4776_v62 = vrot.slane %v4769_v12, %v9616_v25 }
0x8583   :  { %v4118_v55 = vpop.xlane.xlu1 %4117 }
0x8584   :  { %v7473_v42 = vsel %vm7460_vm8, %v7472_v51, %v4118_v55 }
0x8587   :  { %v4772_v50 = vpop.permute.xlu1 %4771 }
0x8588   :  { %v4780_v56 = vrot.slane %v4772_v50, %v9616_v25 }
0x858a   :  { %v4781_v8 = vsel %vm443_vm3, %v4780_v56, %v4776_v62 }
0x858b   :  { %v4783_v57 = vsel %vm4763_vm2, %v4781_v8, 0.0  ;;  %v5437_v44 = vpop.permute.xlu1 %5436 }
0x858c   :  { %v4784_v30 = vsel %vm2353_vm6, %v4783_v57, 0.0  ;;  %v5444_v54 = vrot.slane %v5437_v44, %v9616_v25 }
0x858d   :  { %4785 = vadd.xlane.f32.xlu0 %v4784_v30 }
0x85a3   :  { %5439 = vperm.xlu0 %8340, %v10346_v9  }
0x85e7   :  { %v7426_v20 = vpop.xlane.xlu1 %7425 }
0x85e8   :  { %vm7427_vm14 = vcmp.eq.f32.partialorder %v7424_v32, %v7426_v20  ;;  %v7432_v43 = vcvt.f32.s32 %v7426_v20 }
0x85e9   :  { %v7428_v7 = vsel %vm7427_vm14, %v7423_v23, inf }
0x85ea   :  { %7429 = vmin.xlane.f32.xlu1 %v7428_v7  ;;  %v7433_v3 = vshll.u32 %v7432_v43, 16 }
0x85fb   :  { %6775 = vperm.xlu1 %8341, %v10662_v58   ;;  %v6105_v58 = vpop.permute.xlu1 %6104 }
0x85fc   :  { %v6112_v29 = vrot.slane %v6105_v58, %v9616_v25 }
0x861a   :  { %v4786_v34 = vpop.xlane.xlu0 %4785 }
0x861b   :  { %v7474_v33 = vsel %vm7462_vm15, %v7473_v42, %v4786_v34 }
0x8622   :  { %v5440_v17 = vpop.permute.xlu0 %5439 }
0x8623   :  { %v5448_v24 = vrot.slane %v5440_v17, %v9616_v25 }
0x8625   :  { %v5449_v28 = vsel %vm443_vm3, %v5448_v24, %v5444_v54 }
0x8626   :  { %v5451_v9 = vsel %vm5431_vm4, %v5449_v28, 0.0 }
0x8627   :  { %v5452_v39 = vsel %vm2353_vm6, %v5451_v9, 0.0 }
0x8628   :  { %5453 = vadd.xlane.f32.xlu0 %v5452_v39 }
0x863e   :  { %6107 = vperm.xlu0 %8340, %v10499_v26  }
0x8642   :  { %6772 = vperm.xlu0 %8340, %v10660_v13   ;;  %v7570_v13 = vadd.s32 4294967295, %v1956_v38 }
0x8646   :  { %7439 = vperm.xlu0 %8340, %v10786_v45  }
0x864a   :  { %7442 = vperm.xlu0 %8340, %v10788_v41  }
0x8677   :  { %v7430_v35 = vpop.xlane.xlu1 %7429 }
0x8678   :  { %v7431_v59 = vcvt.f32.s32 %v7430_v35 }
0x867a   :  { %v7434_v27 = vadd.s32 %v7433_v3, %v7431_v59 }
0x867b   :  { %v6776_v48 = vpop.permute.xlu1 %6775 }
0x867c   :  { %v7471_v26 = vsel %vm7470_vm7, %v10684_v60, %v7434_v27  ;;  %v6784_v53 = vrot.slane %v6776_v48, %v9616_v25  ;;  %vm7435_vm5 = vcmp.eq.s32.totalorder %v9585_v52, %v7434_v27 }
0x867d   :  { %v7481_v0 = vmul.u32 %v7471_v26, %v1956_v38 }
0x867f   :  { %v7483_v45 = vadd.s32 %v7570_v13, %v7481_v0 }
0x8681   :  { %7484 = vst.msk [vmem:[#allocation14] sm:$0x3] %vm2353_vm6, %v7483_v45 }
0x86b5   :  { %v5454_v41 = vpop.xlane.xlu0 %5453 }
0x86b6   :  { %v7475_v18 = vsel %vm7464_vm13, %v7474_v33, %v5454_v41 }
0x86bd   :  { %v6108_v36 = vpop.permute.xlu0 %6107 }
0x86be   :  { %v6116_v46 = vrot.slane %v6108_v36, %v9616_v25 }
0x86c0   :  { %v6117_v4 = vsel %vm443_vm3, %v6116_v46, %v6112_v29 }
0x86c1   :  { %v6773_v5 = vpop.permute.xlu0 %6772  ;;  %v6119_v60 = vsel %vm6099_vm11, %v6117_v4, 0.0 }
0x86c2   :  { %v6780_v19 = vrot.slane %v6773_v5, %v9616_v25  ;;  %v6120_v31 = vsel %vm2353_vm6, %v6119_v60, 0.0 }
0x86c3   :  { %6121 = vadd.xlane.f32.xlu0 %v6120_v31 }
0x86c4   :  { %v6785_v22 = vsel %vm443_vm3, %v6784_v53, %v6780_v19 }
0x86c5   :  { %v7440_v2 = vpop.permute.xlu0 %7439  ;;  %v6787_v37 = vsel %vm6767_vm0, %v6785_v22, 0.0 }
0x86c6   :  { %v6788_v63 = vsel %vm2353_vm6, %v6787_v37, 0.0  ;;  %v7447_v61 = vrot.slane %v7440_v2, %v9616_v25 }
0x86c7   :  { %6789 = vadd.xlane.f32.xlu1 %v6788_v63 }
0x86c9   :  { %v7443_v21 = vpop.permute.xlu0 %7442 }
0x86ca   :  { %v7451_v6 = vrot.slane %v7443_v21, %v9616_v25 }
0x86cc   :  { %v7452_v1 = vsel %vm443_vm3, %v7451_v6, %v7447_v61 }
0x86cd   :  { %v7454_v47 = vsel %vm7435_vm5, %v7452_v1, 0.0 }
0x86ce   :  { %v7455_v49 = vsel %vm2353_vm6, %v7454_v47, 0.0 }
0x86cf   :  { %7456 = vadd.xlane.f32.xlu0 %v7455_v49 }
0x86d0   :  { %8843 = shalt.err (!%p8840_p2)
}
0x86d1   :  { %s8844_s3 = scalar_lea.hbm %s10932_s20, 32 }
0x86d2   :  { %p8845_p3 = scmp.ne.s32.totalorder %s10932_s20, %s8844_s3  ;;  %p8848_p4 = scmp.lt.u32.totalorder %s8844_s3, %s10932_s20 }
0x86d4   :  { %p8850_p5 = pnand %p8848_p4, %p8845_p3 }
0x86d6   :  { %8853 = shalt.err (!%p8850_p5)
}
0x86d7   :  { %7504 = dma.vmem_to_hbm [thread:$0]  %s7502_s1, 32, %s10932_s20, [#allocation15]   ;;  %vm10965_vm3 = vcmask 39936   ;;  %v10966_v55 = vld [vmem:[#allocation22_spill] sm:$0xff] }
0x86d8   :  { %s8900_s13 = smov [#allocation13]  }
0x86d9   :  { %s7491_s8 = sshll.u32 %s8900_s13, 4  ;;  %s7492_s8 = int_to_ptr.vmem [resolvable:$true] %s7491_s8 }
0x86da   :  { %s8854_s26 = scalar_lea.vmem %s7492_s8, 32  ;;  %p8859_p7 = scmp.lt.s32.totalorder %s7492_s8, %s7492_s8 }
0x86db   :  { %p8855_p6 = scmp.ne.s32.totalorder %s7492_s8, %s8854_s26  ;;  %p8860_p8 = scmp.lt.s32.totalorder %s8854_s26, %s8854_s26 }
0x86dd   :  { %p8861_p9 = por %p8860_p8, %p8859_p7 }
0x86df   :  { %p8862_p10 = pnand %p8861_p9, %p8855_p6 }
0x8750   :  { %v6122_v52 = vpop.xlane.xlu0 %6121 }
0x8751   :  { %v7476_v10 = vsel %vm10965_vm3, %v7475_v18, %v6122_v52 }
0x8754   :  { %v6790_v25 = vpop.xlane.xlu1 %6789 }
0x8755   :  { %v7477_v32 = vsel %vm7468_vm12, %v7476_v10, %v6790_v25 }
0x875c   :  { %v7457_v15 = vpop.xlane.xlu0 %7456 }
0x875d   :  { %v7478_v51 = vsel %vm7470_vm7, %v7477_v32, %v7457_v15 }
0x875e   :  { %v7479_v42 = vmul.f32 %v10966_v55, %v7478_v51 }
0x8760   :  { %7480 = vst.msk [vmem:[#allocation13] sm:$0x3] %vm2353_vm6, %v7479_v42 }
0x8761   :  { %8865 = shalt.err (!%p8862_p10)
}
0x8762   :  { %s8866_s18 = scalar_lea.hbm %s10931_s19, 32 }
0x8763   :  { %p8867_p11 = scmp.ne.s32.totalorder %s10931_s19, %s8866_s18  ;;  %p8870_p12 = scmp.lt.u32.totalorder %s8866_s18, %s10931_s19 }
0x8765   :  { %p8872_p13 = pnand %p8870_p12, %p8867_p11 }
0x8767   :  { %8875 = shalt.err (!%p8872_p13)
}
0x8768   :  { %7494 = dma.vmem_to_hbm [thread:$0]  %s7492_s8, 32, %s10931_s19, [#allocation6]  }
0x8769   :  { %8882 = dma.done.wait [#allocation6], 32  }
0x876a   :  { %8883 = vsyncadd [#allocation6], 4294967264 }
0x876b   :  { %8884 = dma.done.wait [#allocation15], 32  }
0x876c   :  { %8885 = vsyncadd [#allocation15], 4294967264 }
0x876d   :  { %7511 = vsyncpa [#allocation5], 1 }
0x876e   :  { %7512 = vsyncpa [#allocation8], 1 }
0x876f   :  { %7513 = vsyncpa [#allocation11], 1 }
0x8770   :  { %7514 = vsyncpa [#allocation6], 1 }
0x8771   :  { %7515 = vsyncpa [#allocation15], 1 }

</bundles_post_ra>
